<compile_context>
chip_gen: v5e
topology: v5e:2x2
jax: 0.10.0
libtpu: 0.0.40
codegen_flags: <defaults>
</compile_context>

<pallas_src>
import functools
import math

import jax
import jax.numpy as jnp
from jax.experimental import pallas as pl
from jax.experimental.pallas import tpu as pltpu

BN_EPS = 1e-5
_VMEM_LIMIT = 32 * 1024 * 1024   # comfortably above worst-case live set, <= defaults
_MAX_APPLY_ROWS = 2048           # row-tile cap for the lane-dense apply pass


def _compiler_params():
    return pltpu.CompilerParams(dimension_semantics=("parallel",),
                                vmem_limit_bytes=_VMEM_LIMIT)


def _largest_row_tile(rows, cap=_MAX_APPLY_ROWS):
    """Largest multiple-of-8 divisor of `rows` that is <= cap (rows % 8 == 0)."""
    d = min(rows, cap)
    d -= d % 8
    while d >= 8:
        if rows % d == 0:
            return d
        d -= 8
    return rows


# --------------------------------------------------------------------------- #
# Pallas kernels
# --------------------------------------------------------------------------- #
def _conv_stats_kernel(kh, kw, sh, ho, wo, x_ref, w_ref, y_ref, s_ref, ss_ref):
    """Implicit-im2col conv for one image + partial BN statistics.

    x_ref : (1, hp, wp, cin)   bf16 zero-padded input image
    w_ref : (kh*kw*cin, cout)  bf16 weights, tap-major layout
    y_ref : (1, ho, wo, cout)  bf16 pre-BN conv output
    s_ref / ss_ref : (1, 1, cout) f32 per-image sum / sum-of-squares of y
    """
    cout = y_ref.shape[-1]
    w_val = w_ref[...]                               # hoisted: loaded once per image

    def row_body(oh, carry):
        s, ss = carry
        pieces = []
        for dh in range(kh):                         # static unroll (<= 3)
            row = x_ref[0, oh * sh + dh]             # (wp, cin)
            for dw in range(kw):                     # static unroll (<= 3)
                pieces.append(row[dw:dw + wo, :])    # (wo, cin), static shift
        patch = pieces[0] if len(pieces) == 1 else jnp.concatenate(pieces, axis=-1)
        yrow = jnp.dot(patch, w_val, preferred_element_type=jnp.float32)  # (wo, cout)
        y_ref[0, oh] = yrow.astype(y_ref.dtype)
        s = s + jnp.sum(yrow, axis=0, keepdims=True)
        ss = ss + jnp.sum(yrow * yrow, axis=0, keepdims=True)
        return s, ss

    zero = jnp.zeros((1, cout), jnp.float32)
    s, ss = jax.lax.fori_loop(0, ho, row_body, (zero, zero))
    s_ref[0] = s
    ss_ref[0] = ss


def _bn_apply_kernel(apply_relu, has_residual, *refs):
    """Folded BatchNorm (y*scale + shift) [+ residual] [+ ReLU]; math in f32."""
    if has_residual:
        y_ref, sc_ref, sh_ref, r_ref, o_ref = refs
    else:
        y_ref, sc_ref, sh_ref, o_ref = refs
        r_ref = None
    y = y_ref[...].astype(jnp.float32) * sc_ref[...] + sh_ref[...]
    if has_residual:
        y = y + r_ref[...].astype(jnp.float32)
    if apply_relu:
        y = jnp.maximum(y, 0.0)
    o_ref[...] = y.astype(o_ref.dtype)


def _maxpool_kernel(sw, wo, c, x_ref, o_ref):
    """Fused 2x2 max-pool on one image.  x_ref: (1, ho, 2, W, C)."""
    x = x_ref[...].astype(jnp.float32)
    rm = jnp.maximum(x[:, :, 0], x[:, :, 1])         # max over the 2 row taps
    if sw == 2:
        # column pairs packed into lanes: C == 2*c
        o = jnp.maximum(rm[..., :c], rm[..., c:])
    else:
        # sw == 1: overlapping column windows (W == wo + 1)
        o = jnp.maximum(rm[:, :, 0:wo, :], rm[:, :, 1:wo + 1, :])
    o_ref[...] = o.astype(o_ref.dtype)


# --------------------------------------------------------------------------- #
# Wrappers
# --------------------------------------------------------------------------- #
def _bn_apply(y, scale, shift, *, residual, relu):
    """Apply folded BN (+residual)(+ReLU) to y (n,ho,wo,cout) bf16 -> bf16."""
    n, ho, wo, cout = y.shape
    m = n * ho * wo
    has_res = residual is not None
    kernel = functools.partial(_bn_apply_kernel, relu, has_res)
    bytes_acc = m * cout * 2 * (3 if has_res else 2) + 2 * cout * 4
    cost = pl.CostEstimate(flops=4 * m * cout, transcendentals=0,
                           bytes_accessed=bytes_acc)

    lane_dense = (cout < 128) and (128 % cout == 0) and ((m * cout) % 1024 == 0)
    if lane_dense:
        rows = (m * cout) // 128
        tile_r = _largest_row_tile(rows)
        reps = 128 // cout
        sc = jnp.tile(scale, reps).reshape(1, 128)
        sf = jnp.tile(shift, reps).reshape(1, 128)
        inputs = [y.reshape(rows, 128), sc, sf]
        in_specs = [pl.BlockSpec((tile_r, 128), lambda i: (i, 0)),
                    pl.BlockSpec((1, 128), lambda i: (0, 0)),
                    pl.BlockSpec((1, 128), lambda i: (0, 0))]
        if has_res:
            inputs.append(residual.astype(jnp.bfloat16).reshape(rows, 128))
            in_specs.append(pl.BlockSpec((tile_r, 128), lambda i: (i, 0)))
        out = pl.pallas_call(
            kernel,
            out_shape=jax.ShapeDtypeStruct((rows, 128), jnp.bfloat16),
            grid_spec=pltpu.PrefetchScalarGridSpec(
                num_scalar_prefetch=0,
                grid=(rows // tile_r,),
                in_specs=in_specs,
                out_specs=pl.BlockSpec((tile_r, 128), lambda i: (i, 0))),
            compiler_params=_compiler_params(),
            cost_estimate=cost,
        )(*inputs)
        return out.reshape(n, ho, wo, cout)

    # Fallback: whole image per grid step (no padding / relayout needed).
    sc = scale.reshape(1, 1, 1, cout)
    sf = shift.reshape(1, 1, 1, cout)
    inputs = [y, sc, sf]
    in_specs = [pl.BlockSpec((1, ho, wo, cout), lambda b: (b, 0, 0, 0)),
                pl.BlockSpec((1, 1, 1, cout), lambda b: (0, 0, 0, 0)),
                pl.BlockSpec((1, 1, 1, cout), lambda b: (0, 0, 0, 0))]
    if has_res:
        inputs.append(residual.astype(jnp.bfloat16))
        in_specs.append(pl.BlockSpec((1, ho, wo, cout), lambda b: (b, 0, 0, 0)))
    return pl.pallas_call(
        kernel,
        out_shape=jax.ShapeDtypeStruct((n, ho, wo, cout), jnp.bfloat16),
        grid_spec=pltpu.PrefetchScalarGridSpec(
            num_scalar_prefetch=0,
            grid=(n,),
            in_specs=in_specs,
            out_specs=pl.BlockSpec((1, ho, wo, cout), lambda b: (b, 0, 0, 0))),
        compiler_params=_compiler_params(),
        cost_estimate=cost,
    )(*inputs)


def conv_bn(x, p, *, stride=(1, 1), padding=(1, 1), relu=True, residual=None):
    """x: (N,H,W,Cin).  p: dict(w=(kh,kw,Cin,Cout) HWIO, gamma, beta).  -> bf16."""
    w, gamma, beta = p["w"], p["gamma"], p["beta"]
    n, h, wd, cin = x.shape
    kh, kw, _, cout = w.shape
    sh, sw = stride
    ph, pw = padding
    assert sw == 1, "conv kernel supports stride 1 along W (true for this model)"
    hp, wp = h + 2 * ph, wd + 2 * pw
    ho = (hp - kh) // sh + 1
    wo = wp - kw + 1
    m = n * ho * wo
    k = kh * kw * cin

    xp = jnp.pad(x.astype(jnp.bfloat16), ((0, 0), (ph, ph), (pw, pw), (0, 0)))
    w_mat = w.reshape(k, cout).astype(jnp.bfloat16)

    # ---- pass 1: implicit-im2col conv + per-image BN partial statistics ---- #
    flops = 2 * m * k * cout
    bytes_acc = (n * hp * wp * cin * 2 + k * cout * 2 + m * cout * 2
                 + 2 * n * cout * 4)
    y, s_part, ss_part = pl.pallas_call(
        functools.partial(_conv_stats_kernel, kh, kw, sh, ho, wo),
        out_shape=(jax.ShapeDtypeStruct((n, ho, wo, cout), jnp.bfloat16),
                   jax.ShapeDtypeStruct((n, 1, cout), jnp.float32),
                   jax.ShapeDtypeStruct((n, 1, cout), jnp.float32)),
        grid_spec=pltpu.PrefetchScalarGridSpec(
            num_scalar_prefetch=0,
            grid=(n,),
            in_specs=[pl.BlockSpec((1, hp, wp, cin), lambda b: (b, 0, 0, 0)),
                      pl.BlockSpec((k, cout), lambda b: (0, 0))],
            out_specs=(pl.BlockSpec((1, ho, wo, cout), lambda b: (b, 0, 0, 0)),
                       pl.BlockSpec((1, 1, cout), lambda b: (b, 0, 0)),
                       pl.BlockSpec((1, 1, cout), lambda b: (b, 0, 0)))),
        compiler_params=_compiler_params(),
        cost_estimate=pl.CostEstimate(flops=flops, transcendentals=0,
                                      bytes_accessed=bytes_acc),
    )(xp, w_mat)

    # ---- global BN batch statistics -> folded per-channel scale / shift ---- #
    total = jnp.sum(s_part[:, 0, :], axis=0)          # (cout,)
    total_sq = jnp.sum(ss_part[:, 0, :], axis=0)      # (cout,)
    mean = total / m
    var = jnp.maximum(total_sq / m - mean * mean, 0.0)
    scale = (gamma * jax.lax.rsqrt(var + BN_EPS)).astype(jnp.float32)
    shift = (beta - mean * scale).astype(jnp.float32)

    # ---- pass 2: apply scale/shift (+ residual) (+ ReLU) ------------------- #
    return _bn_apply(y, scale, shift, residual=residual, relu=relu)


def maxpool2d_k2(x, *, stride, padding):
    """MaxPool2d(kernel_size=2) on NHWC (floor mode, -inf padding), fused."""
    n, h, w, c = x.shape
    sh, sw = stride
    ph, pw = padding
    assert sh == 2 and ph == 0, "pools in this model: stride 2, no pad along H"
    ho = (h - 2) // 2 + 1
    wo = (w + 2 * pw - 2) // sw + 1
    x = x.astype(jnp.bfloat16)

    if sw == 2:
        assert pw == 0
        xt = x[:, :2 * ho, :2 * wo, :]
        xr = xt.reshape(n, ho, 2, wo, 2 * c)          # free, contiguous reshape
        wdim, cdim = wo, 2 * c
    else:  # sw == 1 (maxpool3): pad W with -inf, overlapping column windows
        wpad = w + 2 * pw
        xt = jnp.pad(x[:, :2 * ho, :, :],
                     ((0, 0), (0, 0), (pw, pw), (0, 0)),
                     constant_values=-jnp.inf)
        xr = xt.reshape(n, ho, 2, wpad, c)
        wdim, cdim = wpad, c

    cost = pl.CostEstimate(flops=3 * n * ho * wo * c, transcendentals=0,
                           bytes_accessed=(xr.size + n * ho * wo * c) * 2)
    return pl.pallas_call(
        functools.partial(_maxpool_kernel, sw, wo, c),
        out_shape=jax.ShapeDtypeStruct((n, ho, wo, c), jnp.bfloat16),
        grid_spec=pltpu.PrefetchScalarGridSpec(
            num_scalar_prefetch=0,
            grid=(n,),
            in_specs=[pl.BlockSpec((1, ho, 2, wdim, cdim),
                                   lambda b: (b, 0, 0, 0, 0))],
            out_specs=pl.BlockSpec((1, ho, wo, c), lambda b: (b, 0, 0, 0))),
        compiler_params=_compiler_params(),
        cost_estimate=cost,
    )(xr)


# --------------------------------------------------------------------------- #
# Model definition (BasicBlock ResNet, as in the reference module)
# --------------------------------------------------------------------------- #
def basic_block_forward(x, p):
    """BasicBlock: conv3x3-bn-relu -> conv3x3-bn -> (+residual) -> relu."""
    if "downsample" in p:
        residual = conv_bn(x, p["downsample"], stride=(1, 1), padding=(0, 0),
                           relu=False)
    else:
        residual = x
    out = conv_bn(x, p["conv1"], stride=(1, 1), padding=(1, 1), relu=True)
    out = conv_bn(out, p["conv2"], stride=(1, 1), padding=(1, 1), relu=True,
                  residual=residual)
    return out


def resnet_forward(x_nchw, params):
    x = jnp.transpose(x_nchw, (0, 2, 3, 1)).astype(jnp.bfloat16)  # NCHW -> NHWC

    x = conv_bn(x, params["conv0_1"], relu=True)
    x = conv_bn(x, params["conv0_2"], relu=True)
    x = maxpool2d_k2(x, stride=(2, 2), padding=(0, 0))

    for bp in params["layer1"]:
        x = basic_block_forward(x, bp)
    x = conv_bn(x, params["conv1"], relu=True)
    x = maxpool2d_k2(x, stride=(2, 2), padding=(0, 0))

    for bp in params["layer2"]:
        x = basic_block_forward(x, bp)
    x = conv_bn(x, params["conv2"], relu=True)
    x = maxpool2d_k2(x, stride=(2, 1), padding=(0, 1))

    for bp in params["layer3"]:
        x = basic_block_forward(x, bp)
    x = conv_bn(x, params["conv3"], relu=True)

    for bp in params["layer4"]:
        x = basic_block_forward(x, bp)
    x = conv_bn(x, params["conv4_1"], stride=(2, 1), padding=(0, 1), relu=True)
    x = conv_bn(x, params["conv4_2"], stride=(1, 1), padding=(0, 0), relu=True)

    return jnp.transpose(x, (0, 3, 1, 2)).astype(jnp.float32)  # NHWC -> NCHW


def init_params(key, input_channel, output_channel, layers):
    """Deterministic synthetic init. Conv weights HWIO; BN gamma=1, beta=0."""
    ocb = [output_channel // 4, output_channel // 2, output_channel, output_channel]
    inplanes = output_channel // 8
    keys = iter(jax.random.split(key, 64))

    def cb(cin, cout, kh=3, kw=3):
        kk = next(keys)
        fan_in = kh * kw * cin
        w = jax.random.normal(kk, (kh, kw, cin, cout), jnp.float32) / math.sqrt(fan_in)
        return {"w": w,
                "gamma": jnp.ones((cout,), jnp.float32),
                "beta": jnp.zeros((cout,), jnp.float32)}

    params = {}
    params["conv0_1"] = cb(input_channel, output_channel // 16)
    params["conv0_2"] = cb(output_channel // 16, inplanes)

    def make_layer(planes, blocks):
        nonlocal inplanes
        blks = []
        p = {}
        if inplanes != planes:  # expansion = 1, stride = 1 everywhere here
            p["downsample"] = cb(inplanes, planes, 1, 1)
        p["conv1"] = cb(inplanes, planes)
        p["conv2"] = cb(planes, planes)
        blks.append(p)
        inplanes = planes
        for _ in range(1, blocks):
            blks.append({"conv1": cb(inplanes, planes),
                         "conv2": cb(planes, planes)})
        return blks

    params["layer1"] = make_layer(ocb[0], layers[0])
    params["conv1"] = cb(ocb[0], ocb[0])
    params["layer2"] = make_layer(ocb[1], layers[1])
    params["conv2"] = cb(ocb[1], ocb[1])
    params["layer3"] = make_layer(ocb[2], layers[2])
    params["conv3"] = cb(ocb[2], ocb[2])
    params["layer4"] = make_layer(ocb[3], layers[3])
    params["conv4_1"] = cb(ocb[3], ocb[3], 2, 2)
    params["conv4_2"] = cb(ocb[3], ocb[3], 2, 2)
    return params


# --------------------------------------------------------------------------- #
if __name__ == "__main__":
    input_channel, output_channel = 4, 32
    layers = [1, 1, 1, 1]           # BasicBlock counts (small synthetic config)

    root = jax.random.PRNGKey(0)
    pkey, xkey = jax.random.split(root)
    params = init_params(pkey, input_channel, output_channel, layers)

    # NCHW input; imgH must be 32 for the conv4_* stages (as in the original model).
    x = jax.random.normal(xkey, (2, input_channel, 32, 16), jnp.float32)

    fwd = jax.jit(functools.partial(resnet_forward, params=params))
    out = fwd(x)
    jax.block_until_ready(out)

    assert out.shape == (2, output_channel, 1, 5), out.shape
    assert bool(jnp.all(jnp.isfinite(out)))
    print("KERNEL_OK")
</pallas_src>

<mosaic_0001>
module attributes {stable_mosaic.version = 11 : i64} {
  func.func @_conv_stats_kernel(%arg0: i32, %arg1: memref<1x34x18x4xbf16, #tpu.memory_space<vmem>>, %arg2: memref<36x2xbf16, #tpu.memory_space<vmem>>, %arg3: memref<1x32x16x2xbf16, #tpu.memory_space<vmem>>, %arg4: memref<1x1x2xf32, #tpu.memory_space<vmem>>, %arg5: memref<1x1x2xf32, #tpu.memory_space<vmem>>) attributes {dimension_semantics = [#tpu.dimension_semantics<parallel>], iteration_bounds = array<i64: 2>, scalar_prefetch = 0 : i64, scratch_operands = 0 : i64, tpu.core_type = #tpu.core_type<tc>, window_params = [{transform_indices = @transform_0, window_bounds = array<i64: 1, 34, 18, 4>}, {pipeline_mode = #tpu.pipeline_mode<synchronous>, transform_indices = @transform_1, window_bounds = array<i64: 36, 2>}, {transform_indices = @transform_2, window_bounds = array<i64: 1, 32, 16, 2>}, {transform_indices = @transform_3, window_bounds = array<i64: 1, 1, 2>}, {transform_indices = @transform_4, window_bounds = array<i64: 1, 1, 2>}]} {
    %c0 = arith.constant 0 : index
    %c0_0 = arith.constant 0 : index
    %0 = vector.load %arg2[%c0, %c0_0] : memref<36x2xbf16, #tpu.memory_space<vmem>>, vector<36x2xbf16>
    %cst = arith.constant 0.000000e+00 : f32
    %1 = vector.broadcast %cst : f32 to vector<1x2xf32>
    %c0_i32 = arith.constant 0 : i32
    %c32_i32 = arith.constant 32 : i32
    %2 = arith.addi %c0_i32, %c32_i32 : i32
    %c1_i32 = arith.constant 1 : i32
    %3:2 = scf.for %arg6 = %c0_i32 to %2 step %c1_i32 iter_args(%arg7 = %1, %arg8 = %1) -> (vector<1x2xf32>, vector<1x2xf32>)  : i32 {
      %c1_i32_8 = arith.constant 1 : i32
      %10 = arith.muli %arg6, %c1_i32_8 : i32
      %c0_i32_9 = arith.constant 0 : i32
      %11 = arith.addi %10, %c0_i32_9 : i32
      %c0_10 = arith.constant 0 : index
      %12 = arith.index_cast %11 : i32 to index
      %c0_11 = arith.constant 0 : index
      %c0_12 = arith.constant 0 : index
      %13 = vector.load %arg1[%c0_10, %12, %c0_11, %c0_12] : memref<1x34x18x4xbf16, #tpu.memory_space<vmem>>, vector<1x1x18x4xbf16>
      %14 = vector.shape_cast %13 : vector<1x1x18x4xbf16> to vector<18x4xbf16>
      %15 = vector.extract_strided_slice %14 {offsets = [0, 0], sizes = [16, 4], strides = [1, 1]} : vector<18x4xbf16> to vector<16x4xbf16>
      %16 = vector.extract_strided_slice %14 {offsets = [1, 0], sizes = [16, 4], strides = [1, 1]} : vector<18x4xbf16> to vector<16x4xbf16>
      %17 = vector.extract_strided_slice %14 {offsets = [2, 0], sizes = [16, 4], strides = [1, 1]} : vector<18x4xbf16> to vector<16x4xbf16>
      %c1_i32_13 = arith.constant 1 : i32
      %18 = arith.muli %arg6, %c1_i32_13 : i32
      %c1_i32_14 = arith.constant 1 : i32
      %19 = arith.addi %18, %c1_i32_14 : i32
      %c0_15 = arith.constant 0 : index
      %20 = arith.index_cast %19 : i32 to index
      %c0_16 = arith.constant 0 : index
      %c0_17 = arith.constant 0 : index
      %21 = vector.load %arg1[%c0_15, %20, %c0_16, %c0_17] : memref<1x34x18x4xbf16, #tpu.memory_space<vmem>>, vector<1x1x18x4xbf16>
      %22 = vector.shape_cast %21 : vector<1x1x18x4xbf16> to vector<18x4xbf16>
      %23 = vector.extract_strided_slice %22 {offsets = [0, 0], sizes = [16, 4], strides = [1, 1]} : vector<18x4xbf16> to vector<16x4xbf16>
      %24 = vector.extract_strided_slice %22 {offsets = [1, 0], sizes = [16, 4], strides = [1, 1]} : vector<18x4xbf16> to vector<16x4xbf16>
      %25 = vector.extract_strided_slice %22 {offsets = [2, 0], sizes = [16, 4], strides = [1, 1]} : vector<18x4xbf16> to vector<16x4xbf16>
      %c1_i32_18 = arith.constant 1 : i32
      %26 = arith.muli %arg6, %c1_i32_18 : i32
      %c2_i32 = arith.constant 2 : i32
      %27 = arith.addi %26, %c2_i32 : i32
      %c0_19 = arith.constant 0 : index
      %28 = arith.index_cast %27 : i32 to index
      %c0_20 = arith.constant 0 : index
      %c0_21 = arith.constant 0 : index
      %29 = vector.load %arg1[%c0_19, %28, %c0_20, %c0_21] : memref<1x34x18x4xbf16, #tpu.memory_space<vmem>>, vector<1x1x18x4xbf16>
      %30 = vector.shape_cast %29 : vector<1x1x18x4xbf16> to vector<18x4xbf16>
      %31 = vector.extract_strided_slice %30 {offsets = [0, 0], sizes = [16, 4], strides = [1, 1]} : vector<18x4xbf16> to vector<16x4xbf16>
      %32 = vector.extract_strided_slice %30 {offsets = [1, 0], sizes = [16, 4], strides = [1, 1]} : vector<18x4xbf16> to vector<16x4xbf16>
      %33 = vector.extract_strided_slice %30 {offsets = [2, 0], sizes = [16, 4], strides = [1, 1]} : vector<18x4xbf16> to vector<16x4xbf16>
      %34 = tpu.concatenate %15, %16, %17, %23, %24, %25, %31, %32, %33 in 1 : vector<16x4xbf16>, vector<16x4xbf16>, vector<16x4xbf16>, vector<16x4xbf16>, vector<16x4xbf16>, vector<16x4xbf16>, vector<16x4xbf16>, vector<16x4xbf16>, vector<16x4xbf16> -> vector<16x36xbf16>
      %cst_22 = arith.constant dense<0.000000e+00> : vector<16x2xf32>
      %35 = tpu.matmul %34, %0, %cst_22 {dimension_numbers = #tpu.dot_dimension_numbers<[1], [0], [0], [1], [0, 0, 1, 1], [], []>} : vector<16x36xbf16>, vector<36x2xbf16>, vector<16x2xf32> -> vector<16x2xf32>
      %36 = arith.truncf %35 : vector<16x2xf32> to vector<16x2xbf16>
      %c0_23 = arith.constant 0 : index
      %37 = arith.index_cast %arg6 : i32 to index
      %c0_24 = arith.constant 0 : index
      %c0_25 = arith.constant 0 : index
      %38 = vector.load %arg3[%c0_23, %37, %c0_24, %c0_25] : memref<1x32x16x2xbf16, #tpu.memory_space<vmem>>, vector<1x1x16x2xbf16>
      %39 = vector.shape_cast %38 : vector<1x1x16x2xbf16> to vector<16x2xbf16>
      %40 = vector.shape_cast %36 : vector<16x2xbf16> to vector<1x1x16x2xbf16>
      tpu.vector_store %arg3[%c0_23, %37, %c0_24, %c0_25], %40 {strides = array<i32>} : memref<1x32x16x2xbf16, #tpu.memory_space<vmem>>, vector<1x1x16x2xbf16>,
      %cst_26 = arith.constant dense<0.000000e+00> : vector<2xf32>
      %41 = vector.multi_reduction <add>, %35, %cst_26 [0] : vector<16x2xf32> to vector<2xf32>
      %42 = vector.shape_cast %41 : vector<2xf32> to vector<1x2xf32>
      %43 = arith.addf %arg7, %42 : vector<1x2xf32>
      %44 = arith.mulf %35, %35 : vector<16x2xf32>
      %cst_27 = arith.constant dense<0.000000e+00> : vector<2xf32>
      %45 = vector.multi_reduction <add>, %44, %cst_27 [0] : vector<16x2xf32> to vector<2xf32>
      %46 = vector.shape_cast %45 : vector<2xf32> to vector<1x2xf32>
      %47 = arith.addf %arg8, %46 : vector<1x2xf32>
      scf.yield %43, %47 : vector<1x2xf32>, vector<1x2xf32>
    }
    %c32_i32_1 = arith.constant 32 : i32
    %c0_2 = arith.constant 0 : index
    %c0_3 = arith.constant 0 : index
    %c0_4 = arith.constant 0 : index
    %4 = vector.load %arg4[%c0_2, %c0_3, %c0_4] : memref<1x1x2xf32, #tpu.memory_space<vmem>>, vector<1x1x2xf32>
    %5 = vector.shape_cast %4 : vector<1x1x2xf32> to vector<1x2xf32>
    %6 = vector.shape_cast %3#0 : vector<1x2xf32> to vector<1x1x2xf32>
    tpu.vector_store %arg4[%c0_2, %c0_3, %c0_4], %6 {strides = array<i32>} : memref<1x1x2xf32, #tpu.memory_space<vmem>>, vector<1x1x2xf32>,
    %c0_5 = arith.constant 0 : index
    %c0_6 = arith.constant 0 : index
    %c0_7 = arith.constant 0 : index
    %7 = vector.load %arg5[%c0_5, %c0_6, %c0_7] : memref<1x1x2xf32, #tpu.memory_space<vmem>>, vector<1x1x2xf32>
    %8 = vector.shape_cast %7 : vector<1x1x2xf32> to vector<1x2xf32>
    %9 = vector.shape_cast %3#1 : vector<1x2xf32> to vector<1x1x2xf32>
    tpu.vector_store %arg5[%c0_5, %c0_6, %c0_7], %9 {strides = array<i32>} : memref<1x1x2xf32, #tpu.memory_space<vmem>>, vector<1x1x2xf32>,
    return
  }
  func.func @transform_0(%arg0: i32) -> (i32, i32, i32, i32) {
    %c0_i32 = arith.constant 0 : i32
    %c0_i32_0 = arith.constant 0 : i32
    %c0_i32_1 = arith.constant 0 : i32
    %c0_i32_2 = arith.constant 0 : i32
    return %arg0, %c0_i32, %c0_i32_0, %c0_i32_1 : i32, i32, i32, i32
  }
  func.func @transform_1(%arg0: i32) -> (i32, i32) {
    %c0_i32 = arith.constant 0 : i32
    %c0_i32_0 = arith.constant 0 : i32
    %c0_i32_1 = arith.constant 0 : i32
    return %c0_i32, %c0_i32_0 : i32, i32
  }
  func.func @transform_2(%arg0: i32) -> (i32, i32, i32, i32) {
    %c0_i32 = arith.constant 0 : i32
    %c0_i32_0 = arith.constant 0 : i32
    %c0_i32_1 = arith.constant 0 : i32
    %c0_i32_2 = arith.constant 0 : i32
    return %arg0, %c0_i32, %c0_i32_0, %c0_i32_1 : i32, i32, i32, i32
  }
  func.func @transform_3(%arg0: i32) -> (i32, i32, i32) {
    %c0_i32 = arith.constant 0 : i32
    %c0_i32_0 = arith.constant 0 : i32
    %c0_i32_1 = arith.constant 0 : i32
    return %arg0, %c0_i32, %c0_i32_0 : i32, i32, i32
  }
  func.func @transform_4(%arg0: i32) -> (i32, i32, i32) {
    %c0_i32 = arith.constant 0 : i32
    %c0_i32_0 = arith.constant 0 : i32
    %c0_i32_1 = arith.constant 0 : i32
    return %arg0, %c0_i32, %c0_i32_0 : i32, i32, i32
  }
}

module attributes {stable_mosaic.version = 11 : i64} {
  func.func @_bn_apply_kernel(%arg0: i32, %arg1: memref<16x128xbf16, #tpu.memory_space<vmem>>, %arg2: memref<1x128xf32, #tpu.memory_space<vmem>>, %arg3: memref<1x128xf32, #tpu.memory_space<vmem>>, %arg4: memref<16x128xbf16, #tpu.memory_space<vmem>>) attributes {dimension_semantics = [#tpu.dimension_semantics<parallel>], iteration_bounds = array<i64: 1>, scalar_prefetch = 0 : i64, scratch_operands = 0 : i64, tpu.core_type = #tpu.core_type<tc>, window_params = [{transform_indices = @transform_0, window_bounds = array<i64: 16, 128>}, {pipeline_mode = #tpu.pipeline_mode<synchronous>, transform_indices = @transform_1, window_bounds = array<i64: 1, 128>}, {pipeline_mode = #tpu.pipeline_mode<synchronous>, transform_indices = @transform_2, window_bounds = array<i64: 1, 128>}, {transform_indices = @transform_3, window_bounds = array<i64: 16, 128>}]} {
    %c0 = arith.constant 0 : index
    %c0_0 = arith.constant 0 : index
    %0 = vector.load %arg1[%c0, %c0_0] : memref<16x128xbf16, #tpu.memory_space<vmem>>, vector<16x128xbf16>
    %1 = arith.extf %0 : vector<16x128xbf16> to vector<16x128xf32>
    %c0_1 = arith.constant 0 : index
    %c0_2 = arith.constant 0 : index
    %2 = vector.load %arg2[%c0_1, %c0_2] : memref<1x128xf32, #tpu.memory_space<vmem>>, vector<1x128xf32>
    %3 = vector.broadcast %2 : vector<1x128xf32> to vector<16x128xf32>
    %4 = arith.mulf %1, %3 : vector<16x128xf32>
    %c0_3 = arith.constant 0 : index
    %c0_4 = arith.constant 0 : index
    %5 = vector.load %arg3[%c0_3, %c0_4] : memref<1x128xf32, #tpu.memory_space<vmem>>, vector<1x128xf32>
    %6 = vector.broadcast %5 : vector<1x128xf32> to vector<16x128xf32>
    %7 = arith.addf %4, %6 : vector<16x128xf32>
    %cst = arith.constant 0.000000e+00 : f32
    %8 = vector.broadcast %cst : f32 to vector<16x128xf32>
    %9 = arith.maximumf %7, %8 : vector<16x128xf32>
    %10 = arith.truncf %9 : vector<16x128xf32> to vector<16x128xbf16>
    %c0_5 = arith.constant 0 : index
    %c0_6 = arith.constant 0 : index
    %11 = vector.load %arg4[%c0_5, %c0_6] : memref<16x128xbf16, #tpu.memory_space<vmem>>, vector<16x128xbf16>
    tpu.vector_store %arg4[%c0_5, %c0_6], %10 {strides = array<i32>} : memref<16x128xbf16, #tpu.memory_space<vmem>>, vector<16x128xbf16>,
    return
  }
  func.func @transform_0(%arg0: i32) -> (i32, i32) {
    %c0_i32 = arith.constant 0 : i32
    %c0_i32_0 = arith.constant 0 : i32
    return %arg0, %c0_i32 : i32, i32
  }
  func.func @transform_1(%arg0: i32) -> (i32, i32) {
    %c0_i32 = arith.constant 0 : i32
    %c0_i32_0 = arith.constant 0 : i32
    %c0_i32_1 = arith.constant 0 : i32
    return %c0_i32, %c0_i32_0 : i32, i32
  }
  func.func @transform_2(%arg0: i32) -> (i32, i32) {
    %c0_i32 = arith.constant 0 : i32
    %c0_i32_0 = arith.constant 0 : i32
    %c0_i32_1 = arith.constant 0 : i32
    return %c0_i32, %c0_i32_0 : i32, i32
  }
  func.func @transform_3(%arg0: i32) -> (i32, i32) {
    %c0_i32 = arith.constant 0 : i32
    %c0_i32_0 = arith.constant 0 : i32
    return %arg0, %c0_i32 : i32, i32
  }
}

module attributes {stable_mosaic.version = 11 : i64} {
  func.func @_conv_stats_kernel(%arg0: i32, %arg1: memref<1x34x18x2xbf16, #tpu.memory_space<vmem>>, %arg2: memref<18x4xbf16, #tpu.memory_space<vmem>>, %arg3: memref<1x32x16x4xbf16, #tpu.memory_space<vmem>>, %arg4: memref<1x1x4xf32, #tpu.memory_space<vmem>>, %arg5: memref<1x1x4xf32, #tpu.memory_space<vmem>>) attributes {dimension_semantics = [#tpu.dimension_semantics<parallel>], iteration_bounds = array<i64: 2>, scalar_prefetch = 0 : i64, scratch_operands = 0 : i64, tpu.core_type = #tpu.core_type<tc>, window_params = [{transform_indices = @transform_0, window_bounds = array<i64: 1, 34, 18, 2>}, {pipeline_mode = #tpu.pipeline_mode<synchronous>, transform_indices = @transform_1, window_bounds = array<i64: 18, 4>}, {transform_indices = @transform_2, window_bounds = array<i64: 1, 32, 16, 4>}, {transform_indices = @transform_3, window_bounds = array<i64: 1, 1, 4>}, {transform_indices = @transform_4, window_bounds = array<i64: 1, 1, 4>}]} {
    %c0 = arith.constant 0 : index
    %c0_0 = arith.constant 0 : index
    %0 = vector.load %arg2[%c0, %c0_0] : memref<18x4xbf16, #tpu.memory_space<vmem>>, vector<18x4xbf16>
    %cst = arith.constant 0.000000e+00 : f32
    %1 = vector.broadcast %cst : f32 to vector<1x4xf32>
    %c0_i32 = arith.constant 0 : i32
    %c32_i32 = arith.constant 32 : i32
    %2 = arith.addi %c0_i32, %c32_i32 : i32
    %c1_i32 = arith.constant 1 : i32
    %3:2 = scf.for %arg6 = %c0_i32 to %2 step %c1_i32 iter_args(%arg7 = %1, %arg8 = %1) -> (vector<1x4xf32>, vector<1x4xf32>)  : i32 {
      %c1_i32_8 = arith.constant 1 : i32
      %10 = arith.muli %arg6, %c1_i32_8 : i32
      %c0_i32_9 = arith.constant 0 : i32
      %11 = arith.addi %10, %c0_i32_9 : i32
      %c0_10 = arith.constant 0 : index
      %12 = arith.index_cast %11 : i32 to index
      %c0_11 = arith.constant 0 : index
      %c0_12 = arith.constant 0 : index
      %13 = vector.load %arg1[%c0_10, %12, %c0_11, %c0_12] : memref<1x34x18x2xbf16, #tpu.memory_space<vmem>>, vector<1x1x18x2xbf16>
      %14 = vector.shape_cast %13 : vector<1x1x18x2xbf16> to vector<18x2xbf16>
      %15 = vector.extract_strided_slice %14 {offsets = [0, 0], sizes = [16, 2], strides = [1, 1]} : vector<18x2xbf16> to vector<16x2xbf16>
      %16 = vector.extract_strided_slice %14 {offsets = [1, 0], sizes = [16, 2], strides = [1, 1]} : vector<18x2xbf16> to vector<16x2xbf16>
      %17 = vector.extract_strided_slice %14 {offsets = [2, 0], sizes = [16, 2], strides = [1, 1]} : vector<18x2xbf16> to vector<16x2xbf16>
      %c1_i32_13 = arith.constant 1 : i32
      %18 = arith.muli %arg6, %c1_i32_13 : i32
      %c1_i32_14 = arith.constant 1 : i32
      %19 = arith.addi %18, %c1_i32_14 : i32
      %c0_15 = arith.constant 0 : index
      %20 = arith.index_cast %19 : i32 to index
      %c0_16 = arith.constant 0 : index
      %c0_17 = arith.constant 0 : index
      %21 = vector.load %arg1[%c0_15, %20, %c0_16, %c0_17] : memref<1x34x18x2xbf16, #tpu.memory_space<vmem>>, vector<1x1x18x2xbf16>
      %22 = vector.shape_cast %21 : vector<1x1x18x2xbf16> to vector<18x2xbf16>
      %23 = vector.extract_strided_slice %22 {offsets = [0, 0], sizes = [16, 2], strides = [1, 1]} : vector<18x2xbf16> to vector<16x2xbf16>
      %24 = vector.extract_strided_slice %22 {offsets = [1, 0], sizes = [16, 2], strides = [1, 1]} : vector<18x2xbf16> to vector<16x2xbf16>
      %25 = vector.extract_strided_slice %22 {offsets = [2, 0], sizes = [16, 2], strides = [1, 1]} : vector<18x2xbf16> to vector<16x2xbf16>
      %c1_i32_18 = arith.constant 1 : i32
      %26 = arith.muli %arg6, %c1_i32_18 : i32
      %c2_i32 = arith.constant 2 : i32
      %27 = arith.addi %26, %c2_i32 : i32
      %c0_19 = arith.constant 0 : index
      %28 = arith.index_cast %27 : i32 to index
      %c0_20 = arith.constant 0 : index
      %c0_21 = arith.constant 0 : index
      %29 = vector.load %arg1[%c0_19, %28, %c0_20, %c0_21] : memref<1x34x18x2xbf16, #tpu.memory_space<vmem>>, vector<1x1x18x2xbf16>
      %30 = vector.shape_cast %29 : vector<1x1x18x2xbf16> to vector<18x2xbf16>
      %31 = vector.extract_strided_slice %30 {offsets = [0, 0], sizes = [16, 2], strides = [1, 1]} : vector<18x2xbf16> to vector<16x2xbf16>
      %32 = vector.extract_strided_slice %30 {offsets = [1, 0], sizes = [16, 2], strides = [1, 1]} : vector<18x2xbf16> to vector<16x2xbf16>
      %33 = vector.extract_strided_slice %30 {offsets = [2, 0], sizes = [16, 2], strides = [1, 1]} : vector<18x2xbf16> to vector<16x2xbf16>
      %34 = tpu.concatenate %15, %16, %17, %23, %24, %25, %31, %32, %33 in 1 : vector<16x2xbf16>, vector<16x2xbf16>, vector<16x2xbf16>, vector<16x2xbf16>, vector<16x2xbf16>, vector<16x2xbf16>, vector<16x2xbf16>, vector<16x2xbf16>, vector<16x2xbf16> -> vector<16x18xbf16>
      %cst_22 = arith.constant dense<0.000000e+00> : vector<16x4xf32>
      %35 = tpu.matmul %34, %0, %cst_22 {dimension_numbers = #tpu.dot_dimension_numbers<[1], [0], [0], [1], [0, 0, 1, 1], [], []>} : vector<16x18xbf16>, vector<18x4xbf16>, vector<16x4xf32> -> vector<16x4xf32>
      %36 = arith.truncf %35 : vector<16x4xf32> to vector<16x4xbf16>
      %c0_23 = arith.constant 0 : index
      %37 = arith.index_cast %arg6 : i32 to index
      %c0_24 = arith.constant 0 : index
      %c0_25 = arith.constant 0 : index
      %38 = vector.load %arg3[%c0_23, %37, %c0_24, %c0_25] : memref<1x32x16x4xbf16, #tpu.memory_space<vmem>>, vector<1x1x16x4xbf16>
      %39 = vector.shape_cast %38 : vector<1x1x16x4xbf16> to vector<16x4xbf16>
      %40 = vector.shape_cast %36 : vector<16x4xbf16> to vector<1x1x16x4xbf16>
      tpu.vector_store %arg3[%c0_23, %37, %c0_24, %c0_25], %40 {strides = array<i32>} : memref<1x32x16x4xbf16, #tpu.memory_space<vmem>>, vector<1x1x16x4xbf16>,
      %cst_26 = arith.constant dense<0.000000e+00> : vector<4xf32>
      %41 = vector.multi_reduction <add>, %35, %cst_26 [0] : vector<16x4xf32> to vector<4xf32>
      %42 = vector.shape_cast %41 : vector<4xf32> to vector<1x4xf32>
      %43 = arith.addf %arg7, %42 : vector<1x4xf32>
      %44 = arith.mulf %35, %35 : vector<16x4xf32>
      %cst_27 = arith.constant dense<0.000000e+00> : vector<4xf32>
      %45 = vector.multi_reduction <add>, %44, %cst_27 [0] : vector<16x4xf32> to vector<4xf32>
      %46 = vector.shape_cast %45 : vector<4xf32> to vector<1x4xf32>
      %47 = arith.addf %arg8, %46 : vector<1x4xf32>
      scf.yield %43, %47 : vector<1x4xf32>, vector<1x4xf32>
    }
    %c32_i32_1 = arith.constant 32 : i32
    %c0_2 = arith.constant 0 : index
    %c0_3 = arith.constant 0 : index
    %c0_4 = arith.constant 0 : index
    %4 = vector.load %arg4[%c0_2, %c0_3, %c0_4] : memref<1x1x4xf32, #tpu.memory_space<vmem>>, vector<1x1x4xf32>
    %5 = vector.shape_cast %4 : vector<1x1x4xf32> to vector<1x4xf32>
    %6 = vector.shape_cast %3#0 : vector<1x4xf32> to vector<1x1x4xf32>
    tpu.vector_store %arg4[%c0_2, %c0_3, %c0_4], %6 {strides = array<i32>} : memref<1x1x4xf32, #tpu.memory_space<vmem>>, vector<1x1x4xf32>,
    %c0_5 = arith.constant 0 : index
    %c0_6 = arith.constant 0 : index
    %c0_7 = arith.constant 0 : index
    %7 = vector.load %arg5[%c0_5, %c0_6, %c0_7] : memref<1x1x4xf32, #tpu.memory_space<vmem>>, vector<1x1x4xf32>
    %8 = vector.shape_cast %7 : vector<1x1x4xf32> to vector<1x4xf32>
    %9 = vector.shape_cast %3#1 : vector<1x4xf32> to vector<1x1x4xf32>
    tpu.vector_store %arg5[%c0_5, %c0_6, %c0_7], %9 {strides = array<i32>} : memref<1x1x4xf32, #tpu.memory_space<vmem>>, vector<1x1x4xf32>,
    return
  }
  func.func @transform_0(%arg0: i32) -> (i32, i32, i32, i32) {
    %c0_i32 = arith.constant 0 : i32
    %c0_i32_0 = arith.constant 0 : i32
    %c0_i32_1 = arith.constant 0 : i32
    %c0_i32_2 = arith.constant 0 : i32
    return %arg0, %c0_i32, %c0_i32_0, %c0_i32_1 : i32, i32, i32, i32
  }
  func.func @transform_1(%arg0: i32) -> (i32, i32) {
    %c0_i32 = arith.constant 0 : i32
    %c0_i32_0 = arith.constant 0 : i32
    %c0_i32_1 = arith.constant 0 : i32
    return %c0_i32, %c0_i32_0 : i32, i32
  }
  func.func @transform_2(%arg0: i32) -> (i32, i32, i32, i32) {
    %c0_i32 = arith.constant 0 : i32
    %c0_i32_0 = arith.constant 0 : i32
    %c0_i32_1 = arith.constant 0 : i32
    %c0_i32_2 = arith.constant 0 : i32
    return %arg0, %c0_i32, %c0_i32_0, %c0_i32_1 : i32, i32, i32, i32
  }
  func.func @transform_3(%arg0: i32) -> (i32, i32, i32) {
    %c0_i32 = arith.constant 0 : i32
    %c0_i32_0 = arith.constant 0 : i32
    %c0_i32_1 = arith.constant 0 : i32
    return %arg0, %c0_i32, %c0_i32_0 : i32, i32, i32
  }
  func.func @transform_4(%arg0: i32) -> (i32, i32, i32) {
    %c0_i32 = arith.constant 0 : i32
    %c0_i32_0 = arith.constant 0 : i32
    %c0_i32_1 = arith.constant 0 : i32
    return %arg0, %c0_i32, %c0_i32_0 : i32, i32, i32
  }
}

module attributes {stable_mosaic.version = 11 : i64} {
  func.func @_bn_apply_kernel(%arg0: i32, %arg1: memref<32x128xbf16, #tpu.memory_space<vmem>>, %arg2: memref<1x128xf32, #tpu.memory_space<vmem>>, %arg3: memref<1x128xf32, #tpu.memory_space<vmem>>, %arg4: memref<32x128xbf16, #tpu.memory_space<vmem>>) attributes {dimension_semantics = [#tpu.dimension_semantics<parallel>], iteration_bounds = array<i64: 1>, scalar_prefetch = 0 : i64, scratch_operands = 0 : i64, tpu.core_type = #tpu.core_type<tc>, window_params = [{transform_indices = @transform_0, window_bounds = array<i64: 32, 128>}, {pipeline_mode = #tpu.pipeline_mode<synchronous>, transform_indices = @transform_1, window_bounds = array<i64: 1, 128>}, {pipeline_mode = #tpu.pipeline_mode<synchronous>, transform_indices = @transform_2, window_bounds = array<i64: 1, 128>}, {transform_indices = @transform_3, window_bounds = array<i64: 32, 128>}]} {
    %c0 = arith.constant 0 : index
    %c0_0 = arith.constant 0 : index
    %0 = vector.load %arg1[%c0, %c0_0] : memref<32x128xbf16, #tpu.memory_space<vmem>>, vector<32x128xbf16>
    %1 = arith.extf %0 : vector<32x128xbf16> to vector<32x128xf32>
    %c0_1 = arith.constant 0 : index
    %c0_2 = arith.constant 0 : index
    %2 = vector.load %arg2[%c0_1, %c0_2] : memref<1x128xf32, #tpu.memory_space<vmem>>, vector<1x128xf32>
    %3 = vector.broadcast %2 : vector<1x128xf32> to vector<32x128xf32>
    %4 = arith.mulf %1, %3 : vector<32x128xf32>
    %c0_3 = arith.constant 0 : index
    %c0_4 = arith.constant 0 : index
    %5 = vector.load %arg3[%c0_3, %c0_4] : memref<1x128xf32, #tpu.memory_space<vmem>>, vector<1x128xf32>
    %6 = vector.broadcast %5 : vector<1x128xf32> to vector<32x128xf32>
    %7 = arith.addf %4, %6 : vector<32x128xf32>
    %cst = arith.constant 0.000000e+00 : f32
    %8 = vector.broadcast %cst : f32 to vector<32x128xf32>
    %9 = arith.maximumf %7, %8 : vector<32x128xf32>
    %10 = arith.truncf %9 : vector<32x128xf32> to vector<32x128xbf16>
    %c0_5 = arith.constant 0 : index
    %c0_6 = arith.constant 0 : index
    %11 = vector.load %arg4[%c0_5, %c0_6] : memref<32x128xbf16, #tpu.memory_space<vmem>>, vector<32x128xbf16>
    tpu.vector_store %arg4[%c0_5, %c0_6], %10 {strides = array<i32>} : memref<32x128xbf16, #tpu.memory_space<vmem>>, vector<32x128xbf16>,
    return
  }
  func.func @transform_0(%arg0: i32) -> (i32, i32) {
    %c0_i32 = arith.constant 0 : i32
    %c0_i32_0 = arith.constant 0 : i32
    return %arg0, %c0_i32 : i32, i32
  }
  func.func @transform_1(%arg0: i32) -> (i32, i32) {
    %c0_i32 = arith.constant 0 : i32
    %c0_i32_0 = arith.constant 0 : i32
    %c0_i32_1 = arith.constant 0 : i32
    return %c0_i32, %c0_i32_0 : i32, i32
  }
  func.func @transform_2(%arg0: i32) -> (i32, i32) {
    %c0_i32 = arith.constant 0 : i32
    %c0_i32_0 = arith.constant 0 : i32
    %c0_i32_1 = arith.constant 0 : i32
    return %c0_i32, %c0_i32_0 : i32, i32
  }
  func.func @transform_3(%arg0: i32) -> (i32, i32) {
    %c0_i32 = arith.constant 0 : i32
    %c0_i32_0 = arith.constant 0 : i32
    return %arg0, %c0_i32 : i32, i32
  }
}

module attributes {stable_mosaic.version = 11 : i64} {
  func.func @_maxpool_kernel(%arg0: i32, %arg1: memref<1x16x2x8x8xbf16, #tpu.memory_space<vmem>>, %arg2: memref<1x16x8x4xbf16, #tpu.memory_space<vmem>>) attributes {dimension_semantics = [#tpu.dimension_semantics<parallel>], iteration_bounds = array<i64: 2>, scalar_prefetch = 0 : i64, scratch_operands = 0 : i64, tpu.core_type = #tpu.core_type<tc>, window_params = [{transform_indices = @transform_0, window_bounds = array<i64: 1, 16, 2, 8, 8>}, {transform_indices = @transform_1, window_bounds = array<i64: 1, 16, 8, 4>}]} {
    %c0 = arith.constant 0 : index
    %c0_0 = arith.constant 0 : index
    %c0_1 = arith.constant 0 : index
    %c0_2 = arith.constant 0 : index
    %c0_3 = arith.constant 0 : index
    %0 = vector.load %arg1[%c0, %c0_0, %c0_1, %c0_2, %c0_3] : memref<1x16x2x8x8xbf16, #tpu.memory_space<vmem>>, vector<1x16x2x8x8xbf16>
    %1 = arith.extf %0 : vector<1x16x2x8x8xbf16> to vector<1x16x2x8x8xf32>
    %2 = vector.extract_strided_slice %1 {offsets = [0, 0, 0, 0, 0], sizes = [1, 16, 1, 8, 8], strides = [1, 1, 1, 1, 1]} : vector<1x16x2x8x8xf32> to vector<1x16x1x8x8xf32>
    %3 = vector.shape_cast %2 : vector<1x16x1x8x8xf32> to vector<1x16x8x8xf32>
    %4 = vector.extract_strided_slice %1 {offsets = [0, 0, 1, 0, 0], sizes = [1, 16, 1, 8, 8], strides = [1, 1, 1, 1, 1]} : vector<1x16x2x8x8xf32> to vector<1x16x1x8x8xf32>
    %5 = vector.shape_cast %4 : vector<1x16x1x8x8xf32> to vector<1x16x8x8xf32>
    %6 = arith.maximumf %3, %5 : vector<1x16x8x8xf32>
    %7 = vector.extract_strided_slice %6 {offsets = [0, 0, 0, 0], sizes = [1, 16, 8, 4], strides = [1, 1, 1, 1]} : vector<1x16x8x8xf32> to vector<1x16x8x4xf32>
    %8 = vector.extract_strided_slice %6 {offsets = [0, 0, 0, 4], sizes = [1, 16, 8, 4], strides = [1, 1, 1, 1]} : vector<1x16x8x8xf32> to vector<1x16x8x4xf32>
    %9 = arith.maximumf %7, %8 : vector<1x16x8x4xf32>
    %10 = arith.truncf %9 : vector<1x16x8x4xf32> to vector<1x16x8x4xbf16>
    %c0_4 = arith.constant 0 : index
    %c0_5 = arith.constant 0 : index
    %c0_6 = arith.constant 0 : index
    %c0_7 = arith.constant 0 : index
    %11 = vector.load %arg2[%c0_4, %c0_5, %c0_6, %c0_7] : memref<1x16x8x4xbf16, #tpu.memory_space<vmem>>, vector<1x16x8x4xbf16>
    tpu.vector_store %arg2[%c0_4, %c0_5, %c0_6, %c0_7], %10 {strides = array<i32>} : memref<1x16x8x4xbf16, #tpu.memory_space<vmem>>, vector<1x16x8x4xbf16>,
    return
  }
  func.func @transform_0(%arg0: i32) -> (i32, i32, i32, i32, i32) {
    %c0_i32 = arith.constant 0 : i32
    %c0_i32_0 = arith.constant 0 : i32
    %c0_i32_1 = arith.constant 0 : i32
    %c0_i32_2 = arith.constant 0 : i32
    %c0_i32_3 = arith.constant 0 : i32
    return %arg0, %c0_i32, %c0_i32_0, %c0_i32_1, %c0_i32_2 : i32, i32, i32, i32, i32
  }
  func.func @transform_1(%arg0: i32) -> (i32, i32, i32, i32) {
    %c0_i32 = arith.constant 0 : i32
    %c0_i32_0 = arith.constant 0 : i32
    %c0_i32_1 = arith.constant 0 : i32
    %c0_i32_2 = arith.constant 0 : i32
    return %arg0, %c0_i32, %c0_i32_0, %c0_i32_1 : i32, i32, i32, i32
  }
}

module attributes {stable_mosaic.version = 11 : i64} {
  func.func @_conv_stats_kernel(%arg0: i32, %arg1: memref<1x16x8x4xbf16, #tpu.memory_space<vmem>>, %arg2: memref<4x8xbf16, #tpu.memory_space<vmem>>, %arg3: memref<1x16x8x8xbf16, #tpu.memory_space<vmem>>, %arg4: memref<1x1x8xf32, #tpu.memory_space<vmem>>, %arg5: memref<1x1x8xf32, #tpu.memory_space<vmem>>) attributes {dimension_semantics = [#tpu.dimension_semantics<parallel>], iteration_bounds = array<i64: 2>, scalar_prefetch = 0 : i64, scratch_operands = 0 : i64, tpu.core_type = #tpu.core_type<tc>, window_params = [{transform_indices = @transform_0, window_bounds = array<i64: 1, 16, 8, 4>}, {pipeline_mode = #tpu.pipeline_mode<synchronous>, transform_indices = @transform_1, window_bounds = array<i64: 4, 8>}, {transform_indices = @transform_2, window_bounds = array<i64: 1, 16, 8, 8>}, {transform_indices = @transform_3, window_bounds = array<i64: 1, 1, 8>}, {transform_indices = @transform_4, window_bounds = array<i64: 1, 1, 8>}]} {
    %c0 = arith.constant 0 : index
    %c0_0 = arith.constant 0 : index
    %0 = vector.load %arg2[%c0, %c0_0] : memref<4x8xbf16, #tpu.memory_space<vmem>>, vector<4x8xbf16>
    %cst = arith.constant 0.000000e+00 : f32
    %1 = vector.broadcast %cst : f32 to vector<1x8xf32>
    %c0_i32 = arith.constant 0 : i32
    %c16_i32 = arith.constant 16 : i32
    %2 = arith.addi %c0_i32, %c16_i32 : i32
    %c1_i32 = arith.constant 1 : i32
    %3:2 = scf.for %arg6 = %c0_i32 to %2 step %c1_i32 iter_args(%arg7 = %1, %arg8 = %1) -> (vector<1x8xf32>, vector<1x8xf32>)  : i32 {
      %c1_i32_8 = arith.constant 1 : i32
      %10 = arith.muli %arg6, %c1_i32_8 : i32
      %c0_i32_9 = arith.constant 0 : i32
      %11 = arith.addi %10, %c0_i32_9 : i32
      %c0_10 = arith.constant 0 : index
      %12 = arith.index_cast %11 : i32 to index
      %c0_11 = arith.constant 0 : index
      %c0_12 = arith.constant 0 : index
      %13 = vector.load %arg1[%c0_10, %12, %c0_11, %c0_12] : memref<1x16x8x4xbf16, #tpu.memory_space<vmem>>, vector<1x1x8x4xbf16>
      %14 = vector.shape_cast %13 : vector<1x1x8x4xbf16> to vector<8x4xbf16>
      %cst_13 = arith.constant dense<0.000000e+00> : vector<8x8xf32>
      %15 = tpu.matmul %14, %0, %cst_13 {dimension_numbers = #tpu.dot_dimension_numbers<[1], [0], [0], [1], [0, 0, 1, 1], [], []>} : vector<8x4xbf16>, vector<4x8xbf16>, vector<8x8xf32> -> vector<8x8xf32>
      %16 = arith.truncf %15 : vector<8x8xf32> to vector<8x8xbf16>
      %c0_14 = arith.constant 0 : index
      %17 = arith.index_cast %arg6 : i32 to index
      %c0_15 = arith.constant 0 : index
      %c0_16 = arith.constant 0 : index
      %18 = vector.load %arg3[%c0_14, %17, %c0_15, %c0_16] : memref<1x16x8x8xbf16, #tpu.memory_space<vmem>>, vector<1x1x8x8xbf16>
      %19 = vector.shape_cast %18 : vector<1x1x8x8xbf16> to vector<8x8xbf16>
      %20 = vector.shape_cast %16 : vector<8x8xbf16> to vector<1x1x8x8xbf16>
      tpu.vector_store %arg3[%c0_14, %17, %c0_15, %c0_16], %20 {strides = array<i32>} : memref<1x16x8x8xbf16, #tpu.memory_space<vmem>>, vector<1x1x8x8xbf16>,
      %cst_17 = arith.constant dense<0.000000e+00> : vector<8xf32>
      %21 = vector.multi_reduction <add>, %15, %cst_17 [0] : vector<8x8xf32> to vector<8xf32>
      %22 = vector.shape_cast %21 : vector<8xf32> to vector<1x8xf32>
      %23 = arith.addf %arg7, %22 : vector<1x8xf32>
      %24 = arith.mulf %15, %15 : vector<8x8xf32>
      %cst_18 = arith.constant dense<0.000000e+00> : vector<8xf32>
      %25 = vector.multi_reduction <add>, %24, %cst_18 [0] : vector<8x8xf32> to vector<8xf32>
      %26 = vector.shape_cast %25 : vector<8xf32> to vector<1x8xf32>
      %27 = arith.addf %arg8, %26 : vector<1x8xf32>
      scf.yield %23, %27 : vector<1x8xf32>, vector<1x8xf32>
    }
    %c16_i32_1 = arith.constant 16 : i32
    %c0_2 = arith.constant 0 : index
    %c0_3 = arith.constant 0 : index
    %c0_4 = arith.constant 0 : index
    %4 = vector.load %arg4[%c0_2, %c0_3, %c0_4] : memref<1x1x8xf32, #tpu.memory_space<vmem>>, vector<1x1x8xf32>
    %5 = vector.shape_cast %4 : vector<1x1x8xf32> to vector<1x8xf32>
    %6 = vector.shape_cast %3#0 : vector<1x8xf32> to vector<1x1x8xf32>
    tpu.vector_store %arg4[%c0_2, %c0_3, %c0_4], %6 {strides = array<i32>} : memref<1x1x8xf32, #tpu.memory_space<vmem>>, vector<1x1x8xf32>,
    %c0_5 = arith.constant 0 : index
    %c0_6 = arith.constant 0 : index
    %c0_7 = arith.constant 0 : index
    %7 = vector.load %arg5[%c0_5, %c0_6, %c0_7] : memref<1x1x8xf32, #tpu.memory_space<vmem>>, vector<1x1x8xf32>
    %8 = vector.shape_cast %7 : vector<1x1x8xf32> to vector<1x8xf32>
    %9 = vector.shape_cast %3#1 : vector<1x8xf32> to vector<1x1x8xf32>
    tpu.vector_store %arg5[%c0_5, %c0_6, %c0_7], %9 {strides = array<i32>} : memref<1x1x8xf32, #tpu.memory_space<vmem>>, vector<1x1x8xf32>,
    return
  }
  func.func @transform_0(%arg0: i32) -> (i32, i32, i32, i32) {
    %c0_i32 = arith.constant 0 : i32
    %c0_i32_0 = arith.constant 0 : i32
    %c0_i32_1 = arith.constant 0 : i32
    %c0_i32_2 = arith.constant 0 : i32
    return %arg0, %c0_i32, %c0_i32_0, %c0_i32_1 : i32, i32, i32, i32
  }
  func.func @transform_1(%arg0: i32) -> (i32, i32) {
    %c0_i32 = arith.constant 0 : i32
    %c0_i32_0 = arith.constant 0 : i32
    %c0_i32_1 = arith.constant 0 : i32
    return %c0_i32, %c0_i32_0 : i32, i32
  }
  func.func @transform_2(%arg0: i32) -> (i32, i32, i32, i32) {
    %c0_i32 = arith.constant 0 : i32
    %c0_i32_0 = arith.constant 0 : i32
    %c0_i32_1 = arith.constant 0 : i32
    %c0_i32_2 = arith.constant 0 : i32
    return %arg0, %c0_i32, %c0_i32_0, %c0_i32_1 : i32, i32, i32, i32
  }
  func.func @transform_3(%arg0: i32) -> (i32, i32, i32) {
    %c0_i32 = arith.constant 0 : i32
    %c0_i32_0 = arith.constant 0 : i32
    %c0_i32_1 = arith.constant 0 : i32
    return %arg0, %c0_i32, %c0_i32_0 : i32, i32, i32
  }
  func.func @transform_4(%arg0: i32) -> (i32, i32, i32) {
    %c0_i32 = arith.constant 0 : i32
    %c0_i32_0 = arith.constant 0 : i32
    %c0_i32_1 = arith.constant 0 : i32
    return %arg0, %c0_i32, %c0_i32_0 : i32, i32, i32
  }
}

module attributes {stable_mosaic.version = 11 : i64} {
  func.func @_bn_apply_kernel(%arg0: i32, %arg1: memref<16x128xbf16, #tpu.memory_space<vmem>>, %arg2: memref<1x128xf32, #tpu.memory_space<vmem>>, %arg3: memref<1x128xf32, #tpu.memory_space<vmem>>, %arg4: memref<16x128xbf16, #tpu.memory_space<vmem>>) attributes {dimension_semantics = [#tpu.dimension_semantics<parallel>], iteration_bounds = array<i64: 1>, scalar_prefetch = 0 : i64, scratch_operands = 0 : i64, tpu.core_type = #tpu.core_type<tc>, window_params = [{transform_indices = @transform_0, window_bounds = array<i64: 16, 128>}, {pipeline_mode = #tpu.pipeline_mode<synchronous>, transform_indices = @transform_1, window_bounds = array<i64: 1, 128>}, {pipeline_mode = #tpu.pipeline_mode<synchronous>, transform_indices = @transform_2, window_bounds = array<i64: 1, 128>}, {transform_indices = @transform_3, window_bounds = array<i64: 16, 128>}]} {
    %c0 = arith.constant 0 : index
    %c0_0 = arith.constant 0 : index
    %0 = vector.load %arg1[%c0, %c0_0] : memref<16x128xbf16, #tpu.memory_space<vmem>>, vector<16x128xbf16>
    %1 = arith.extf %0 : vector<16x128xbf16> to vector<16x128xf32>
    %c0_1 = arith.constant 0 : index
    %c0_2 = arith.constant 0 : index
    %2 = vector.load %arg2[%c0_1, %c0_2] : memref<1x128xf32, #tpu.memory_space<vmem>>, vector<1x128xf32>
    %3 = vector.broadcast %2 : vector<1x128xf32> to vector<16x128xf32>
    %4 = arith.mulf %1, %3 : vector<16x128xf32>
    %c0_3 = arith.constant 0 : index
    %c0_4 = arith.constant 0 : index
    %5 = vector.load %arg3[%c0_3, %c0_4] : memref<1x128xf32, #tpu.memory_space<vmem>>, vector<1x128xf32>
    %6 = vector.broadcast %5 : vector<1x128xf32> to vector<16x128xf32>
    %7 = arith.addf %4, %6 : vector<16x128xf32>
    %8 = arith.truncf %7 : vector<16x128xf32> to vector<16x128xbf16>
    %c0_5 = arith.constant 0 : index
    %c0_6 = arith.constant 0 : index
    %9 = vector.load %arg4[%c0_5, %c0_6] : memref<16x128xbf16, #tpu.memory_space<vmem>>, vector<16x128xbf16>
    tpu.vector_store %arg4[%c0_5, %c0_6], %8 {strides = array<i32>} : memref<16x128xbf16, #tpu.memory_space<vmem>>, vector<16x128xbf16>,
    return
  }
  func.func @transform_0(%arg0: i32) -> (i32, i32) {
    %c0_i32 = arith.constant 0 : i32
    %c0_i32_0 = arith.constant 0 : i32
    return %arg0, %c0_i32 : i32, i32
  }
  func.func @transform_1(%arg0: i32) -> (i32, i32) {
    %c0_i32 = arith.constant 0 : i32
    %c0_i32_0 = arith.constant 0 : i32
    %c0_i32_1 = arith.constant 0 : i32
    return %c0_i32, %c0_i32_0 : i32, i32
  }
  func.func @transform_2(%arg0: i32) -> (i32, i32) {
    %c0_i32 = arith.constant 0 : i32
    %c0_i32_0 = arith.constant 0 : i32
    %c0_i32_1 = arith.constant 0 : i32
    return %c0_i32, %c0_i32_0 : i32, i32
  }
  func.func @transform_3(%arg0: i32) -> (i32, i32) {
    %c0_i32 = arith.constant 0 : i32
    %c0_i32_0 = arith.constant 0 : i32
    return %arg0, %c0_i32 : i32, i32
  }
}

module attributes {stable_mosaic.version = 11 : i64} {
  func.func @_conv_stats_kernel(%arg0: i32, %arg1: memref<1x18x10x4xbf16, #tpu.memory_space<vmem>>, %arg2: memref<36x8xbf16, #tpu.memory_space<vmem>>, %arg3: memref<1x16x8x8xbf16, #tpu.memory_space<vmem>>, %arg4: memref<1x1x8xf32, #tpu.memory_space<vmem>>, %arg5: memref<1x1x8xf32, #tpu.memory_space<vmem>>) attributes {dimension_semantics = [#tpu.dimension_semantics<parallel>], iteration_bounds = array<i64: 2>, scalar_prefetch = 0 : i64, scratch_operands = 0 : i64, tpu.core_type = #tpu.core_type<tc>, window_params = [{transform_indices = @transform_0, window_bounds = array<i64: 1, 18, 10, 4>}, {pipeline_mode = #tpu.pipeline_mode<synchronous>, transform_indices = @transform_1, window_bounds = array<i64: 36, 8>}, {transform_indices = @transform_2, window_bounds = array<i64: 1, 16, 8, 8>}, {transform_indices = @transform_3, window_bounds = array<i64: 1, 1, 8>}, {transform_indices = @transform_4, window_bounds = array<i64: 1, 1, 8>}]} {
    %c0 = arith.constant 0 : index
    %c0_0 = arith.constant 0 : index
    %0 = vector.load %arg2[%c0, %c0_0] : memref<36x8xbf16, #tpu.memory_space<vmem>>, vector<36x8xbf16>
    %cst = arith.constant 0.000000e+00 : f32
    %1 = vector.broadcast %cst : f32 to vector<1x8xf32>
    %c0_i32 = arith.constant 0 : i32
    %c16_i32 = arith.constant 16 : i32
    %2 = arith.addi %c0_i32, %c16_i32 : i32
    %c1_i32 = arith.constant 1 : i32
    %3:2 = scf.for %arg6 = %c0_i32 to %2 step %c1_i32 iter_args(%arg7 = %1, %arg8 = %1) -> (vector<1x8xf32>, vector<1x8xf32>)  : i32 {
      %c1_i32_8 = arith.constant 1 : i32
      %10 = arith.muli %arg6, %c1_i32_8 : i32
      %c0_i32_9 = arith.constant 0 : i32
      %11 = arith.addi %10, %c0_i32_9 : i32
      %c0_10 = arith.constant 0 : index
      %12 = arith.index_cast %11 : i32 to index
      %c0_11 = arith.constant 0 : index
      %c0_12 = arith.constant 0 : index
      %13 = vector.load %arg1[%c0_10, %12, %c0_11, %c0_12] : memref<1x18x10x4xbf16, #tpu.memory_space<vmem>>, vector<1x1x10x4xbf16>
      %14 = vector.shape_cast %13 : vector<1x1x10x4xbf16> to vector<10x4xbf16>
      %15 = vector.extract_strided_slice %14 {offsets = [0, 0], sizes = [8, 4], strides = [1, 1]} : vector<10x4xbf16> to vector<8x4xbf16>
      %16 = vector.extract_strided_slice %14 {offsets = [1, 0], sizes = [8, 4], strides = [1, 1]} : vector<10x4xbf16> to vector<8x4xbf16>
      %17 = vector.extract_strided_slice %14 {offsets = [2, 0], sizes = [8, 4], strides = [1, 1]} : vector<10x4xbf16> to vector<8x4xbf16>
      %c1_i32_13 = arith.constant 1 : i32
      %18 = arith.muli %arg6, %c1_i32_13 : i32
      %c1_i32_14 = arith.constant 1 : i32
      %19 = arith.addi %18, %c1_i32_14 : i32
      %c0_15 = arith.constant 0 : index
      %20 = arith.index_cast %19 : i32 to index
      %c0_16 = arith.constant 0 : index
      %c0_17 = arith.constant 0 : index
      %21 = vector.load %arg1[%c0_15, %20, %c0_16, %c0_17] : memref<1x18x10x4xbf16, #tpu.memory_space<vmem>>, vector<1x1x10x4xbf16>
      %22 = vector.shape_cast %21 : vector<1x1x10x4xbf16> to vector<10x4xbf16>
      %23 = vector.extract_strided_slice %22 {offsets = [0, 0], sizes = [8, 4], strides = [1, 1]} : vector<10x4xbf16> to vector<8x4xbf16>
      %24 = vector.extract_strided_slice %22 {offsets = [1, 0], sizes = [8, 4], strides = [1, 1]} : vector<10x4xbf16> to vector<8x4xbf16>
      %25 = vector.extract_strided_slice %22 {offsets = [2, 0], sizes = [8, 4], strides = [1, 1]} : vector<10x4xbf16> to vector<8x4xbf16>
      %c1_i32_18 = arith.constant 1 : i32
      %26 = arith.muli %arg6, %c1_i32_18 : i32
      %c2_i32 = arith.constant 2 : i32
      %27 = arith.addi %26, %c2_i32 : i32
      %c0_19 = arith.constant 0 : index
      %28 = arith.index_cast %27 : i32 to index
      %c0_20 = arith.constant 0 : index
      %c0_21 = arith.constant 0 : index
      %29 = vector.load %arg1[%c0_19, %28, %c0_20, %c0_21] : memref<1x18x10x4xbf16, #tpu.memory_space<vmem>>, vector<1x1x10x4xbf16>
      %30 = vector.shape_cast %29 : vector<1x1x10x4xbf16> to vector<10x4xbf16>
      %31 = vector.extract_strided_slice %30 {offsets = [0, 0], sizes = [8, 4], strides = [1, 1]} : vector<10x4xbf16> to vector<8x4xbf16>
      %32 = vector.extract_strided_slice %30 {offsets = [1, 0], sizes = [8, 4], strides = [1, 1]} : vector<10x4xbf16> to vector<8x4xbf16>
      %33 = vector.extract_strided_slice %30 {offsets = [2, 0], sizes = [8, 4], strides = [1, 1]} : vector<10x4xbf16> to vector<8x4xbf16>
      %34 = tpu.concatenate %15, %16, %17, %23, %24, %25, %31, %32, %33 in 1 : vector<8x4xbf16>, vector<8x4xbf16>, vector<8x4xbf16>, vector<8x4xbf16>, vector<8x4xbf16>, vector<8x4xbf16>, vector<8x4xbf16>, vector<8x4xbf16>, vector<8x4xbf16> -> vector<8x36xbf16>
      %cst_22 = arith.constant dense<0.000000e+00> : vector<8x8xf32>
      %35 = tpu.matmul %34, %0, %cst_22 {dimension_numbers = #tpu.dot_dimension_numbers<[1], [0], [0], [1], [0, 0, 1, 1], [], []>} : vector<8x36xbf16>, vector<36x8xbf16>, vector<8x8xf32> -> vector<8x8xf32>
      %36 = arith.truncf %35 : vector<8x8xf32> to vector<8x8xbf16>
      %c0_23 = arith.constant 0 : index
      %37 = arith.index_cast %arg6 : i32 to index
      %c0_24 = arith.constant 0 : index
      %c0_25 = arith.constant 0 : index
      %38 = vector.load %arg3[%c0_23, %37, %c0_24, %c0_25] : memref<1x16x8x8xbf16, #tpu.memory_space<vmem>>, vector<1x1x8x8xbf16>
      %39 = vector.shape_cast %38 : vector<1x1x8x8xbf16> to vector<8x8xbf16>
      %40 = vector.shape_cast %36 : vector<8x8xbf16> to vector<1x1x8x8xbf16>
      tpu.vector_store %arg3[%c0_23, %37, %c0_24, %c0_25], %40 {strides = array<i32>} : memref<1x16x8x8xbf16, #tpu.memory_space<vmem>>, vector<1x1x8x8xbf16>,
      %cst_26 = arith.constant dense<0.000000e+00> : vector<8xf32>
      %41 = vector.multi_reduction <add>, %35, %cst_26 [0] : vector<8x8xf32> to vector<8xf32>
      %42 = vector.shape_cast %41 : vector<8xf32> to vector<1x8xf32>
      %43 = arith.addf %arg7, %42 : vector<1x8xf32>
      %44 = arith.mulf %35, %35 : vector<8x8xf32>
      %cst_27 = arith.constant dense<0.000000e+00> : vector<8xf32>
      %45 = vector.multi_reduction <add>, %44, %cst_27 [0] : vector<8x8xf32> to vector<8xf32>
      %46 = vector.shape_cast %45 : vector<8xf32> to vector<1x8xf32>
      %47 = arith.addf %arg8, %46 : vector<1x8xf32>
      scf.yield %43, %47 : vector<1x8xf32>, vector<1x8xf32>
    }
    %c16_i32_1 = arith.constant 16 : i32
    %c0_2 = arith.constant 0 : index
    %c0_3 = arith.constant 0 : index
    %c0_4 = arith.constant 0 : index
    %4 = vector.load %arg4[%c0_2, %c0_3, %c0_4] : memref<1x1x8xf32, #tpu.memory_space<vmem>>, vector<1x1x8xf32>
    %5 = vector.shape_cast %4 : vector<1x1x8xf32> to vector<1x8xf32>
    %6 = vector.shape_cast %3#0 : vector<1x8xf32> to vector<1x1x8xf32>
    tpu.vector_store %arg4[%c0_2, %c0_3, %c0_4], %6 {strides = array<i32>} : memref<1x1x8xf32, #tpu.memory_space<vmem>>, vector<1x1x8xf32>,
    %c0_5 = arith.constant 0 : index
    %c0_6 = arith.constant 0 : index
    %c0_7 = arith.constant 0 : index
    %7 = vector.load %arg5[%c0_5, %c0_6, %c0_7] : memref<1x1x8xf32, #tpu.memory_space<vmem>>, vector<1x1x8xf32>
    %8 = vector.shape_cast %7 : vector<1x1x8xf32> to vector<1x8xf32>
    %9 = vector.shape_cast %3#1 : vector<1x8xf32> to vector<1x1x8xf32>
    tpu.vector_store %arg5[%c0_5, %c0_6, %c0_7], %9 {strides = array<i32>} : memref<1x1x8xf32, #tpu.memory_space<vmem>>, vector<1x1x8xf32>,
    return
  }
  func.func @transform_0(%arg0: i32) -> (i32, i32, i32, i32) {
    %c0_i32 = arith.constant 0 : i32
    %c0_i32_0 = arith.constant 0 : i32
    %c0_i32_1 = arith.constant 0 : i32
    %c0_i32_2 = arith.constant 0 : i32
    return %arg0, %c0_i32, %c0_i32_0, %c0_i32_1 : i32, i32, i32, i32
  }
  func.func @transform_1(%arg0: i32) -> (i32, i32) {
    %c0_i32 = arith.constant 0 : i32
    %c0_i32_0 = arith.constant 0 : i32
    %c0_i32_1 = arith.constant 0 : i32
    return %c0_i32, %c0_i32_0 : i32, i32
  }
  func.func @transform_2(%arg0: i32) -> (i32, i32, i32, i32) {
    %c0_i32 = arith.constant 0 : i32
    %c0_i32_0 = arith.constant 0 : i32
    %c0_i32_1 = arith.constant 0 : i32
    %c0_i32_2 = arith.constant 0 : i32
    return %arg0, %c0_i32, %c0_i32_0, %c0_i32_1 : i32, i32, i32, i32
  }
  func.func @transform_3(%arg0: i32) -> (i32, i32, i32) {
    %c0_i32 = arith.constant 0 : i32
    %c0_i32_0 = arith.constant 0 : i32
    %c0_i32_1 = arith.constant 0 : i32
    return %arg0, %c0_i32, %c0_i32_0 : i32, i32, i32
  }
  func.func @transform_4(%arg0: i32) -> (i32, i32, i32) {
    %c0_i32 = arith.constant 0 : i32
    %c0_i32_0 = arith.constant 0 : i32
    %c0_i32_1 = arith.constant 0 : i32
    return %arg0, %c0_i32, %c0_i32_0 : i32, i32, i32
  }
}

module attributes {stable_mosaic.version = 11 : i64} {
  func.func @_bn_apply_kernel(%arg0: i32, %arg1: memref<16x128xbf16, #tpu.memory_space<vmem>>, %arg2: memref<1x128xf32, #tpu.memory_space<vmem>>, %arg3: memref<1x128xf32, #tpu.memory_space<vmem>>, %arg4: memref<16x128xbf16, #tpu.memory_space<vmem>>) attributes {dimension_semantics = [#tpu.dimension_semantics<parallel>], iteration_bounds = array<i64: 1>, scalar_prefetch = 0 : i64, scratch_operands = 0 : i64, tpu.core_type = #tpu.core_type<tc>, window_params = [{transform_indices = @transform_0, window_bounds = array<i64: 16, 128>}, {pipeline_mode = #tpu.pipeline_mode<synchronous>, transform_indices = @transform_1, window_bounds = array<i64: 1, 128>}, {pipeline_mode = #tpu.pipeline_mode<synchronous>, transform_indices = @transform_2, window_bounds = array<i64: 1, 128>}, {transform_indices = @transform_3, window_bounds = array<i64: 16, 128>}]} {
    %c0 = arith.constant 0 : index
    %c0_0 = arith.constant 0 : index
    %0 = vector.load %arg1[%c0, %c0_0] : memref<16x128xbf16, #tpu.memory_space<vmem>>, vector<16x128xbf16>
    %1 = arith.extf %0 : vector<16x128xbf16> to vector<16x128xf32>
    %c0_1 = arith.constant 0 : index
    %c0_2 = arith.constant 0 : index
    %2 = vector.load %arg2[%c0_1, %c0_2] : memref<1x128xf32, #tpu.memory_space<vmem>>, vector<1x128xf32>
    %3 = vector.broadcast %2 : vector<1x128xf32> to vector<16x128xf32>
    %4 = arith.mulf %1, %3 : vector<16x128xf32>
    %c0_3 = arith.constant 0 : index
    %c0_4 = arith.constant 0 : index
    %5 = vector.load %arg3[%c0_3, %c0_4] : memref<1x128xf32, #tpu.memory_space<vmem>>, vector<1x128xf32>
    %6 = vector.broadcast %5 : vector<1x128xf32> to vector<16x128xf32>
    %7 = arith.addf %4, %6 : vector<16x128xf32>
    %cst = arith.constant 0.000000e+00 : f32
    %8 = vector.broadcast %cst : f32 to vector<16x128xf32>
    %9 = arith.maximumf %7, %8 : vector<16x128xf32>
    %10 = arith.truncf %9 : vector<16x128xf32> to vector<16x128xbf16>
    %c0_5 = arith.constant 0 : index
    %c0_6 = arith.constant 0 : index
    %11 = vector.load %arg4[%c0_5, %c0_6] : memref<16x128xbf16, #tpu.memory_space<vmem>>, vector<16x128xbf16>
    tpu.vector_store %arg4[%c0_5, %c0_6], %10 {strides = array<i32>} : memref<16x128xbf16, #tpu.memory_space<vmem>>, vector<16x128xbf16>,
    return
  }
  func.func @transform_0(%arg0: i32) -> (i32, i32) {
    %c0_i32 = arith.constant 0 : i32
    %c0_i32_0 = arith.constant 0 : i32
    return %arg0, %c0_i32 : i32, i32
  }
  func.func @transform_1(%arg0: i32) -> (i32, i32) {
    %c0_i32 = arith.constant 0 : i32
    %c0_i32_0 = arith.constant 0 : i32
    %c0_i32_1 = arith.constant 0 : i32
    return %c0_i32, %c0_i32_0 : i32, i32
  }
  func.func @transform_2(%arg0: i32) -> (i32, i32) {
    %c0_i32 = arith.constant 0 : i32
    %c0_i32_0 = arith.constant 0 : i32
    %c0_i32_1 = arith.constant 0 : i32
    return %c0_i32, %c0_i32_0 : i32, i32
  }
  func.func @transform_3(%arg0: i32) -> (i32, i32) {
    %c0_i32 = arith.constant 0 : i32
    %c0_i32_0 = arith.constant 0 : i32
    return %arg0, %c0_i32 : i32, i32
  }
}

module attributes {stable_mosaic.version = 11 : i64} {
  func.func @_bn_apply_kernel(%arg0: i32, %arg1: memref<16x128xbf16, #tpu.memory_space<vmem>>, %arg2: memref<1x128xf32, #tpu.memory_space<vmem>>, %arg3: memref<1x128xf32, #tpu.memory_space<vmem>>, %arg4: memref<16x128xbf16, #tpu.memory_space<vmem>>, %arg5: memref<16x128xbf16, #tpu.memory_space<vmem>>) attributes {dimension_semantics = [#tpu.dimension_semantics<parallel>], iteration_bounds = array<i64: 1>, scalar_prefetch = 0 : i64, scratch_operands = 0 : i64, tpu.core_type = #tpu.core_type<tc>, window_params = [{transform_indices = @transform_0, window_bounds = array<i64: 16, 128>}, {pipeline_mode = #tpu.pipeline_mode<synchronous>, transform_indices = @transform_1, window_bounds = array<i64: 1, 128>}, {pipeline_mode = #tpu.pipeline_mode<synchronous>, transform_indices = @transform_2, window_bounds = array<i64: 1, 128>}, {transform_indices = @transform_3, window_bounds = array<i64: 16, 128>}, {transform_indices = @transform_4, window_bounds = array<i64: 16, 128>}]} {
    %c0 = arith.constant 0 : index
    %c0_0 = arith.constant 0 : index
    %0 = vector.load %arg1[%c0, %c0_0] : memref<16x128xbf16, #tpu.memory_space<vmem>>, vector<16x128xbf16>
    %1 = arith.extf %0 : vector<16x128xbf16> to vector<16x128xf32>
    %c0_1 = arith.constant 0 : index
    %c0_2 = arith.constant 0 : index
    %2 = vector.load %arg2[%c0_1, %c0_2] : memref<1x128xf32, #tpu.memory_space<vmem>>, vector<1x128xf32>
    %3 = vector.broadcast %2 : vector<1x128xf32> to vector<16x128xf32>
    %4 = arith.mulf %1, %3 : vector<16x128xf32>
    %c0_3 = arith.constant 0 : index
    %c0_4 = arith.constant 0 : index
    %5 = vector.load %arg3[%c0_3, %c0_4] : memref<1x128xf32, #tpu.memory_space<vmem>>, vector<1x128xf32>
    %6 = vector.broadcast %5 : vector<1x128xf32> to vector<16x128xf32>
    %7 = arith.addf %4, %6 : vector<16x128xf32>
    %c0_5 = arith.constant 0 : index
    %c0_6 = arith.constant 0 : index
    %8 = vector.load %arg4[%c0_5, %c0_6] : memref<16x128xbf16, #tpu.memory_space<vmem>>, vector<16x128xbf16>
    %9 = arith.extf %8 : vector<16x128xbf16> to vector<16x128xf32>
    %10 = arith.addf %7, %9 : vector<16x128xf32>
    %cst = arith.constant 0.000000e+00 : f32
    %11 = vector.broadcast %cst : f32 to vector<16x128xf32>
    %12 = arith.maximumf %10, %11 : vector<16x128xf32>
    %13 = arith.truncf %12 : vector<16x128xf32> to vector<16x128xbf16>
    %c0_7 = arith.constant 0 : index
    %c0_8 = arith.constant 0 : index
    %14 = vector.load %arg5[%c0_7, %c0_8] : memref<16x128xbf16, #tpu.memory_space<vmem>>, vector<16x128xbf16>
    tpu.vector_store %arg5[%c0_7, %c0_8], %13 {strides = array<i32>} : memref<16x128xbf16, #tpu.memory_space<vmem>>, vector<16x128xbf16>,
    return
  }
  func.func @transform_0(%arg0: i32) -> (i32, i32) {
    %c0_i32 = arith.constant 0 : i32
    %c0_i32_0 = arith.constant 0 : i32
    return %arg0, %c0_i32 : i32, i32
  }
  func.func @transform_1(%arg0: i32) -> (i32, i32) {
    %c0_i32 = arith.constant 0 : i32
    %c0_i32_0 = arith.constant 0 : i32
    %c0_i32_1 = arith.constant 0 : i32
    return %c0_i32, %c0_i32_0 : i32, i32
  }
  func.func @transform_2(%arg0: i32) -> (i32, i32) {
    %c0_i32 = arith.constant 0 : i32
    %c0_i32_0 = arith.constant 0 : i32
    %c0_i32_1 = arith.constant 0 : i32
    return %c0_i32, %c0_i32_0 : i32, i32
  }
  func.func @transform_3(%arg0: i32) -> (i32, i32) {
    %c0_i32 = arith.constant 0 : i32
    %c0_i32_0 = arith.constant 0 : i32
    return %arg0, %c0_i32 : i32, i32
  }
  func.func @transform_4(%arg0: i32) -> (i32, i32) {
    %c0_i32 = arith.constant 0 : i32
    %c0_i32_0 = arith.constant 0 : i32
    return %arg0, %c0_i32 : i32, i32
  }
}

module attributes {stable_mosaic.version = 11 : i64} {
  func.func @_conv_stats_kernel(%arg0: i32, %arg1: memref<1x18x10x8xbf16, #tpu.memory_space<vmem>>, %arg2: memref<72x8xbf16, #tpu.memory_space<vmem>>, %arg3: memref<1x16x8x8xbf16, #tpu.memory_space<vmem>>, %arg4: memref<1x1x8xf32, #tpu.memory_space<vmem>>, %arg5: memref<1x1x8xf32, #tpu.memory_space<vmem>>) attributes {dimension_semantics = [#tpu.dimension_semantics<parallel>], iteration_bounds = array<i64: 2>, scalar_prefetch = 0 : i64, scratch_operands = 0 : i64, tpu.core_type = #tpu.core_type<tc>, window_params = [{transform_indices = @transform_0, window_bounds = array<i64: 1, 18, 10, 8>}, {pipeline_mode = #tpu.pipeline_mode<synchronous>, transform_indices = @transform_1, window_bounds = array<i64: 72, 8>}, {transform_indices = @transform_2, window_bounds = array<i64: 1, 16, 8, 8>}, {transform_indices = @transform_3, window_bounds = array<i64: 1, 1, 8>}, {transform_indices = @transform_4, window_bounds = array<i64: 1, 1, 8>}]} {
    %c0 = arith.constant 0 : index
    %c0_0 = arith.constant 0 : index
    %0 = vector.load %arg2[%c0, %c0_0] : memref<72x8xbf16, #tpu.memory_space<vmem>>, vector<72x8xbf16>
    %cst = arith.constant 0.000000e+00 : f32
    %1 = vector.broadcast %cst : f32 to vector<1x8xf32>
    %c0_i32 = arith.constant 0 : i32
    %c16_i32 = arith.constant 16 : i32
    %2 = arith.addi %c0_i32, %c16_i32 : i32
    %c1_i32 = arith.constant 1 : i32
    %3:2 = scf.for %arg6 = %c0_i32 to %2 step %c1_i32 iter_args(%arg7 = %1, %arg8 = %1) -> (vector<1x8xf32>, vector<1x8xf32>)  : i32 {
      %c1_i32_8 = arith.constant 1 : i32
      %10 = arith.muli %arg6, %c1_i32_8 : i32
      %c0_i32_9 = arith.constant 0 : i32
      %11 = arith.addi %10, %c0_i32_9 : i32
      %c0_10 = arith.constant 0 : index
      %12 = arith.index_cast %11 : i32 to index
      %c0_11 = arith.constant 0 : index
      %c0_12 = arith.constant 0 : index
      %13 = vector.load %arg1[%c0_10, %12, %c0_11, %c0_12] : memref<1x18x10x8xbf16, #tpu.memory_space<vmem>>, vector<1x1x10x8xbf16>
      %14 = vector.shape_cast %13 : vector<1x1x10x8xbf16> to vector<10x8xbf16>
      %15 = vector.extract_strided_slice %14 {offsets = [0, 0], sizes = [8, 8], strides = [1, 1]} : vector<10x8xbf16> to vector<8x8xbf16>
      %16 = vector.extract_strided_slice %14 {offsets = [1, 0], sizes = [8, 8], strides = [1, 1]} : vector<10x8xbf16> to vector<8x8xbf16>
      %17 = vector.extract_strided_slice %14 {offsets = [2, 0], sizes = [8, 8], strides = [1, 1]} : vector<10x8xbf16> to vector<8x8xbf16>
      %c1_i32_13 = arith.constant 1 : i32
      %18 = arith.muli %arg6, %c1_i32_13 : i32
      %c1_i32_14 = arith.constant 1 : i32
      %19 = arith.addi %18, %c1_i32_14 : i32
      %c0_15 = arith.constant 0 : index
      %20 = arith.index_cast %19 : i32 to index
      %c0_16 = arith.constant 0 : index
      %c0_17 = arith.constant 0 : index
      %21 = vector.load %arg1[%c0_15, %20, %c0_16, %c0_17] : memref<1x18x10x8xbf16, #tpu.memory_space<vmem>>, vector<1x1x10x8xbf16>
      %22 = vector.shape_cast %21 : vector<1x1x10x8xbf16> to vector<10x8xbf16>
      %23 = vector.extract_strided_slice %22 {offsets = [0, 0], sizes = [8, 8], strides = [1, 1]} : vector<10x8xbf16> to vector<8x8xbf16>
      %24 = vector.extract_strided_slice %22 {offsets = [1, 0], sizes = [8, 8], strides = [1, 1]} : vector<10x8xbf16> to vector<8x8xbf16>
      %25 = vector.extract_strided_slice %22 {offsets = [2, 0], sizes = [8, 8], strides = [1, 1]} : vector<10x8xbf16> to vector<8x8xbf16>
      %c1_i32_18 = arith.constant 1 : i32
      %26 = arith.muli %arg6, %c1_i32_18 : i32
      %c2_i32 = arith.constant 2 : i32
      %27 = arith.addi %26, %c2_i32 : i32
      %c0_19 = arith.constant 0 : index
      %28 = arith.index_cast %27 : i32 to index
      %c0_20 = arith.constant 0 : index
      %c0_21 = arith.constant 0 : index
      %29 = vector.load %arg1[%c0_19, %28, %c0_20, %c0_21] : memref<1x18x10x8xbf16, #tpu.memory_space<vmem>>, vector<1x1x10x8xbf16>
      %30 = vector.shape_cast %29 : vector<1x1x10x8xbf16> to vector<10x8xbf16>
      %31 = vector.extract_strided_slice %30 {offsets = [0, 0], sizes = [8, 8], strides = [1, 1]} : vector<10x8xbf16> to vector<8x8xbf16>
      %32 = vector.extract_strided_slice %30 {offsets = [1, 0], sizes = [8, 8], strides = [1, 1]} : vector<10x8xbf16> to vector<8x8xbf16>
      %33 = vector.extract_strided_slice %30 {offsets = [2, 0], sizes = [8, 8], strides = [1, 1]} : vector<10x8xbf16> to vector<8x8xbf16>
      %34 = tpu.concatenate %15, %16, %17, %23, %24, %25, %31, %32, %33 in 1 : vector<8x8xbf16>, vector<8x8xbf16>, vector<8x8xbf16>, vector<8x8xbf16>, vector<8x8xbf16>, vector<8x8xbf16>, vector<8x8xbf16>, vector<8x8xbf16>, vector<8x8xbf16> -> vector<8x72xbf16>
      %cst_22 = arith.constant dense<0.000000e+00> : vector<8x8xf32>
      %35 = tpu.matmul %34, %0, %cst_22 {dimension_numbers = #tpu.dot_dimension_numbers<[1], [0], [0], [1], [0, 0, 1, 1], [], []>} : vector<8x72xbf16>, vector<72x8xbf16>, vector<8x8xf32> -> vector<8x8xf32>
      %36 = arith.truncf %35 : vector<8x8xf32> to vector<8x8xbf16>
      %c0_23 = arith.constant 0 : index
      %37 = arith.index_cast %arg6 : i32 to index
      %c0_24 = arith.constant 0 : index
      %c0_25 = arith.constant 0 : index
      %38 = vector.load %arg3[%c0_23, %37, %c0_24, %c0_25] : memref<1x16x8x8xbf16, #tpu.memory_space<vmem>>, vector<1x1x8x8xbf16>
      %39 = vector.shape_cast %38 : vector<1x1x8x8xbf16> to vector<8x8xbf16>
      %40 = vector.shape_cast %36 : vector<8x8xbf16> to vector<1x1x8x8xbf16>
      tpu.vector_store %arg3[%c0_23, %37, %c0_24, %c0_25], %40 {strides = array<i32>} : memref<1x16x8x8xbf16, #tpu.memory_space<vmem>>, vector<1x1x8x8xbf16>,
      %cst_26 = arith.constant dense<0.000000e+00> : vector<8xf32>
      %41 = vector.multi_reduction <add>, %35, %cst_26 [0] : vector<8x8xf32> to vector<8xf32>
      %42 = vector.shape_cast %41 : vector<8xf32> to vector<1x8xf32>
      %43 = arith.addf %arg7, %42 : vector<1x8xf32>
      %44 = arith.mulf %35, %35 : vector<8x8xf32>
      %cst_27 = arith.constant dense<0.000000e+00> : vector<8xf32>
      %45 = vector.multi_reduction <add>, %44, %cst_27 [0] : vector<8x8xf32> to vector<8xf32>
      %46 = vector.shape_cast %45 : vector<8xf32> to vector<1x8xf32>
      %47 = arith.addf %arg8, %46 : vector<1x8xf32>
      scf.yield %43, %47 : vector<1x8xf32>, vector<1x8xf32>
    }
    %c16_i32_1 = arith.constant 16 : i32
    %c0_2 = arith.constant 0 : index
    %c0_3 = arith.constant 0 : index
    %c0_4 = arith.constant 0 : index
    %4 = vector.load %arg4[%c0_2, %c0_3, %c0_4] : memref<1x1x8xf32, #tpu.memory_space<vmem>>, vector<1x1x8xf32>
    %5 = vector.shape_cast %4 : vector<1x1x8xf32> to vector<1x8xf32>
    %6 = vector.shape_cast %3#0 : vector<1x8xf32> to vector<1x1x8xf32>
    tpu.vector_store %arg4[%c0_2, %c0_3, %c0_4], %6 {strides = array<i32>} : memref<1x1x8xf32, #tpu.memory_space<vmem>>, vector<1x1x8xf32>,
    %c0_5 = arith.constant 0 : index
    %c0_6 = arith.constant 0 : index
    %c0_7 = arith.constant 0 : index
    %7 = vector.load %arg5[%c0_5, %c0_6, %c0_7] : memref<1x1x8xf32, #tpu.memory_space<vmem>>, vector<1x1x8xf32>
    %8 = vector.shape_cast %7 : vector<1x1x8xf32> to vector<1x8xf32>
    %9 = vector.shape_cast %3#1 : vector<1x8xf32> to vector<1x1x8xf32>
    tpu.vector_store %arg5[%c0_5, %c0_6, %c0_7], %9 {strides = array<i32>} : memref<1x1x8xf32, #tpu.memory_space<vmem>>, vector<1x1x8xf32>,
    return
  }
  func.func @transform_0(%arg0: i32) -> (i32, i32, i32, i32) {
    %c0_i32 = arith.constant 0 : i32
    %c0_i32_0 = arith.constant 0 : i32
    %c0_i32_1 = arith.constant 0 : i32
    %c0_i32_2 = arith.constant 0 : i32
    return %arg0, %c0_i32, %c0_i32_0, %c0_i32_1 : i32, i32, i32, i32
  }
  func.func @transform_1(%arg0: i32) -> (i32, i32) {
    %c0_i32 = arith.constant 0 : i32
    %c0_i32_0 = arith.constant 0 : i32
    %c0_i32_1 = arith.constant 0 : i32
    return %c0_i32, %c0_i32_0 : i32, i32
  }
  func.func @transform_2(%arg0: i32) -> (i32, i32, i32, i32) {
    %c0_i32 = arith.constant 0 : i32
    %c0_i32_0 = arith.constant 0 : i32
    %c0_i32_1 = arith.constant 0 : i32
    %c0_i32_2 = arith.constant 0 : i32
    return %arg0, %c0_i32, %c0_i32_0, %c0_i32_1 : i32, i32, i32, i32
  }
  func.func @transform_3(%arg0: i32) -> (i32, i32, i32) {
    %c0_i32 = arith.constant 0 : i32
    %c0_i32_0 = arith.constant 0 : i32
    %c0_i32_1 = arith.constant 0 : i32
    return %arg0, %c0_i32, %c0_i32_0 : i32, i32, i32
  }
  func.func @transform_4(%arg0: i32) -> (i32, i32, i32) {
    %c0_i32 = arith.constant 0 : i32
    %c0_i32_0 = arith.constant 0 : i32
    %c0_i32_1 = arith.constant 0 : i32
    return %arg0, %c0_i32, %c0_i32_0 : i32, i32, i32
  }
}

module attributes {stable_mosaic.version = 11 : i64} {
  func.func @_conv_stats_kernel(%arg0: i32, %arg1: memref<1x8x4x8xbf16, #tpu.memory_space<vmem>>, %arg2: memref<8x16xbf16, #tpu.memory_space<vmem>>, %arg3: memref<1x8x4x16xbf16, #tpu.memory_space<vmem>>, %arg4: memref<1x1x16xf32, #tpu.memory_space<vmem>>, %arg5: memref<1x1x16xf32, #tpu.memory_space<vmem>>) attributes {dimension_semantics = [#tpu.dimension_semantics<parallel>], iteration_bounds = array<i64: 2>, scalar_prefetch = 0 : i64, scratch_operands = 0 : i64, tpu.core_type = #tpu.core_type<tc>, window_params = [{transform_indices = @transform_0, window_bounds = array<i64: 1, 8, 4, 8>}, {pipeline_mode = #tpu.pipeline_mode<synchronous>, transform_indices = @transform_1, window_bounds = array<i64: 8, 16>}, {transform_indices = @transform_2, window_bounds = array<i64: 1, 8, 4, 16>}, {transform_indices = @transform_3, window_bounds = array<i64: 1, 1, 16>}, {transform_indices = @transform_4, window_bounds = array<i64: 1, 1, 16>}]} {
    %c0 = arith.constant 0 : index
    %c0_0 = arith.constant 0 : index
    %0 = vector.load %arg2[%c0, %c0_0] : memref<8x16xbf16, #tpu.memory_space<vmem>>, vector<8x16xbf16>
    %cst = arith.constant 0.000000e+00 : f32
    %1 = vector.broadcast %cst : f32 to vector<1x16xf32>
    %c0_i32 = arith.constant 0 : i32
    %c8_i32 = arith.constant 8 : i32
    %2 = arith.addi %c0_i32, %c8_i32 : i32
    %c1_i32 = arith.constant 1 : i32
    %3:2 = scf.for %arg6 = %c0_i32 to %2 step %c1_i32 iter_args(%arg7 = %1, %arg8 = %1) -> (vector<1x16xf32>, vector<1x16xf32>)  : i32 {
      %c1_i32_8 = arith.constant 1 : i32
      %10 = arith.muli %arg6, %c1_i32_8 : i32
      %c0_i32_9 = arith.constant 0 : i32
      %11 = arith.addi %10, %c0_i32_9 : i32
      %c0_10 = arith.constant 0 : index
      %12 = arith.index_cast %11 : i32 to index
      %c0_11 = arith.constant 0 : index
      %c0_12 = arith.constant 0 : index
      %13 = vector.load %arg1[%c0_10, %12, %c0_11, %c0_12] : memref<1x8x4x8xbf16, #tpu.memory_space<vmem>>, vector<1x1x4x8xbf16>
      %14 = vector.shape_cast %13 : vector<1x1x4x8xbf16> to vector<4x8xbf16>
      %cst_13 = arith.constant dense<0.000000e+00> : vector<4x16xf32>
      %15 = tpu.matmul %14, %0, %cst_13 {dimension_numbers = #tpu.dot_dimension_numbers<[1], [0], [0], [1], [0, 0, 1, 1], [], []>} : vector<4x8xbf16>, vector<8x16xbf16>, vector<4x16xf32> -> vector<4x16xf32>
      %16 = arith.truncf %15 : vector<4x16xf32> to vector<4x16xbf16>
      %c0_14 = arith.constant 0 : index
      %17 = arith.index_cast %arg6 : i32 to index
      %c0_15 = arith.constant 0 : index
      %c0_16 = arith.constant 0 : index
      %18 = vector.load %arg3[%c0_14, %17, %c0_15, %c0_16] : memref<1x8x4x16xbf16, #tpu.memory_space<vmem>>, vector<1x1x4x16xbf16>
      %19 = vector.shape_cast %18 : vector<1x1x4x16xbf16> to vector<4x16xbf16>
      %20 = vector.shape_cast %16 : vector<4x16xbf16> to vector<1x1x4x16xbf16>
      tpu.vector_store %arg3[%c0_14, %17, %c0_15, %c0_16], %20 {strides = array<i32>} : memref<1x8x4x16xbf16, #tpu.memory_space<vmem>>, vector<1x1x4x16xbf16>,
      %cst_17 = arith.constant dense<0.000000e+00> : vector<16xf32>
      %21 = vector.multi_reduction <add>, %15, %cst_17 [0] : vector<4x16xf32> to vector<16xf32>
      %22 = vector.shape_cast %21 : vector<16xf32> to vector<1x16xf32>
      %23 = arith.addf %arg7, %22 : vector<1x16xf32>
      %24 = arith.mulf %15, %15 : vector<4x16xf32>
      %cst_18 = arith.constant dense<0.000000e+00> : vector<16xf32>
      %25 = vector.multi_reduction <add>, %24, %cst_18 [0] : vector<4x16xf32> to vector<16xf32>
      %26 = vector.shape_cast %25 : vector<16xf32> to vector<1x16xf32>
      %27 = arith.addf %arg8, %26 : vector<1x16xf32>
      scf.yield %23, %27 : vector<1x16xf32>, vector<1x16xf32>
    }
    %c8_i32_1 = arith.constant 8 : i32
    %c0_2 = arith.constant 0 : index
    %c0_3 = arith.constant 0 : index
    %c0_4 = arith.constant 0 : index
    %4 = vector.load %arg4[%c0_2, %c0_3, %c0_4] : memref<1x1x16xf32, #tpu.memory_space<vmem>>, vector<1x1x16xf32>
    %5 = vector.shape_cast %4 : vector<1x1x16xf32> to vector<1x16xf32>
    %6 = vector.shape_cast %3#0 : vector<1x16xf32> to vector<1x1x16xf32>
    tpu.vector_store %arg4[%c0_2, %c0_3, %c0_4], %6 {strides = array<i32>} : memref<1x1x16xf32, #tpu.memory_space<vmem>>, vector<1x1x16xf32>,
    %c0_5 = arith.constant 0 : index
    %c0_6 = arith.constant 0 : index
    %c0_7 = arith.constant 0 : index
    %7 = vector.load %arg5[%c0_5, %c0_6, %c0_7] : memref<1x1x16xf32, #tpu.memory_space<vmem>>, vector<1x1x16xf32>
    %8 = vector.shape_cast %7 : vector<1x1x16xf32> to vector<1x16xf32>
    %9 = vector.shape_cast %3#1 : vector<1x16xf32> to vector<1x1x16xf32>
    tpu.vector_store %arg5[%c0_5, %c0_6, %c0_7], %9 {strides = array<i32>} : memref<1x1x16xf32, #tpu.memory_space<vmem>>, vector<1x1x16xf32>,
    return
  }
  func.func @transform_0(%arg0: i32) -> (i32, i32, i32, i32) {
    %c0_i32 = arith.constant 0 : i32
    %c0_i32_0 = arith.constant 0 : i32
    %c0_i32_1 = arith.constant 0 : i32
    %c0_i32_2 = arith.constant 0 : i32
    return %arg0, %c0_i32, %c0_i32_0, %c0_i32_1 : i32, i32, i32, i32
  }
  func.func @transform_1(%arg0: i32) -> (i32, i32) {
    %c0_i32 = arith.constant 0 : i32
    %c0_i32_0 = arith.constant 0 : i32
    %c0_i32_1 = arith.constant 0 : i32
    return %c0_i32, %c0_i32_0 : i32, i32
  }
  func.func @transform_2(%arg0: i32) -> (i32, i32, i32, i32) {
    %c0_i32 = arith.constant 0 : i32
    %c0_i32_0 = arith.constant 0 : i32
    %c0_i32_1 = arith.constant 0 : i32
    %c0_i32_2 = arith.constant 0 : i32
    return %arg0, %c0_i32, %c0_i32_0, %c0_i32_1 : i32, i32, i32, i32
  }
  func.func @transform_3(%arg0: i32) -> (i32, i32, i32) {
    %c0_i32 = arith.constant 0 : i32
    %c0_i32_0 = arith.constant 0 : i32
    %c0_i32_1 = arith.constant 0 : i32
    return %arg0, %c0_i32, %c0_i32_0 : i32, i32, i32
  }
  func.func @transform_4(%arg0: i32) -> (i32, i32, i32) {
    %c0_i32 = arith.constant 0 : i32
    %c0_i32_0 = arith.constant 0 : i32
    %c0_i32_1 = arith.constant 0 : i32
    return %arg0, %c0_i32, %c0_i32_0 : i32, i32, i32
  }
}

module attributes {stable_mosaic.version = 11 : i64} {
  func.func @_maxpool_kernel(%arg0: i32, %arg1: memref<1x8x2x4x16xbf16, #tpu.memory_space<vmem>>, %arg2: memref<1x8x4x8xbf16, #tpu.memory_space<vmem>>) attributes {dimension_semantics = [#tpu.dimension_semantics<parallel>], iteration_bounds = array<i64: 2>, scalar_prefetch = 0 : i64, scratch_operands = 0 : i64, tpu.core_type = #tpu.core_type<tc>, window_params = [{transform_indices = @transform_0, window_bounds = array<i64: 1, 8, 2, 4, 16>}, {transform_indices = @transform_1, window_bounds = array<i64: 1, 8, 4, 8>}]} {
    %c0 = arith.constant 0 : index
    %c0_0 = arith.constant 0 : index
    %c0_1 = arith.constant 0 : index
    %c0_2 = arith.constant 0 : index
    %c0_3 = arith.constant 0 : index
    %0 = vector.load %arg1[%c0, %c0_0, %c0_1, %c0_2, %c0_3] : memref<1x8x2x4x16xbf16, #tpu.memory_space<vmem>>, vector<1x8x2x4x16xbf16>
    %1 = arith.extf %0 : vector<1x8x2x4x16xbf16> to vector<1x8x2x4x16xf32>
    %2 = vector.extract_strided_slice %1 {offsets = [0, 0, 0, 0, 0], sizes = [1, 8, 1, 4, 16], strides = [1, 1, 1, 1, 1]} : vector<1x8x2x4x16xf32> to vector<1x8x1x4x16xf32>
    %3 = vector.shape_cast %2 : vector<1x8x1x4x16xf32> to vector<1x8x4x16xf32>
    %4 = vector.extract_strided_slice %1 {offsets = [0, 0, 1, 0, 0], sizes = [1, 8, 1, 4, 16], strides = [1, 1, 1, 1, 1]} : vector<1x8x2x4x16xf32> to vector<1x8x1x4x16xf32>
    %5 = vector.shape_cast %4 : vector<1x8x1x4x16xf32> to vector<1x8x4x16xf32>
    %6 = arith.maximumf %3, %5 : vector<1x8x4x16xf32>
    %7 = vector.extract_strided_slice %6 {offsets = [0, 0, 0, 0], sizes = [1, 8, 4, 8], strides = [1, 1, 1, 1]} : vector<1x8x4x16xf32> to vector<1x8x4x8xf32>
    %8 = vector.extract_strided_slice %6 {offsets = [0, 0, 0, 8], sizes = [1, 8, 4, 8], strides = [1, 1, 1, 1]} : vector<1x8x4x16xf32> to vector<1x8x4x8xf32>
    %9 = arith.maximumf %7, %8 : vector<1x8x4x8xf32>
    %10 = arith.truncf %9 : vector<1x8x4x8xf32> to vector<1x8x4x8xbf16>
    %c0_4 = arith.constant 0 : index
    %c0_5 = arith.constant 0 : index
    %c0_6 = arith.constant 0 : index
    %c0_7 = arith.constant 0 : index
    %11 = vector.load %arg2[%c0_4, %c0_5, %c0_6, %c0_7] : memref<1x8x4x8xbf16, #tpu.memory_space<vmem>>, vector<1x8x4x8xbf16>
    tpu.vector_store %arg2[%c0_4, %c0_5, %c0_6, %c0_7], %10 {strides = array<i32>} : memref<1x8x4x8xbf16, #tpu.memory_space<vmem>>, vector<1x8x4x8xbf16>,
    return
  }
  func.func @transform_0(%arg0: i32) -> (i32, i32, i32, i32, i32) {
    %c0_i32 = arith.constant 0 : i32
    %c0_i32_0 = arith.constant 0 : i32
    %c0_i32_1 = arith.constant 0 : i32
    %c0_i32_2 = arith.constant 0 : i32
    %c0_i32_3 = arith.constant 0 : i32
    return %arg0, %c0_i32, %c0_i32_0, %c0_i32_1, %c0_i32_2 : i32, i32, i32, i32, i32
  }
  func.func @transform_1(%arg0: i32) -> (i32, i32, i32, i32) {
    %c0_i32 = arith.constant 0 : i32
    %c0_i32_0 = arith.constant 0 : i32
    %c0_i32_1 = arith.constant 0 : i32
    %c0_i32_2 = arith.constant 0 : i32
    return %arg0, %c0_i32, %c0_i32_0, %c0_i32_1 : i32, i32, i32, i32
  }
}

module attributes {stable_mosaic.version = 11 : i64} {
  func.func @_conv_stats_kernel(%arg0: i32, %arg1: memref<1x10x6x8xbf16, #tpu.memory_space<vmem>>, %arg2: memref<72x16xbf16, #tpu.memory_space<vmem>>, %arg3: memref<1x8x4x16xbf16, #tpu.memory_space<vmem>>, %arg4: memref<1x1x16xf32, #tpu.memory_space<vmem>>, %arg5: memref<1x1x16xf32, #tpu.memory_space<vmem>>) attributes {dimension_semantics = [#tpu.dimension_semantics<parallel>], iteration_bounds = array<i64: 2>, scalar_prefetch = 0 : i64, scratch_operands = 0 : i64, tpu.core_type = #tpu.core_type<tc>, window_params = [{transform_indices = @transform_0, window_bounds = array<i64: 1, 10, 6, 8>}, {pipeline_mode = #tpu.pipeline_mode<synchronous>, transform_indices = @transform_1, window_bounds = array<i64: 72, 16>}, {transform_indices = @transform_2, window_bounds = array<i64: 1, 8, 4, 16>}, {transform_indices = @transform_3, window_bounds = array<i64: 1, 1, 16>}, {transform_indices = @transform_4, window_bounds = array<i64: 1, 1, 16>}]} {
    %c0 = arith.constant 0 : index
    %c0_0 = arith.constant 0 : index
    %0 = vector.load %arg2[%c0, %c0_0] : memref<72x16xbf16, #tpu.memory_space<vmem>>, vector<72x16xbf16>
    %cst = arith.constant 0.000000e+00 : f32
    %1 = vector.broadcast %cst : f32 to vector<1x16xf32>
    %c0_i32 = arith.constant 0 : i32
    %c8_i32 = arith.constant 8 : i32
    %2 = arith.addi %c0_i32, %c8_i32 : i32
    %c1_i32 = arith.constant 1 : i32
    %3:2 = scf.for %arg6 = %c0_i32 to %2 step %c1_i32 iter_args(%arg7 = %1, %arg8 = %1) -> (vector<1x16xf32>, vector<1x16xf32>)  : i32 {
      %c1_i32_8 = arith.constant 1 : i32
      %10 = arith.muli %arg6, %c1_i32_8 : i32
      %c0_i32_9 = arith.constant 0 : i32
      %11 = arith.addi %10, %c0_i32_9 : i32
      %c0_10 = arith.constant 0 : index
      %12 = arith.index_cast %11 : i32 to index
      %c0_11 = arith.constant 0 : index
      %c0_12 = arith.constant 0 : index
      %13 = vector.load %arg1[%c0_10, %12, %c0_11, %c0_12] : memref<1x10x6x8xbf16, #tpu.memory_space<vmem>>, vector<1x1x6x8xbf16>
      %14 = vector.shape_cast %13 : vector<1x1x6x8xbf16> to vector<6x8xbf16>
      %15 = vector.extract_strided_slice %14 {offsets = [0, 0], sizes = [4, 8], strides = [1, 1]} : vector<6x8xbf16> to vector<4x8xbf16>
      %16 = vector.extract_strided_slice %14 {offsets = [1, 0], sizes = [4, 8], strides = [1, 1]} : vector<6x8xbf16> to vector<4x8xbf16>
      %17 = vector.extract_strided_slice %14 {offsets = [2, 0], sizes = [4, 8], strides = [1, 1]} : vector<6x8xbf16> to vector<4x8xbf16>
      %c1_i32_13 = arith.constant 1 : i32
      %18 = arith.muli %arg6, %c1_i32_13 : i32
      %c1_i32_14 = arith.constant 1 : i32
      %19 = arith.addi %18, %c1_i32_14 : i32
      %c0_15 = arith.constant 0 : index
      %20 = arith.index_cast %19 : i32 to index
      %c0_16 = arith.constant 0 : index
      %c0_17 = arith.constant 0 : index
      %21 = vector.load %arg1[%c0_15, %20, %c0_16, %c0_17] : memref<1x10x6x8xbf16, #tpu.memory_space<vmem>>, vector<1x1x6x8xbf16>
      %22 = vector.shape_cast %21 : vector<1x1x6x8xbf16> to vector<6x8xbf16>
      %23 = vector.extract_strided_slice %22 {offsets = [0, 0], sizes = [4, 8], strides = [1, 1]} : vector<6x8xbf16> to vector<4x8xbf16>
      %24 = vector.extract_strided_slice %22 {offsets = [1, 0], sizes = [4, 8], strides = [1, 1]} : vector<6x8xbf16> to vector<4x8xbf16>
      %25 = vector.extract_strided_slice %22 {offsets = [2, 0], sizes = [4, 8], strides = [1, 1]} : vector<6x8xbf16> to vector<4x8xbf16>
      %c1_i32_18 = arith.constant 1 : i32
      %26 = arith.muli %arg6, %c1_i32_18 : i32
      %c2_i32 = arith.constant 2 : i32
      %27 = arith.addi %26, %c2_i32 : i32
      %c0_19 = arith.constant 0 : index
      %28 = arith.index_cast %27 : i32 to index
      %c0_20 = arith.constant 0 : index
      %c0_21 = arith.constant 0 : index
      %29 = vector.load %arg1[%c0_19, %28, %c0_20, %c0_21] : memref<1x10x6x8xbf16, #tpu.memory_space<vmem>>, vector<1x1x6x8xbf16>
      %30 = vector.shape_cast %29 : vector<1x1x6x8xbf16> to vector<6x8xbf16>
      %31 = vector.extract_strided_slice %30 {offsets = [0, 0], sizes = [4, 8], strides = [1, 1]} : vector<6x8xbf16> to vector<4x8xbf16>
      %32 = vector.extract_strided_slice %30 {offsets = [1, 0], sizes = [4, 8], strides = [1, 1]} : vector<6x8xbf16> to vector<4x8xbf16>
      %33 = vector.extract_strided_slice %30 {offsets = [2, 0], sizes = [4, 8], strides = [1, 1]} : vector<6x8xbf16> to vector<4x8xbf16>
      %34 = tpu.concatenate %15, %16, %17, %23, %24, %25, %31, %32, %33 in 1 : vector<4x8xbf16>, vector<4x8xbf16>, vector<4x8xbf16>, vector<4x8xbf16>, vector<4x8xbf16>, vector<4x8xbf16>, vector<4x8xbf16>, vector<4x8xbf16>, vector<4x8xbf16> -> vector<4x72xbf16>
      %cst_22 = arith.constant dense<0.000000e+00> : vector<4x16xf32>
      %35 = tpu.matmul %34, %0, %cst_22 {dimension_numbers = #tpu.dot_dimension_numbers<[1], [0], [0], [1], [0, 0, 1, 1], [], []>} : vector<4x72xbf16>, vector<72x16xbf16>, vector<4x16xf32> -> vector<4x16xf32>
      %36 = arith.truncf %35 : vector<4x16xf32> to vector<4x16xbf16>
      %c0_23 = arith.constant 0 : index
      %37 = arith.index_cast %arg6 : i32 to index
      %c0_24 = arith.constant 0 : index
      %c0_25 = arith.constant 0 : index
      %38 = vector.load %arg3[%c0_23, %37, %c0_24, %c0_25] : memref<1x8x4x16xbf16, #tpu.memory_space<vmem>>, vector<1x1x4x16xbf16>
      %39 = vector.shape_cast %38 : vector<1x1x4x16xbf16> to vector<4x16xbf16>
      %40 = vector.shape_cast %36 : vector<4x16xbf16> to vector<1x1x4x16xbf16>
      tpu.vector_store %arg3[%c0_23, %37, %c0_24, %c0_25], %40 {strides = array<i32>} : memref<1x8x4x16xbf16, #tpu.memory_space<vmem>>, vector<1x1x4x16xbf16>,
      %cst_26 = arith.constant dense<0.000000e+00> : vector<16xf32>
      %41 = vector.multi_reduction <add>, %35, %cst_26 [0] : vector<4x16xf32> to vector<16xf32>
      %42 = vector.shape_cast %41 : vector<16xf32> to vector<1x16xf32>
      %43 = arith.addf %arg7, %42 : vector<1x16xf32>
      %44 = arith.mulf %35, %35 : vector<4x16xf32>
      %cst_27 = arith.constant dense<0.000000e+00> : vector<16xf32>
      %45 = vector.multi_reduction <add>, %44, %cst_27 [0] : vector<4x16xf32> to vector<16xf32>
      %46 = vector.shape_cast %45 : vector<16xf32> to vector<1x16xf32>
      %47 = arith.addf %arg8, %46 : vector<1x16xf32>
      scf.yield %43, %47 : vector<1x16xf32>, vector<1x16xf32>
    }
    %c8_i32_1 = arith.constant 8 : i32
    %c0_2 = arith.constant 0 : index
    %c0_3 = arith.constant 0 : index
    %c0_4 = arith.constant 0 : index
    %4 = vector.load %arg4[%c0_2, %c0_3, %c0_4] : memref<1x1x16xf32, #tpu.memory_space<vmem>>, vector<1x1x16xf32>
    %5 = vector.shape_cast %4 : vector<1x1x16xf32> to vector<1x16xf32>
    %6 = vector.shape_cast %3#0 : vector<1x16xf32> to vector<1x1x16xf32>
    tpu.vector_store %arg4[%c0_2, %c0_3, %c0_4], %6 {strides = array<i32>} : memref<1x1x16xf32, #tpu.memory_space<vmem>>, vector<1x1x16xf32>,
    %c0_5 = arith.constant 0 : index
    %c0_6 = arith.constant 0 : index
    %c0_7 = arith.constant 0 : index
    %7 = vector.load %arg5[%c0_5, %c0_6, %c0_7] : memref<1x1x16xf32, #tpu.memory_space<vmem>>, vector<1x1x16xf32>
    %8 = vector.shape_cast %7 : vector<1x1x16xf32> to vector<1x16xf32>
    %9 = vector.shape_cast %3#1 : vector<1x16xf32> to vector<1x1x16xf32>
    tpu.vector_store %arg5[%c0_5, %c0_6, %c0_7], %9 {strides = array<i32>} : memref<1x1x16xf32, #tpu.memory_space<vmem>>, vector<1x1x16xf32>,
    return
  }
  func.func @transform_0(%arg0: i32) -> (i32, i32, i32, i32) {
    %c0_i32 = arith.constant 0 : i32
    %c0_i32_0 = arith.constant 0 : i32
    %c0_i32_1 = arith.constant 0 : i32
    %c0_i32_2 = arith.constant 0 : i32
    return %arg0, %c0_i32, %c0_i32_0, %c0_i32_1 : i32, i32, i32, i32
  }
  func.func @transform_1(%arg0: i32) -> (i32, i32) {
    %c0_i32 = arith.constant 0 : i32
    %c0_i32_0 = arith.constant 0 : i32
    %c0_i32_1 = arith.constant 0 : i32
    return %c0_i32, %c0_i32_0 : i32, i32
  }
  func.func @transform_2(%arg0: i32) -> (i32, i32, i32, i32) {
    %c0_i32 = arith.constant 0 : i32
    %c0_i32_0 = arith.constant 0 : i32
    %c0_i32_1 = arith.constant 0 : i32
    %c0_i32_2 = arith.constant 0 : i32
    return %arg0, %c0_i32, %c0_i32_0, %c0_i32_1 : i32, i32, i32, i32
  }
  func.func @transform_3(%arg0: i32) -> (i32, i32, i32) {
    %c0_i32 = arith.constant 0 : i32
    %c0_i32_0 = arith.constant 0 : i32
    %c0_i32_1 = arith.constant 0 : i32
    return %arg0, %c0_i32, %c0_i32_0 : i32, i32, i32
  }
  func.func @transform_4(%arg0: i32) -> (i32, i32, i32) {
    %c0_i32 = arith.constant 0 : i32
    %c0_i32_0 = arith.constant 0 : i32
    %c0_i32_1 = arith.constant 0 : i32
    return %arg0, %c0_i32, %c0_i32_0 : i32, i32, i32
  }
}

module attributes {stable_mosaic.version = 11 : i64} {
  func.func @_bn_apply_kernel(%arg0: i32, %arg1: memref<8x128xbf16, #tpu.memory_space<vmem>>, %arg2: memref<1x128xf32, #tpu.memory_space<vmem>>, %arg3: memref<1x128xf32, #tpu.memory_space<vmem>>, %arg4: memref<8x128xbf16, #tpu.memory_space<vmem>>) attributes {dimension_semantics = [#tpu.dimension_semantics<parallel>], iteration_bounds = array<i64: 1>, scalar_prefetch = 0 : i64, scratch_operands = 0 : i64, tpu.core_type = #tpu.core_type<tc>, window_params = [{transform_indices = @transform_0, window_bounds = array<i64: 8, 128>}, {pipeline_mode = #tpu.pipeline_mode<synchronous>, transform_indices = @transform_1, window_bounds = array<i64: 1, 128>}, {pipeline_mode = #tpu.pipeline_mode<synchronous>, transform_indices = @transform_2, window_bounds = array<i64: 1, 128>}, {transform_indices = @transform_3, window_bounds = array<i64: 8, 128>}]} {
    %c0 = arith.constant 0 : index
    %c0_0 = arith.constant 0 : index
    %0 = vector.load %arg1[%c0, %c0_0] : memref<8x128xbf16, #tpu.memory_space<vmem>>, vector<8x128xbf16>
    %1 = arith.extf %0 : vector<8x128xbf16> to vector<8x128xf32>
    %c0_1 = arith.constant 0 : index
    %c0_2 = arith.constant 0 : index
    %2 = vector.load %arg2[%c0_1, %c0_2] : memref<1x128xf32, #tpu.memory_space<vmem>>, vector<1x128xf32>
    %3 = vector.broadcast %2 : vector<1x128xf32> to vector<8x128xf32>
    %4 = arith.mulf %1, %3 : vector<8x128xf32>
    %c0_3 = arith.constant 0 : index
    %c0_4 = arith.constant 0 : index
    %5 = vector.load %arg3[%c0_3, %c0_4] : memref<1x128xf32, #tpu.memory_space<vmem>>, vector<1x128xf32>
    %6 = vector.broadcast %5 : vector<1x128xf32> to vector<8x128xf32>
    %7 = arith.addf %4, %6 : vector<8x128xf32>
    %8 = arith.truncf %7 : vector<8x128xf32> to vector<8x128xbf16>
    %c0_5 = arith.constant 0 : index
    %c0_6 = arith.constant 0 : index
    %9 = vector.load %arg4[%c0_5, %c0_6] : memref<8x128xbf16, #tpu.memory_space<vmem>>, vector<8x128xbf16>
    tpu.vector_store %arg4[%c0_5, %c0_6], %8 {strides = array<i32>} : memref<8x128xbf16, #tpu.memory_space<vmem>>, vector<8x128xbf16>,
    return
  }
  func.func @transform_0(%arg0: i32) -> (i32, i32) {
    %c0_i32 = arith.constant 0 : i32
    %c0_i32_0 = arith.constant 0 : i32
    return %arg0, %c0_i32 : i32, i32
  }
  func.func @transform_1(%arg0: i32) -> (i32, i32) {
    %c0_i32 = arith.constant 0 : i32
    %c0_i32_0 = arith.constant 0 : i32
    %c0_i32_1 = arith.constant 0 : i32
    return %c0_i32, %c0_i32_0 : i32, i32
  }
  func.func @transform_2(%arg0: i32) -> (i32, i32) {
    %c0_i32 = arith.constant 0 : i32
    %c0_i32_0 = arith.constant 0 : i32
    %c0_i32_1 = arith.constant 0 : i32
    return %c0_i32, %c0_i32_0 : i32, i32
  }
  func.func @transform_3(%arg0: i32) -> (i32, i32) {
    %c0_i32 = arith.constant 0 : i32
    %c0_i32_0 = arith.constant 0 : i32
    return %arg0, %c0_i32 : i32, i32
  }
}

module attributes {stable_mosaic.version = 11 : i64} {
  func.func @_bn_apply_kernel(%arg0: i32, %arg1: memref<8x128xbf16, #tpu.memory_space<vmem>>, %arg2: memref<1x128xf32, #tpu.memory_space<vmem>>, %arg3: memref<1x128xf32, #tpu.memory_space<vmem>>, %arg4: memref<8x128xbf16, #tpu.memory_space<vmem>>) attributes {dimension_semantics = [#tpu.dimension_semantics<parallel>], iteration_bounds = array<i64: 1>, scalar_prefetch = 0 : i64, scratch_operands = 0 : i64, tpu.core_type = #tpu.core_type<tc>, window_params = [{transform_indices = @transform_0, window_bounds = array<i64: 8, 128>}, {pipeline_mode = #tpu.pipeline_mode<synchronous>, transform_indices = @transform_1, window_bounds = array<i64: 1, 128>}, {pipeline_mode = #tpu.pipeline_mode<synchronous>, transform_indices = @transform_2, window_bounds = array<i64: 1, 128>}, {transform_indices = @transform_3, window_bounds = array<i64: 8, 128>}]} {
    %c0 = arith.constant 0 : index
    %c0_0 = arith.constant 0 : index
    %0 = vector.load %arg1[%c0, %c0_0] : memref<8x128xbf16, #tpu.memory_space<vmem>>, vector<8x128xbf16>
    %1 = arith.extf %0 : vector<8x128xbf16> to vector<8x128xf32>
    %c0_1 = arith.constant 0 : index
    %c0_2 = arith.constant 0 : index
    %2 = vector.load %arg2[%c0_1, %c0_2] : memref<1x128xf32, #tpu.memory_space<vmem>>, vector<1x128xf32>
    %3 = vector.broadcast %2 : vector<1x128xf32> to vector<8x128xf32>
    %4 = arith.mulf %1, %3 : vector<8x128xf32>
    %c0_3 = arith.constant 0 : index
    %c0_4 = arith.constant 0 : index
    %5 = vector.load %arg3[%c0_3, %c0_4] : memref<1x128xf32, #tpu.memory_space<vmem>>, vector<1x128xf32>
    %6 = vector.broadcast %5 : vector<1x128xf32> to vector<8x128xf32>
    %7 = arith.addf %4, %6 : vector<8x128xf32>
    %cst = arith.constant 0.000000e+00 : f32
    %8 = vector.broadcast %cst : f32 to vector<8x128xf32>
    %9 = arith.maximumf %7, %8 : vector<8x128xf32>
    %10 = arith.truncf %9 : vector<8x128xf32> to vector<8x128xbf16>
    %c0_5 = arith.constant 0 : index
    %c0_6 = arith.constant 0 : index
    %11 = vector.load %arg4[%c0_5, %c0_6] : memref<8x128xbf16, #tpu.memory_space<vmem>>, vector<8x128xbf16>
    tpu.vector_store %arg4[%c0_5, %c0_6], %10 {strides = array<i32>} : memref<8x128xbf16, #tpu.memory_space<vmem>>, vector<8x128xbf16>,
    return
  }
  func.func @transform_0(%arg0: i32) -> (i32, i32) {
    %c0_i32 = arith.constant 0 : i32
    %c0_i32_0 = arith.constant 0 : i32
    return %arg0, %c0_i32 : i32, i32
  }
  func.func @transform_1(%arg0: i32) -> (i32, i32) {
    %c0_i32 = arith.constant 0 : i32
    %c0_i32_0 = arith.constant 0 : i32
    %c0_i32_1 = arith.constant 0 : i32
    return %c0_i32, %c0_i32_0 : i32, i32
  }
  func.func @transform_2(%arg0: i32) -> (i32, i32) {
    %c0_i32 = arith.constant 0 : i32
    %c0_i32_0 = arith.constant 0 : i32
    %c0_i32_1 = arith.constant 0 : i32
    return %c0_i32, %c0_i32_0 : i32, i32
  }
  func.func @transform_3(%arg0: i32) -> (i32, i32) {
    %c0_i32 = arith.constant 0 : i32
    %c0_i32_0 = arith.constant 0 : i32
    return %arg0, %c0_i32 : i32, i32
  }
}

module attributes {stable_mosaic.version = 11 : i64} {
  func.func @_bn_apply_kernel(%arg0: i32, %arg1: memref<8x128xbf16, #tpu.memory_space<vmem>>, %arg2: memref<1x128xf32, #tpu.memory_space<vmem>>, %arg3: memref<1x128xf32, #tpu.memory_space<vmem>>, %arg4: memref<8x128xbf16, #tpu.memory_space<vmem>>, %arg5: memref<8x128xbf16, #tpu.memory_space<vmem>>) attributes {dimension_semantics = [#tpu.dimension_semantics<parallel>], iteration_bounds = array<i64: 1>, scalar_prefetch = 0 : i64, scratch_operands = 0 : i64, tpu.core_type = #tpu.core_type<tc>, window_params = [{transform_indices = @transform_0, window_bounds = array<i64: 8, 128>}, {pipeline_mode = #tpu.pipeline_mode<synchronous>, transform_indices = @transform_1, window_bounds = array<i64: 1, 128>}, {pipeline_mode = #tpu.pipeline_mode<synchronous>, transform_indices = @transform_2, window_bounds = array<i64: 1, 128>}, {transform_indices = @transform_3, window_bounds = array<i64: 8, 128>}, {transform_indices = @transform_4, window_bounds = array<i64: 8, 128>}]} {
    %c0 = arith.constant 0 : index
    %c0_0 = arith.constant 0 : index
    %0 = vector.load %arg1[%c0, %c0_0] : memref<8x128xbf16, #tpu.memory_space<vmem>>, vector<8x128xbf16>
    %1 = arith.extf %0 : vector<8x128xbf16> to vector<8x128xf32>
    %c0_1 = arith.constant 0 : index
    %c0_2 = arith.constant 0 : index
    %2 = vector.load %arg2[%c0_1, %c0_2] : memref<1x128xf32, #tpu.memory_space<vmem>>, vector<1x128xf32>
    %3 = vector.broadcast %2 : vector<1x128xf32> to vector<8x128xf32>
    %4 = arith.mulf %1, %3 : vector<8x128xf32>
    %c0_3 = arith.constant 0 : index
    %c0_4 = arith.constant 0 : index
    %5 = vector.load %arg3[%c0_3, %c0_4] : memref<1x128xf32, #tpu.memory_space<vmem>>, vector<1x128xf32>
    %6 = vector.broadcast %5 : vector<1x128xf32> to vector<8x128xf32>
    %7 = arith.addf %4, %6 : vector<8x128xf32>
    %c0_5 = arith.constant 0 : index
    %c0_6 = arith.constant 0 : index
    %8 = vector.load %arg4[%c0_5, %c0_6] : memref<8x128xbf16, #tpu.memory_space<vmem>>, vector<8x128xbf16>
    %9 = arith.extf %8 : vector<8x128xbf16> to vector<8x128xf32>
    %10 = arith.addf %7, %9 : vector<8x128xf32>
    %cst = arith.constant 0.000000e+00 : f32
    %11 = vector.broadcast %cst : f32 to vector<8x128xf32>
    %12 = arith.maximumf %10, %11 : vector<8x128xf32>
    %13 = arith.truncf %12 : vector<8x128xf32> to vector<8x128xbf16>
    %c0_7 = arith.constant 0 : index
    %c0_8 = arith.constant 0 : index
    %14 = vector.load %arg5[%c0_7, %c0_8] : memref<8x128xbf16, #tpu.memory_space<vmem>>, vector<8x128xbf16>
    tpu.vector_store %arg5[%c0_7, %c0_8], %13 {strides = array<i32>} : memref<8x128xbf16, #tpu.memory_space<vmem>>, vector<8x128xbf16>,
    return
  }
  func.func @transform_0(%arg0: i32) -> (i32, i32) {
    %c0_i32 = arith.constant 0 : i32
    %c0_i32_0 = arith.constant 0 : i32
    return %arg0, %c0_i32 : i32, i32
  }
  func.func @transform_1(%arg0: i32) -> (i32, i32) {
    %c0_i32 = arith.constant 0 : i32
    %c0_i32_0 = arith.constant 0 : i32
    %c0_i32_1 = arith.constant 0 : i32
    return %c0_i32, %c0_i32_0 : i32, i32
  }
  func.func @transform_2(%arg0: i32) -> (i32, i32) {
    %c0_i32 = arith.constant 0 : i32
    %c0_i32_0 = arith.constant 0 : i32
    %c0_i32_1 = arith.constant 0 : i32
    return %c0_i32, %c0_i32_0 : i32, i32
  }
  func.func @transform_3(%arg0: i32) -> (i32, i32) {
    %c0_i32 = arith.constant 0 : i32
    %c0_i32_0 = arith.constant 0 : i32
    return %arg0, %c0_i32 : i32, i32
  }
  func.func @transform_4(%arg0: i32) -> (i32, i32) {
    %c0_i32 = arith.constant 0 : i32
    %c0_i32_0 = arith.constant 0 : i32
    return %arg0, %c0_i32 : i32, i32
  }
}

module attributes {stable_mosaic.version = 11 : i64} {
  func.func @_conv_stats_kernel(%arg0: i32, %arg1: memref<1x10x6x16xbf16, #tpu.memory_space<vmem>>, %arg2: memref<144x16xbf16, #tpu.memory_space<vmem>>, %arg3: memref<1x8x4x16xbf16, #tpu.memory_space<vmem>>, %arg4: memref<1x1x16xf32, #tpu.memory_space<vmem>>, %arg5: memref<1x1x16xf32, #tpu.memory_space<vmem>>) attributes {dimension_semantics = [#tpu.dimension_semantics<parallel>], iteration_bounds = array<i64: 2>, scalar_prefetch = 0 : i64, scratch_operands = 0 : i64, tpu.core_type = #tpu.core_type<tc>, window_params = [{transform_indices = @transform_0, window_bounds = array<i64: 1, 10, 6, 16>}, {pipeline_mode = #tpu.pipeline_mode<synchronous>, transform_indices = @transform_1, window_bounds = array<i64: 144, 16>}, {transform_indices = @transform_2, window_bounds = array<i64: 1, 8, 4, 16>}, {transform_indices = @transform_3, window_bounds = array<i64: 1, 1, 16>}, {transform_indices = @transform_4, window_bounds = array<i64: 1, 1, 16>}]} {
    %c0 = arith.constant 0 : index
    %c0_0 = arith.constant 0 : index
    %0 = vector.load %arg2[%c0, %c0_0] : memref<144x16xbf16, #tpu.memory_space<vmem>>, vector<144x16xbf16>
    %cst = arith.constant 0.000000e+00 : f32
    %1 = vector.broadcast %cst : f32 to vector<1x16xf32>
    %c0_i32 = arith.constant 0 : i32
    %c8_i32 = arith.constant 8 : i32
    %2 = arith.addi %c0_i32, %c8_i32 : i32
    %c1_i32 = arith.constant 1 : i32
    %3:2 = scf.for %arg6 = %c0_i32 to %2 step %c1_i32 iter_args(%arg7 = %1, %arg8 = %1) -> (vector<1x16xf32>, vector<1x16xf32>)  : i32 {
      %c1_i32_8 = arith.constant 1 : i32
      %10 = arith.muli %arg6, %c1_i32_8 : i32
      %c0_i32_9 = arith.constant 0 : i32
      %11 = arith.addi %10, %c0_i32_9 : i32
      %c0_10 = arith.constant 0 : index
      %12 = arith.index_cast %11 : i32 to index
      %c0_11 = arith.constant 0 : index
      %c0_12 = arith.constant 0 : index
      %13 = vector.load %arg1[%c0_10, %12, %c0_11, %c0_12] : memref<1x10x6x16xbf16, #tpu.memory_space<vmem>>, vector<1x1x6x16xbf16>
      %14 = vector.shape_cast %13 : vector<1x1x6x16xbf16> to vector<6x16xbf16>
      %15 = vector.extract_strided_slice %14 {offsets = [0, 0], sizes = [4, 16], strides = [1, 1]} : vector<6x16xbf16> to vector<4x16xbf16>
      %16 = vector.extract_strided_slice %14 {offsets = [1, 0], sizes = [4, 16], strides = [1, 1]} : vector<6x16xbf16> to vector<4x16xbf16>
      %17 = vector.extract_strided_slice %14 {offsets = [2, 0], sizes = [4, 16], strides = [1, 1]} : vector<6x16xbf16> to vector<4x16xbf16>
      %c1_i32_13 = arith.constant 1 : i32
      %18 = arith.muli %arg6, %c1_i32_13 : i32
      %c1_i32_14 = arith.constant 1 : i32
      %19 = arith.addi %18, %c1_i32_14 : i32
      %c0_15 = arith.constant 0 : index
      %20 = arith.index_cast %19 : i32 to index
      %c0_16 = arith.constant 0 : index
      %c0_17 = arith.constant 0 : index
      %21 = vector.load %arg1[%c0_15, %20, %c0_16, %c0_17] : memref<1x10x6x16xbf16, #tpu.memory_space<vmem>>, vector<1x1x6x16xbf16>
      %22 = vector.shape_cast %21 : vector<1x1x6x16xbf16> to vector<6x16xbf16>
      %23 = vector.extract_strided_slice %22 {offsets = [0, 0], sizes = [4, 16], strides = [1, 1]} : vector<6x16xbf16> to vector<4x16xbf16>
      %24 = vector.extract_strided_slice %22 {offsets = [1, 0], sizes = [4, 16], strides = [1, 1]} : vector<6x16xbf16> to vector<4x16xbf16>
      %25 = vector.extract_strided_slice %22 {offsets = [2, 0], sizes = [4, 16], strides = [1, 1]} : vector<6x16xbf16> to vector<4x16xbf16>
      %c1_i32_18 = arith.constant 1 : i32
      %26 = arith.muli %arg6, %c1_i32_18 : i32
      %c2_i32 = arith.constant 2 : i32
      %27 = arith.addi %26, %c2_i32 : i32
      %c0_19 = arith.constant 0 : index
      %28 = arith.index_cast %27 : i32 to index
      %c0_20 = arith.constant 0 : index
      %c0_21 = arith.constant 0 : index
      %29 = vector.load %arg1[%c0_19, %28, %c0_20, %c0_21] : memref<1x10x6x16xbf16, #tpu.memory_space<vmem>>, vector<1x1x6x16xbf16>
      %30 = vector.shape_cast %29 : vector<1x1x6x16xbf16> to vector<6x16xbf16>
      %31 = vector.extract_strided_slice %30 {offsets = [0, 0], sizes = [4, 16], strides = [1, 1]} : vector<6x16xbf16> to vector<4x16xbf16>
      %32 = vector.extract_strided_slice %30 {offsets = [1, 0], sizes = [4, 16], strides = [1, 1]} : vector<6x16xbf16> to vector<4x16xbf16>
      %33 = vector.extract_strided_slice %30 {offsets = [2, 0], sizes = [4, 16], strides = [1, 1]} : vector<6x16xbf16> to vector<4x16xbf16>
      %34 = tpu.concatenate %15, %16, %17, %23, %24, %25, %31, %32, %33 in 1 : vector<4x16xbf16>, vector<4x16xbf16>, vector<4x16xbf16>, vector<4x16xbf16>, vector<4x16xbf16>, vector<4x16xbf16>, vector<4x16xbf16>, vector<4x16xbf16>, vector<4x16xbf16> -> vector<4x144xbf16>
      %cst_22 = arith.constant dense<0.000000e+00> : vector<4x16xf32>
      %35 = tpu.matmul %34, %0, %cst_22 {dimension_numbers = #tpu.dot_dimension_numbers<[1], [0], [0], [1], [0, 0, 1, 1], [], []>} : vector<4x144xbf16>, vector<144x16xbf16>, vector<4x16xf32> -> vector<4x16xf32>
      %36 = arith.truncf %35 : vector<4x16xf32> to vector<4x16xbf16>
      %c0_23 = arith.constant 0 : index
      %37 = arith.index_cast %arg6 : i32 to index
      %c0_24 = arith.constant 0 : index
      %c0_25 = arith.constant 0 : index
      %38 = vector.load %arg3[%c0_23, %37, %c0_24, %c0_25] : memref<1x8x4x16xbf16, #tpu.memory_space<vmem>>, vector<1x1x4x16xbf16>
      %39 = vector.shape_cast %38 : vector<1x1x4x16xbf16> to vector<4x16xbf16>
      %40 = vector.shape_cast %36 : vector<4x16xbf16> to vector<1x1x4x16xbf16>
      tpu.vector_store %arg3[%c0_23, %37, %c0_24, %c0_25], %40 {strides = array<i32>} : memref<1x8x4x16xbf16, #tpu.memory_space<vmem>>, vector<1x1x4x16xbf16>,
      %cst_26 = arith.constant dense<0.000000e+00> : vector<16xf32>
      %41 = vector.multi_reduction <add>, %35, %cst_26 [0] : vector<4x16xf32> to vector<16xf32>
      %42 = vector.shape_cast %41 : vector<16xf32> to vector<1x16xf32>
      %43 = arith.addf %arg7, %42 : vector<1x16xf32>
      %44 = arith.mulf %35, %35 : vector<4x16xf32>
      %cst_27 = arith.constant dense<0.000000e+00> : vector<16xf32>
      %45 = vector.multi_reduction <add>, %44, %cst_27 [0] : vector<4x16xf32> to vector<16xf32>
      %46 = vector.shape_cast %45 : vector<16xf32> to vector<1x16xf32>
      %47 = arith.addf %arg8, %46 : vector<1x16xf32>
      scf.yield %43, %47 : vector<1x16xf32>, vector<1x16xf32>
    }
    %c8_i32_1 = arith.constant 8 : i32
    %c0_2 = arith.constant 0 : index
    %c0_3 = arith.constant 0 : index
    %c0_4 = arith.constant 0 : index
    %4 = vector.load %arg4[%c0_2, %c0_3, %c0_4] : memref<1x1x16xf32, #tpu.memory_space<vmem>>, vector<1x1x16xf32>
    %5 = vector.shape_cast %4 : vector<1x1x16xf32> to vector<1x16xf32>
    %6 = vector.shape_cast %3#0 : vector<1x16xf32> to vector<1x1x16xf32>
    tpu.vector_store %arg4[%c0_2, %c0_3, %c0_4], %6 {strides = array<i32>} : memref<1x1x16xf32, #tpu.memory_space<vmem>>, vector<1x1x16xf32>,
    %c0_5 = arith.constant 0 : index
    %c0_6 = arith.constant 0 : index
    %c0_7 = arith.constant 0 : index
    %7 = vector.load %arg5[%c0_5, %c0_6, %c0_7] : memref<1x1x16xf32, #tpu.memory_space<vmem>>, vector<1x1x16xf32>
    %8 = vector.shape_cast %7 : vector<1x1x16xf32> to vector<1x16xf32>
    %9 = vector.shape_cast %3#1 : vector<1x16xf32> to vector<1x1x16xf32>
    tpu.vector_store %arg5[%c0_5, %c0_6, %c0_7], %9 {strides = array<i32>} : memref<1x1x16xf32, #tpu.memory_space<vmem>>, vector<1x1x16xf32>,
    return
  }
  func.func @transform_0(%arg0: i32) -> (i32, i32, i32, i32) {
    %c0_i32 = arith.constant 0 : i32
    %c0_i32_0 = arith.constant 0 : i32
    %c0_i32_1 = arith.constant 0 : i32
    %c0_i32_2 = arith.constant 0 : i32
    return %arg0, %c0_i32, %c0_i32_0, %c0_i32_1 : i32, i32, i32, i32
  }
  func.func @transform_1(%arg0: i32) -> (i32, i32) {
    %c0_i32 = arith.constant 0 : i32
    %c0_i32_0 = arith.constant 0 : i32
    %c0_i32_1 = arith.constant 0 : i32
    return %c0_i32, %c0_i32_0 : i32, i32
  }
  func.func @transform_2(%arg0: i32) -> (i32, i32, i32, i32) {
    %c0_i32 = arith.constant 0 : i32
    %c0_i32_0 = arith.constant 0 : i32
    %c0_i32_1 = arith.constant 0 : i32
    %c0_i32_2 = arith.constant 0 : i32
    return %arg0, %c0_i32, %c0_i32_0, %c0_i32_1 : i32, i32, i32, i32
  }
  func.func @transform_3(%arg0: i32) -> (i32, i32, i32) {
    %c0_i32 = arith.constant 0 : i32
    %c0_i32_0 = arith.constant 0 : i32
    %c0_i32_1 = arith.constant 0 : i32
    return %arg0, %c0_i32, %c0_i32_0 : i32, i32, i32
  }
  func.func @transform_4(%arg0: i32) -> (i32, i32, i32) {
    %c0_i32 = arith.constant 0 : i32
    %c0_i32_0 = arith.constant 0 : i32
    %c0_i32_1 = arith.constant 0 : i32
    return %arg0, %c0_i32, %c0_i32_0 : i32, i32, i32
  }
}

module attributes {stable_mosaic.version = 11 : i64} {
  func.func @_maxpool_kernel(%arg0: i32, %arg1: memref<1x4x2x6x16xbf16, #tpu.memory_space<vmem>>, %arg2: memref<1x4x5x16xbf16, #tpu.memory_space<vmem>>) attributes {dimension_semantics = [#tpu.dimension_semantics<parallel>], iteration_bounds = array<i64: 2>, scalar_prefetch = 0 : i64, scratch_operands = 0 : i64, tpu.core_type = #tpu.core_type<tc>, window_params = [{transform_indices = @transform_0, window_bounds = array<i64: 1, 4, 2, 6, 16>}, {transform_indices = @transform_1, window_bounds = array<i64: 1, 4, 5, 16>}]} {
    %c0 = arith.constant 0 : index
    %c0_0 = arith.constant 0 : index
    %c0_1 = arith.constant 0 : index
    %c0_2 = arith.constant 0 : index
    %c0_3 = arith.constant 0 : index
    %0 = vector.load %arg1[%c0, %c0_0, %c0_1, %c0_2, %c0_3] : memref<1x4x2x6x16xbf16, #tpu.memory_space<vmem>>, vector<1x4x2x6x16xbf16>
    %1 = arith.extf %0 : vector<1x4x2x6x16xbf16> to vector<1x4x2x6x16xf32>
    %2 = vector.extract_strided_slice %1 {offsets = [0, 0, 0, 0, 0], sizes = [1, 4, 1, 6, 16], strides = [1, 1, 1, 1, 1]} : vector<1x4x2x6x16xf32> to vector<1x4x1x6x16xf32>
    %3 = vector.shape_cast %2 : vector<1x4x1x6x16xf32> to vector<1x4x6x16xf32>
    %4 = vector.extract_strided_slice %1 {offsets = [0, 0, 1, 0, 0], sizes = [1, 4, 1, 6, 16], strides = [1, 1, 1, 1, 1]} : vector<1x4x2x6x16xf32> to vector<1x4x1x6x16xf32>
    %5 = vector.shape_cast %4 : vector<1x4x1x6x16xf32> to vector<1x4x6x16xf32>
    %6 = arith.maximumf %3, %5 : vector<1x4x6x16xf32>
    %7 = vector.extract_strided_slice %6 {offsets = [0, 0, 0, 0], sizes = [1, 4, 5, 16], strides = [1, 1, 1, 1]} : vector<1x4x6x16xf32> to vector<1x4x5x16xf32>
    %8 = vector.extract_strided_slice %6 {offsets = [0, 0, 1, 0], sizes = [1, 4, 5, 16], strides = [1, 1, 1, 1]} : vector<1x4x6x16xf32> to vector<1x4x5x16xf32>
    %9 = arith.maximumf %7, %8 : vector<1x4x5x16xf32>
    %10 = arith.truncf %9 : vector<1x4x5x16xf32> to vector<1x4x5x16xbf16>
    %c0_4 = arith.constant 0 : index
    %c0_5 = arith.constant 0 : index
    %c0_6 = arith.constant 0 : index
    %c0_7 = arith.constant 0 : index
    %11 = vector.load %arg2[%c0_4, %c0_5, %c0_6, %c0_7] : memref<1x4x5x16xbf16, #tpu.memory_space<vmem>>, vector<1x4x5x16xbf16>
    tpu.vector_store %arg2[%c0_4, %c0_5, %c0_6, %c0_7], %10 {strides = array<i32>} : memref<1x4x5x16xbf16, #tpu.memory_space<vmem>>, vector<1x4x5x16xbf16>,
    return
  }
  func.func @transform_0(%arg0: i32) -> (i32, i32, i32, i32, i32) {
    %c0_i32 = arith.constant 0 : i32
    %c0_i32_0 = arith.constant 0 : i32
    %c0_i32_1 = arith.constant 0 : i32
    %c0_i32_2 = arith.constant 0 : i32
    %c0_i32_3 = arith.constant 0 : i32
    return %arg0, %c0_i32, %c0_i32_0, %c0_i32_1, %c0_i32_2 : i32, i32, i32, i32, i32
  }
  func.func @transform_1(%arg0: i32) -> (i32, i32, i32, i32) {
    %c0_i32 = arith.constant 0 : i32
    %c0_i32_0 = arith.constant 0 : i32
    %c0_i32_1 = arith.constant 0 : i32
    %c0_i32_2 = arith.constant 0 : i32
    return %arg0, %c0_i32, %c0_i32_0, %c0_i32_1 : i32, i32, i32, i32
  }
}

module attributes {stable_mosaic.version = 11 : i64} {
  func.func @_conv_stats_kernel(%arg0: i32, %arg1: memref<1x4x5x16xbf16, #tpu.memory_space<vmem>>, %arg2: memref<16x32xbf16, #tpu.memory_space<vmem>>, %arg3: memref<1x4x5x32xbf16, #tpu.memory_space<vmem>>, %arg4: memref<1x1x32xf32, #tpu.memory_space<vmem>>, %arg5: memref<1x1x32xf32, #tpu.memory_space<vmem>>) attributes {dimension_semantics = [#tpu.dimension_semantics<parallel>], iteration_bounds = array<i64: 2>, scalar_prefetch = 0 : i64, scratch_operands = 0 : i64, tpu.core_type = #tpu.core_type<tc>, window_params = [{transform_indices = @transform_0, window_bounds = array<i64: 1, 4, 5, 16>}, {pipeline_mode = #tpu.pipeline_mode<synchronous>, transform_indices = @transform_1, window_bounds = array<i64: 16, 32>}, {transform_indices = @transform_2, window_bounds = array<i64: 1, 4, 5, 32>}, {transform_indices = @transform_3, window_bounds = array<i64: 1, 1, 32>}, {transform_indices = @transform_4, window_bounds = array<i64: 1, 1, 32>}]} {
    %c0 = arith.constant 0 : index
    %c0_0 = arith.constant 0 : index
    %0 = vector.load %arg2[%c0, %c0_0] : memref<16x32xbf16, #tpu.memory_space<vmem>>, vector<16x32xbf16>
    %cst = arith.constant 0.000000e+00 : f32
    %1 = vector.broadcast %cst : f32 to vector<1x32xf32>
    %c0_i32 = arith.constant 0 : i32
    %c4_i32 = arith.constant 4 : i32
    %2 = arith.addi %c0_i32, %c4_i32 : i32
    %c1_i32 = arith.constant 1 : i32
    %3:2 = scf.for %arg6 = %c0_i32 to %2 step %c1_i32 iter_args(%arg7 = %1, %arg8 = %1) -> (vector<1x32xf32>, vector<1x32xf32>)  : i32 {
      %c1_i32_8 = arith.constant 1 : i32
      %10 = arith.muli %arg6, %c1_i32_8 : i32
      %c0_i32_9 = arith.constant 0 : i32
      %11 = arith.addi %10, %c0_i32_9 : i32
      %c0_10 = arith.constant 0 : index
      %12 = arith.index_cast %11 : i32 to index
      %c0_11 = arith.constant 0 : index
      %c0_12 = arith.constant 0 : index
      %13 = vector.load %arg1[%c0_10, %12, %c0_11, %c0_12] : memref<1x4x5x16xbf16, #tpu.memory_space<vmem>>, vector<1x1x5x16xbf16>
      %14 = vector.shape_cast %13 : vector<1x1x5x16xbf16> to vector<5x16xbf16>
      %cst_13 = arith.constant dense<0.000000e+00> : vector<5x32xf32>
      %15 = tpu.matmul %14, %0, %cst_13 {dimension_numbers = #tpu.dot_dimension_numbers<[1], [0], [0], [1], [0, 0, 1, 1], [], []>} : vector<5x16xbf16>, vector<16x32xbf16>, vector<5x32xf32> -> vector<5x32xf32>
      %16 = arith.truncf %15 : vector<5x32xf32> to vector<5x32xbf16>
      %c0_14 = arith.constant 0 : index
      %17 = arith.index_cast %arg6 : i32 to index
      %c0_15 = arith.constant 0 : index
      %c0_16 = arith.constant 0 : index
      %18 = vector.load %arg3[%c0_14, %17, %c0_15, %c0_16] : memref<1x4x5x32xbf16, #tpu.memory_space<vmem>>, vector<1x1x5x32xbf16>
      %19 = vector.shape_cast %18 : vector<1x1x5x32xbf16> to vector<5x32xbf16>
      %20 = vector.shape_cast %16 : vector<5x32xbf16> to vector<1x1x5x32xbf16>
      tpu.vector_store %arg3[%c0_14, %17, %c0_15, %c0_16], %20 {strides = array<i32>} : memref<1x4x5x32xbf16, #tpu.memory_space<vmem>>, vector<1x1x5x32xbf16>,
      %cst_17 = arith.constant dense<0.000000e+00> : vector<32xf32>
      %21 = vector.multi_reduction <add>, %15, %cst_17 [0] : vector<5x32xf32> to vector<32xf32>
      %22 = vector.shape_cast %21 : vector<32xf32> to vector<1x32xf32>
      %23 = arith.addf %arg7, %22 : vector<1x32xf32>
      %24 = arith.mulf %15, %15 : vector<5x32xf32>
      %cst_18 = arith.constant dense<0.000000e+00> : vector<32xf32>
      %25 = vector.multi_reduction <add>, %24, %cst_18 [0] : vector<5x32xf32> to vector<32xf32>
      %26 = vector.shape_cast %25 : vector<32xf32> to vector<1x32xf32>
      %27 = arith.addf %arg8, %26 : vector<1x32xf32>
      scf.yield %23, %27 : vector<1x32xf32>, vector<1x32xf32>
    }
    %c4_i32_1 = arith.constant 4 : i32
    %c0_2 = arith.constant 0 : index
    %c0_3 = arith.constant 0 : index
    %c0_4 = arith.constant 0 : index
    %4 = vector.load %arg4[%c0_2, %c0_3, %c0_4] : memref<1x1x32xf32, #tpu.memory_space<vmem>>, vector<1x1x32xf32>
    %5 = vector.shape_cast %4 : vector<1x1x32xf32> to vector<1x32xf32>
    %6 = vector.shape_cast %3#0 : vector<1x32xf32> to vector<1x1x32xf32>
    tpu.vector_store %arg4[%c0_2, %c0_3, %c0_4], %6 {strides = array<i32>} : memref<1x1x32xf32, #tpu.memory_space<vmem>>, vector<1x1x32xf32>,
    %c0_5 = arith.constant 0 : index
    %c0_6 = arith.constant 0 : index
    %c0_7 = arith.constant 0 : index
    %7 = vector.load %arg5[%c0_5, %c0_6, %c0_7] : memref<1x1x32xf32, #tpu.memory_space<vmem>>, vector<1x1x32xf32>
    %8 = vector.shape_cast %7 : vector<1x1x32xf32> to vector<1x32xf32>
    %9 = vector.shape_cast %3#1 : vector<1x32xf32> to vector<1x1x32xf32>
    tpu.vector_store %arg5[%c0_5, %c0_6, %c0_7], %9 {strides = array<i32>} : memref<1x1x32xf32, #tpu.memory_space<vmem>>, vector<1x1x32xf32>,
    return
  }
  func.func @transform_0(%arg0: i32) -> (i32, i32, i32, i32) {
    %c0_i32 = arith.constant 0 : i32
    %c0_i32_0 = arith.constant 0 : i32
    %c0_i32_1 = arith.constant 0 : i32
    %c0_i32_2 = arith.constant 0 : i32
    return %arg0, %c0_i32, %c0_i32_0, %c0_i32_1 : i32, i32, i32, i32
  }
  func.func @transform_1(%arg0: i32) -> (i32, i32) {
    %c0_i32 = arith.constant 0 : i32
    %c0_i32_0 = arith.constant 0 : i32
    %c0_i32_1 = arith.constant 0 : i32
    return %c0_i32, %c0_i32_0 : i32, i32
  }
  func.func @transform_2(%arg0: i32) -> (i32, i32, i32, i32) {
    %c0_i32 = arith.constant 0 : i32
    %c0_i32_0 = arith.constant 0 : i32
    %c0_i32_1 = arith.constant 0 : i32
    %c0_i32_2 = arith.constant 0 : i32
    return %arg0, %c0_i32, %c0_i32_0, %c0_i32_1 : i32, i32, i32, i32
  }
  func.func @transform_3(%arg0: i32) -> (i32, i32, i32) {
    %c0_i32 = arith.constant 0 : i32
    %c0_i32_0 = arith.constant 0 : i32
    %c0_i32_1 = arith.constant 0 : i32
    return %arg0, %c0_i32, %c0_i32_0 : i32, i32, i32
  }
  func.func @transform_4(%arg0: i32) -> (i32, i32, i32) {
    %c0_i32 = arith.constant 0 : i32
    %c0_i32_0 = arith.constant 0 : i32
    %c0_i32_1 = arith.constant 0 : i32
    return %arg0, %c0_i32, %c0_i32_0 : i32, i32, i32
  }
}

module attributes {stable_mosaic.version = 11 : i64} {
  func.func @_bn_apply_kernel(%arg0: i32, %arg1: memref<1x4x5x32xbf16, #tpu.memory_space<vmem>>, %arg2: memref<1x1x1x32xf32, #tpu.memory_space<vmem>>, %arg3: memref<1x1x1x32xf32, #tpu.memory_space<vmem>>, %arg4: memref<1x4x5x32xbf16, #tpu.memory_space<vmem>>) attributes {dimension_semantics = [#tpu.dimension_semantics<parallel>], iteration_bounds = array<i64: 2>, scalar_prefetch = 0 : i64, scratch_operands = 0 : i64, tpu.core_type = #tpu.core_type<tc>, window_params = [{transform_indices = @transform_0, window_bounds = array<i64: 1, 4, 5, 32>}, {pipeline_mode = #tpu.pipeline_mode<synchronous>, transform_indices = @transform_1, window_bounds = array<i64: 1, 1, 1, 32>}, {pipeline_mode = #tpu.pipeline_mode<synchronous>, transform_indices = @transform_2, window_bounds = array<i64: 1, 1, 1, 32>}, {transform_indices = @transform_3, window_bounds = array<i64: 1, 4, 5, 32>}]} {
    %c0 = arith.constant 0 : index
    %c0_0 = arith.constant 0 : index
    %c0_1 = arith.constant 0 : index
    %c0_2 = arith.constant 0 : index
    %0 = vector.load %arg1[%c0, %c0_0, %c0_1, %c0_2] : memref<1x4x5x32xbf16, #tpu.memory_space<vmem>>, vector<1x4x5x32xbf16>
    %1 = arith.extf %0 : vector<1x4x5x32xbf16> to vector<1x4x5x32xf32>
    %c0_3 = arith.constant 0 : index
    %c0_4 = arith.constant 0 : index
    %c0_5 = arith.constant 0 : index
    %c0_6 = arith.constant 0 : index
    %2 = vector.load %arg2[%c0_3, %c0_4, %c0_5, %c0_6] : memref<1x1x1x32xf32, #tpu.memory_space<vmem>>, vector<1x1x1x32xf32>
    %3 = vector.broadcast %2 : vector<1x1x1x32xf32> to vector<1x4x5x32xf32>
    %4 = arith.mulf %1, %3 : vector<1x4x5x32xf32>
    %c0_7 = arith.constant 0 : index
    %c0_8 = arith.constant 0 : index
    %c0_9 = arith.constant 0 : index
    %c0_10 = arith.constant 0 : index
    %5 = vector.load %arg3[%c0_7, %c0_8, %c0_9, %c0_10] : memref<1x1x1x32xf32, #tpu.memory_space<vmem>>, vector<1x1x1x32xf32>
    %6 = vector.broadcast %5 : vector<1x1x1x32xf32> to vector<1x4x5x32xf32>
    %7 = arith.addf %4, %6 : vector<1x4x5x32xf32>
    %8 = arith.truncf %7 : vector<1x4x5x32xf32> to vector<1x4x5x32xbf16>
    %c0_11 = arith.constant 0 : index
    %c0_12 = arith.constant 0 : index
    %c0_13 = arith.constant 0 : index
    %c0_14 = arith.constant 0 : index
    %9 = vector.load %arg4[%c0_11, %c0_12, %c0_13, %c0_14] : memref<1x4x5x32xbf16, #tpu.memory_space<vmem>>, vector<1x4x5x32xbf16>
    tpu.vector_store %arg4[%c0_11, %c0_12, %c0_13, %c0_14], %8 {strides = array<i32>} : memref<1x4x5x32xbf16, #tpu.memory_space<vmem>>, vector<1x4x5x32xbf16>,
    return
  }
  func.func @transform_0(%arg0: i32) -> (i32, i32, i32, i32) {
    %c0_i32 = arith.constant 0 : i32
    %c0_i32_0 = arith.constant 0 : i32
    %c0_i32_1 = arith.constant 0 : i32
    %c0_i32_2 = arith.constant 0 : i32
    return %arg0, %c0_i32, %c0_i32_0, %c0_i32_1 : i32, i32, i32, i32
  }
  func.func @transform_1(%arg0: i32) -> (i32, i32, i32, i32) {
    %c0_i32 = arith.constant 0 : i32
    %c0_i32_0 = arith.constant 0 : i32
    %c0_i32_1 = arith.constant 0 : i32
    %c0_i32_2 = arith.constant 0 : i32
    %c0_i32_3 = arith.constant 0 : i32
    return %c0_i32, %c0_i32_0, %c0_i32_1, %c0_i32_2 : i32, i32, i32, i32
  }
  func.func @transform_2(%arg0: i32) -> (i32, i32, i32, i32) {
    %c0_i32 = arith.constant 0 : i32
    %c0_i32_0 = arith.constant 0 : i32
    %c0_i32_1 = arith.constant 0 : i32
    %c0_i32_2 = arith.constant 0 : i32
    %c0_i32_3 = arith.constant 0 : i32
    return %c0_i32, %c0_i32_0, %c0_i32_1, %c0_i32_2 : i32, i32, i32, i32
  }
  func.func @transform_3(%arg0: i32) -> (i32, i32, i32, i32) {
    %c0_i32 = arith.constant 0 : i32
    %c0_i32_0 = arith.constant 0 : i32
    %c0_i32_1 = arith.constant 0 : i32
    %c0_i32_2 = arith.constant 0 : i32
    return %arg0, %c0_i32, %c0_i32_0, %c0_i32_1 : i32, i32, i32, i32
  }
}

module attributes {stable_mosaic.version = 11 : i64} {
  func.func @_conv_stats_kernel(%arg0: i32, %arg1: memref<1x6x7x16xbf16, #tpu.memory_space<vmem>>, %arg2: memref<144x32xbf16, #tpu.memory_space<vmem>>, %arg3: memref<1x4x5x32xbf16, #tpu.memory_space<vmem>>, %arg4: memref<1x1x32xf32, #tpu.memory_space<vmem>>, %arg5: memref<1x1x32xf32, #tpu.memory_space<vmem>>) attributes {dimension_semantics = [#tpu.dimension_semantics<parallel>], iteration_bounds = array<i64: 2>, scalar_prefetch = 0 : i64, scratch_operands = 0 : i64, tpu.core_type = #tpu.core_type<tc>, window_params = [{transform_indices = @transform_0, window_bounds = array<i64: 1, 6, 7, 16>}, {pipeline_mode = #tpu.pipeline_mode<synchronous>, transform_indices = @transform_1, window_bounds = array<i64: 144, 32>}, {transform_indices = @transform_2, window_bounds = array<i64: 1, 4, 5, 32>}, {transform_indices = @transform_3, window_bounds = array<i64: 1, 1, 32>}, {transform_indices = @transform_4, window_bounds = array<i64: 1, 1, 32>}]} {
    %c0 = arith.constant 0 : index
    %c0_0 = arith.constant 0 : index
    %0 = vector.load %arg2[%c0, %c0_0] : memref<144x32xbf16, #tpu.memory_space<vmem>>, vector<144x32xbf16>
    %cst = arith.constant 0.000000e+00 : f32
    %1 = vector.broadcast %cst : f32 to vector<1x32xf32>
    %c0_i32 = arith.constant 0 : i32
    %c4_i32 = arith.constant 4 : i32
    %2 = arith.addi %c0_i32, %c4_i32 : i32
    %c1_i32 = arith.constant 1 : i32
    %3:2 = scf.for %arg6 = %c0_i32 to %2 step %c1_i32 iter_args(%arg7 = %1, %arg8 = %1) -> (vector<1x32xf32>, vector<1x32xf32>)  : i32 {
      %c1_i32_8 = arith.constant 1 : i32
      %10 = arith.muli %arg6, %c1_i32_8 : i32
      %c0_i32_9 = arith.constant 0 : i32
      %11 = arith.addi %10, %c0_i32_9 : i32
      %c0_10 = arith.constant 0 : index
      %12 = arith.index_cast %11 : i32 to index
      %c0_11 = arith.constant 0 : index
      %c0_12 = arith.constant 0 : index
      %13 = vector.load %arg1[%c0_10, %12, %c0_11, %c0_12] : memref<1x6x7x16xbf16, #tpu.memory_space<vmem>>, vector<1x1x7x16xbf16>
      %14 = vector.shape_cast %13 : vector<1x1x7x16xbf16> to vector<7x16xbf16>
      %15 = vector.extract_strided_slice %14 {offsets = [0, 0], sizes = [5, 16], strides = [1, 1]} : vector<7x16xbf16> to vector<5x16xbf16>
      %16 = vector.extract_strided_slice %14 {offsets = [1, 0], sizes = [5, 16], strides = [1, 1]} : vector<7x16xbf16> to vector<5x16xbf16>
      %17 = vector.extract_strided_slice %14 {offsets = [2, 0], sizes = [5, 16], strides = [1, 1]} : vector<7x16xbf16> to vector<5x16xbf16>
      %c1_i32_13 = arith.constant 1 : i32
      %18 = arith.muli %arg6, %c1_i32_13 : i32
      %c1_i32_14 = arith.constant 1 : i32
      %19 = arith.addi %18, %c1_i32_14 : i32
      %c0_15 = arith.constant 0 : index
      %20 = arith.index_cast %19 : i32 to index
      %c0_16 = arith.constant 0 : index
      %c0_17 = arith.constant 0 : index
      %21 = vector.load %arg1[%c0_15, %20, %c0_16, %c0_17] : memref<1x6x7x16xbf16, #tpu.memory_space<vmem>>, vector<1x1x7x16xbf16>
      %22 = vector.shape_cast %21 : vector<1x1x7x16xbf16> to vector<7x16xbf16>
      %23 = vector.extract_strided_slice %22 {offsets = [0, 0], sizes = [5, 16], strides = [1, 1]} : vector<7x16xbf16> to vector<5x16xbf16>
      %24 = vector.extract_strided_slice %22 {offsets = [1, 0], sizes = [5, 16], strides = [1, 1]} : vector<7x16xbf16> to vector<5x16xbf16>
      %25 = vector.extract_strided_slice %22 {offsets = [2, 0], sizes = [5, 16], strides = [1, 1]} : vector<7x16xbf16> to vector<5x16xbf16>
      %c1_i32_18 = arith.constant 1 : i32
      %26 = arith.muli %arg6, %c1_i32_18 : i32
      %c2_i32 = arith.constant 2 : i32
      %27 = arith.addi %26, %c2_i32 : i32
      %c0_19 = arith.constant 0 : index
      %28 = arith.index_cast %27 : i32 to index
      %c0_20 = arith.constant 0 : index
      %c0_21 = arith.constant 0 : index
      %29 = vector.load %arg1[%c0_19, %28, %c0_20, %c0_21] : memref<1x6x7x16xbf16, #tpu.memory_space<vmem>>, vector<1x1x7x16xbf16>
      %30 = vector.shape_cast %29 : vector<1x1x7x16xbf16> to vector<7x16xbf16>
      %31 = vector.extract_strided_slice %30 {offsets = [0, 0], sizes = [5, 16], strides = [1, 1]} : vector<7x16xbf16> to vector<5x16xbf16>
      %32 = vector.extract_strided_slice %30 {offsets = [1, 0], sizes = [5, 16], strides = [1, 1]} : vector<7x16xbf16> to vector<5x16xbf16>
      %33 = vector.extract_strided_slice %30 {offsets = [2, 0], sizes = [5, 16], strides = [1, 1]} : vector<7x16xbf16> to vector<5x16xbf16>
      %34 = tpu.concatenate %15, %16, %17, %23, %24, %25, %31, %32, %33 in 1 : vector<5x16xbf16>, vector<5x16xbf16>, vector<5x16xbf16>, vector<5x16xbf16>, vector<5x16xbf16>, vector<5x16xbf16>, vector<5x16xbf16>, vector<5x16xbf16>, vector<5x16xbf16> -> vector<5x144xbf16>
      %cst_22 = arith.constant dense<0.000000e+00> : vector<5x32xf32>
      %35 = tpu.matmul %34, %0, %cst_22 {dimension_numbers = #tpu.dot_dimension_numbers<[1], [0], [0], [1], [0, 0, 1, 1], [], []>} : vector<5x144xbf16>, vector<144x32xbf16>, vector<5x32xf32> -> vector<5x32xf32>
      %36 = arith.truncf %35 : vector<5x32xf32> to vector<5x32xbf16>
      %c0_23 = arith.constant 0 : index
      %37 = arith.index_cast %arg6 : i32 to index
      %c0_24 = arith.constant 0 : index
      %c0_25 = arith.constant 0 : index
      %38 = vector.load %arg3[%c0_23, %37, %c0_24, %c0_25] : memref<1x4x5x32xbf16, #tpu.memory_space<vmem>>, vector<1x1x5x32xbf16>
      %39 = vector.shape_cast %38 : vector<1x1x5x32xbf16> to vector<5x32xbf16>
      %40 = vector.shape_cast %36 : vector<5x32xbf16> to vector<1x1x5x32xbf16>
      tpu.vector_store %arg3[%c0_23, %37, %c0_24, %c0_25], %40 {strides = array<i32>} : memref<1x4x5x32xbf16, #tpu.memory_space<vmem>>, vector<1x1x5x32xbf16>,
      %cst_26 = arith.constant dense<0.000000e+00> : vector<32xf32>
      %41 = vector.multi_reduction <add>, %35, %cst_26 [0] : vector<5x32xf32> to vector<32xf32>
      %42 = vector.shape_cast %41 : vector<32xf32> to vector<1x32xf32>
      %43 = arith.addf %arg7, %42 : vector<1x32xf32>
      %44 = arith.mulf %35, %35 : vector<5x32xf32>
      %cst_27 = arith.constant dense<0.000000e+00> : vector<32xf32>
      %45 = vector.multi_reduction <add>, %44, %cst_27 [0] : vector<5x32xf32> to vector<32xf32>
      %46 = vector.shape_cast %45 : vector<32xf32> to vector<1x32xf32>
      %47 = arith.addf %arg8, %46 : vector<1x32xf32>
      scf.yield %43, %47 : vector<1x32xf32>, vector<1x32xf32>
    }
    %c4_i32_1 = arith.constant 4 : i32
    %c0_2 = arith.constant 0 : index
    %c0_3 = arith.constant 0 : index
    %c0_4 = arith.constant 0 : index
    %4 = vector.load %arg4[%c0_2, %c0_3, %c0_4] : memref<1x1x32xf32, #tpu.memory_space<vmem>>, vector<1x1x32xf32>
    %5 = vector.shape_cast %4 : vector<1x1x32xf32> to vector<1x32xf32>
    %6 = vector.shape_cast %3#0 : vector<1x32xf32> to vector<1x1x32xf32>
    tpu.vector_store %arg4[%c0_2, %c0_3, %c0_4], %6 {strides = array<i32>} : memref<1x1x32xf32, #tpu.memory_space<vmem>>, vector<1x1x32xf32>,
    %c0_5 = arith.constant 0 : index
    %c0_6 = arith.constant 0 : index
    %c0_7 = arith.constant 0 : index
    %7 = vector.load %arg5[%c0_5, %c0_6, %c0_7] : memref<1x1x32xf32, #tpu.memory_space<vmem>>, vector<1x1x32xf32>
    %8 = vector.shape_cast %7 : vector<1x1x32xf32> to vector<1x32xf32>
    %9 = vector.shape_cast %3#1 : vector<1x32xf32> to vector<1x1x32xf32>
    tpu.vector_store %arg5[%c0_5, %c0_6, %c0_7], %9 {strides = array<i32>} : memref<1x1x32xf32, #tpu.memory_space<vmem>>, vector<1x1x32xf32>,
    return
  }
  func.func @transform_0(%arg0: i32) -> (i32, i32, i32, i32) {
    %c0_i32 = arith.constant 0 : i32
    %c0_i32_0 = arith.constant 0 : i32
    %c0_i32_1 = arith.constant 0 : i32
    %c0_i32_2 = arith.constant 0 : i32
    return %arg0, %c0_i32, %c0_i32_0, %c0_i32_1 : i32, i32, i32, i32
  }
  func.func @transform_1(%arg0: i32) -> (i32, i32) {
    %c0_i32 = arith.constant 0 : i32
    %c0_i32_0 = arith.constant 0 : i32
    %c0_i32_1 = arith.constant 0 : i32
    return %c0_i32, %c0_i32_0 : i32, i32
  }
  func.func @transform_2(%arg0: i32) -> (i32, i32, i32, i32) {
    %c0_i32 = arith.constant 0 : i32
    %c0_i32_0 = arith.constant 0 : i32
    %c0_i32_1 = arith.constant 0 : i32
    %c0_i32_2 = arith.constant 0 : i32
    return %arg0, %c0_i32, %c0_i32_0, %c0_i32_1 : i32, i32, i32, i32
  }
  func.func @transform_3(%arg0: i32) -> (i32, i32, i32) {
    %c0_i32 = arith.constant 0 : i32
    %c0_i32_0 = arith.constant 0 : i32
    %c0_i32_1 = arith.constant 0 : i32
    return %arg0, %c0_i32, %c0_i32_0 : i32, i32, i32
  }
  func.func @transform_4(%arg0: i32) -> (i32, i32, i32) {
    %c0_i32 = arith.constant 0 : i32
    %c0_i32_0 = arith.constant 0 : i32
    %c0_i32_1 = arith.constant 0 : i32
    return %arg0, %c0_i32, %c0_i32_0 : i32, i32, i32
  }
}

module attributes {stable_mosaic.version = 11 : i64} {
  func.func @_bn_apply_kernel(%arg0: i32, %arg1: memref<1x4x5x32xbf16, #tpu.memory_space<vmem>>, %arg2: memref<1x1x1x32xf32, #tpu.memory_space<vmem>>, %arg3: memref<1x1x1x32xf32, #tpu.memory_space<vmem>>, %arg4: memref<1x4x5x32xbf16, #tpu.memory_space<vmem>>) attributes {dimension_semantics = [#tpu.dimension_semantics<parallel>], iteration_bounds = array<i64: 2>, scalar_prefetch = 0 : i64, scratch_operands = 0 : i64, tpu.core_type = #tpu.core_type<tc>, window_params = [{transform_indices = @transform_0, window_bounds = array<i64: 1, 4, 5, 32>}, {pipeline_mode = #tpu.pipeline_mode<synchronous>, transform_indices = @transform_1, window_bounds = array<i64: 1, 1, 1, 32>}, {pipeline_mode = #tpu.pipeline_mode<synchronous>, transform_indices = @transform_2, window_bounds = array<i64: 1, 1, 1, 32>}, {transform_indices = @transform_3, window_bounds = array<i64: 1, 4, 5, 32>}]} {
    %c0 = arith.constant 0 : index
    %c0_0 = arith.constant 0 : index
    %c0_1 = arith.constant 0 : index
    %c0_2 = arith.constant 0 : index
    %0 = vector.load %arg1[%c0, %c0_0, %c0_1, %c0_2] : memref<1x4x5x32xbf16, #tpu.memory_space<vmem>>, vector<1x4x5x32xbf16>
    %1 = arith.extf %0 : vector<1x4x5x32xbf16> to vector<1x4x5x32xf32>
    %c0_3 = arith.constant 0 : index
    %c0_4 = arith.constant 0 : index
    %c0_5 = arith.constant 0 : index
    %c0_6 = arith.constant 0 : index
    %2 = vector.load %arg2[%c0_3, %c0_4, %c0_5, %c0_6] : memref<1x1x1x32xf32, #tpu.memory_space<vmem>>, vector<1x1x1x32xf32>
    %3 = vector.broadcast %2 : vector<1x1x1x32xf32> to vector<1x4x5x32xf32>
    %4 = arith.mulf %1, %3 : vector<1x4x5x32xf32>
    %c0_7 = arith.constant 0 : index
    %c0_8 = arith.constant 0 : index
    %c0_9 = arith.constant 0 : index
    %c0_10 = arith.constant 0 : index
    %5 = vector.load %arg3[%c0_7, %c0_8, %c0_9, %c0_10] : memref<1x1x1x32xf32, #tpu.memory_space<vmem>>, vector<1x1x1x32xf32>
    %6 = vector.broadcast %5 : vector<1x1x1x32xf32> to vector<1x4x5x32xf32>
    %7 = arith.addf %4, %6 : vector<1x4x5x32xf32>
    %cst = arith.constant 0.000000e+00 : f32
    %8 = vector.broadcast %cst : f32 to vector<1x4x5x32xf32>
    %9 = arith.maximumf %7, %8 : vector<1x4x5x32xf32>
    %10 = arith.truncf %9 : vector<1x4x5x32xf32> to vector<1x4x5x32xbf16>
    %c0_11 = arith.constant 0 : index
    %c0_12 = arith.constant 0 : index
    %c0_13 = arith.constant 0 : index
    %c0_14 = arith.constant 0 : index
    %11 = vector.load %arg4[%c0_11, %c0_12, %c0_13, %c0_14] : memref<1x4x5x32xbf16, #tpu.memory_space<vmem>>, vector<1x4x5x32xbf16>
    tpu.vector_store %arg4[%c0_11, %c0_12, %c0_13, %c0_14], %10 {strides = array<i32>} : memref<1x4x5x32xbf16, #tpu.memory_space<vmem>>, vector<1x4x5x32xbf16>,
    return
  }
  func.func @transform_0(%arg0: i32) -> (i32, i32, i32, i32) {
    %c0_i32 = arith.constant 0 : i32
    %c0_i32_0 = arith.constant 0 : i32
    %c0_i32_1 = arith.constant 0 : i32
    %c0_i32_2 = arith.constant 0 : i32
    return %arg0, %c0_i32, %c0_i32_0, %c0_i32_1 : i32, i32, i32, i32
  }
  func.func @transform_1(%arg0: i32) -> (i32, i32, i32, i32) {
    %c0_i32 = arith.constant 0 : i32
    %c0_i32_0 = arith.constant 0 : i32
    %c0_i32_1 = arith.constant 0 : i32
    %c0_i32_2 = arith.constant 0 : i32
    %c0_i32_3 = arith.constant 0 : i32
    return %c0_i32, %c0_i32_0, %c0_i32_1, %c0_i32_2 : i32, i32, i32, i32
  }
  func.func @transform_2(%arg0: i32) -> (i32, i32, i32, i32) {
    %c0_i32 = arith.constant 0 : i32
    %c0_i32_0 = arith.constant 0 : i32
    %c0_i32_1 = arith.constant 0 : i32
    %c0_i32_2 = arith.constant 0 : i32
    %c0_i32_3 = arith.constant 0 : i32
    return %c0_i32, %c0_i32_0, %c0_i32_1, %c0_i32_2 : i32, i32, i32, i32
  }
  func.func @transform_3(%arg0: i32) -> (i32, i32, i32, i32) {
    %c0_i32 = arith.constant 0 : i32
    %c0_i32_0 = arith.constant 0 : i32
    %c0_i32_1 = arith.constant 0 : i32
    %c0_i32_2 = arith.constant 0 : i32
    return %arg0, %c0_i32, %c0_i32_0, %c0_i32_1 : i32, i32, i32, i32
  }
}

module attributes {stable_mosaic.version = 11 : i64} {
  func.func @_bn_apply_kernel(%arg0: i32, %arg1: memref<1x4x5x32xbf16, #tpu.memory_space<vmem>>, %arg2: memref<1x1x1x32xf32, #tpu.memory_space<vmem>>, %arg3: memref<1x1x1x32xf32, #tpu.memory_space<vmem>>, %arg4: memref<1x4x5x32xbf16, #tpu.memory_space<vmem>>, %arg5: memref<1x4x5x32xbf16, #tpu.memory_space<vmem>>) attributes {dimension_semantics = [#tpu.dimension_semantics<parallel>], iteration_bounds = array<i64: 2>, scalar_prefetch = 0 : i64, scratch_operands = 0 : i64, tpu.core_type = #tpu.core_type<tc>, window_params = [{transform_indices = @transform_0, window_bounds = array<i64: 1, 4, 5, 32>}, {pipeline_mode = #tpu.pipeline_mode<synchronous>, transform_indices = @transform_1, window_bounds = array<i64: 1, 1, 1, 32>}, {pipeline_mode = #tpu.pipeline_mode<synchronous>, transform_indices = @transform_2, window_bounds = array<i64: 1, 1, 1, 32>}, {transform_indices = @transform_3, window_bounds = array<i64: 1, 4, 5, 32>}, {transform_indices = @transform_4, window_bounds = array<i64: 1, 4, 5, 32>}]} {
    %c0 = arith.constant 0 : index
    %c0_0 = arith.constant 0 : index
    %c0_1 = arith.constant 0 : index
    %c0_2 = arith.constant 0 : index
    %0 = vector.load %arg1[%c0, %c0_0, %c0_1, %c0_2] : memref<1x4x5x32xbf16, #tpu.memory_space<vmem>>, vector<1x4x5x32xbf16>
    %1 = arith.extf %0 : vector<1x4x5x32xbf16> to vector<1x4x5x32xf32>
    %c0_3 = arith.constant 0 : index
    %c0_4 = arith.constant 0 : index
    %c0_5 = arith.constant 0 : index
    %c0_6 = arith.constant 0 : index
    %2 = vector.load %arg2[%c0_3, %c0_4, %c0_5, %c0_6] : memref<1x1x1x32xf32, #tpu.memory_space<vmem>>, vector<1x1x1x32xf32>
    %3 = vector.broadcast %2 : vector<1x1x1x32xf32> to vector<1x4x5x32xf32>
    %4 = arith.mulf %1, %3 : vector<1x4x5x32xf32>
    %c0_7 = arith.constant 0 : index
    %c0_8 = arith.constant 0 : index
    %c0_9 = arith.constant 0 : index
    %c0_10 = arith.constant 0 : index
    %5 = vector.load %arg3[%c0_7, %c0_8, %c0_9, %c0_10] : memref<1x1x1x32xf32, #tpu.memory_space<vmem>>, vector<1x1x1x32xf32>
    %6 = vector.broadcast %5 : vector<1x1x1x32xf32> to vector<1x4x5x32xf32>
    %7 = arith.addf %4, %6 : vector<1x4x5x32xf32>
    %c0_11 = arith.constant 0 : index
    %c0_12 = arith.constant 0 : index
    %c0_13 = arith.constant 0 : index
    %c0_14 = arith.constant 0 : index
    %8 = vector.load %arg4[%c0_11, %c0_12, %c0_13, %c0_14] : memref<1x4x5x32xbf16, #tpu.memory_space<vmem>>, vector<1x4x5x32xbf16>
    %9 = arith.extf %8 : vector<1x4x5x32xbf16> to vector<1x4x5x32xf32>
    %10 = arith.addf %7, %9 : vector<1x4x5x32xf32>
    %cst = arith.constant 0.000000e+00 : f32
    %11 = vector.broadcast %cst : f32 to vector<1x4x5x32xf32>
    %12 = arith.maximumf %10, %11 : vector<1x4x5x32xf32>
    %13 = arith.truncf %12 : vector<1x4x5x32xf32> to vector<1x4x5x32xbf16>
    %c0_15 = arith.constant 0 : index
    %c0_16 = arith.constant 0 : index
    %c0_17 = arith.constant 0 : index
    %c0_18 = arith.constant 0 : index
    %14 = vector.load %arg5[%c0_15, %c0_16, %c0_17, %c0_18] : memref<1x4x5x32xbf16, #tpu.memory_space<vmem>>, vector<1x4x5x32xbf16>
    tpu.vector_store %arg5[%c0_15, %c0_16, %c0_17, %c0_18], %13 {strides = array<i32>} : memref<1x4x5x32xbf16, #tpu.memory_space<vmem>>, vector<1x4x5x32xbf16>,
    return
  }
  func.func @transform_0(%arg0: i32) -> (i32, i32, i32, i32) {
    %c0_i32 = arith.constant 0 : i32
    %c0_i32_0 = arith.constant 0 : i32
    %c0_i32_1 = arith.constant 0 : i32
    %c0_i32_2 = arith.constant 0 : i32
    return %arg0, %c0_i32, %c0_i32_0, %c0_i32_1 : i32, i32, i32, i32
  }
  func.func @transform_1(%arg0: i32) -> (i32, i32, i32, i32) {
    %c0_i32 = arith.constant 0 : i32
    %c0_i32_0 = arith.constant 0 : i32
    %c0_i32_1 = arith.constant 0 : i32
    %c0_i32_2 = arith.constant 0 : i32
    %c0_i32_3 = arith.constant 0 : i32
    return %c0_i32, %c0_i32_0, %c0_i32_1, %c0_i32_2 : i32, i32, i32, i32
  }
  func.func @transform_2(%arg0: i32) -> (i32, i32, i32, i32) {
    %c0_i32 = arith.constant 0 : i32
    %c0_i32_0 = arith.constant 0 : i32
    %c0_i32_1 = arith.constant 0 : i32
    %c0_i32_2 = arith.constant 0 : i32
    %c0_i32_3 = arith.constant 0 : i32
    return %c0_i32, %c0_i32_0, %c0_i32_1, %c0_i32_2 : i32, i32, i32, i32
  }
  func.func @transform_3(%arg0: i32) -> (i32, i32, i32, i32) {
    %c0_i32 = arith.constant 0 : i32
    %c0_i32_0 = arith.constant 0 : i32
    %c0_i32_1 = arith.constant 0 : i32
    %c0_i32_2 = arith.constant 0 : i32
    return %arg0, %c0_i32, %c0_i32_0, %c0_i32_1 : i32, i32, i32, i32
  }
  func.func @transform_4(%arg0: i32) -> (i32, i32, i32, i32) {
    %c0_i32 = arith.constant 0 : i32
    %c0_i32_0 = arith.constant 0 : i32
    %c0_i32_1 = arith.constant 0 : i32
    %c0_i32_2 = arith.constant 0 : i32
    return %arg0, %c0_i32, %c0_i32_0, %c0_i32_1 : i32, i32, i32, i32
  }
}

module attributes {stable_mosaic.version = 11 : i64} {
  func.func @_conv_stats_kernel(%arg0: i32, %arg1: memref<1x6x7x32xbf16, #tpu.memory_space<vmem>>, %arg2: memref<288x32xbf16, #tpu.memory_space<vmem>>, %arg3: memref<1x4x5x32xbf16, #tpu.memory_space<vmem>>, %arg4: memref<1x1x32xf32, #tpu.memory_space<vmem>>, %arg5: memref<1x1x32xf32, #tpu.memory_space<vmem>>) attributes {dimension_semantics = [#tpu.dimension_semantics<parallel>], iteration_bounds = array<i64: 2>, scalar_prefetch = 0 : i64, scratch_operands = 0 : i64, tpu.core_type = #tpu.core_type<tc>, window_params = [{transform_indices = @transform_0, window_bounds = array<i64: 1, 6, 7, 32>}, {pipeline_mode = #tpu.pipeline_mode<synchronous>, transform_indices = @transform_1, window_bounds = array<i64: 288, 32>}, {transform_indices = @transform_2, window_bounds = array<i64: 1, 4, 5, 32>}, {transform_indices = @transform_3, window_bounds = array<i64: 1, 1, 32>}, {transform_indices = @transform_4, window_bounds = array<i64: 1, 1, 32>}]} {
    %c0 = arith.constant 0 : index
    %c0_0 = arith.constant 0 : index
    %0 = vector.load %arg2[%c0, %c0_0] : memref<288x32xbf16, #tpu.memory_space<vmem>>, vector<288x32xbf16>
    %cst = arith.constant 0.000000e+00 : f32
    %1 = vector.broadcast %cst : f32 to vector<1x32xf32>
    %c0_i32 = arith.constant 0 : i32
    %c4_i32 = arith.constant 4 : i32
    %2 = arith.addi %c0_i32, %c4_i32 : i32
    %c1_i32 = arith.constant 1 : i32
    %3:2 = scf.for %arg6 = %c0_i32 to %2 step %c1_i32 iter_args(%arg7 = %1, %arg8 = %1) -> (vector<1x32xf32>, vector<1x32xf32>)  : i32 {
      %c1_i32_8 = arith.constant 1 : i32
      %10 = arith.muli %arg6, %c1_i32_8 : i32
      %c0_i32_9 = arith.constant 0 : i32
      %11 = arith.addi %10, %c0_i32_9 : i32
      %c0_10 = arith.constant 0 : index
      %12 = arith.index_cast %11 : i32 to index
      %c0_11 = arith.constant 0 : index
      %c0_12 = arith.constant 0 : index
      %13 = vector.load %arg1[%c0_10, %12, %c0_11, %c0_12] : memref<1x6x7x32xbf16, #tpu.memory_space<vmem>>, vector<1x1x7x32xbf16>
      %14 = vector.shape_cast %13 : vector<1x1x7x32xbf16> to vector<7x32xbf16>
      %15 = vector.extract_strided_slice %14 {offsets = [0, 0], sizes = [5, 32], strides = [1, 1]} : vector<7x32xbf16> to vector<5x32xbf16>
      %16 = vector.extract_strided_slice %14 {offsets = [1, 0], sizes = [5, 32], strides = [1, 1]} : vector<7x32xbf16> to vector<5x32xbf16>
      %17 = vector.extract_strided_slice %14 {offsets = [2, 0], sizes = [5, 32], strides = [1, 1]} : vector<7x32xbf16> to vector<5x32xbf16>
      %c1_i32_13 = arith.constant 1 : i32
      %18 = arith.muli %arg6, %c1_i32_13 : i32
      %c1_i32_14 = arith.constant 1 : i32
      %19 = arith.addi %18, %c1_i32_14 : i32
      %c0_15 = arith.constant 0 : index
      %20 = arith.index_cast %19 : i32 to index
      %c0_16 = arith.constant 0 : index
      %c0_17 = arith.constant 0 : index
      %21 = vector.load %arg1[%c0_15, %20, %c0_16, %c0_17] : memref<1x6x7x32xbf16, #tpu.memory_space<vmem>>, vector<1x1x7x32xbf16>
      %22 = vector.shape_cast %21 : vector<1x1x7x32xbf16> to vector<7x32xbf16>
      %23 = vector.extract_strided_slice %22 {offsets = [0, 0], sizes = [5, 32], strides = [1, 1]} : vector<7x32xbf16> to vector<5x32xbf16>
      %24 = vector.extract_strided_slice %22 {offsets = [1, 0], sizes = [5, 32], strides = [1, 1]} : vector<7x32xbf16> to vector<5x32xbf16>
      %25 = vector.extract_strided_slice %22 {offsets = [2, 0], sizes = [5, 32], strides = [1, 1]} : vector<7x32xbf16> to vector<5x32xbf16>
      %c1_i32_18 = arith.constant 1 : i32
      %26 = arith.muli %arg6, %c1_i32_18 : i32
      %c2_i32 = arith.constant 2 : i32
      %27 = arith.addi %26, %c2_i32 : i32
      %c0_19 = arith.constant 0 : index
      %28 = arith.index_cast %27 : i32 to index
      %c0_20 = arith.constant 0 : index
      %c0_21 = arith.constant 0 : index
      %29 = vector.load %arg1[%c0_19, %28, %c0_20, %c0_21] : memref<1x6x7x32xbf16, #tpu.memory_space<vmem>>, vector<1x1x7x32xbf16>
      %30 = vector.shape_cast %29 : vector<1x1x7x32xbf16> to vector<7x32xbf16>
      %31 = vector.extract_strided_slice %30 {offsets = [0, 0], sizes = [5, 32], strides = [1, 1]} : vector<7x32xbf16> to vector<5x32xbf16>
      %32 = vector.extract_strided_slice %30 {offsets = [1, 0], sizes = [5, 32], strides = [1, 1]} : vector<7x32xbf16> to vector<5x32xbf16>
      %33 = vector.extract_strided_slice %30 {offsets = [2, 0], sizes = [5, 32], strides = [1, 1]} : vector<7x32xbf16> to vector<5x32xbf16>
      %34 = tpu.concatenate %15, %16, %17, %23, %24, %25, %31, %32, %33 in 1 : vector<5x32xbf16>, vector<5x32xbf16>, vector<5x32xbf16>, vector<5x32xbf16>, vector<5x32xbf16>, vector<5x32xbf16>, vector<5x32xbf16>, vector<5x32xbf16>, vector<5x32xbf16> -> vector<5x288xbf16>
      %cst_22 = arith.constant dense<0.000000e+00> : vector<5x32xf32>
      %35 = tpu.matmul %34, %0, %cst_22 {dimension_numbers = #tpu.dot_dimension_numbers<[1], [0], [0], [1], [0, 0, 1, 1], [], []>} : vector<5x288xbf16>, vector<288x32xbf16>, vector<5x32xf32> -> vector<5x32xf32>
      %36 = arith.truncf %35 : vector<5x32xf32> to vector<5x32xbf16>
      %c0_23 = arith.constant 0 : index
      %37 = arith.index_cast %arg6 : i32 to index
      %c0_24 = arith.constant 0 : index
      %c0_25 = arith.constant 0 : index
      %38 = vector.load %arg3[%c0_23, %37, %c0_24, %c0_25] : memref<1x4x5x32xbf16, #tpu.memory_space<vmem>>, vector<1x1x5x32xbf16>
      %39 = vector.shape_cast %38 : vector<1x1x5x32xbf16> to vector<5x32xbf16>
      %40 = vector.shape_cast %36 : vector<5x32xbf16> to vector<1x1x5x32xbf16>
      tpu.vector_store %arg3[%c0_23, %37, %c0_24, %c0_25], %40 {strides = array<i32>} : memref<1x4x5x32xbf16, #tpu.memory_space<vmem>>, vector<1x1x5x32xbf16>,
      %cst_26 = arith.constant dense<0.000000e+00> : vector<32xf32>
      %41 = vector.multi_reduction <add>, %35, %cst_26 [0] : vector<5x32xf32> to vector<32xf32>
      %42 = vector.shape_cast %41 : vector<32xf32> to vector<1x32xf32>
      %43 = arith.addf %arg7, %42 : vector<1x32xf32>
      %44 = arith.mulf %35, %35 : vector<5x32xf32>
      %cst_27 = arith.constant dense<0.000000e+00> : vector<32xf32>
      %45 = vector.multi_reduction <add>, %44, %cst_27 [0] : vector<5x32xf32> to vector<32xf32>
      %46 = vector.shape_cast %45 : vector<32xf32> to vector<1x32xf32>
      %47 = arith.addf %arg8, %46 : vector<1x32xf32>
      scf.yield %43, %47 : vector<1x32xf32>, vector<1x32xf32>
    }
    %c4_i32_1 = arith.constant 4 : i32
    %c0_2 = arith.constant 0 : index
    %c0_3 = arith.constant 0 : index
    %c0_4 = arith.constant 0 : index
    %4 = vector.load %arg4[%c0_2, %c0_3, %c0_4] : memref<1x1x32xf32, #tpu.memory_space<vmem>>, vector<1x1x32xf32>
    %5 = vector.shape_cast %4 : vector<1x1x32xf32> to vector<1x32xf32>
    %6 = vector.shape_cast %3#0 : vector<1x32xf32> to vector<1x1x32xf32>
    tpu.vector_store %arg4[%c0_2, %c0_3, %c0_4], %6 {strides = array<i32>} : memref<1x1x32xf32, #tpu.memory_space<vmem>>, vector<1x1x32xf32>,
    %c0_5 = arith.constant 0 : index
    %c0_6 = arith.constant 0 : index
    %c0_7 = arith.constant 0 : index
    %7 = vector.load %arg5[%c0_5, %c0_6, %c0_7] : memref<1x1x32xf32, #tpu.memory_space<vmem>>, vector<1x1x32xf32>
    %8 = vector.shape_cast %7 : vector<1x1x32xf32> to vector<1x32xf32>
    %9 = vector.shape_cast %3#1 : vector<1x32xf32> to vector<1x1x32xf32>
    tpu.vector_store %arg5[%c0_5, %c0_6, %c0_7], %9 {strides = array<i32>} : memref<1x1x32xf32, #tpu.memory_space<vmem>>, vector<1x1x32xf32>,
    return
  }
  func.func @transform_0(%arg0: i32) -> (i32, i32, i32, i32) {
    %c0_i32 = arith.constant 0 : i32
    %c0_i32_0 = arith.constant 0 : i32
    %c0_i32_1 = arith.constant 0 : i32
    %c0_i32_2 = arith.constant 0 : i32
    return %arg0, %c0_i32, %c0_i32_0, %c0_i32_1 : i32, i32, i32, i32
  }
  func.func @transform_1(%arg0: i32) -> (i32, i32) {
    %c0_i32 = arith.constant 0 : i32
    %c0_i32_0 = arith.constant 0 : i32
    %c0_i32_1 = arith.constant 0 : i32
    return %c0_i32, %c0_i32_0 : i32, i32
  }
  func.func @transform_2(%arg0: i32) -> (i32, i32, i32, i32) {
    %c0_i32 = arith.constant 0 : i32
    %c0_i32_0 = arith.constant 0 : i32
    %c0_i32_1 = arith.constant 0 : i32
    %c0_i32_2 = arith.constant 0 : i32
    return %arg0, %c0_i32, %c0_i32_0, %c0_i32_1 : i32, i32, i32, i32
  }
  func.func @transform_3(%arg0: i32) -> (i32, i32, i32) {
    %c0_i32 = arith.constant 0 : i32
    %c0_i32_0 = arith.constant 0 : i32
    %c0_i32_1 = arith.constant 0 : i32
    return %arg0, %c0_i32, %c0_i32_0 : i32, i32, i32
  }
  func.func @transform_4(%arg0: i32) -> (i32, i32, i32) {
    %c0_i32 = arith.constant 0 : i32
    %c0_i32_0 = arith.constant 0 : i32
    %c0_i32_1 = arith.constant 0 : i32
    return %arg0, %c0_i32, %c0_i32_0 : i32, i32, i32
  }
}

module attributes {stable_mosaic.version = 11 : i64} {
  func.func @_conv_stats_kernel(%arg0: i32, %arg1: memref<1x4x7x32xbf16, #tpu.memory_space<vmem>>, %arg2: memref<128x32xbf16, #tpu.memory_space<vmem>>, %arg3: memref<1x2x6x32xbf16, #tpu.memory_space<vmem>>, %arg4: memref<1x1x32xf32, #tpu.memory_space<vmem>>, %arg5: memref<1x1x32xf32, #tpu.memory_space<vmem>>) attributes {dimension_semantics = [#tpu.dimension_semantics<parallel>], iteration_bounds = array<i64: 2>, scalar_prefetch = 0 : i64, scratch_operands = 0 : i64, tpu.core_type = #tpu.core_type<tc>, window_params = [{transform_indices = @transform_0, window_bounds = array<i64: 1, 4, 7, 32>}, {pipeline_mode = #tpu.pipeline_mode<synchronous>, transform_indices = @transform_1, window_bounds = array<i64: 128, 32>}, {transform_indices = @transform_2, window_bounds = array<i64: 1, 2, 6, 32>}, {transform_indices = @transform_3, window_bounds = array<i64: 1, 1, 32>}, {transform_indices = @transform_4, window_bounds = array<i64: 1, 1, 32>}]} {
    %c0 = arith.constant 0 : index
    %c0_0 = arith.constant 0 : index
    %0 = vector.load %arg2[%c0, %c0_0] : memref<128x32xbf16, #tpu.memory_space<vmem>>, vector<128x32xbf16>
    %cst = arith.constant 0.000000e+00 : f32
    %1 = vector.broadcast %cst : f32 to vector<1x32xf32>
    %c0_i32 = arith.constant 0 : i32
    %c2_i32 = arith.constant 2 : i32
    %2 = arith.addi %c0_i32, %c2_i32 : i32
    %c1_i32 = arith.constant 1 : i32
    %3:2 = scf.for %arg6 = %c0_i32 to %2 step %c1_i32 iter_args(%arg7 = %1, %arg8 = %1) -> (vector<1x32xf32>, vector<1x32xf32>)  : i32 {
      %c2_i32_8 = arith.constant 2 : i32
      %10 = arith.muli %arg6, %c2_i32_8 : i32
      %c0_i32_9 = arith.constant 0 : i32
      %11 = arith.addi %10, %c0_i32_9 : i32
      %c0_10 = arith.constant 0 : index
      %12 = arith.index_cast %11 : i32 to index
      %c0_11 = arith.constant 0 : index
      %c0_12 = arith.constant 0 : index
      %13 = vector.load %arg1[%c0_10, %12, %c0_11, %c0_12] : memref<1x4x7x32xbf16, #tpu.memory_space<vmem>>, vector<1x1x7x32xbf16>
      %14 = vector.shape_cast %13 : vector<1x1x7x32xbf16> to vector<7x32xbf16>
      %15 = vector.extract_strided_slice %14 {offsets = [0, 0], sizes = [6, 32], strides = [1, 1]} : vector<7x32xbf16> to vector<6x32xbf16>
      %16 = vector.extract_strided_slice %14 {offsets = [1, 0], sizes = [6, 32], strides = [1, 1]} : vector<7x32xbf16> to vector<6x32xbf16>
      %c2_i32_13 = arith.constant 2 : i32
      %17 = arith.muli %arg6, %c2_i32_13 : i32
      %c1_i32_14 = arith.constant 1 : i32
      %18 = arith.addi %17, %c1_i32_14 : i32
      %c0_15 = arith.constant 0 : index
      %19 = arith.index_cast %18 : i32 to index
      %c0_16 = arith.constant 0 : index
      %c0_17 = arith.constant 0 : index
      %20 = vector.load %arg1[%c0_15, %19, %c0_16, %c0_17] : memref<1x4x7x32xbf16, #tpu.memory_space<vmem>>, vector<1x1x7x32xbf16>
      %21 = vector.shape_cast %20 : vector<1x1x7x32xbf16> to vector<7x32xbf16>
      %22 = vector.extract_strided_slice %21 {offsets = [0, 0], sizes = [6, 32], strides = [1, 1]} : vector<7x32xbf16> to vector<6x32xbf16>
      %23 = vector.extract_strided_slice %21 {offsets = [1, 0], sizes = [6, 32], strides = [1, 1]} : vector<7x32xbf16> to vector<6x32xbf16>
      %24 = tpu.concatenate %15, %16, %22, %23 in 1 : vector<6x32xbf16>, vector<6x32xbf16>, vector<6x32xbf16>, vector<6x32xbf16> -> vector<6x128xbf16>
      %cst_18 = arith.constant dense<0.000000e+00> : vector<6x32xf32>
      %25 = tpu.matmul %24, %0, %cst_18 {dimension_numbers = #tpu.dot_dimension_numbers<[1], [0], [0], [1], [0, 0, 1, 1], [], []>} : vector<6x128xbf16>, vector<128x32xbf16>, vector<6x32xf32> -> vector<6x32xf32>
      %26 = arith.truncf %25 : vector<6x32xf32> to vector<6x32xbf16>
      %c0_19 = arith.constant 0 : index
      %27 = arith.index_cast %arg6 : i32 to index
      %c0_20 = arith.constant 0 : index
      %c0_21 = arith.constant 0 : index
      %28 = vector.load %arg3[%c0_19, %27, %c0_20, %c0_21] : memref<1x2x6x32xbf16, #tpu.memory_space<vmem>>, vector<1x1x6x32xbf16>
      %29 = vector.shape_cast %28 : vector<1x1x6x32xbf16> to vector<6x32xbf16>
      %30 = vector.shape_cast %26 : vector<6x32xbf16> to vector<1x1x6x32xbf16>
      tpu.vector_store %arg3[%c0_19, %27, %c0_20, %c0_21], %30 {strides = array<i32>} : memref<1x2x6x32xbf16, #tpu.memory_space<vmem>>, vector<1x1x6x32xbf16>,
      %cst_22 = arith.constant dense<0.000000e+00> : vector<32xf32>
      %31 = vector.multi_reduction <add>, %25, %cst_22 [0] : vector<6x32xf32> to vector<32xf32>
      %32 = vector.shape_cast %31 : vector<32xf32> to vector<1x32xf32>
      %33 = arith.addf %arg7, %32 : vector<1x32xf32>
      %34 = arith.mulf %25, %25 : vector<6x32xf32>
      %cst_23 = arith.constant dense<0.000000e+00> : vector<32xf32>
      %35 = vector.multi_reduction <add>, %34, %cst_23 [0] : vector<6x32xf32> to vector<32xf32>
      %36 = vector.shape_cast %35 : vector<32xf32> to vector<1x32xf32>
      %37 = arith.addf %arg8, %36 : vector<1x32xf32>
      scf.yield %33, %37 : vector<1x32xf32>, vector<1x32xf32>
    }
    %c2_i32_1 = arith.constant 2 : i32
    %c0_2 = arith.constant 0 : index
    %c0_3 = arith.constant 0 : index
    %c0_4 = arith.constant 0 : index
    %4 = vector.load %arg4[%c0_2, %c0_3, %c0_4] : memref<1x1x32xf32, #tpu.memory_space<vmem>>, vector<1x1x32xf32>
    %5 = vector.shape_cast %4 : vector<1x1x32xf32> to vector<1x32xf32>
    %6 = vector.shape_cast %3#0 : vector<1x32xf32> to vector<1x1x32xf32>
    tpu.vector_store %arg4[%c0_2, %c0_3, %c0_4], %6 {strides = array<i32>} : memref<1x1x32xf32, #tpu.memory_space<vmem>>, vector<1x1x32xf32>,
    %c0_5 = arith.constant 0 : index
    %c0_6 = arith.constant 0 : index
    %c0_7 = arith.constant 0 : index
    %7 = vector.load %arg5[%c0_5, %c0_6, %c0_7] : memref<1x1x32xf32, #tpu.memory_space<vmem>>, vector<1x1x32xf32>
    %8 = vector.shape_cast %7 : vector<1x1x32xf32> to vector<1x32xf32>
    %9 = vector.shape_cast %3#1 : vector<1x32xf32> to vector<1x1x32xf32>
    tpu.vector_store %arg5[%c0_5, %c0_6, %c0_7], %9 {strides = array<i32>} : memref<1x1x32xf32, #tpu.memory_space<vmem>>, vector<1x1x32xf32>,
    return
  }
  func.func @transform_0(%arg0: i32) -> (i32, i32, i32, i32) {
    %c0_i32 = arith.constant 0 : i32
    %c0_i32_0 = arith.constant 0 : i32
    %c0_i32_1 = arith.constant 0 : i32
    %c0_i32_2 = arith.constant 0 : i32
    return %arg0, %c0_i32, %c0_i32_0, %c0_i32_1 : i32, i32, i32, i32
  }
  func.func @transform_1(%arg0: i32) -> (i32, i32) {
    %c0_i32 = arith.constant 0 : i32
    %c0_i32_0 = arith.constant 0 : i32
    %c0_i32_1 = arith.constant 0 : i32
    return %c0_i32, %c0_i32_0 : i32, i32
  }
  func.func @transform_2(%arg0: i32) -> (i32, i32, i32, i32) {
    %c0_i32 = arith.constant 0 : i32
    %c0_i32_0 = arith.constant 0 : i32
    %c0_i32_1 = arith.constant 0 : i32
    %c0_i32_2 = arith.constant 0 : i32
    return %arg0, %c0_i32, %c0_i32_0, %c0_i32_1 : i32, i32, i32, i32
  }
  func.func @transform_3(%arg0: i32) -> (i32, i32, i32) {
    %c0_i32 = arith.constant 0 : i32
    %c0_i32_0 = arith.constant 0 : i32
    %c0_i32_1 = arith.constant 0 : i32
    return %arg0, %c0_i32, %c0_i32_0 : i32, i32, i32
  }
  func.func @transform_4(%arg0: i32) -> (i32, i32, i32) {
    %c0_i32 = arith.constant 0 : i32
    %c0_i32_0 = arith.constant 0 : i32
    %c0_i32_1 = arith.constant 0 : i32
    return %arg0, %c0_i32, %c0_i32_0 : i32, i32, i32
  }
}

module attributes {stable_mosaic.version = 11 : i64} {
  func.func @_bn_apply_kernel(%arg0: i32, %arg1: memref<1x2x6x32xbf16, #tpu.memory_space<vmem>>, %arg2: memref<1x1x1x32xf32, #tpu.memory_space<vmem>>, %arg3: memref<1x1x1x32xf32, #tpu.memory_space<vmem>>, %arg4: memref<1x2x6x32xbf16, #tpu.memory_space<vmem>>) attributes {dimension_semantics = [#tpu.dimension_semantics<parallel>], iteration_bounds = array<i64: 2>, scalar_prefetch = 0 : i64, scratch_operands = 0 : i64, tpu.core_type = #tpu.core_type<tc>, window_params = [{transform_indices = @transform_0, window_bounds = array<i64: 1, 2, 6, 32>}, {pipeline_mode = #tpu.pipeline_mode<synchronous>, transform_indices = @transform_1, window_bounds = array<i64: 1, 1, 1, 32>}, {pipeline_mode = #tpu.pipeline_mode<synchronous>, transform_indices = @transform_2, window_bounds = array<i64: 1, 1, 1, 32>}, {transform_indices = @transform_3, window_bounds = array<i64: 1, 2, 6, 32>}]} {
    %c0 = arith.constant 0 : index
    %c0_0 = arith.constant 0 : index
    %c0_1 = arith.constant 0 : index
    %c0_2 = arith.constant 0 : index
    %0 = vector.load %arg1[%c0, %c0_0, %c0_1, %c0_2] : memref<1x2x6x32xbf16, #tpu.memory_space<vmem>>, vector<1x2x6x32xbf16>
    %1 = arith.extf %0 : vector<1x2x6x32xbf16> to vector<1x2x6x32xf32>
    %c0_3 = arith.constant 0 : index
    %c0_4 = arith.constant 0 : index
    %c0_5 = arith.constant 0 : index
    %c0_6 = arith.constant 0 : index
    %2 = vector.load %arg2[%c0_3, %c0_4, %c0_5, %c0_6] : memref<1x1x1x32xf32, #tpu.memory_space<vmem>>, vector<1x1x1x32xf32>
    %3 = vector.broadcast %2 : vector<1x1x1x32xf32> to vector<1x2x6x32xf32>
    %4 = arith.mulf %1, %3 : vector<1x2x6x32xf32>
    %c0_7 = arith.constant 0 : index
    %c0_8 = arith.constant 0 : index
    %c0_9 = arith.constant 0 : index
    %c0_10 = arith.constant 0 : index
    %5 = vector.load %arg3[%c0_7, %c0_8, %c0_9, %c0_10] : memref<1x1x1x32xf32, #tpu.memory_space<vmem>>, vector<1x1x1x32xf32>
    %6 = vector.broadcast %5 : vector<1x1x1x32xf32> to vector<1x2x6x32xf32>
    %7 = arith.addf %4, %6 : vector<1x2x6x32xf32>
    %cst = arith.constant 0.000000e+00 : f32
    %8 = vector.broadcast %cst : f32 to vector<1x2x6x32xf32>
    %9 = arith.maximumf %7, %8 : vector<1x2x6x32xf32>
    %10 = arith.truncf %9 : vector<1x2x6x32xf32> to vector<1x2x6x32xbf16>
    %c0_11 = arith.constant 0 : index
    %c0_12 = arith.constant 0 : index
    %c0_13 = arith.constant 0 : index
    %c0_14 = arith.constant 0 : index
    %11 = vector.load %arg4[%c0_11, %c0_12, %c0_13, %c0_14] : memref<1x2x6x32xbf16, #tpu.memory_space<vmem>>, vector<1x2x6x32xbf16>
    tpu.vector_store %arg4[%c0_11, %c0_12, %c0_13, %c0_14], %10 {strides = array<i32>} : memref<1x2x6x32xbf16, #tpu.memory_space<vmem>>, vector<1x2x6x32xbf16>,
    return
  }
  func.func @transform_0(%arg0: i32) -> (i32, i32, i32, i32) {
    %c0_i32 = arith.constant 0 : i32
    %c0_i32_0 = arith.constant 0 : i32
    %c0_i32_1 = arith.constant 0 : i32
    %c0_i32_2 = arith.constant 0 : i32
    return %arg0, %c0_i32, %c0_i32_0, %c0_i32_1 : i32, i32, i32, i32
  }
  func.func @transform_1(%arg0: i32) -> (i32, i32, i32, i32) {
    %c0_i32 = arith.constant 0 : i32
    %c0_i32_0 = arith.constant 0 : i32
    %c0_i32_1 = arith.constant 0 : i32
    %c0_i32_2 = arith.constant 0 : i32
    %c0_i32_3 = arith.constant 0 : i32
    return %c0_i32, %c0_i32_0, %c0_i32_1, %c0_i32_2 : i32, i32, i32, i32
  }
  func.func @transform_2(%arg0: i32) -> (i32, i32, i32, i32) {
    %c0_i32 = arith.constant 0 : i32
    %c0_i32_0 = arith.constant 0 : i32
    %c0_i32_1 = arith.constant 0 : i32
    %c0_i32_2 = arith.constant 0 : i32
    %c0_i32_3 = arith.constant 0 : i32
    return %c0_i32, %c0_i32_0, %c0_i32_1, %c0_i32_2 : i32, i32, i32, i32
  }
  func.func @transform_3(%arg0: i32) -> (i32, i32, i32, i32) {
    %c0_i32 = arith.constant 0 : i32
    %c0_i32_0 = arith.constant 0 : i32
    %c0_i32_1 = arith.constant 0 : i32
    %c0_i32_2 = arith.constant 0 : i32
    return %arg0, %c0_i32, %c0_i32_0, %c0_i32_1 : i32, i32, i32, i32
  }
}

module attributes {stable_mosaic.version = 11 : i64} {
  func.func @_conv_stats_kernel(%arg0: i32, %arg1: memref<1x2x6x32xbf16, #tpu.memory_space<vmem>>, %arg2: memref<128x32xbf16, #tpu.memory_space<vmem>>, %arg3: memref<1x1x5x32xbf16, #tpu.memory_space<vmem>>, %arg4: memref<1x1x32xf32, #tpu.memory_space<vmem>>, %arg5: memref<1x1x32xf32, #tpu.memory_space<vmem>>) attributes {dimension_semantics = [#tpu.dimension_semantics<parallel>], iteration_bounds = array<i64: 2>, scalar_prefetch = 0 : i64, scratch_operands = 0 : i64, tpu.core_type = #tpu.core_type<tc>, window_params = [{transform_indices = @transform_0, window_bounds = array<i64: 1, 2, 6, 32>}, {pipeline_mode = #tpu.pipeline_mode<synchronous>, transform_indices = @transform_1, window_bounds = array<i64: 128, 32>}, {transform_indices = @transform_2, window_bounds = array<i64: 1, 1, 5, 32>}, {transform_indices = @transform_3, window_bounds = array<i64: 1, 1, 32>}, {transform_indices = @transform_4, window_bounds = array<i64: 1, 1, 32>}]} {
    %c0 = arith.constant 0 : index
    %c0_0 = arith.constant 0 : index
    %0 = vector.load %arg2[%c0, %c0_0] : memref<128x32xbf16, #tpu.memory_space<vmem>>, vector<128x32xbf16>
    %cst = arith.constant 0.000000e+00 : f32
    %1 = vector.broadcast %cst : f32 to vector<1x32xf32>
    %c0_i32 = arith.constant 0 : i32
    %c1_i32 = arith.constant 1 : i32
    %2 = arith.muli %c0_i32, %c1_i32 : i32
    %c0_i32_1 = arith.constant 0 : i32
    %3 = arith.addi %2, %c0_i32_1 : i32
    %c0_2 = arith.constant 0 : index
    %4 = arith.index_cast %3 : i32 to index
    %c0_3 = arith.constant 0 : index
    %c0_4 = arith.constant 0 : index
    %5 = vector.load %arg1[%c0_2, %4, %c0_3, %c0_4] : memref<1x2x6x32xbf16, #tpu.memory_space<vmem>>, vector<1x1x6x32xbf16>
    %6 = vector.shape_cast %5 : vector<1x1x6x32xbf16> to vector<6x32xbf16>
    %7 = vector.extract_strided_slice %6 {offsets = [0, 0], sizes = [5, 32], strides = [1, 1]} : vector<6x32xbf16> to vector<5x32xbf16>
    %8 = vector.extract_strided_slice %6 {offsets = [1, 0], sizes = [5, 32], strides = [1, 1]} : vector<6x32xbf16> to vector<5x32xbf16>
    %c1_i32_5 = arith.constant 1 : i32
    %9 = arith.muli %c0_i32, %c1_i32_5 : i32
    %c1_i32_6 = arith.constant 1 : i32
    %10 = arith.addi %9, %c1_i32_6 : i32
    %c0_7 = arith.constant 0 : index
    %11 = arith.index_cast %10 : i32 to index
    %c0_8 = arith.constant 0 : index
    %c0_9 = arith.constant 0 : index
    %12 = vector.load %arg1[%c0_7, %11, %c0_8, %c0_9] : memref<1x2x6x32xbf16, #tpu.memory_space<vmem>>, vector<1x1x6x32xbf16>
    %13 = vector.shape_cast %12 : vector<1x1x6x32xbf16> to vector<6x32xbf16>
    %14 = vector.extract_strided_slice %13 {offsets = [0, 0], sizes = [5, 32], strides = [1, 1]} : vector<6x32xbf16> to vector<5x32xbf16>
    %15 = vector.extract_strided_slice %13 {offsets = [1, 0], sizes = [5, 32], strides = [1, 1]} : vector<6x32xbf16> to vector<5x32xbf16>
    %16 = tpu.concatenate %7, %8, %14, %15 in 1 : vector<5x32xbf16>, vector<5x32xbf16>, vector<5x32xbf16>, vector<5x32xbf16> -> vector<5x128xbf16>
    %cst_10 = arith.constant dense<0.000000e+00> : vector<5x32xf32>
    %17 = tpu.matmul %16, %0, %cst_10 {dimension_numbers = #tpu.dot_dimension_numbers<[1], [0], [0], [1], [0, 0, 1, 1], [], []>} : vector<5x128xbf16>, vector<128x32xbf16>, vector<5x32xf32> -> vector<5x32xf32>
    %18 = arith.truncf %17 : vector<5x32xf32> to vector<5x32xbf16>
    %c0_11 = arith.constant 0 : index
    %19 = arith.index_cast %c0_i32 : i32 to index
    %c0_12 = arith.constant 0 : index
    %c0_13 = arith.constant 0 : index
    %20 = vector.load %arg3[%c0_11, %19, %c0_12, %c0_13] : memref<1x1x5x32xbf16, #tpu.memory_space<vmem>>, vector<1x1x5x32xbf16>
    %21 = vector.shape_cast %20 : vector<1x1x5x32xbf16> to vector<5x32xbf16>
    %22 = vector.shape_cast %18 : vector<5x32xbf16> to vector<1x1x5x32xbf16>
    tpu.vector_store %arg3[%c0_11, %19, %c0_12, %c0_13], %22 {strides = array<i32>} : memref<1x1x5x32xbf16, #tpu.memory_space<vmem>>, vector<1x1x5x32xbf16>,
    %cst_14 = arith.constant dense<0.000000e+00> : vector<32xf32>
    %23 = vector.multi_reduction <add>, %17, %cst_14 [0] : vector<5x32xf32> to vector<32xf32>
    %24 = vector.shape_cast %23 : vector<32xf32> to vector<1x32xf32>
    %25 = arith.addf %1, %24 : vector<1x32xf32>
    %26 = arith.mulf %17, %17 : vector<5x32xf32>
    %cst_15 = arith.constant dense<0.000000e+00> : vector<32xf32>
    %27 = vector.multi_reduction <add>, %26, %cst_15 [0] : vector<5x32xf32> to vector<32xf32>
    %28 = vector.shape_cast %27 : vector<32xf32> to vector<1x32xf32>
    %29 = arith.addf %1, %28 : vector<1x32xf32>
    %c1_i32_16 = arith.constant 1 : i32
    %c0_17 = arith.constant 0 : index
    %c0_18 = arith.constant 0 : index
    %c0_19 = arith.constant 0 : index
    %30 = vector.load %arg4[%c0_17, %c0_18, %c0_19] : memref<1x1x32xf32, #tpu.memory_space<vmem>>, vector<1x1x32xf32>
    %31 = vector.shape_cast %30 : vector<1x1x32xf32> to vector<1x32xf32>
    %32 = vector.shape_cast %25 : vector<1x32xf32> to vector<1x1x32xf32>
    tpu.vector_store %arg4[%c0_17, %c0_18, %c0_19], %32 {strides = array<i32>} : memref<1x1x32xf32, #tpu.memory_space<vmem>>, vector<1x1x32xf32>,
    %c0_20 = arith.constant 0 : index
    %c0_21 = arith.constant 0 : index
    %c0_22 = arith.constant 0 : index
    %33 = vector.load %arg5[%c0_20, %c0_21, %c0_22] : memref<1x1x32xf32, #tpu.memory_space<vmem>>, vector<1x1x32xf32>
    %34 = vector.shape_cast %33 : vector<1x1x32xf32> to vector<1x32xf32>
    %35 = vector.shape_cast %29 : vector<1x32xf32> to vector<1x1x32xf32>
    tpu.vector_store %arg5[%c0_20, %c0_21, %c0_22], %35 {strides = array<i32>} : memref<1x1x32xf32, #tpu.memory_space<vmem>>, vector<1x1x32xf32>,
    return
  }
  func.func @transform_0(%arg0: i32) -> (i32, i32, i32, i32) {
    %c0_i32 = arith.constant 0 : i32
    %c0_i32_0 = arith.constant 0 : i32
    %c0_i32_1 = arith.constant 0 : i32
    %c0_i32_2 = arith.constant 0 : i32
    return %arg0, %c0_i32, %c0_i32_0, %c0_i32_1 : i32, i32, i32, i32
  }
  func.func @transform_1(%arg0: i32) -> (i32, i32) {
    %c0_i32 = arith.constant 0 : i32
    %c0_i32_0 = arith.constant 0 : i32
    %c0_i32_1 = arith.constant 0 : i32
    return %c0_i32, %c0_i32_0 : i32, i32
  }
  func.func @transform_2(%arg0: i32) -> (i32, i32, i32, i32) {
    %c0_i32 = arith.constant 0 : i32
    %c0_i32_0 = arith.constant 0 : i32
    %c0_i32_1 = arith.constant 0 : i32
    %c0_i32_2 = arith.constant 0 : i32
    return %arg0, %c0_i32, %c0_i32_0, %c0_i32_1 : i32, i32, i32, i32
  }
  func.func @transform_3(%arg0: i32) -> (i32, i32, i32) {
    %c0_i32 = arith.constant 0 : i32
    %c0_i32_0 = arith.constant 0 : i32
    %c0_i32_1 = arith.constant 0 : i32
    return %arg0, %c0_i32, %c0_i32_0 : i32, i32, i32
  }
  func.func @transform_4(%arg0: i32) -> (i32, i32, i32) {
    %c0_i32 = arith.constant 0 : i32
    %c0_i32_0 = arith.constant 0 : i32
    %c0_i32_1 = arith.constant 0 : i32
    return %arg0, %c0_i32, %c0_i32_0 : i32, i32, i32
  }
}

module attributes {stable_mosaic.version = 11 : i64} {
  func.func @_bn_apply_kernel(%arg0: i32, %arg1: memref<1x1x5x32xbf16, #tpu.memory_space<vmem>>, %arg2: memref<1x1x1x32xf32, #tpu.memory_space<vmem>>, %arg3: memref<1x1x1x32xf32, #tpu.memory_space<vmem>>, %arg4: memref<1x1x5x32xbf16, #tpu.memory_space<vmem>>) attributes {dimension_semantics = [#tpu.dimension_semantics<parallel>], iteration_bounds = array<i64: 2>, scalar_prefetch = 0 : i64, scratch_operands = 0 : i64, tpu.core_type = #tpu.core_type<tc>, window_params = [{transform_indices = @transform_0, window_bounds = array<i64: 1, 1, 5, 32>}, {pipeline_mode = #tpu.pipeline_mode<synchronous>, transform_indices = @transform_1, window_bounds = array<i64: 1, 1, 1, 32>}, {pipeline_mode = #tpu.pipeline_mode<synchronous>, transform_indices = @transform_2, window_bounds = array<i64: 1, 1, 1, 32>}, {transform_indices = @transform_3, window_bounds = array<i64: 1, 1, 5, 32>}]} {
    %c0 = arith.constant 0 : index
    %c0_0 = arith.constant 0 : index
    %c0_1 = arith.constant 0 : index
    %c0_2 = arith.constant 0 : index
    %0 = vector.load %arg1[%c0, %c0_0, %c0_1, %c0_2] : memref<1x1x5x32xbf16, #tpu.memory_space<vmem>>, vector<1x1x5x32xbf16>
    %1 = arith.extf %0 : vector<1x1x5x32xbf16> to vector<1x1x5x32xf32>
    %c0_3 = arith.constant 0 : index
    %c0_4 = arith.constant 0 : index
    %c0_5 = arith.constant 0 : index
    %c0_6 = arith.constant 0 : index
    %2 = vector.load %arg2[%c0_3, %c0_4, %c0_5, %c0_6] : memref<1x1x1x32xf32, #tpu.memory_space<vmem>>, vector<1x1x1x32xf32>
    %3 = vector.broadcast %2 : vector<1x1x1x32xf32> to vector<1x1x5x32xf32>
    %4 = arith.mulf %1, %3 : vector<1x1x5x32xf32>
    %c0_7 = arith.constant 0 : index
    %c0_8 = arith.constant 0 : index
    %c0_9 = arith.constant 0 : index
    %c0_10 = arith.constant 0 : index
    %5 = vector.load %arg3[%c0_7, %c0_8, %c0_9, %c0_10] : memref<1x1x1x32xf32, #tpu.memory_space<vmem>>, vector<1x1x1x32xf32>
    %6 = vector.broadcast %5 : vector<1x1x1x32xf32> to vector<1x1x5x32xf32>
    %7 = arith.addf %4, %6 : vector<1x1x5x32xf32>
    %cst = arith.constant 0.000000e+00 : f32
    %8 = vector.broadcast %cst : f32 to vector<1x1x5x32xf32>
    %9 = arith.maximumf %7, %8 : vector<1x1x5x32xf32>
    %10 = arith.truncf %9 : vector<1x1x5x32xf32> to vector<1x1x5x32xbf16>
    %c0_11 = arith.constant 0 : index
    %c0_12 = arith.constant 0 : index
    %c0_13 = arith.constant 0 : index
    %c0_14 = arith.constant 0 : index
    %11 = vector.load %arg4[%c0_11, %c0_12, %c0_13, %c0_14] : memref<1x1x5x32xbf16, #tpu.memory_space<vmem>>, vector<1x1x5x32xbf16>
    tpu.vector_store %arg4[%c0_11, %c0_12, %c0_13, %c0_14], %10 {strides = array<i32>} : memref<1x1x5x32xbf16, #tpu.memory_space<vmem>>, vector<1x1x5x32xbf16>,
    return
  }
  func.func @transform_0(%arg0: i32) -> (i32, i32, i32, i32) {
    %c0_i32 = arith.constant 0 : i32
    %c0_i32_0 = arith.constant 0 : i32
    %c0_i32_1 = arith.constant 0 : i32
    %c0_i32_2 = arith.constant 0 : i32
    return %arg0, %c0_i32, %c0_i32_0, %c0_i32_1 : i32, i32, i32, i32
  }
  func.func @transform_1(%arg0: i32) -> (i32, i32, i32, i32) {
    %c0_i32 = arith.constant 0 : i32
    %c0_i32_0 = arith.constant 0 : i32
    %c0_i32_1 = arith.constant 0 : i32
    %c0_i32_2 = arith.constant 0 : i32
    %c0_i32_3 = arith.constant 0 : i32
    return %c0_i32, %c0_i32_0, %c0_i32_1, %c0_i32_2 : i32, i32, i32, i32
  }
  func.func @transform_2(%arg0: i32) -> (i32, i32, i32, i32) {
    %c0_i32 = arith.constant 0 : i32
    %c0_i32_0 = arith.constant 0 : i32
    %c0_i32_1 = arith.constant 0 : i32
    %c0_i32_2 = arith.constant 0 : i32
    %c0_i32_3 = arith.constant 0 : i32
    return %c0_i32, %c0_i32_0, %c0_i32_1, %c0_i32_2 : i32, i32, i32, i32
  }
  func.func @transform_3(%arg0: i32) -> (i32, i32, i32, i32) {
    %c0_i32 = arith.constant 0 : i32
    %c0_i32_0 = arith.constant 0 : i32
    %c0_i32_1 = arith.constant 0 : i32
    %c0_i32_2 = arith.constant 0 : i32
    return %arg0, %c0_i32, %c0_i32_0, %c0_i32_1 : i32, i32, i32, i32
  }
}

</mosaic_0001>

<bundles_post_ra>
// kernel: tile.108
= control target key start
LH: loop header
LB: loop body
LE: loop exit
PB: predicated region body
PF: predicated region fallthrough
CT: control target
= control target key end

     0   :  { %s64_s0 = inlined_call_operand.vmem [shape: f32[2], index: 0, kind: input, shape index: {}]   ;;  %s65_s1 = inlined_call_operand.vmem [shape: f32[64,2], index: 1, kind: output, shape index: {}]  }
   0x1   :  { %v4_v0 = vld [vmem:[%s64_s0] ss:$0 sm:$0xff] }
   0x2   :  { %5 = vst [vmem:[%s65_s1] sm:$0xff] %v4_v0 }
   0x3   :  { %20 = vst [vmem:[%s65_s1 + $0x8] sm:$0xff] %v4_v0 }
   0x4   :  { %21 = vst [vmem:[%s65_s1 + $0x10] sm:$0xff] %v4_v0 }
   0x5   :  { %22 = vst [vmem:[%s65_s1 + $0x18] sm:$0xff] %v4_v0 }
   0x6   :  { %23 = vst [vmem:[%s65_s1 + $0x20] sm:$0xff] %v4_v0 }
   0x7   :  { %24 = vst [vmem:[%s65_s1 + $0x28] sm:$0xff] %v4_v0 }
   0x8   :  { %25 = vst [vmem:[%s65_s1 + $0x30] sm:$0xff] %v4_v0 }
   0x9   :  { %26 = vst [vmem:[%s65_s1 + $0x38] sm:$0xff] %v4_v0 }

// kernel: tile.109
= control target key start
LH: loop header
LB: loop body
LE: loop exit
PB: predicated region body
PF: predicated region fallthrough
CT: control target
= control target key end

     0   :  { %s515_s10 = smov 126   ;;  %s516_s11 = smov 122   ;;  %vm3_vm0 = vcmask 15360   ;;  %vm9_vm1 = vcmask 1048560   ;;  %vm15_vm2 = vcmask 1032160   ;;  %vm21_vm3 = vcmask 1015760   ;;  %s783_s0 = inlined_call_operand.vmem [shape: f32[64,2], index: 0, kind: input, shape index: {}]   ;;  %s784_s1 = inlined_call_operand.vmem [shape: f32[1,128], index: 1, kind: output, shape index: {}]  }
   0x1   :  { %v389_v0 = vld [vmem:[%s783_s0 + $0x3f] sm:$0x1]   ;;  %v391_v1 = vld [vmem:[%s783_s0 + $0x3d] sm:$0x1]   ;;  %v393_v2 = vld [vmem:[%s783_s0 + $0x3b] sm:$0x1]  }
   0x2   :  { %7 = vrot.lane.b32.xlu0 %v389_v0, %s515_s10  ;;  %19 = vrot.lane.b32.xlu1 %v391_v1, %s516_s11  ;;  %s517_s14 = smov 118   ;;  %v390_v3 = vld [vmem:[%s783_s0 + $0x3e] sm:$0x1]   ;;  %v392_v4 = vld [vmem:[%s783_s0 + $0x3c] sm:$0x1]   ;;  %s518_s19 = smov 124  }
   0x3   :  { %31 = vrot.lane.b32.xlu2 %v393_v2, %s517_s14  ;;  %s519_s20 = smov 120   ;;  %v394_v5 = vld [vmem:[%s783_s0 + $0x3a] sm:$0x1]   ;;  %s520_s23 = smov 116   ;;  %v395_v6 = vld [vmem:[%s783_s0 + $0x39] sm:$0x1]  }
   0x4   :  { %v396_v7 = vld [vmem:[%s783_s0 + $0x38] sm:$0x1]   ;;  %s521_s28 = smov 114   ;;  %s522_s29 = smov 112   ;;  %v397_v8 = vld [vmem:[%s783_s0 + $0x37] sm:$0x1]  }
   0x5   :  { %s523_s3 = smov 110   ;;  %v398_v9 = vld [vmem:[%s783_s0 + $0x36] sm:$0x1]   ;;  %v399_v10 = vld [vmem:[%s783_s0 + $0x35] sm:$0x1]   ;;  %s524_s8 = smov 108  }
   0x6   :  { %s525_s9 = smov 106   ;;  %v400_v11 = vld [vmem:[%s783_s0 + $0x34] sm:$0x1]   ;;  %s526_s12 = smov 104   ;;  %v401_v12 = vld [vmem:[%s783_s0 + $0x33] sm:$0x1]  }
   0x7   :  { %v402_v13 = vld [vmem:[%s783_s0 + $0x32] sm:$0x1]   ;;  %s527_s17 = smov 102   ;;  %s528_s18 = smov 100   ;;  %v403_v14 = vld [vmem:[%s783_s0 + $0x31] sm:$0x1]  }
   0x8   :  { %s529_s21 = smov 98   ;;  %v404_v15 = vld [vmem:[%s783_s0 + $0x30] sm:$0x1]   ;;  %v405_v16 = vld [vmem:[%s783_s0 + $0x2f] sm:$0x1]   ;;  %s530_s26 = smov 96  }
   0x9   :  { %s531_s27 = smov 94   ;;  %v406_v17 = vld [vmem:[%s783_s0 + $0x2e] sm:$0x1]   ;;  %s532_s30 = smov 92   ;;  %v407_v18 = vld [vmem:[%s783_s0 + $0x2d] sm:$0x1]  }
   0xa   :  { %13 = vrot.lane.b32.xlu0 %v390_v3, %s518_s19  ;;  %25 = vrot.lane.b32.xlu1 %v392_v4, %s519_s20  ;;  %v408_v19 = vld [vmem:[%s783_s0 + $0x2c] sm:$0x1]   ;;  %s533_s6 = smov 90   ;;  %s534_s7 = smov 88   ;;  %v409_v20 = vld [vmem:[%s783_s0 + $0x2b] sm:$0x1]  }
   0xb   :  { %37 = vrot.lane.b32.xlu2 %v394_v5, %s520_s23  ;;  %s535_s10 = smov 86   ;;  %v410_v21 = vld [vmem:[%s783_s0 + $0x2a] sm:$0x1]   ;;  %v411_v22 = vld [vmem:[%s783_s0 + $0x29] sm:$0x1]   ;;  %s536_s15 = smov 84  }
   0xc   :  { %s537_s16 = smov 82   ;;  %v412_v23 = vld [vmem:[%s783_s0 + $0x28] sm:$0x1]   ;;  %s538_s19 = smov 80   ;;  %v413_v24 = vld [vmem:[%s783_s0 + $0x27] sm:$0x1]  }
   0xd   :  { %v414_v25 = vld [vmem:[%s783_s0 + $0x26] sm:$0x1]   ;;  %s539_s24 = smov 78   ;;  %s540_s25 = smov 76   ;;  %v415_v26 = vld [vmem:[%s783_s0 + $0x25] sm:$0x1]  }
   0xe   :  { %v416_v27 = vld [vmem:[%s783_s0 + $0x24] sm:$0x1]   ;;  %v417_v28 = vld [vmem:[%s783_s0 + $0x23] sm:$0x1]   ;;  %s542_s4 = smov 72   ;;  %s543_s5 = smov 70  }
   0xf   :  { %v418_v29 = vld [vmem:[%s783_s0 + $0x22] sm:$0x1]   ;;  %v419_v30 = vld [vmem:[%s783_s0 + $0x21] sm:$0x1]   ;;  %v420_v31 = vld [vmem:[%s783_s0 + $0x20] sm:$0x1]  }
  0x10   :  { %s545_s13 = smov 66   ;;  %s546_s14 = smov 64   ;;  %v421_v32 = vld [vmem:[%s783_s0 + $0x1f] sm:$0x1]   ;;  %v2_v33 = vld [vmem:[%s783_s0] sm:$0x1]  }
  0x11   :  { %4 = vst.msk [vmem:[#allocation0] sm:$0x1] %vm3_vm0, %v2_v33   ;;  %v422_v34 = vld [vmem:[%s783_s0 + $0x1e] sm:$0x1]   ;;  %v423_v35 = vld [vmem:[%s783_s0 + $0x1d] sm:$0x1]  }
  0x12   :  { %43 = vrot.lane.b32.xlu0 %v395_v6, %s521_s28  ;;  %49 = vrot.lane.b32.xlu1 %v396_v7, %s522_s29  ;;  %s541_s28 = smov 74   ;;  %v424_v36 = vld [vmem:[%s783_s0 + $0x1c] sm:$0x1]   ;;  %v425_v37 = vld [vmem:[%s783_s0 + $0x1b] sm:$0x1]   ;;  %s557_s22 = smov 42  }
  0x13   :  { %55 = vrot.lane.b32.xlu2 %v397_v8, %s523_s3  ;;  %v426_v38 = vld [vmem:[%s783_s0 + $0x1a] sm:$0x1]   ;;  %v427_v40 = vld [vmem:[%s783_s0 + $0x19] sm:$0x1]   ;;  %v428_v41 = vld [vmem:[%s783_s0 + $0x18] sm:$0x1]  }
  0x14   :  { %v429_v42 = vld [vmem:[%s783_s0 + $0x17] sm:$0x1]   ;;  %v430_v44 = vld [vmem:[%s783_s0 + $0x16] sm:$0x1]   ;;  %v431_v45 = vld [vmem:[%s783_s0 + $0x15] sm:$0x1]  }
  0x15   :  { %v432_v46 = vld [vmem:[%s783_s0 + $0x14] sm:$0x1]   ;;  %s558_s23 = smov 40   ;;  %v433_v48 = vld [vmem:[%s783_s0 + $0x13] sm:$0x1]   ;;  %s560_s2 = smov 36  }
  0x16   :  { %v434_v51 = vld [vmem:[%s783_s0 + $0x12] sm:$0x1]   ;;  %v435_v52 = vld [vmem:[%s783_s0 + $0x11] sm:$0x1]   ;;  %s561_s3 = smov 34   ;;  %vm27_vm4 = vcmask 999360  }
  0x17   :  { %v436_v54 = vld [vmem:[%s783_s0 + $0x10] sm:$0x1]   ;;  %vm33_vm5 = vcmask 982960   ;;  %vm39_vm6 = vcmask 966560   ;;  %v437_v57 = vld [vmem:[%s783_s0 + $0xf] sm:$0x1]  }
  0x18   :  { %v438_v58 = vld [vmem:[%s783_s0 + $0xe] sm:$0x1]   ;;  %s563_s11 = smov 30   ;;  %vm45_vm7 = vcmask 950160   ;;  %vm51_vm8 = vcmask 933760   ;;  %vm57_vm9 = vcmask 917360  }
  0x19   :  { %v439_v60 = vld [vmem:[%s783_s0 + $0xd] sm:$0x1]   ;;  %v440_v63 = vld [vmem:[%s783_s0 + $0xc] sm:$0x1]   ;;  %v441_v0 = vld [vmem:[%s783_s0 + $0xb] sm:$0x1]  }
  0x1a   :  { %61 = vrot.lane.b32.xlu0 %v398_v9, %s524_s8  ;;  %67 = vrot.lane.b32.xlu1 %v399_v10, %s525_s9  ;;  %s544_s8 = smov 68   ;;  %s566_s20 = smov 24   ;;  %vm63_vm10 = vcmask 900960   ;;  %vm69_vm11 = vcmask 884560   ;;  %v442_v2 = vld [vmem:[%s783_s0 + $0xa] sm:$0x1]  }
  0x1b   :  { %73 = vrot.lane.b32.xlu2 %v400_v11, %s526_s12  ;;  %s564_s12 = smov 28   ;;  %vm75_vm12 = vcmask 868160   ;;  %v443_v5 = vld [vmem:[%s783_s0 + $0x9] sm:$0x1]   ;;  %v444_v6 = vld [vmem:[%s783_s0 + $0x8] sm:$0x1]  }
  0x1c   :  { %s569_s29 = smov 18   ;;  %vm81_vm13 = vcmask 851760   ;;  %vm87_vm14 = vcmask 835360   ;;  %v445_v8 = vld [vmem:[%s783_s0 + $0x7] sm:$0x1]   ;;  %vm93_vm15 = vcmask 818960  }
  0x1d   :  { %v446_v11 = vld [vmem:[%s783_s0 + $0x6] sm:$0x1]   ;;  %s572_s9 = smov 12   ;;  %vm99_vm0 = vcmask 802560  }
  0x22   :  { %79 = vrot.lane.b32.xlu0 %v401_v12, %s527_s17  ;;  %85 = vrot.lane.b32.xlu1 %v402_v13, %s528_s18  ;;  %s556_s17 = smov 44   ;;  %v447_v12 = vld [vmem:[%s783_s0 + $0x5] sm:$0x1]   ;;  %s575_s18 = smov 6  }
  0x23   :  { %91 = vrot.lane.b32.xlu2 %v403_v14, %s529_s21  ;;  %s567_s21 = smov 22   ;;  %v448_v14 = vld [vmem:[%s783_s0 + $0x4] sm:$0x1]  }
  0x2a   :  { %97 = vrot.lane.b32.xlu0 %v404_v15, %s530_s26  ;;  %103 = vrot.lane.b32.xlu1 %v405_v16, %s531_s27  ;;  %s559_s26 = smov 38  }
  0x2b   :  { %109 = vrot.lane.b32.xlu2 %v406_v17, %s532_s30  ;;  %s570_s30 = smov 16   ;;  %v449_v17 = vld [vmem:[%s783_s0 + $0x3] sm:$0x1]  }
  0x32   :  { %115 = vrot.lane.b32.xlu0 %v407_v18, %s533_s6  ;;  %121 = vrot.lane.b32.xlu1 %v408_v19, %s534_s7  ;;  %s562_s6 = smov 32   ;;  %v450_v18 = vld [vmem:[%s783_s0 + $0x2] sm:$0x1]  }
  0x33   :  { %127 = vrot.lane.b32.xlu2 %v409_v20, %s535_s10  ;;  %s573_s10 = smov 10   ;;  %v451_v20 = vld [vmem:[%s783_s0 + $0x1] sm:$0x1]   ;;  %s577_s0 = smov 2  }
  0x3a   :  { %133 = vrot.lane.b32.xlu0 %v410_v21, %s536_s15  ;;  %139 = vrot.lane.b32.xlu1 %v411_v22, %s537_s16  ;;  %s565_s15 = smov 26  }
  0x3b   :  { %145 = vrot.lane.b32.xlu2 %v412_v23, %s538_s19  ;;  %s547_s19 = smov 62  }
  0x42   :  { %151 = vrot.lane.b32.xlu0 %v413_v24, %s539_s24  ;;  %157 = vrot.lane.b32.xlu1 %v414_v25, %s540_s25  ;;  %s548_s24 = smov 60   ;;  %s549_s25 = smov 58  }
  0x43   :  { %163 = vrot.lane.b32.xlu2 %v415_v26, %s541_s28  ;;  %s550_s28 = smov 56  }
  0x4a   :  { %169 = vrot.lane.b32.xlu0 %v416_v27, %s542_s4  ;;  %175 = vrot.lane.b32.xlu1 %v417_v28, %s543_s5  ;;  %s551_s4 = smov 54   ;;  %s552_s5 = smov 52  }
  0x4b   :  { %181 = vrot.lane.b32.xlu2 %v418_v29, %s544_s8  ;;  %s553_s8 = smov 50  }
  0x52   :  { %187 = vrot.lane.b32.xlu0 %v419_v30, %s545_s13  ;;  %193 = vrot.lane.b32.xlu1 %v420_v31, %s546_s14  ;;  %s554_s13 = smov 48   ;;  %s555_s14 = smov 46  }
  0x53   :  { %199 = vrot.lane.b32.xlu2 %v421_v32, %s547_s19  ;;  %s576_s19 = smov 4  }
  0x5a   :  { %205 = vrot.lane.b32.xlu0 %v422_v34, %s548_s24  ;;  %211 = vrot.lane.b32.xlu1 %v423_v35, %s549_s25  ;;  %s568_s24 = smov 20  }
  0x5b   :  { %217 = vrot.lane.b32.xlu2 %v424_v36, %s550_s28 }
  0x5d   :  { %v32_v39 = vpop.permute.xlu2 %31  }
  0x62   :  { %223 = vrot.lane.b32.xlu0 %v425_v37, %s551_s4  ;;  %229 = vrot.lane.b32.xlu1 %v426_v38, %s552_s5  ;;  %s571_s4 = smov 14  }
  0x63   :  { %235 = vrot.lane.b32.xlu2 %v427_v40, %s553_s8 }
  0x65   :  { %v38_v43 = vpop.permute.xlu2 %37  }
  0x6a   :  { %241 = vrot.lane.b32.xlu0 %v428_v41, %s554_s13  ;;  %247 = vrot.lane.b32.xlu1 %v429_v42, %s555_s14  ;;  %s574_s13 = smov 8  }
  0x6b   :  { %253 = vrot.lane.b32.xlu2 %v430_v44, %s556_s17 }
  0x6d   :  { %v56_v47 = vpop.permute.xlu2 %55  }
  0x72   :  { %259 = vrot.lane.b32.xlu0 %v431_v45, %s557_s22  ;;  %265 = vrot.lane.b32.xlu1 %v432_v46, %s558_s23 }
  0x73   :  { %271 = vrot.lane.b32.xlu2 %v433_v48, %s559_s26 }
  0x74   :  { %v8_v49 = vpop.permute.xlu0 %7   ;;  %v20_v50 = vpop.permute.xlu1 %19  }
  0x75   :  { %10 = vst.msk [vmem:[#allocation0] sm:$0x1] %vm9_vm1, %v8_v49   ;;  %v74_v53 = vpop.permute.xlu2 %73   ;;  %vm105_vm1 = vcmask 786160  }
  0x7a   :  { %277 = vrot.lane.b32.xlu0 %v434_v51, %s560_s2  ;;  %283 = vrot.lane.b32.xlu1 %v435_v52, %s561_s3 }
  0x7b   :  { %289 = vrot.lane.b32.xlu2 %v436_v54, %s562_s6 }
  0x7c   :  { %v14_v55 = vpop.permute.xlu0 %13   ;;  %v26_v56 = vpop.permute.xlu1 %25  }
  0x7d   :  { %16 = vst.msk [vmem:[#allocation0] sm:$0x1] %vm15_vm2, %v14_v55   ;;  %v92_v59 = vpop.permute.xlu2 %91   ;;  %vm111_vm2 = vcmask 769760  }
  0x7e   :  { %22 = vst.msk [vmem:[#allocation0] sm:$0x1] %vm21_vm3, %v20_v50   ;;  %vm117_vm3 = vcmask 753360  }
  0x7f   :  { %28 = vst.msk [vmem:[#allocation0] sm:$0x1] %vm27_vm4, %v26_v56   ;;  %vm123_vm4 = vcmask 736960  }
  0x80   :  { %34 = vst.msk [vmem:[#allocation0] sm:$0x1] %vm33_vm5, %v32_v39   ;;  %vm129_vm5 = vcmask 720560  }
  0x81   :  { %40 = vst.msk [vmem:[#allocation0] sm:$0x1] %vm39_vm6, %v38_v43   ;;  %vm135_vm6 = vcmask 704160  }
  0x82   :  { %295 = vrot.lane.b32.xlu0 %v437_v57, %s563_s11  ;;  %301 = vrot.lane.b32.xlu1 %v438_v58, %s564_s12 }
  0x83   :  { %307 = vrot.lane.b32.xlu2 %v439_v60, %s565_s15 }
  0x84   :  { %v44_v61 = vpop.permute.xlu0 %43   ;;  %v50_v62 = vpop.permute.xlu1 %49  }
  0x85   :  { %46 = vst.msk [vmem:[#allocation0] sm:$0x1] %vm45_vm7, %v44_v61   ;;  %v110_v1 = vpop.permute.xlu2 %109   ;;  %vm141_vm7 = vcmask 687760  }
  0x86   :  { %52 = vst.msk [vmem:[#allocation0] sm:$0x1] %vm51_vm8, %v50_v62   ;;  %vm147_vm8 = vcmask 671360  }
  0x87   :  { %58 = vst.msk [vmem:[#allocation0] sm:$0x1] %vm57_vm9, %v56_v47   ;;  %vm153_vm9 = vcmask 654960  }
  0x8a   :  { %313 = vrot.lane.b32.xlu0 %v440_v63, %s566_s20  ;;  %319 = vrot.lane.b32.xlu1 %v441_v0, %s567_s21 }
  0x8b   :  { %325 = vrot.lane.b32.xlu2 %v442_v2, %s568_s24 }
  0x8c   :  { %v62_v3 = vpop.permute.xlu0 %61   ;;  %v68_v4 = vpop.permute.xlu1 %67  }
  0x8d   :  { %64 = vst.msk [vmem:[#allocation0] sm:$0x1] %vm63_vm10, %v62_v3   ;;  %v128_v7 = vpop.permute.xlu2 %127   ;;  %vm159_vm10 = vcmask 638560  }
  0x8e   :  { %70 = vst.msk [vmem:[#allocation0] sm:$0x1] %vm69_vm11, %v68_v4   ;;  %vm165_vm11 = vcmask 622160  }
  0x8f   :  { %76 = vst.msk [vmem:[#allocation0] sm:$0x1] %vm75_vm12, %v74_v53   ;;  %vm171_vm12 = vcmask 605760  }
  0x92   :  { %331 = vrot.lane.b32.xlu0 %v443_v5, %s569_s29  ;;  %337 = vrot.lane.b32.xlu1 %v444_v6, %s570_s30 }
  0x93   :  { %343 = vrot.lane.b32.xlu2 %v445_v8, %s571_s4 }
  0x94   :  { %v80_v9 = vpop.permute.xlu0 %79   ;;  %v86_v10 = vpop.permute.xlu1 %85  }
  0x95   :  { %82 = vst.msk [vmem:[#allocation0] sm:$0x1] %vm81_vm13, %v80_v9   ;;  %v146_v13 = vpop.permute.xlu2 %145   ;;  %vm177_vm13 = vcmask 589360  }
  0x96   :  { %88 = vst.msk [vmem:[#allocation0] sm:$0x1] %vm87_vm14, %v86_v10   ;;  %vm183_vm14 = vcmask 572960  }
  0x97   :  { %94 = vst.msk [vmem:[#allocation0] sm:$0x1] %vm93_vm15, %v92_v59   ;;  %vm189_vm15 = vcmask 556560  }
  0x9a   :  { %349 = vrot.lane.b32.xlu0 %v446_v11, %s572_s9  ;;  %355 = vrot.lane.b32.xlu1 %v447_v12, %s573_s10 }
  0x9b   :  { %361 = vrot.lane.b32.xlu2 %v448_v14, %s574_s13 }
  0x9c   :  { %v98_v15 = vpop.permute.xlu0 %97   ;;  %v104_v16 = vpop.permute.xlu1 %103  }
  0x9d   :  { %100 = vst.msk [vmem:[#allocation0] sm:$0x1] %vm99_vm0, %v98_v15   ;;  %v164_v19 = vpop.permute.xlu2 %163   ;;  %vm195_vm0 = vcmask 540160  }
  0x9e   :  { %106 = vst.msk [vmem:[#allocation0] sm:$0x1] %vm105_vm1, %v104_v16   ;;  %vm201_vm1 = vcmask 523760  }
  0x9f   :  { %112 = vst.msk [vmem:[#allocation0] sm:$0x1] %vm111_vm2, %v110_v1   ;;  %vm207_vm2 = vcmask 507360  }
  0xa2   :  { %367 = vrot.lane.b32.xlu0 %v449_v17, %s575_s18  ;;  %373 = vrot.lane.b32.xlu1 %v450_v18, %s576_s19 }
  0xa3   :  { %379 = vrot.lane.b32.xlu2 %v451_v20, %s577_s0 }
  0xa4   :  { %v116_v21 = vpop.permute.xlu0 %115   ;;  %v122_v22 = vpop.permute.xlu1 %121  }
  0xa5   :  { %118 = vst.msk [vmem:[#allocation0] sm:$0x1] %vm117_vm3, %v116_v21   ;;  %v182_v23 = vpop.permute.xlu2 %181   ;;  %vm213_vm3 = vcmask 490960  }
  0xa6   :  { %124 = vst.msk [vmem:[#allocation0] sm:$0x1] %vm123_vm4, %v122_v22   ;;  %vm219_vm4 = vcmask 474560  }
  0xa7   :  { %130 = vst.msk [vmem:[#allocation0] sm:$0x1] %vm129_vm5, %v128_v7   ;;  %vm225_vm5 = vcmask 458160  }
  0xac   :  { %v134_v24 = vpop.permute.xlu0 %133   ;;  %v140_v25 = vpop.permute.xlu1 %139  }
  0xad   :  { %136 = vst.msk [vmem:[#allocation0] sm:$0x1] %vm135_vm6, %v134_v24   ;;  %v200_v26 = vpop.permute.xlu2 %199   ;;  %vm231_vm6 = vcmask 441760  }
  0xae   :  { %142 = vst.msk [vmem:[#allocation0] sm:$0x1] %vm141_vm7, %v140_v25   ;;  %vm237_vm7 = vcmask 425360  }
  0xaf   :  { %148 = vst.msk [vmem:[#allocation0] sm:$0x1] %vm147_vm8, %v146_v13   ;;  %vm243_vm8 = vcmask 408960  }
  0xb4   :  { %v152_v27 = vpop.permute.xlu0 %151   ;;  %v158_v28 = vpop.permute.xlu1 %157  }
  0xb5   :  { %154 = vst.msk [vmem:[#allocation0] sm:$0x1] %vm153_vm9, %v152_v27   ;;  %v218_v29 = vpop.permute.xlu2 %217   ;;  %vm249_vm9 = vcmask 392560  }
  0xb6   :  { %160 = vst.msk [vmem:[#allocation0] sm:$0x1] %vm159_vm10, %v158_v28   ;;  %vm255_vm10 = vcmask 376160  }
  0xb7   :  { %166 = vst.msk [vmem:[#allocation0] sm:$0x1] %vm165_vm11, %v164_v19   ;;  %vm261_vm11 = vcmask 359760  }
  0xbc   :  { %v170_v30 = vpop.permute.xlu0 %169   ;;  %v176_v31 = vpop.permute.xlu1 %175  }
  0xbd   :  { %172 = vst.msk [vmem:[#allocation0] sm:$0x1] %vm171_vm12, %v170_v30   ;;  %v236_v32 = vpop.permute.xlu2 %235   ;;  %vm267_vm12 = vcmask 343360  }
  0xbe   :  { %178 = vst.msk [vmem:[#allocation0] sm:$0x1] %vm177_vm13, %v176_v31   ;;  %vm273_vm13 = vcmask 326960  }
  0xbf   :  { %184 = vst.msk [vmem:[#allocation0] sm:$0x1] %vm183_vm14, %v182_v23   ;;  %vm279_vm14 = vcmask 310560  }
  0xc4   :  { %v188_v33 = vpop.permute.xlu0 %187   ;;  %v194_v34 = vpop.permute.xlu1 %193  }
  0xc5   :  { %190 = vst.msk [vmem:[#allocation0] sm:$0x1] %vm189_vm15, %v188_v33   ;;  %v254_v35 = vpop.permute.xlu2 %253   ;;  %vm285_vm15 = vcmask 294160  }
  0xc6   :  { %196 = vst.msk [vmem:[#allocation0] sm:$0x1] %vm195_vm0, %v194_v34   ;;  %vm291_vm0 = vcmask 277760  }
  0xc7   :  { %202 = vst.msk [vmem:[#allocation0] sm:$0x1] %vm201_vm1, %v200_v26   ;;  %vm297_vm1 = vcmask 261360  }
  0xcc   :  { %v206_v36 = vpop.permute.xlu0 %205   ;;  %v212_v37 = vpop.permute.xlu1 %211  }
  0xcd   :  { %208 = vst.msk [vmem:[#allocation0] sm:$0x1] %vm207_vm2, %v206_v36   ;;  %v272_v38 = vpop.permute.xlu2 %271   ;;  %vm303_vm2 = vcmask 244960  }
  0xce   :  { %214 = vst.msk [vmem:[#allocation0] sm:$0x1] %vm213_vm3, %v212_v37   ;;  %vm309_vm3 = vcmask 228560  }
  0xcf   :  { %220 = vst.msk [vmem:[#allocation0] sm:$0x1] %vm219_vm4, %v218_v29   ;;  %vm315_vm4 = vcmask 212160  }
  0xd4   :  { %v224_v39 = vpop.permute.xlu0 %223   ;;  %v230_v40 = vpop.permute.xlu1 %229  }
  0xd5   :  { %226 = vst.msk [vmem:[#allocation0] sm:$0x1] %vm225_vm5, %v224_v39   ;;  %v290_v41 = vpop.permute.xlu2 %289   ;;  %vm321_vm5 = vcmask 195760  }
  0xd6   :  { %232 = vst.msk [vmem:[#allocation0] sm:$0x1] %vm231_vm6, %v230_v40   ;;  %vm327_vm6 = vcmask 179360  }
  0xd7   :  { %238 = vst.msk [vmem:[#allocation0] sm:$0x1] %vm237_vm7, %v236_v32   ;;  %vm333_vm7 = vcmask 162960  }
  0xdc   :  { %v242_v42 = vpop.permute.xlu0 %241   ;;  %v248_v43 = vpop.permute.xlu1 %247  }
  0xdd   :  { %244 = vst.msk [vmem:[#allocation0] sm:$0x1] %vm243_vm8, %v242_v42   ;;  %v308_v44 = vpop.permute.xlu2 %307   ;;  %vm339_vm8 = vcmask 146560  }
  0xde   :  { %250 = vst.msk [vmem:[#allocation0] sm:$0x1] %vm249_vm9, %v248_v43   ;;  %vm345_vm9 = vcmask 130160  }
  0xdf   :  { %256 = vst.msk [vmem:[#allocation0] sm:$0x1] %vm255_vm10, %v254_v35   ;;  %vm351_vm10 = vcmask 113760  }
  0xe4   :  { %v260_v45 = vpop.permute.xlu0 %259   ;;  %v266_v46 = vpop.permute.xlu1 %265  }
  0xe5   :  { %262 = vst.msk [vmem:[#allocation0] sm:$0x1] %vm261_vm11, %v260_v45   ;;  %v326_v47 = vpop.permute.xlu2 %325   ;;  %vm357_vm11 = vcmask 97360  }
  0xe6   :  { %268 = vst.msk [vmem:[#allocation0] sm:$0x1] %vm267_vm12, %v266_v46   ;;  %vm363_vm12 = vcmask 80960  }
  0xe7   :  { %274 = vst.msk [vmem:[#allocation0] sm:$0x1] %vm273_vm13, %v272_v38   ;;  %vm369_vm13 = vcmask 64560  }
  0xec   :  { %v278_v48 = vpop.permute.xlu0 %277   ;;  %v284_v49 = vpop.permute.xlu1 %283  }
  0xed   :  { %280 = vst.msk [vmem:[#allocation0] sm:$0x1] %vm279_vm14, %v278_v48   ;;  %v344_v50 = vpop.permute.xlu2 %343   ;;  %vm375_vm14 = vcmask 48160  }
  0xee   :  { %286 = vst.msk [vmem:[#allocation0] sm:$0x1] %vm285_vm15, %v284_v49   ;;  %vm381_vm15 = vcmask 31760  }
  0xef   :  { %292 = vst.msk [vmem:[#allocation0] sm:$0x1] %vm291_vm0, %v290_v41  }
  0xf4   :  { %v296_v51 = vpop.permute.xlu0 %295   ;;  %v302_v52 = vpop.permute.xlu1 %301  }
  0xf5   :  { %298 = vst.msk [vmem:[#allocation0] sm:$0x1] %vm297_vm1, %v296_v51   ;;  %v362_v53 = vpop.permute.xlu2 %361  }
  0xf6   :  { %304 = vst.msk [vmem:[#allocation0] sm:$0x1] %vm303_vm2, %v302_v52  }
  0xf7   :  { %310 = vst.msk [vmem:[#allocation0] sm:$0x1] %vm309_vm3, %v308_v44  }
  0xfc   :  { %v314_v54 = vpop.permute.xlu0 %313   ;;  %v320_v55 = vpop.permute.xlu1 %319  }
  0xfd   :  { %316 = vst.msk [vmem:[#allocation0] sm:$0x1] %vm315_vm4, %v314_v54   ;;  %v380_v56 = vpop.permute.xlu2 %379  }
  0xfe   :  { %322 = vst.msk [vmem:[#allocation0] sm:$0x1] %vm321_vm5, %v320_v55  }
  0xff   :  { %328 = vst.msk [vmem:[#allocation0] sm:$0x1] %vm327_vm6, %v326_v47  }
 0x104   :  { %v332_v57 = vpop.permute.xlu0 %331   ;;  %v338_v58 = vpop.permute.xlu1 %337  }
 0x105   :  { %334 = vst.msk [vmem:[#allocation0] sm:$0x1] %vm333_vm7, %v332_v57  }
 0x106   :  { %340 = vst.msk [vmem:[#allocation0] sm:$0x1] %vm339_vm8, %v338_v58  }
 0x107   :  { %346 = vst.msk [vmem:[#allocation0] sm:$0x1] %vm345_vm9, %v344_v50  }
 0x10c   :  { %v350_v59 = vpop.permute.xlu0 %349   ;;  %v356_v60 = vpop.permute.xlu1 %355  }
 0x10d   :  { %352 = vst.msk [vmem:[#allocation0] sm:$0x1] %vm351_vm10, %v350_v59  }
 0x10e   :  { %358 = vst.msk [vmem:[#allocation0] sm:$0x1] %vm357_vm11, %v356_v60  }
 0x10f   :  { %364 = vst.msk [vmem:[#allocation0] sm:$0x1] %vm363_vm12, %v362_v53  }
 0x114   :  { %v368_v61 = vpop.permute.xlu0 %367   ;;  %v374_v62 = vpop.permute.xlu1 %373  }
 0x115   :  { %370 = vst.msk [vmem:[#allocation0] sm:$0x1] %vm369_vm13, %v368_v61  }
 0x116   :  { %376 = vst.msk [vmem:[#allocation0] sm:$0x1] %vm375_vm14, %v374_v62  }
 0x117   :  { %382 = vst.msk [vmem:[#allocation0] sm:$0x1] %vm381_vm15, %v380_v56  }
 0x11e   :  { %v385_v63 = vld [vmem:[#allocation0] sm:$0x1] }
 0x11f   :  { %388 = vst [vmem:[%s784_s1] sm:$0x1] %v385_v63 }

// kernel: resnet_forward.39
= control target key start
LH: loop header
LB: loop body
LE: loop exit
PB: predicated region body
PF: predicated region fallthrough
CT: control target
= control target key end

     0   :  { %s710_s15 = smov 0   ;;  %s823_s0 = inlined_call_operand.vmem [shape: bf16[2,34,18,4], index: 0, kind: input, shape index: {}]   ;;  %s824_s1 = inlined_call_operand.vmem [shape: bf16[36,2], index: 1, kind: input, shape index: {}]   ;;  %s825_s2 = inlined_call_operand.vmem [shape: bf16[2,32,16,2], index: 2, kind: output, shape index: {0}]   ;;  %s826_s3 = inlined_call_operand.vmem [shape: f32[2,1,2], index: 3, kind: output, shape index: {1}]   ;;  %s827_s4 = inlined_call_operand.vmem [shape: f32[2,1,2], index: 4, kind: output, shape index: {2}]  }
   0x1 LB: > { %s556_s16 = sadd.s32 4294967295, %s663_s15   ;;  %p560_p0 = scmp.ge.s32.totalorder %s663_s15, 1  ;;  %s663_s15 = sphi %s710_s15, %s15_s15  }
   0x2   : > { %p167_p1 = scmp.lt.s32.totalorder %s663_s15, 3 }
   0x4   : > { %p168_p2 = pnand %p560_p0, %p167_p1 }
   0x5   : > { %p199_p3 = scmp.lt.s32.totalorder (!%p168_p2), %s556_s16, 1  ;;  %s769_s17 = smov (!%p168_p2), 0  }
   0x6   : > { %171 = sbr.rel (%p168_p2) target bundleno = 314 (0x13a), region = 28 }
   0xb   : > { %v721_v0 = vld [vmem:[%s824_s1] sm:$0xf]  ;;  %v726_v1 = vld [vmem:[%s824_s1] sm:$0xf0]  ;;  %v731_v2 = vld [vmem:[%s824_s1 + $0x8] sm:$0xf] }
   0xc   : > { %v736_v3 = vld [vmem:[%s824_s1 + $0x8] sm:$0xf0]  ;;  %v741_v4 = vld [vmem:[%s824_s1 + $0x10] sm:$0x3]  ;;  %s831_s16 = smov (!%p199_p3, %s556_s16), 1  ;;  %v765_v5 = vmov 0.0  }
   0xd   : > { %s604_s27 = smul.u32 408, %s831_s16  ;;  %s596_s28 = sshll.u32 %s831_s16, 8  ;;  %v767_v6 = vmov 0.0  }
   0xe   : > { %s750_s5 = scalar_lea.vmem %s825_s2, %s596_s28  ;;  %s211_s8 = scalar_lea.vmem %s826_s3, %s831_s16 }
   0xf   : > { %s759_s11 = scalar_lea.vmem %s823_s0, %s604_s27  ;;  %s214_s14 = scalar_lea.vmem %s827_s4, %s831_s16 }
  0x10 LB: >> { %s599_s18 = smul.u32 12, %s675_s17  ;;  %s677_s20 = smov 12   ;;  %vm272_vm0 = vcmask 1046528   ;;  %vm257_vm1 = vsmask.f32 7424  ;;  %v369_v49 = vunpack.c.l.b16 %v741_v4  ;;  %vm378_vm2 = vcmask 1041408   ;;  %s675_s17 = sphi %s769_s17, %s226_s17   ;;  %v671_v6 = vphi %v767_v6, %v829_v6   ;;  %v667_v5 = vphi %v765_v5, %v828_v5  }
  0x11   : >> { %s678_s21 = smov 8   ;;  %s679_s22 = smov 16   ;;  %v590_v52 = vor.u32 %v736_v3, %v731_v2  ;;  %v586_v53 = vor.u32 %v726_v1, %v721_v0  ;;  %vm336_vm3 = vcmask 31744   ;;  %vm339_vm4 = vcmask 64512  }
  0x12   : >> { %s231_s19 = scalar_lea.vmem %s759_s11, %s599_s18  ;;  %s680_s23 = smov 20   ;;  %v372_v50 = vpack.c.b16 %v369_v49, %v369_v49  ;;  %vm342_vm5 = vcmask 97280   ;;  %vm345_vm6 = vcmask 130048   ;;  %vm348_vm7 = vcmask 162816  }
  0x13   : >> { %v782_v7 = vld [vmem:[%s231_s19] sm:$0xff]  ;;  %v234_v8 = vld [vmem:[%s231_s19 + $0x8] sm:$0x1]  ;;  %v601_v9 = vld [vmem:[%s231_s19 + $0xc] sm:$0xff]  ;;  %s681_s24 = smov 4   ;;  %s682_s25 = smov 32  }
  0x14   : >> { %v255_v10 = vunpack.c.l.b16 %v234_v8  ;;  %v567_v11 = vld [vmem:[%s231_s19 + $0x14] sm:$0x1]  ;;  %v570_v12 = vld [vmem:[%s231_s19 + $0x20] sm:$0x1]  ;;  %283 = vrot.lane.b32.xlu1 %v601_v9, %s677_s20  ;;  %v261_v13 = vshll.u32 %v782_v7, 16  ;;  %v273_v16 = vrot.slane %v782_v7, 1 }
  0x15   : >> { %v286_v14 = vunpack.c.l.b16 %v567_v11  ;;  %v289_v17 = vshrl.u32 %v601_v9, 16  ;;  %v291_v18 = vshll.u32 %v601_v9, 16  ;;  %v259_v19 = vshrl.u32 %v782_v7, 16  ;;  %v602_v21 = vld [vmem:[%s231_s19 + $0x18] sm:$0xff]  ;;  %s683_s26 = smov 24   ;;  %s684_s27 = smov 28  }
  0x16   : >> { %v256_v15 = vpack.c.b16 %v255_v10, %v255_v10  ;;  %v315_v22 = vunpack.c.l.b16 %v570_v12  ;;  %v263_v24 = vrot.slane %v261_v13, 1  ;;  %v320_v31 = vshll.u32 %v602_v21, 16  ;;  %s603_s28 = sshll.u32 %s675_s17, 3  ;;  %s226_s17 = sadd.s32 1, %s675_s17  }
  0x17   : >> { %v287_v20 = vpack.c.b16 %v286_v14, %v286_v14  ;;  %v293_v26 = vrot.slane %v291_v18, 1  ;;  %v302_v32 = vrot.slane %v601_v9, 1  ;;  %v331_v39 = vrot.slane %v602_v21, 1  ;;  %s400_s29 = scalar_lea.vmem %s750_s5, %s603_s28  ;;  %p223_p4 = scmp.ge.s32.totalorder %s226_s17, 32  }
  0x18   : >> { %v274_v23 = vrot.slane %v256_v15, 1  ;;  %v266_v25 = vshll.u32 %v256_v15, 16  ;;  %v264_v33 = vor.u32 %v263_v24, %v259_v19  ;;  %v316_v35 = vpack.c.b16 %v315_v22, %v315_v22 }
  0x19   : >> { %v296_v27 = vshll.u32 %v287_v20, 16  ;;  %v294_v29 = vor.u32 %v293_v26, %v289_v17  ;;  %v303_v36 = vrot.slane %v287_v20, 1  ;;  %v318_v42 = vshrl.u32 %v602_v21, 16 }
  0x1a   : >> { %v275_v28 = vsel %vm272_vm0, %v273_v16, %v274_v23  ;;  %v268_v34 = vrot.slane %v266_v25, 1  ;;  %v332_v40 = vrot.slane %v316_v35, 1  ;;  %v322_v43 = vrot.slane %v320_v31, 1 }
  0x1b   : >> { %276 = vrot.lane.b32.xlu0 %v275_v28, %s678_s21  ;;  %v298_v30 = vrot.slane %v296_v27, 1  ;;  %v304_v38 = vsel %vm272_vm0, %v302_v32, %v303_v36  ;;  %v325_v44 = vshll.u32 %v316_v35, 16  ;;  %v380_v51 = vsel %vm378_vm2, %v372_v50, 0 }
  0x1c   : >> { %305 = vrot.lane.b32.xlu2 %v304_v38, %s680_s23  ;;  %v269_v41 = vsel %vm257_vm1, %v264_v33, %v268_v34  ;;  %v333_v45 = vsel %vm272_vm0, %v331_v39, %v332_v40  ;;  %v323_v46 = vor.u32 %v322_v43, %v318_v42  ;;  %387 = vmatpush.bf16.msra.mxu0 %v380_v51  ;;  %vm351_vm8 = vcmask 195584  }
  0x1d   : >> { %v299_v37 = vsel %vm257_vm1, %v294_v29, %v298_v30  ;;  %v327_v47 = vrot.slane %v325_v44, 1  ;;  %vm354_vm9 = vcmask 228352   ;;  %vm357_vm10 = vcmask 261120  }
  0x1e   : >> { %300 = vrot.lane.b32.xlu1 %v299_v37, %s679_s22  ;;  %vm375_vm11 = vcmask 293888   ;;  %vm401_vm12 = vcmask 11264   ;;  %vm404_vm13 = vcmask 15360   ;;  %vm427_vm14 = vcmask (%p223_p4), 8192  }
  0x1f   : >> { %v328_v48 = vsel %vm257_vm1, %v323_v46, %v327_v47 }
  0x20   : >> { %388 = vmatpush.bf16.msra.mxu0 %v590_v52 }
  0x23   : >> { %270 = vrot.lane.b32.xlu0 %v269_v41, %s681_s24 }
  0x24   : >> { %312 = vrot.lane.b32.xlu2 %v602_v21, %s683_s26  ;;  %389 = vmatpush.bf16.msra.mxu0 %v586_v53 }
  0x26   : >> { %334 = vrot.lane.b32.xlu1 %v333_v45, %s682_s25 }
  0x2b   : >> { %329 = vrot.lane.b32.xlu0 %v328_v48, %s684_s27 }
  0x76   : >> { %v306_v56 = vpop.permute.xlu2 %305 }
  0x7e   : >> { %v313_v63 = vpop.permute.xlu2 %312 }
  0x86   : >> { %v284_v54 = vpop.permute.xlu1 %283 }
  0x8d   : >> { %v277_v55 = vpop.permute.xlu0 %276 }
  0x90   : >> { %v301_v57 = vpop.permute.xlu1 %300 }
  0x95   : >> { %v271_v58 = vpop.permute.xlu0 %270 }
  0x96   : >> { %v338_v59 = vsel %vm336_vm3, %v782_v7, %v271_v58 }
  0x97   : >> { %v341_v60 = vsel %vm339_vm4, %v338_v59, %v277_v55 }
  0x98   : >> { %v344_v61 = vsel %vm342_vm5, %v341_v60, %v284_v54  ;;  %v335_v9 = vpop.permute.xlu1 %334 }
  0x99   : >> { %v347_v62 = vsel %vm345_vm6, %v344_v61, %v301_v57 }
  0x9a   : >> { %v350_v8 = vsel %vm348_vm7, %v347_v62, %v306_v56 }
  0x9b   : >> { %v353_v10 = vsel %vm351_vm8, %v350_v8, %v313_v63 }
  0x9d   : >> { %v330_v11 = vpop.permute.xlu0 %329 }
  0x9e   : >> { %v356_v12 = vsel %vm354_vm9, %v353_v10, %v330_v11 }
  0x9f   : >> { %v359_v13 = vsel %vm357_vm10, %v356_v12, %v335_v9 }
  0xa0   : >> { %591 = vmatmul.msk.bf16.vlgmr.msra.gmra.mxu0 %vm375_vm11, %v359_v13 }
 0x11d   : >> { %v391_v7 = vpop.f32.mrf.mxu0 }
 0x11e   : >> { %v396_v14 = vpack.c.bf16 %v391_v7, %v391_v7  ;;  %v415_v15 = vmul.f32 %v391_v7, %v391_v7  ;;  %v405_v17 = vsel %vm404_vm13, %v391_v7, 0.0 }
 0x120   : >> { %402 = vst.msk [vmem:[%s400_s29] sm:$0xf] %vm401_vm12, %v396_v14  ;;  %v417_v22 = vsel %vm404_vm13, %v415_v15, 0.0 }
 0x125   : >> { %v393_v16 = vpop.f32.mrf.mxu0 }
 0x126   : >> { %v397_v18 = vpack.c.bf16 %v393_v16, %v393_v16  ;;  %v406_v19 = vsel %vm404_vm13, %v393_v16, 0.0  ;;  %v416_v20 = vmul.f32 %v393_v16, %v393_v16 }
 0x127   : >> { %v407_v21 = vadd.f32 %v406_v19, %v405_v17 }
 0x128   : >> { %403 = vst.msk [vmem:[%s400_s29 + $0x4] sm:$0xf] %vm401_vm12, %v397_v18  ;;  %v418_v23 = vsel %vm404_vm13, %v416_v20, 0.0 }
 0x129   : >> { %v408_v24 = vrot.slane %v407_v21, 4  ;;  %v419_v25 = vadd.f32 %v418_v23, %v417_v22 }
 0x12b   : >> { %v409_v26 = vadd.f32 %v408_v24, %v407_v21  ;;  %v420_v27 = vrot.slane %v419_v25, 4 }
 0x12d   : >> { %v410_v28 = vrot.slane %v409_v26, 2  ;;  %v421_v29 = vadd.f32 %v420_v27, %v419_v25 }
 0x12f   : >> { %v411_v30 = vadd.f32 %v410_v28, %v409_v26  ;;  %v422_v31 = vrot.slane %v421_v29, 2 }
 0x131   : >> { %v412_v32 = vrot.slane %v411_v30, 1  ;;  %v423_v33 = vadd.f32 %v422_v31, %v421_v29 }
 0x133   : >> { %v413_v34 = vadd.f32 %v412_v32, %v411_v30  ;;  %v424_v35 = vrot.slane %v423_v33, 1 }
 0x135   : >> { %v414_v36 = vadd.f32 %v671_v6, %v413_v34   ;;  %v425_v37 = vadd.f32 %v424_v35, %v423_v33  ;;  %225 = sbr.rel (!%p223_p4) target bundleno = 16 (0x10), region = 93 }
 0x137   : >> { %v426_v38 = vadd.f32 %v667_v5, %v425_v37   ;;  %v829_v6 = vmov %v414_v36  ;;  %428 = vst.msk [vmem:[%s211_s8] sm:$0x1] (%p223_p4), %vm427_vm14, %v414_v36 }
 0x139   : >> { %v828_v5 = vmov %v426_v38  ;;  %429 = vst.msk [vmem:[%s214_s14] sm:$0x1] (%p223_p4), %vm427_vm14, %v426_v38 }
 0x13a PF: > { %s15_s15 = sadd.s32 1, %s663_s15  }
 0x13b   : > { %p12_p5 = scmp.ge.s32.totalorder %s15_s15, 4  }
 0x13d   :  { %14 = sbr.rel (!%p12_p5) target bundleno = 1 (0x1), region = 104 }

// kernel: resnet_forward.40
= control target key start
LH: loop header
LB: loop body
LE: loop exit
PB: predicated region body
PF: predicated region fallthrough
CT: control target
= control target key end

     0   :  { %s83_s0 = inlined_call_operand.vmem [shape: bf16[16,128], index: 0, kind: input, shape index: {}]   ;;  %s84_s1 = inlined_call_operand.vmem [shape: f32[1,128], index: 1, kind: input, shape index: {}]   ;;  %s85_s2 = inlined_call_operand.vmem [shape: f32[1,128], index: 2, kind: input, shape index: {}]   ;;  %s86_s3 = inlined_call_operand.vmem [shape: bf16[16,128], index: 3, kind: output, shape index: {}]  }
   0x1   :  { %v41_v0 = vld [vmem:[%s83_s0] sm:$0xff]  }
   0x2   :  { %v49_v1 = vld [vmem:[%s84_s1] ss:$0 sm:$0xff]  ;;  %v42_v2 = vunpack.c.l.bf16 %v41_v0  ;;  %v43_v3 = vunpack.c.h.bf16 %v41_v0 }
   0x3   :  { %v50_v4 = vld [vmem:[%s85_s2] ss:$0 sm:$0xff] }
   0x4   :  { %v22_v5 = vmul.f32 %v49_v1, %v42_v2  ;;  %v23_v6 = vmul.f32 %v49_v1, %v43_v3 }
   0x6   :  { %v28_v7 = vadd.f32 %v50_v4, %v22_v5  ;;  %v29_v8 = vadd.f32 %v50_v4, %v23_v6 }
   0x8   :  { %v30_v9 = vmax.f32 %v28_v7, 0.0  ;;  %v31_v10 = vmax.f32 %v29_v8, 0.0 }
   0xa   :  { %v47_v11 = vpack.c.bf16 %v31_v10, %v30_v9 }
   0xc   :  { %48 = vst [vmem:[%s86_s3] sm:$0xff] %v47_v11  }

// kernel: resnet_forward.41
= control target key start
LH: loop header
LB: loop body
LE: loop exit
PB: predicated region body
PF: predicated region fallthrough
CT: control target
= control target key end

     0   :  { %s696_s15 = smov 0   ;;  %s802_s0 = inlined_call_operand.vmem [shape: bf16[2,34,18,2], index: 0, kind: input, shape index: {}]   ;;  %s803_s1 = inlined_call_operand.vmem [shape: bf16[18,4], index: 1, kind: input, shape index: {}]   ;;  %s804_s2 = inlined_call_operand.vmem [shape: bf16[2,32,16,4], index: 2, kind: output, shape index: {0}]   ;;  %s805_s3 = inlined_call_operand.vmem [shape: f32[2,1,4], index: 3, kind: output, shape index: {1}]   ;;  %s806_s4 = inlined_call_operand.vmem [shape: f32[2,1,4], index: 4, kind: output, shape index: {2}]  }
   0x1 LB: > { %s547_s16 = sadd.s32 4294967295, %s649_s15   ;;  %p551_p0 = scmp.ge.s32.totalorder %s649_s15, 1  ;;  %s649_s15 = sphi %s696_s15, %s15_s15  }
   0x2   : > { %p167_p1 = scmp.lt.s32.totalorder %s649_s15, 3 }
   0x4   : > { %p168_p2 = pnand %p551_p0, %p167_p1 }
   0x5   : > { %p199_p3 = scmp.lt.s32.totalorder (!%p168_p2), %s547_s16, 1  ;;  %s745_s11 = smov (!%p168_p2), 0  }
   0x6   : > { %171 = sbr.rel (%p168_p2) target bundleno = 314 (0x13a), region = 28 }
   0xb   : > { %v707_v0 = vld [vmem:[%s803_s1] sm:$0xf]  ;;  %v712_v1 = vld [vmem:[%s803_s1] sm:$0xf0]  ;;  %v717_v2 = vld [vmem:[%s803_s1 + $0x8] sm:$0x1] }
   0xc   : > { %s810_s16 = smov (!%p199_p3, %s547_s16), 1  ;;  %v741_v3 = vmov 0.0   ;;  %v743_v4 = vmov 0.0  }
   0xd   : > { %s590_s23 = smul.u32 408, %s810_s16  ;;  %s583_s24 = sshll.u32 %s810_s16, 8 }
   0xe   : > { %s726_s27 = scalar_lea.vmem %s804_s2, %s583_s24  ;;  %s211_s30 = scalar_lea.vmem %s805_s3, %s810_s16 }
   0xf   : > { %s735_s7 = scalar_lea.vmem %s802_s0, %s590_s23  ;;  %s214_s10 = scalar_lea.vmem %s806_s4, %s810_s16 }
  0x10 LB: >> { %s585_s12 = smul.u32 12, %s661_s11  ;;  %s663_s14 = smov 6   ;;  %vm270_vm0 = vcmask 1046528   ;;  %vm255_vm1 = vsmask.f32 7424  ;;  %v363_v47 = vunpack.c.l.b16 %v717_v2  ;;  %vm370_vm2 = vcmask 1040384   ;;  %s661_s11 = sphi %s745_s11, %s224_s11   ;;  %v657_v4 = vphi %v743_v4, %v808_v4   ;;  %v653_v3 = vphi %v741_v3, %v807_v3  }
  0x11   : >> { %s664_s17 = smov 4   ;;  %s665_s18 = smov 8   ;;  %v577_v50 = vor.u32 %v712_v1, %v707_v0  ;;  %vm334_vm3 = vcmask 15360   ;;  %vm337_vm4 = vcmask 31744   ;;  %vm340_vm5 = vcmask 48128  }
  0x12   : >> { %s229_s13 = scalar_lea.vmem %s735_s7, %s585_s12  ;;  %s666_s19 = smov 10   ;;  %v365_v48 = vpack.c.b16 %v363_v47, %v363_v47  ;;  %vm343_vm6 = vcmask 64512   ;;  %vm346_vm7 = vcmask 80896   ;;  %vm349_vm8 = vcmask 97280  }
  0x13   : >> { %v758_v5 = vld [vmem:[%s229_s13] sm:$0xff]  ;;  %v232_v6 = vld [vmem:[%s229_s13 + $0x8] sm:$0x1]  ;;  %v587_v7 = vld [vmem:[%s229_s13 + $0xc] sm:$0xff]  ;;  %s667_s20 = smov 2   ;;  %s668_s21 = smov 16  }
  0x14   : >> { %v253_v8 = vunpack.c.l.b16 %v232_v6  ;;  %v558_v9 = vld [vmem:[%s229_s13 + $0x14] sm:$0x1]  ;;  %v561_v10 = vld [vmem:[%s229_s13 + $0x20] sm:$0x1]  ;;  %281 = vrot.lane.b32.xlu1 %v587_v7, %s663_s14  ;;  %v259_v11 = vshll.u32 %v758_v5, 16  ;;  %v271_v14 = vrot.slane %v758_v5, 1 }
  0x15   : >> { %v284_v12 = vunpack.c.l.b16 %v558_v9  ;;  %v287_v15 = vshrl.u32 %v587_v7, 16  ;;  %v289_v16 = vshll.u32 %v587_v7, 16  ;;  %v257_v17 = vshrl.u32 %v758_v5, 16  ;;  %v588_v19 = vld [vmem:[%s229_s13 + $0x18] sm:$0xff]  ;;  %s669_s22 = smov 12   ;;  %s670_s23 = smov 14  }
  0x16   : >> { %v254_v13 = vpack.c.b16 %v253_v8, %v253_v8  ;;  %v313_v20 = vunpack.c.l.b16 %v561_v10  ;;  %v261_v22 = vrot.slane %v259_v11, 1  ;;  %v318_v29 = vshll.u32 %v588_v19, 16  ;;  %s589_s24 = sshll.u32 %s661_s11, 3  ;;  %s224_s11 = sadd.s32 1, %s661_s11  }
  0x17   : >> { %v285_v18 = vpack.c.b16 %v284_v12, %v284_v12  ;;  %v291_v24 = vrot.slane %v289_v16, 1  ;;  %v300_v30 = vrot.slane %v587_v7, 1  ;;  %v329_v37 = vrot.slane %v588_v19, 1  ;;  %s392_s25 = scalar_lea.vmem %s726_s27, %s589_s24  ;;  %p221_p4 = scmp.ge.s32.totalorder %s224_s11, 32  }
  0x18   : >> { %v272_v21 = vrot.slane %v254_v13, 1  ;;  %v264_v23 = vshll.u32 %v254_v13, 16  ;;  %v262_v31 = vor.u32 %v261_v22, %v257_v17  ;;  %v314_v33 = vpack.c.b16 %v313_v20, %v313_v20 }
  0x19   : >> { %v294_v25 = vshll.u32 %v285_v18, 16  ;;  %v292_v27 = vor.u32 %v291_v24, %v287_v15  ;;  %v301_v34 = vrot.slane %v285_v18, 1  ;;  %v316_v40 = vshrl.u32 %v588_v19, 16 }
  0x1a   : >> { %v273_v26 = vsel %vm270_vm0, %v271_v14, %v272_v21  ;;  %v266_v32 = vrot.slane %v264_v23, 1  ;;  %v330_v38 = vrot.slane %v314_v33, 1  ;;  %v320_v41 = vrot.slane %v318_v29, 1 }
  0x1b   : >> { %274 = vrot.lane.b32.xlu0 %v273_v26, %s664_s17  ;;  %v296_v28 = vrot.slane %v294_v25, 1  ;;  %v302_v36 = vsel %vm270_vm0, %v300_v30, %v301_v34  ;;  %v323_v42 = vshll.u32 %v314_v33, 16  ;;  %v372_v49 = vsel %vm370_vm2, %v365_v48, 0 }
  0x1c   : >> { %303 = vrot.lane.b32.xlu2 %v302_v36, %s666_s19  ;;  %v267_v39 = vsel %vm255_vm1, %v262_v31, %v266_v32  ;;  %v331_v43 = vsel %vm270_vm0, %v329_v37, %v330_v38  ;;  %v321_v44 = vor.u32 %v320_v41, %v316_v40  ;;  %380 = vmatpush.bf16.msra.mxu0 %v372_v49  ;;  %vm352_vm9 = vcmask 113664  }
  0x1d   : >> { %v297_v35 = vsel %vm255_vm1, %v292_v27, %v296_v28  ;;  %v325_v45 = vrot.slane %v323_v42, 1  ;;  %vm355_vm10 = vcmask 130048   ;;  %vm367_vm11 = vcmask 146432  }
  0x1e   : >> { %298 = vrot.lane.b32.xlu1 %v297_v35, %s665_s18  ;;  %vm393_vm12 = vcmask 27648   ;;  %vm418_vm13 = vcmask (%p221_p4), 24576  }
  0x1f   : >> { %v326_v46 = vsel %vm255_vm1, %v321_v44, %v325_v45 }
  0x20   : >> { %381 = vmatpush.bf16.msra.mxu0 %v577_v50 }
  0x23   : >> { %268 = vrot.lane.b32.xlu0 %v267_v39, %s667_s20 }
  0x24   : >> { %310 = vrot.lane.b32.xlu2 %v588_v19, %s669_s22 }
  0x26   : >> { %332 = vrot.lane.b32.xlu1 %v331_v43, %s668_s21 }
  0x2b   : >> { %327 = vrot.lane.b32.xlu0 %v326_v46, %s670_s23 }
  0x76   : >> { %v304_v53 = vpop.permute.xlu2 %303 }
  0x7e   : >> { %v311_v60 = vpop.permute.xlu2 %310 }
  0x86   : >> { %v282_v51 = vpop.permute.xlu1 %281 }
  0x8d   : >> { %v275_v52 = vpop.permute.xlu0 %274 }
  0x90   : >> { %v299_v54 = vpop.permute.xlu1 %298 }
  0x95   : >> { %v269_v55 = vpop.permute.xlu0 %268 }
  0x96   : >> { %v336_v56 = vsel %vm334_vm3, %v758_v5, %v269_v55 }
  0x97   : >> { %v339_v57 = vsel %vm337_vm4, %v336_v56, %v275_v52 }
  0x98   : >> { %v342_v58 = vsel %vm340_vm5, %v339_v57, %v282_v51  ;;  %v333_v62 = vpop.permute.xlu1 %332 }
  0x99   : >> { %v345_v59 = vsel %vm343_vm6, %v342_v58, %v299_v54 }
  0x9a   : >> { %v348_v61 = vsel %vm346_vm7, %v345_v59, %v304_v53 }
  0x9b   : >> { %v351_v63 = vsel %vm349_vm8, %v348_v61, %v311_v60 }
  0x9d   : >> { %v328_v6 = vpop.permute.xlu0 %327 }
  0x9e   : >> { %v354_v7 = vsel %vm352_vm9, %v351_v63, %v328_v6 }
  0x9f   : >> { %v357_v8 = vsel %vm355_vm10, %v354_v7, %v333_v62 }
  0xa0   : >> { %578 = vmatmul.msk.bf16.vlgmr.msra.gmra.mxu0 %vm367_vm11, %v357_v8 }
 0x11d   : >> { %v383_v5 = vpop.f32.mrf.mxu0 }
 0x11e   : >> { %v388_v9 = vpack.c.bf16 %v383_v5, %v383_v5  ;;  %v406_v10 = vmul.f32 %v383_v5, %v383_v5  ;;  %v396_v12 = vsel %vm337_vm4, %v383_v5, 0.0 }
 0x120   : >> { %394 = vst.msk [vmem:[%s392_s25] sm:$0xf] %vm393_vm12, %v388_v9  ;;  %v408_v17 = vsel %vm337_vm4, %v406_v10, 0.0 }
 0x125   : >> { %v385_v11 = vpop.f32.mrf.mxu0 }
 0x126   : >> { %v389_v13 = vpack.c.bf16 %v385_v11, %v385_v11  ;;  %v397_v14 = vsel %vm337_vm4, %v385_v11, 0.0  ;;  %v407_v15 = vmul.f32 %v385_v11, %v385_v11 }
 0x127   : >> { %v398_v16 = vadd.f32 %v397_v14, %v396_v12 }
 0x128   : >> { %395 = vst.msk [vmem:[%s392_s25 + $0x4] sm:$0xf] %vm393_vm12, %v389_v13  ;;  %v409_v18 = vsel %vm337_vm4, %v407_v15, 0.0 }
 0x129   : >> { %v399_v19 = vrot.slane %v398_v16, 4  ;;  %v410_v20 = vadd.f32 %v409_v18, %v408_v17 }
 0x12b   : >> { %v400_v21 = vadd.f32 %v399_v19, %v398_v16  ;;  %v411_v22 = vrot.slane %v410_v20, 4 }
 0x12d   : >> { %v401_v23 = vrot.slane %v400_v21, 2  ;;  %v412_v24 = vadd.f32 %v411_v22, %v410_v20 }
 0x12f   : >> { %v402_v25 = vadd.f32 %v401_v23, %v400_v21  ;;  %v413_v26 = vrot.slane %v412_v24, 2 }
 0x131   : >> { %v403_v27 = vrot.slane %v402_v25, 1  ;;  %v414_v28 = vadd.f32 %v413_v26, %v412_v24 }
 0x133   : >> { %v404_v29 = vadd.f32 %v403_v27, %v402_v25  ;;  %v415_v30 = vrot.slane %v414_v28, 1 }
 0x135   : >> { %v405_v31 = vadd.f32 %v657_v4, %v404_v29   ;;  %v416_v32 = vadd.f32 %v415_v30, %v414_v28  ;;  %223 = sbr.rel (!%p221_p4) target bundleno = 16 (0x10), region = 93 }
 0x137   : >> { %v417_v33 = vadd.f32 %v653_v3, %v416_v32   ;;  %v808_v4 = vmov %v405_v31  ;;  %419 = vst.msk [vmem:[%s211_s30] sm:$0x1] (%p221_p4), %vm418_vm13, %v405_v31 }
 0x139   : >> { %v807_v3 = vmov %v417_v33  ;;  %420 = vst.msk [vmem:[%s214_s10] sm:$0x1] (%p221_p4), %vm418_vm13, %v417_v33 }
 0x13a PF: > { %s15_s15 = sadd.s32 1, %s649_s15  }
 0x13b   : > { %p12_p5 = scmp.ge.s32.totalorder %s15_s15, 4  }
 0x13d   :  { %14 = sbr.rel (!%p12_p5) target bundleno = 1 (0x1), region = 104 }

// kernel: tile.118
= control target key start
LH: loop header
LB: loop body
LE: loop exit
PB: predicated region body
PF: predicated region fallthrough
CT: control target
= control target key end

     0   :  { %s40_s0 = inlined_call_operand.vmem [shape: f32[4], index: 0, kind: input, shape index: {}]   ;;  %s41_s1 = inlined_call_operand.vmem [shape: f32[32,4], index: 1, kind: output, shape index: {}]  }
   0x1   :  { %v4_v0 = vld [vmem:[%s40_s0] ss:$0 sm:$0xff] }
   0x2   :  { %5 = vst [vmem:[%s41_s1] sm:$0xff] %v4_v0 }
   0x3   :  { %12 = vst [vmem:[%s41_s1 + $0x8] sm:$0xff] %v4_v0 }
   0x4   :  { %13 = vst [vmem:[%s41_s1 + $0x10] sm:$0xff] %v4_v0 }
   0x5   :  { %14 = vst [vmem:[%s41_s1 + $0x18] sm:$0xff] %v4_v0 }

// kernel: tile.119
= control target key start
LH: loop header
LB: loop body
LE: loop exit
PB: predicated region body
PF: predicated region fallthrough
CT: control target
= control target key end

     0   :  { %s259_s10 = smov 124   ;;  %s260_s11 = smov 116   ;;  %vm3_vm0 = vcmask 31744   ;;  %vm9_vm1 = vcmask 1048544   ;;  %vm15_vm2 = vcmask 1015744   ;;  %vm21_vm3 = vcmask 982944   ;;  %s399_s0 = inlined_call_operand.vmem [shape: f32[32,4], index: 0, kind: input, shape index: {}]   ;;  %s400_s1 = inlined_call_operand.vmem [shape: f32[1,128], index: 1, kind: output, shape index: {}]  }
   0x1   :  { %v197_v0 = vld [vmem:[%s399_s0 + $0x1f] sm:$0x1]   ;;  %v199_v1 = vld [vmem:[%s399_s0 + $0x1d] sm:$0x1]   ;;  %v201_v2 = vld [vmem:[%s399_s0 + $0x1b] sm:$0x1]  }
   0x2   :  { %7 = vrot.lane.b32.xlu0 %v197_v0, %s259_s10  ;;  %19 = vrot.lane.b32.xlu1 %v199_v1, %s260_s11  ;;  %s261_s14 = smov 108   ;;  %v198_v3 = vld [vmem:[%s399_s0 + $0x1e] sm:$0x1]   ;;  %v200_v4 = vld [vmem:[%s399_s0 + $0x1c] sm:$0x1]   ;;  %s262_s19 = smov 120  }
   0x3   :  { %31 = vrot.lane.b32.xlu2 %v201_v2, %s261_s14  ;;  %s263_s20 = smov 112   ;;  %v202_v5 = vld [vmem:[%s399_s0 + $0x1a] sm:$0x1]   ;;  %s264_s23 = smov 104   ;;  %v203_v6 = vld [vmem:[%s399_s0 + $0x19] sm:$0x1]  }
   0x4   :  { %v204_v7 = vld [vmem:[%s399_s0 + $0x18] sm:$0x1]   ;;  %s265_s28 = smov 100   ;;  %s266_s29 = smov 96   ;;  %v205_v8 = vld [vmem:[%s399_s0 + $0x17] sm:$0x1]  }
   0x5   :  { %s267_s3 = smov 92   ;;  %v206_v9 = vld [vmem:[%s399_s0 + $0x16] sm:$0x1]   ;;  %v207_v10 = vld [vmem:[%s399_s0 + $0x15] sm:$0x1]   ;;  %s268_s8 = smov 88  }
   0x6   :  { %s269_s9 = smov 84   ;;  %v208_v11 = vld [vmem:[%s399_s0 + $0x14] sm:$0x1]   ;;  %s270_s12 = smov 80   ;;  %v209_v12 = vld [vmem:[%s399_s0 + $0x13] sm:$0x1]  }
   0x7   :  { %v210_v13 = vld [vmem:[%s399_s0 + $0x12] sm:$0x1]   ;;  %s271_s17 = smov 76   ;;  %s272_s18 = smov 72   ;;  %v211_v14 = vld [vmem:[%s399_s0 + $0x11] sm:$0x1]  }
   0x8   :  { %s273_s21 = smov 68   ;;  %v212_v15 = vld [vmem:[%s399_s0 + $0x10] sm:$0x1]   ;;  %v213_v16 = vld [vmem:[%s399_s0 + $0xf] sm:$0x1]   ;;  %s274_s26 = smov 64  }
   0x9   :  { %s275_s27 = smov 60   ;;  %v214_v17 = vld [vmem:[%s399_s0 + $0xe] sm:$0x1]   ;;  %s276_s30 = smov 56   ;;  %v215_v18 = vld [vmem:[%s399_s0 + $0xd] sm:$0x1]  }
   0xa   :  { %13 = vrot.lane.b32.xlu0 %v198_v3, %s262_s19  ;;  %25 = vrot.lane.b32.xlu1 %v200_v4, %s263_s20  ;;  %v216_v19 = vld [vmem:[%s399_s0 + $0xc] sm:$0x1]   ;;  %s277_s6 = smov 52   ;;  %s278_s7 = smov 48   ;;  %v217_v20 = vld [vmem:[%s399_s0 + $0xb] sm:$0x1]  }
   0xb   :  { %37 = vrot.lane.b32.xlu2 %v202_v5, %s264_s23  ;;  %s279_s10 = smov 44   ;;  %v218_v21 = vld [vmem:[%s399_s0 + $0xa] sm:$0x1]   ;;  %v219_v22 = vld [vmem:[%s399_s0 + $0x9] sm:$0x1]   ;;  %s280_s15 = smov 40  }
   0xc   :  { %s281_s16 = smov 36   ;;  %v220_v23 = vld [vmem:[%s399_s0 + $0x8] sm:$0x1]   ;;  %s282_s19 = smov 32   ;;  %v221_v24 = vld [vmem:[%s399_s0 + $0x7] sm:$0x1]  }
   0xd   :  { %v222_v25 = vld [vmem:[%s399_s0 + $0x6] sm:$0x1]   ;;  %s283_s24 = smov 28   ;;  %s284_s25 = smov 24   ;;  %v223_v26 = vld [vmem:[%s399_s0 + $0x5] sm:$0x1]  }
   0xe   :  { %v224_v27 = vld [vmem:[%s399_s0 + $0x4] sm:$0x1]   ;;  %v225_v28 = vld [vmem:[%s399_s0 + $0x3] sm:$0x1]   ;;  %s286_s4 = smov 16   ;;  %s287_s5 = smov 12  }
   0xf   :  { %v226_v29 = vld [vmem:[%s399_s0 + $0x2] sm:$0x1]   ;;  %v227_v30 = vld [vmem:[%s399_s0 + $0x1] sm:$0x1]   ;;  %s289_s11 = smov 4   ;;  %vm27_vm4 = vcmask 950144  }
  0x10   :  { %v2_v31 = vld [vmem:[%s399_s0] sm:$0x1]   ;;  %vm33_vm5 = vcmask 917344   ;;  %vm39_vm6 = vcmask 884544   ;;  %vm45_vm7 = vcmask 851744   ;;  %vm51_vm8 = vcmask 818944  }
  0x11   :  { %4 = vst.msk [vmem:[#allocation0] sm:$0x1] %vm3_vm0, %v2_v31   ;;  %vm57_vm9 = vcmask 786144   ;;  %vm63_vm10 = vcmask 753344   ;;  %vm69_vm11 = vcmask 720544   ;;  %vm75_vm12 = vcmask 687744  }
  0x12   :  { %43 = vrot.lane.b32.xlu0 %v203_v6, %s265_s28  ;;  %49 = vrot.lane.b32.xlu1 %v204_v7, %s266_s29  ;;  %s285_s28 = smov 20   ;;  %vm81_vm13 = vcmask 654944   ;;  %vm87_vm14 = vcmask 622144   ;;  %vm93_vm15 = vcmask 589344   ;;  %vm99_vm0 = vcmask 556544  }
  0x13   :  { %55 = vrot.lane.b32.xlu2 %v205_v8, %s267_s3 }
  0x1a   :  { %61 = vrot.lane.b32.xlu0 %v206_v9, %s268_s8  ;;  %67 = vrot.lane.b32.xlu1 %v207_v10, %s269_s9  ;;  %s288_s8 = smov 8  }
  0x1b   :  { %73 = vrot.lane.b32.xlu2 %v208_v11, %s270_s12 }
  0x22   :  { %79 = vrot.lane.b32.xlu0 %v209_v12, %s271_s17  ;;  %85 = vrot.lane.b32.xlu1 %v210_v13, %s272_s18 }
  0x23   :  { %91 = vrot.lane.b32.xlu2 %v211_v14, %s273_s21 }
  0x2a   :  { %97 = vrot.lane.b32.xlu0 %v212_v15, %s274_s26  ;;  %103 = vrot.lane.b32.xlu1 %v213_v16, %s275_s27 }
  0x2b   :  { %109 = vrot.lane.b32.xlu2 %v214_v17, %s276_s30 }
  0x32   :  { %115 = vrot.lane.b32.xlu0 %v215_v18, %s277_s6  ;;  %121 = vrot.lane.b32.xlu1 %v216_v19, %s278_s7 }
  0x33   :  { %127 = vrot.lane.b32.xlu2 %v217_v20, %s279_s10 }
  0x3a   :  { %133 = vrot.lane.b32.xlu0 %v218_v21, %s280_s15  ;;  %139 = vrot.lane.b32.xlu1 %v219_v22, %s281_s16 }
  0x3b   :  { %145 = vrot.lane.b32.xlu2 %v220_v23, %s282_s19 }
  0x42   :  { %151 = vrot.lane.b32.xlu0 %v221_v24, %s283_s24  ;;  %157 = vrot.lane.b32.xlu1 %v222_v25, %s284_s25 }
  0x43   :  { %163 = vrot.lane.b32.xlu2 %v223_v26, %s285_s28 }
  0x4a   :  { %169 = vrot.lane.b32.xlu0 %v224_v27, %s286_s4  ;;  %175 = vrot.lane.b32.xlu1 %v225_v28, %s287_s5 }
  0x4b   :  { %181 = vrot.lane.b32.xlu2 %v226_v29, %s288_s8 }
  0x52   :  { %187 = vrot.lane.b32.xlu0 %v227_v30, %s289_s11 }
  0x5d   :  { %v32_v32 = vpop.permute.xlu2 %31  }
  0x65   :  { %v38_v33 = vpop.permute.xlu2 %37  }
  0x6d   :  { %v56_v34 = vpop.permute.xlu2 %55  }
  0x74   :  { %v8_v35 = vpop.permute.xlu0 %7   ;;  %v20_v36 = vpop.permute.xlu1 %19  }
  0x75   :  { %10 = vst.msk [vmem:[#allocation0] sm:$0x1] %vm9_vm1, %v8_v35   ;;  %v74_v37 = vpop.permute.xlu2 %73   ;;  %vm105_vm1 = vcmask 523744  }
  0x7c   :  { %v14_v38 = vpop.permute.xlu0 %13   ;;  %v26_v39 = vpop.permute.xlu1 %25  }
  0x7d   :  { %16 = vst.msk [vmem:[#allocation0] sm:$0x1] %vm15_vm2, %v14_v38   ;;  %v92_v40 = vpop.permute.xlu2 %91   ;;  %vm111_vm2 = vcmask 490944  }
  0x7e   :  { %22 = vst.msk [vmem:[#allocation0] sm:$0x1] %vm21_vm3, %v20_v36   ;;  %vm117_vm3 = vcmask 458144  }
  0x7f   :  { %28 = vst.msk [vmem:[#allocation0] sm:$0x1] %vm27_vm4, %v26_v39   ;;  %vm123_vm4 = vcmask 425344  }
  0x80   :  { %34 = vst.msk [vmem:[#allocation0] sm:$0x1] %vm33_vm5, %v32_v32   ;;  %vm129_vm5 = vcmask 392544  }
  0x81   :  { %40 = vst.msk [vmem:[#allocation0] sm:$0x1] %vm39_vm6, %v38_v33   ;;  %vm135_vm6 = vcmask 359744  }
  0x84   :  { %v44_v41 = vpop.permute.xlu0 %43   ;;  %v50_v42 = vpop.permute.xlu1 %49  }
  0x85   :  { %46 = vst.msk [vmem:[#allocation0] sm:$0x1] %vm45_vm7, %v44_v41   ;;  %v110_v43 = vpop.permute.xlu2 %109   ;;  %vm141_vm7 = vcmask 326944  }
  0x86   :  { %52 = vst.msk [vmem:[#allocation0] sm:$0x1] %vm51_vm8, %v50_v42   ;;  %vm147_vm8 = vcmask 294144  }
  0x87   :  { %58 = vst.msk [vmem:[#allocation0] sm:$0x1] %vm57_vm9, %v56_v34   ;;  %vm153_vm9 = vcmask 261344  }
  0x8c   :  { %v62_v44 = vpop.permute.xlu0 %61   ;;  %v68_v45 = vpop.permute.xlu1 %67  }
  0x8d   :  { %64 = vst.msk [vmem:[#allocation0] sm:$0x1] %vm63_vm10, %v62_v44   ;;  %v128_v46 = vpop.permute.xlu2 %127   ;;  %vm159_vm10 = vcmask 228544  }
  0x8e   :  { %70 = vst.msk [vmem:[#allocation0] sm:$0x1] %vm69_vm11, %v68_v45   ;;  %vm165_vm11 = vcmask 195744  }
  0x8f   :  { %76 = vst.msk [vmem:[#allocation0] sm:$0x1] %vm75_vm12, %v74_v37   ;;  %vm171_vm12 = vcmask 162944  }
  0x94   :  { %v80_v47 = vpop.permute.xlu0 %79   ;;  %v86_v48 = vpop.permute.xlu1 %85  }
  0x95   :  { %82 = vst.msk [vmem:[#allocation0] sm:$0x1] %vm81_vm13, %v80_v47   ;;  %v146_v49 = vpop.permute.xlu2 %145   ;;  %vm177_vm13 = vcmask 130144  }
  0x96   :  { %88 = vst.msk [vmem:[#allocation0] sm:$0x1] %vm87_vm14, %v86_v48   ;;  %vm183_vm14 = vcmask 97344  }
  0x97   :  { %94 = vst.msk [vmem:[#allocation0] sm:$0x1] %vm93_vm15, %v92_v40   ;;  %vm189_vm15 = vcmask 64544  }
  0x9c   :  { %v98_v50 = vpop.permute.xlu0 %97   ;;  %v104_v51 = vpop.permute.xlu1 %103  }
  0x9d   :  { %100 = vst.msk [vmem:[#allocation0] sm:$0x1] %vm99_vm0, %v98_v50   ;;  %v164_v52 = vpop.permute.xlu2 %163  }
  0x9e   :  { %106 = vst.msk [vmem:[#allocation0] sm:$0x1] %vm105_vm1, %v104_v51  }
  0x9f   :  { %112 = vst.msk [vmem:[#allocation0] sm:$0x1] %vm111_vm2, %v110_v43  }
  0xa4   :  { %v116_v53 = vpop.permute.xlu0 %115   ;;  %v122_v54 = vpop.permute.xlu1 %121  }
  0xa5   :  { %118 = vst.msk [vmem:[#allocation0] sm:$0x1] %vm117_vm3, %v116_v53   ;;  %v182_v55 = vpop.permute.xlu2 %181  }
  0xa6   :  { %124 = vst.msk [vmem:[#allocation0] sm:$0x1] %vm123_vm4, %v122_v54  }
  0xa7   :  { %130 = vst.msk [vmem:[#allocation0] sm:$0x1] %vm129_vm5, %v128_v46  }
  0xac   :  { %v134_v56 = vpop.permute.xlu0 %133   ;;  %v140_v57 = vpop.permute.xlu1 %139  }
  0xad   :  { %136 = vst.msk [vmem:[#allocation0] sm:$0x1] %vm135_vm6, %v134_v56  }
  0xae   :  { %142 = vst.msk [vmem:[#allocation0] sm:$0x1] %vm141_vm7, %v140_v57  }
  0xaf   :  { %148 = vst.msk [vmem:[#allocation0] sm:$0x1] %vm147_vm8, %v146_v49  }
  0xb4   :  { %v152_v58 = vpop.permute.xlu0 %151   ;;  %v158_v59 = vpop.permute.xlu1 %157  }
  0xb5   :  { %154 = vst.msk [vmem:[#allocation0] sm:$0x1] %vm153_vm9, %v152_v58  }
  0xb6   :  { %160 = vst.msk [vmem:[#allocation0] sm:$0x1] %vm159_vm10, %v158_v59  }
  0xb7   :  { %166 = vst.msk [vmem:[#allocation0] sm:$0x1] %vm165_vm11, %v164_v52  }
  0xbc   :  { %v170_v60 = vpop.permute.xlu0 %169   ;;  %v176_v61 = vpop.permute.xlu1 %175  }
  0xbd   :  { %172 = vst.msk [vmem:[#allocation0] sm:$0x1] %vm171_vm12, %v170_v60  }
  0xbe   :  { %178 = vst.msk [vmem:[#allocation0] sm:$0x1] %vm177_vm13, %v176_v61  }
  0xbf   :  { %184 = vst.msk [vmem:[#allocation0] sm:$0x1] %vm183_vm14, %v182_v55  }
  0xc4   :  { %v188_v62 = vpop.permute.xlu0 %187  }
  0xc5   :  { %190 = vst.msk [vmem:[#allocation0] sm:$0x1] %vm189_vm15, %v188_v62  }
  0xcc   :  { %v193_v63 = vld [vmem:[#allocation0] sm:$0x1] }
  0xcd   :  { %196 = vst [vmem:[%s400_s1] sm:$0x1] %v193_v63 }

// kernel: resnet_forward.42
= control target key start
LH: loop header
LB: loop body
LE: loop exit
PB: predicated region body
PF: predicated region fallthrough
CT: control target
= control target key end

     0   :  { %s114_s0 = inlined_call_operand.vmem [shape: bf16[32,128], index: 0, kind: input, shape index: {}]   ;;  %s115_s1 = inlined_call_operand.vmem [shape: f32[1,128], index: 1, kind: input, shape index: {}]   ;;  %s116_s2 = inlined_call_operand.vmem [shape: f32[1,128], index: 2, kind: input, shape index: {}]   ;;  %s117_s3 = inlined_call_operand.vmem [shape: bf16[32,128], index: 3, kind: output, shape index: {}]  }
   0x1   :  { %v55_v0 = vld [vmem:[%s114_s0] sm:$0xff]   ;;  %v72_v5 = vld [vmem:[%s114_s0 + $0x8] sm:$0xff]  }
   0x2   :  { %v74_v1 = vld [vmem:[%s115_s1] ss:$0 sm:$0xff]  ;;  %v56_v2 = vunpack.c.l.bf16 %v55_v0  ;;  %v57_v3 = vunpack.c.h.bf16 %v55_v0  ;;  %v60_v6 = vunpack.c.l.bf16 %v72_v5  ;;  %v61_v7 = vunpack.c.h.bf16 %v72_v5 }
   0x3   :  { %v75_v4 = vld [vmem:[%s116_s2] ss:$0 sm:$0xff] }
   0x4   :  { %v26_v8 = vmul.f32 %v74_v1, %v56_v2  ;;  %v27_v9 = vmul.f32 %v74_v1, %v57_v3  ;;  %v28_v10 = vmul.f32 %v74_v1, %v60_v6  ;;  %v29_v11 = vmul.f32 %v74_v1, %v61_v7 }
   0x6   :  { %v34_v12 = vadd.f32 %v75_v4, %v26_v8  ;;  %v35_v13 = vadd.f32 %v75_v4, %v27_v9  ;;  %v36_v14 = vadd.f32 %v75_v4, %v28_v10  ;;  %v37_v15 = vadd.f32 %v75_v4, %v29_v11 }
   0x8   :  { %v38_v16 = vmax.f32 %v34_v12, 0.0  ;;  %v39_v17 = vmax.f32 %v35_v13, 0.0  ;;  %v40_v18 = vmax.f32 %v36_v14, 0.0  ;;  %v41_v19 = vmax.f32 %v37_v15, 0.0 }
   0xa   :  { %v65_v20 = vpack.c.bf16 %v39_v17, %v38_v16  ;;  %v70_v21 = vpack.c.bf16 %v41_v19, %v40_v18 }
   0xc   :  { %66 = vst [vmem:[%s117_s3] sm:$0xff] %v65_v20  }
   0xd   :  { %73 = vst [vmem:[%s117_s3 + $0x8] sm:$0xff] %v70_v21  }

// kernel: tile.128
= control target key start
LH: loop header
LB: loop body
LE: loop exit
PB: predicated region body
PF: predicated region fallthrough
CT: control target
= control target key end

     0   :  { %s28_s0 = inlined_call_operand.vmem [shape: f32[8], index: 0, kind: input, shape index: {}]   ;;  %s29_s1 = inlined_call_operand.vmem [shape: f32[16,8], index: 1, kind: output, shape index: {}]  }
   0x1   :  { %v4_v0 = vld [vmem:[%s28_s0] ss:$0 sm:$0xff] }
   0x2   :  { %5 = vst [vmem:[%s29_s1] sm:$0xff] %v4_v0 }
   0x3   :  { %8 = vst [vmem:[%s29_s1 + $0x8] sm:$0xff] %v4_v0 }

// kernel: resnet_forward.44
= control target key start
LH: loop header
LB: loop body
LE: loop exit
PB: predicated region body
PF: predicated region fallthrough
CT: control target
= control target key end

     0   :  { %s500_s15 = smov 0   ;;  %s556_s0 = inlined_call_operand.vmem [shape: bf16[2,16,8,4], index: 0, kind: input, shape index: {}]   ;;  %s557_s1 = inlined_call_operand.vmem [shape: bf16[4,8], index: 1, kind: input, shape index: {}]   ;;  %s558_s2 = inlined_call_operand.vmem [shape: bf16[2,16,8,8], index: 2, kind: output, shape index: {0}]   ;;  %s559_s3 = inlined_call_operand.vmem [shape: f32[2,1,8], index: 3, kind: output, shape index: {1}]   ;;  %s560_s4 = inlined_call_operand.vmem [shape: f32[2,1,8], index: 4, kind: output, shape index: {2}]  }
   0x1 LB: > { %s395_s16 = sadd.s32 4294967295, %s461_s15   ;;  %p399_p0 = scmp.ge.s32.totalorder %s461_s15, 1  ;;  %s461_s15 = sphi %s500_s15, %s15_s15  }
   0x2   : > { %p167_p1 = scmp.lt.s32.totalorder %s461_s15, 3 }
   0x4   : > { %p168_p2 = pnand %p399_p0, %p167_p1 }
   0x5   : > { %p199_p3 = scmp.lt.s32.totalorder (!%p168_p2), %s395_s16, 1  ;;  %s532_s6 = smov (!%p168_p2), 0  }
   0x6   : > { %171 = sbr.rel (%p168_p2) target bundleno = 164 (0xa4), region = 28 }
   0xb   : > { %v216_v0 = vld [vmem:[%s557_s1] sm:$0x3]  ;;  %s562_s16 = smov (!%p199_p3, %s395_s16), 1  ;;  %v463_v1 = vmov 0.0   ;;  %v467_v2 = vmov 0.0  }
   0xc   : > { %s409_s19 = sshll.u32 %s562_s16, 6  ;;  %s211_s22 = scalar_lea.vmem %s559_s3, %s562_s16 }
   0xd   : > { %s521_s25 = scalar_lea.vmem %s556_s0, %s409_s19  ;;  %s526_s28 = scalar_lea.vmem %s558_s2, %s409_s19 }
   0xe   : > { %s214_s5 = scalar_lea.vmem %s560_s4, %s562_s16 }
   0xf LB: >> { %vm232_vm0 = vcmask 1041408   ;;  %s404_s7 = sshll.u32 %s473_s6, 2  ;;  %vm228_vm1 = vcmask 31744   ;;  %vm254_vm2 = vcmask 64512   ;;  %vm252_vm3 = vcmask 60416   ;;  %s222_s6 = sadd.s32 1, %s473_s6   ;;  %s473_s6 = sphi %s532_s6, %s222_s6   ;;  %v469_v2 = vphi %v467_v2, %v468_v2   ;;  %v465_v1 = vphi %v463_v1, %v464_v1  }
  0x10   : >> { %v234_v3 = vsel %vm232_vm0, %v216_v0, 0  ;;  %s226_s8 = scalar_lea.vmem %s521_s25, %s404_s7  ;;  %s251_s9 = scalar_lea.vmem %s526_s28, %s404_s7 }
  0x11   : >> { %243 = vmatpush.bf16.msra.mxu0 %v234_v3  ;;  %v227_v4 = vld [vmem:[%s226_s8] sm:$0xf]  ;;  %p219_p4 = scmp.ge.s32.totalorder %s222_s6, 16  }
  0x12   : > { %vm272_vm4 = vcmask (%p219_p4), 57344  }
  0x14   : >> { %405 = vmatmul.msk.bf16.vlgmr.msra.gmra.mxu0 %vm228_vm1, %v227_v4 }
  0x91   : >> { %v245_v5 = vpop.f32.mrf.mxu0 }
  0x92   : >> { %v249_v6 = vpack.c.bf16 %v245_v5, %v245_v5  ;;  %v255_v7 = vsel %vm254_vm2, %v245_v5, 0.0  ;;  %v263_v8 = vmul.f32 %v245_v5, %v245_v5 }
  0x93   : >> { %v256_v9 = vrot.slane %v255_v7, 4 }
  0x94   : >> { %253 = vst.msk [vmem:[%s251_s9] sm:$0xf] %vm252_vm3, %v249_v6  ;;  %v264_v10 = vsel %vm254_vm2, %v263_v8, 0.0 }
  0x95   : >> { %v257_v11 = vadd.f32 %v256_v9, %v255_v7  ;;  %v265_v12 = vrot.slane %v264_v10, 4 }
  0x97   : >> { %v258_v13 = vrot.slane %v257_v11, 2  ;;  %v266_v14 = vadd.f32 %v265_v12, %v264_v10 }
  0x99   : >> { %v259_v15 = vadd.f32 %v258_v13, %v257_v11  ;;  %v267_v16 = vrot.slane %v266_v14, 2  ;;  %v247_v17 = vpop.f32.mrf.mxu0 }
  0x9b   : >> { %v260_v18 = vrot.slane %v259_v15, 1  ;;  %v268_v19 = vadd.f32 %v267_v16, %v266_v14 }
  0x9d   : >> { %v261_v20 = vadd.f32 %v260_v18, %v259_v15  ;;  %v269_v21 = vrot.slane %v268_v19, 1 }
  0x9f   : >> { %v262_v22 = vadd.f32 %v469_v2, %v261_v20   ;;  %v270_v23 = vadd.f32 %v269_v21, %v268_v19  ;;  %221 = sbr.rel (!%p219_p4) target bundleno = 15 (0xf), region = 91 }
  0xa1   : >> { %v271_v24 = vadd.f32 %v465_v1, %v270_v23   ;;  %v468_v2 = vmov %v262_v22   ;;  %273 = vst.msk [vmem:[%s211_s22] sm:$0x1] (%p219_p4), %vm272_vm4, %v262_v22 }
  0xa3   : >> { %v464_v1 = vmov %v271_v24   ;;  %274 = vst.msk [vmem:[%s214_s5] sm:$0x1] (%p219_p4), %vm272_vm4, %v271_v24 }
  0xa4 PF: > { %s15_s15 = sadd.s32 1, %s461_s15  }
  0xa5   : > { %p12_p5 = scmp.ge.s32.totalorder %s15_s15, 4  }
  0xa7   :  { %14 = sbr.rel (!%p12_p5) target bundleno = 1 (0x1), region = 102 }

// kernel: tile.129
= control target key start
LH: loop header
LB: loop body
LE: loop exit
PB: predicated region body
PF: predicated region fallthrough
CT: control target
= control target key end

     0   :  { %s131_s10 = smov 120   ;;  %s132_s11 = smov 104   ;;  %vm3_vm0 = vcmask 64512   ;;  %vm9_vm1 = vcmask 1048512   ;;  %vm15_vm2 = vcmask 982912   ;;  %vm21_vm3 = vcmask 917312   ;;  %s207_s0 = inlined_call_operand.vmem [shape: f32[16,8], index: 0, kind: input, shape index: {}]   ;;  %s208_s1 = inlined_call_operand.vmem [shape: f32[1,128], index: 1, kind: output, shape index: {}]  }
   0x1   :  { %v101_v0 = vld [vmem:[%s207_s0 + $0xf] sm:$0x1]   ;;  %v103_v1 = vld [vmem:[%s207_s0 + $0xd] sm:$0x1]   ;;  %v105_v2 = vld [vmem:[%s207_s0 + $0xb] sm:$0x1]  }
   0x2   :  { %7 = vrot.lane.b32.xlu0 %v101_v0, %s131_s10  ;;  %19 = vrot.lane.b32.xlu1 %v103_v1, %s132_s11  ;;  %s133_s14 = smov 88   ;;  %v102_v3 = vld [vmem:[%s207_s0 + $0xe] sm:$0x1]   ;;  %v104_v4 = vld [vmem:[%s207_s0 + $0xc] sm:$0x1]   ;;  %s134_s19 = smov 112  }
   0x3   :  { %31 = vrot.lane.b32.xlu2 %v105_v2, %s133_s14  ;;  %s135_s20 = smov 96   ;;  %v106_v5 = vld [vmem:[%s207_s0 + $0xa] sm:$0x1]   ;;  %s136_s23 = smov 80   ;;  %v107_v6 = vld [vmem:[%s207_s0 + $0x9] sm:$0x1]  }
   0x4   :  { %v108_v7 = vld [vmem:[%s207_s0 + $0x8] sm:$0x1]   ;;  %s137_s28 = smov 72   ;;  %s138_s29 = smov 64   ;;  %v109_v8 = vld [vmem:[%s207_s0 + $0x7] sm:$0x1]  }
   0x5   :  { %s139_s3 = smov 56   ;;  %v110_v9 = vld [vmem:[%s207_s0 + $0x6] sm:$0x1]   ;;  %v111_v10 = vld [vmem:[%s207_s0 + $0x5] sm:$0x1]   ;;  %s140_s8 = smov 48  }
   0x6   :  { %s141_s9 = smov 40   ;;  %v112_v11 = vld [vmem:[%s207_s0 + $0x4] sm:$0x1]   ;;  %s142_s12 = smov 32   ;;  %v113_v12 = vld [vmem:[%s207_s0 + $0x3] sm:$0x1]  }
   0x7   :  { %v114_v13 = vld [vmem:[%s207_s0 + $0x2] sm:$0x1]   ;;  %s143_s17 = smov 24   ;;  %s144_s18 = smov 16   ;;  %v115_v14 = vld [vmem:[%s207_s0 + $0x1] sm:$0x1]  }
   0x8   :  { %s145_s21 = smov 8   ;;  %v2_v15 = vld [vmem:[%s207_s0] sm:$0x1]   ;;  %vm27_vm4 = vcmask 851712   ;;  %vm33_vm5 = vcmask 786112   ;;  %vm39_vm6 = vcmask 720512  }
   0x9   :  { %4 = vst.msk [vmem:[#allocation0] sm:$0x1] %vm3_vm0, %v2_v15   ;;  %vm45_vm7 = vcmask 654912   ;;  %vm51_vm8 = vcmask 589312   ;;  %vm57_vm9 = vcmask 523712   ;;  %vm63_vm10 = vcmask 458112  }
   0xa   :  { %13 = vrot.lane.b32.xlu0 %v102_v3, %s134_s19  ;;  %25 = vrot.lane.b32.xlu1 %v104_v4, %s135_s20  ;;  %vm69_vm11 = vcmask 392512   ;;  %vm75_vm12 = vcmask 326912   ;;  %vm81_vm13 = vcmask 261312   ;;  %vm87_vm14 = vcmask 195712  }
   0xb   :  { %37 = vrot.lane.b32.xlu2 %v106_v5, %s136_s23  ;;  %vm93_vm15 = vcmask 130112  }
  0x12   :  { %43 = vrot.lane.b32.xlu0 %v107_v6, %s137_s28  ;;  %49 = vrot.lane.b32.xlu1 %v108_v7, %s138_s29 }
  0x13   :  { %55 = vrot.lane.b32.xlu2 %v109_v8, %s139_s3 }
  0x1a   :  { %61 = vrot.lane.b32.xlu0 %v110_v9, %s140_s8  ;;  %67 = vrot.lane.b32.xlu1 %v111_v10, %s141_s9 }
  0x1b   :  { %73 = vrot.lane.b32.xlu2 %v112_v11, %s142_s12 }
  0x22   :  { %79 = vrot.lane.b32.xlu0 %v113_v12, %s143_s17  ;;  %85 = vrot.lane.b32.xlu1 %v114_v13, %s144_s18 }
  0x23   :  { %91 = vrot.lane.b32.xlu2 %v115_v14, %s145_s21 }
  0x5d   :  { %v32_v16 = vpop.permute.xlu2 %31  }
  0x65   :  { %v38_v17 = vpop.permute.xlu2 %37  }
  0x6d   :  { %v56_v18 = vpop.permute.xlu2 %55  }
  0x74   :  { %v8_v19 = vpop.permute.xlu0 %7   ;;  %v20_v20 = vpop.permute.xlu1 %19  }
  0x75   :  { %10 = vst.msk [vmem:[#allocation0] sm:$0x1] %vm9_vm1, %v8_v19   ;;  %v74_v21 = vpop.permute.xlu2 %73  }
  0x7c   :  { %v14_v22 = vpop.permute.xlu0 %13   ;;  %v26_v23 = vpop.permute.xlu1 %25  }
  0x7d   :  { %16 = vst.msk [vmem:[#allocation0] sm:$0x1] %vm15_vm2, %v14_v22   ;;  %v92_v24 = vpop.permute.xlu2 %91  }
  0x7e   :  { %22 = vst.msk [vmem:[#allocation0] sm:$0x1] %vm21_vm3, %v20_v20  }
  0x7f   :  { %28 = vst.msk [vmem:[#allocation0] sm:$0x1] %vm27_vm4, %v26_v23  }
  0x80   :  { %34 = vst.msk [vmem:[#allocation0] sm:$0x1] %vm33_vm5, %v32_v16  }
  0x81   :  { %40 = vst.msk [vmem:[#allocation0] sm:$0x1] %vm39_vm6, %v38_v17  }
  0x84   :  { %v44_v25 = vpop.permute.xlu0 %43   ;;  %v50_v26 = vpop.permute.xlu1 %49  }
  0x85   :  { %46 = vst.msk [vmem:[#allocation0] sm:$0x1] %vm45_vm7, %v44_v25  }
  0x86   :  { %52 = vst.msk [vmem:[#allocation0] sm:$0x1] %vm51_vm8, %v50_v26  }
  0x87   :  { %58 = vst.msk [vmem:[#allocation0] sm:$0x1] %vm57_vm9, %v56_v18  }
  0x8c   :  { %v62_v27 = vpop.permute.xlu0 %61   ;;  %v68_v28 = vpop.permute.xlu1 %67  }
  0x8d   :  { %64 = vst.msk [vmem:[#allocation0] sm:$0x1] %vm63_vm10, %v62_v27  }
  0x8e   :  { %70 = vst.msk [vmem:[#allocation0] sm:$0x1] %vm69_vm11, %v68_v28  }
  0x8f   :  { %76 = vst.msk [vmem:[#allocation0] sm:$0x1] %vm75_vm12, %v74_v21  }
  0x94   :  { %v80_v29 = vpop.permute.xlu0 %79   ;;  %v86_v30 = vpop.permute.xlu1 %85  }
  0x95   :  { %82 = vst.msk [vmem:[#allocation0] sm:$0x1] %vm81_vm13, %v80_v29  }
  0x96   :  { %88 = vst.msk [vmem:[#allocation0] sm:$0x1] %vm87_vm14, %v86_v30  }
  0x97   :  { %94 = vst.msk [vmem:[#allocation0] sm:$0x1] %vm93_vm15, %v92_v24  }
  0x9e   :  { %v97_v31 = vld [vmem:[#allocation0] sm:$0x1] }
  0x9f   :  { %100 = vst [vmem:[%s208_s1] sm:$0x1] %v97_v31 }

// kernel: resnet_forward.43
= control target key start
LH: loop header
LB: loop body
LE: loop exit
PB: predicated region body
PF: predicated region fallthrough
CT: control target
= control target key end

     0   :  { %s525_s6 = smov 0   ;;  %s654_s0 = inlined_call_operand.vmem [shape: bf16[2,16,2,8,8], index: 0, kind: input, shape index: {}]   ;;  %s655_s1 = inlined_call_operand.vmem [shape: bf16[2,16,8,4], index: 1, kind: output, shape index: {}]  }
   0x1 LB: > { %s365_s7 = sadd.s32 4294967295, %s512_s6   ;;  %p369_p0 = scmp.ge.s32.totalorder %s512_s6, 1  ;;  %s512_s6 = sphi %s525_s6, %s11_s6  }
   0x2   : > { %p87_p1 = scmp.lt.s32.totalorder %s512_s6, 3 }
   0x4   : > { %p88_p2 = pnand %p369_p0, %p87_p1 }
   0x5   : > { %p107_p3 = scmp.lt.s32.totalorder (!%p88_p2), %s365_s7, 1  ;;  %s514_s12 = smov (!%p88_p2), 124  }
   0x6   : > { %91 = sbr.rel (%p88_p2) target bundleno = 162 (0xa2), region = 24 }
   0xb   : > { %s657_s7 = smov (!%p107_p3, %s365_s7), 1  ;;  %vm293_vm0 = vcmask 27648  }
   0xc   : > { %s376_s8 = sshll.u32 %s657_s7, 7  ;;  %s377_s13 = sshll.u32 %s657_s7, 6 }
   0xd   : > { %s539_s11 = scalar_lea.vmem %s654_s0, %s376_s8  ;;  %s605_s16 = scalar_lea.vmem %s655_s1, %s377_s13 }
   0xe   : > { %v445_v0 = vld [vmem:[%s539_s11 + $0x20] sm:$0xff]   ;;  %v446_v1 = vld [vmem:[%s539_s11 + $0x28] sm:$0xff]   ;;  %v447_v8 = vld [vmem:[%s539_s11 + $0x30] sm:$0xff]  }
   0xf   : > { %v379_v2 = vld [vmem:[%s539_s11] sm:$0xff]   ;;  %v396_v3 = vunpack.c.l.bf16 %v445_v0  ;;  %v397_v4 = vunpack.c.h.bf16 %v445_v0  ;;  %v400_v5 = vunpack.c.l.bf16 %v446_v1  ;;  %v401_v6 = vunpack.c.h.bf16 %v446_v1  ;;  %v442_v7 = vld [vmem:[%s539_s11 + $0x8] sm:$0xff]   ;;  %v448_v9 = vld [vmem:[%s539_s11 + $0x38] sm:$0xff]  }
  0x10   : > { %v380_v10 = vunpack.c.l.bf16 %v379_v2  ;;  %v381_v11 = vunpack.c.h.bf16 %v379_v2  ;;  %v384_v12 = vunpack.c.l.bf16 %v442_v7  ;;  %v385_v13 = vunpack.c.h.bf16 %v442_v7  ;;  %v443_v14 = vld [vmem:[%s539_s11 + $0x10] sm:$0xff]   ;;  %v444_v19 = vld [vmem:[%s539_s11 + $0x18] sm:$0xff]   ;;  %v453_v34 = vld [vmem:[%s539_s11 + $0x60] sm:$0xff]  }
  0x11   : > { %v548_v15 = vmax.f32 %v396_v3, %v397_v4  ;;  %v550_v16 = vmax.f32 %v400_v5, %v401_v6  ;;  %v404_v17 = vunpack.c.l.bf16 %v447_v8  ;;  %v405_v18 = vunpack.c.h.bf16 %v447_v8  ;;  %v455_v32 = vld [vmem:[%s539_s11 + $0x70] sm:$0xff]   ;;  %v456_v33 = vld [vmem:[%s539_s11 + $0x78] sm:$0xff]   ;;  %v449_v35 = vld [vmem:[%s539_s11 + $0x40] sm:$0xff]  }
  0x12   : > { %v553_v20 = vmax.f32 %v380_v10, %v381_v11  ;;  %v555_v21 = vmax.f32 %v384_v12, %v385_v13  ;;  %v408_v22 = vunpack.c.l.bf16 %v448_v9  ;;  %v409_v23 = vunpack.c.h.bf16 %v448_v9  ;;  %v454_v38 = vld [vmem:[%s539_s11 + $0x68] sm:$0xff]   ;;  %v451_v44 = vld [vmem:[%s539_s11 + $0x50] sm:$0xff]   ;;  %v452_v49 = vld [vmem:[%s539_s11 + $0x58] sm:$0xff]  }
  0x13   : > { %v476_v24 = vpack.i.bf16 %v550_v16, %v548_v15  ;;  %v559_v25 = vmax.f32 %v404_v17, %v405_v18  ;;  %v388_v26 = vunpack.c.l.bf16 %v443_v14  ;;  %v389_v27 = vunpack.c.h.bf16 %v443_v14  ;;  %v450_v39 = vld [vmem:[%s539_s11 + $0x48] sm:$0xff]  }
  0x14   : > { %v466_v28 = vpack.i.bf16 %v555_v21, %v553_v20  ;;  %v563_v29 = vmax.f32 %v408_v22, %v409_v23  ;;  %v392_v30 = vunpack.c.l.bf16 %v444_v19  ;;  %v393_v31 = vunpack.c.h.bf16 %v444_v19 }
  0x15   : > { %477 = vrot.lane.b32.xlu1 %v476_v24, %s514_s12  ;;  %v571_v36 = vmax.f32 %v388_v26, %v389_v27  ;;  %v436_v41 = vunpack.c.l.bf16 %v455_v32  ;;  %v437_v42 = vunpack.c.h.bf16 %v455_v32  ;;  %v440_v43 = vunpack.c.l.bf16 %v456_v33 }
  0x16   : > { %467 = vrot.lane.b32.xlu0 %v466_v28, %s514_s12  ;;  %v573_v37 = vmax.f32 %v392_v30, %v393_v31  ;;  %v481_v40 = vpack.i.bf16 %v563_v29, %v559_v25  ;;  %v441_v45 = vunpack.c.h.bf16 %v456_v33  ;;  %v428_v46 = vunpack.c.l.bf16 %v453_v34 }
  0x17   : > { %v412_v47 = vunpack.c.l.bf16 %v449_v35  ;;  %v413_v48 = vunpack.c.h.bf16 %v449_v35  ;;  %v429_v50 = vunpack.c.h.bf16 %v453_v34  ;;  %v432_v51 = vunpack.c.l.bf16 %v454_v38 }
  0x18   : > { %v416_v52 = vunpack.c.l.bf16 %v450_v39  ;;  %v417_v53 = vunpack.c.h.bf16 %v450_v39  ;;  %v471_v54 = vpack.i.bf16 %v573_v37, %v571_v36  ;;  %v433_v55 = vunpack.c.h.bf16 %v454_v38 }
  0x19   : > { %v189_v56 = vmax.f32 %v412_v47, %v413_v48  ;;  %v420_v57 = vunpack.c.l.bf16 %v451_v44  ;;  %v421_v59 = vunpack.c.h.bf16 %v451_v44  ;;  %v424_v60 = vunpack.c.l.bf16 %v452_v49 }
  0x1a   : > { %v190_v58 = vmax.f32 %v416_v52, %v417_v53  ;;  %v425_v61 = vunpack.c.h.bf16 %v452_v49  ;;  %v584_v62 = vmax.f32 %v436_v41, %v437_v42  ;;  %v586_v63 = vmax.f32 %v440_v43, %v441_v45 }
  0x1b   : > { %v589_v1 = vmax.f32 %v428_v46, %v429_v50  ;;  %v591_v2 = vmax.f32 %v432_v51, %v433_v55  ;;  %v191_v3 = vmax.f32 %v420_v57, %v421_v59 }
  0x1c   : > { %v486_v0 = vpack.i.bf16 %v190_v58, %v189_v56  ;;  %v192_v4 = vmax.f32 %v424_v60, %v425_v61  ;;  %v501_v5 = vpack.i.bf16 %v586_v63, %v584_v62 }
  0x1d   : > { %482 = vrot.lane.b32.xlu1 %v481_v40, %s514_s12  ;;  %v496_v6 = vpack.i.bf16 %v591_v2, %v589_v1 }
  0x1e   : > { %472 = vrot.lane.b32.xlu0 %v471_v54, %s514_s12  ;;  %487 = vrot.lane.b32.xlu2 %v486_v0, %s514_s12  ;;  %v491_v7 = vpack.i.bf16 %v192_v4, %v191_v3 }
  0x25   : > { %502 = vrot.lane.b32.xlu1 %v501_v5, %s514_s12 }
  0x26   : > { %497 = vrot.lane.b32.xlu0 %v496_v6, %s514_s12  ;;  %492 = vrot.lane.b32.xlu2 %v491_v7, %s514_s12 }
  0x78   : > { %v488_v8 = vpop.permute.xlu2 %487 }
  0x79   : > { %v490_v9 = vunpack.i.h.bf16 %v488_v8  ;;  %v489_v10 = vunpack.i.l.bf16 %v488_v8 }
  0x7b   : > { %v270_v11 = vmax.f32 %v190_v58, %v490_v9  ;;  %v269_v12 = vmax.f32 %v189_v56, %v489_v10 }
  0x7d   : > { %v286_v13 = vpack.c.bf16 %v270_v11, %v270_v11  ;;  %v285_v14 = vpack.c.bf16 %v269_v12, %v269_v12 }
  0x7f   : > { %303 = vst.msk [vmem:[%s605_s16 + $0x24] sm:$0xf] %vm293_vm0, %v286_v13 }
  0x80   : > { %302 = vst.msk [vmem:[%s605_s16 + $0x20] sm:$0xf] %vm293_vm0, %v285_v14  ;;  %v493_v17 = vpop.permute.xlu2 %492 }
  0x81   : > { %v495_v18 = vunpack.i.h.bf16 %v493_v17  ;;  %v494_v19 = vunpack.i.l.bf16 %v493_v17 }
  0x83   : > { %v272_v22 = vmax.f32 %v192_v4, %v495_v18  ;;  %v271_v23 = vmax.f32 %v191_v3, %v494_v19 }
  0x85   : > { %v288_v24 = vpack.c.bf16 %v272_v22, %v272_v22  ;;  %v287_v26 = vpack.c.bf16 %v271_v23, %v271_v23 }
  0x87   : > { %v478_v27 = vpop.permute.xlu1 %477  ;;  %305 = vst.msk [vmem:[%s605_s16 + $0x2c] sm:$0xf] %vm293_vm0, %v288_v24 }
  0x88   : > { %v480_v28 = vunpack.i.h.bf16 %v478_v27  ;;  %v479_v30 = vunpack.i.l.bf16 %v478_v27  ;;  %v468_v31 = vpop.permute.xlu0 %467  ;;  %304 = vst.msk [vmem:[%s605_s16 + $0x28] sm:$0xf] %vm293_vm0, %v287_v26 }
  0x89   : > { %v470_v32 = vunpack.i.h.bf16 %v468_v31  ;;  %v469_v33 = vunpack.i.l.bf16 %v468_v31 }
  0x8a   : > { %v266_v34 = vmax.f32 %v550_v16, %v480_v28  ;;  %v265_v35 = vmax.f32 %v548_v15, %v479_v30 }
  0x8b   : > { %v262_v38 = vmax.f32 %v555_v21, %v470_v32  ;;  %v261_v39 = vmax.f32 %v553_v20, %v469_v33 }
  0x8c   : > { %v282_v40 = vpack.c.bf16 %v266_v34, %v266_v34  ;;  %v281_v41 = vpack.c.bf16 %v265_v35, %v265_v35 }
  0x8d   : > { %v278_v42 = vpack.c.bf16 %v262_v38, %v262_v38  ;;  %v277_v43 = vpack.c.bf16 %v261_v39, %v261_v39 }
  0x8e   : > { %299 = vst.msk [vmem:[%s605_s16 + $0x14] sm:$0xf] %vm293_vm0, %v282_v40 }
  0x8f   : > { %298 = vst.msk [vmem:[%s605_s16 + $0x10] sm:$0xf] %vm293_vm0, %v281_v41  ;;  %v483_v44 = vpop.permute.xlu1 %482 }
  0x90   : > { %295 = vst.msk [vmem:[%s605_s16 + $0x4] sm:$0xf] %vm293_vm0, %v278_v42  ;;  %v485_v16 = vunpack.i.h.bf16 %v483_v44  ;;  %v484_v45 = vunpack.i.l.bf16 %v483_v44  ;;  %v473_v15 = vpop.permute.xlu0 %472 }
  0x91   : > { %294 = vst.msk [vmem:[%s605_s16] sm:$0xf] %vm293_vm0, %v277_v43  ;;  %v475_v20 = vunpack.i.h.bf16 %v473_v15  ;;  %v474_v21 = vunpack.i.l.bf16 %v473_v15 }
  0x92   : > { %v268_v46 = vmax.f32 %v563_v29, %v485_v16  ;;  %v267_v47 = vmax.f32 %v559_v25, %v484_v45 }
  0x93   : > { %v264_v48 = vmax.f32 %v573_v37, %v475_v20  ;;  %v263_v49 = vmax.f32 %v571_v36, %v474_v21 }
  0x94   : > { %v284_v50 = vpack.c.bf16 %v268_v46, %v268_v46  ;;  %v283_v51 = vpack.c.bf16 %v267_v47, %v267_v47 }
  0x95   : > { %v280_v52 = vpack.c.bf16 %v264_v48, %v264_v48  ;;  %v279_v53 = vpack.c.bf16 %v263_v49, %v263_v49 }
  0x96   : > { %301 = vst.msk [vmem:[%s605_s16 + $0x1c] sm:$0xf] %vm293_vm0, %v284_v50 }
  0x97   : > { %300 = vst.msk [vmem:[%s605_s16 + $0x18] sm:$0xf] %vm293_vm0, %v283_v51  ;;  %v503_v54 = vpop.permute.xlu1 %502 }
  0x98   : > { %297 = vst.msk [vmem:[%s605_s16 + $0xc] sm:$0xf] %vm293_vm0, %v280_v52  ;;  %v505_v29 = vunpack.i.h.bf16 %v503_v54  ;;  %v504_v25 = vunpack.i.l.bf16 %v503_v54  ;;  %v498_v37 = vpop.permute.xlu0 %497 }
  0x99   : > { %296 = vst.msk [vmem:[%s605_s16 + $0x8] sm:$0xf] %vm293_vm0, %v279_v53  ;;  %v500_v36 = vunpack.i.h.bf16 %v498_v37  ;;  %v499_v55 = vunpack.i.l.bf16 %v498_v37 }
  0x9a   : > { %v276_v56 = vmax.f32 %v586_v63, %v505_v29  ;;  %v275_v57 = vmax.f32 %v584_v62, %v504_v25 }
  0x9b   : > { %v274_v58 = vmax.f32 %v591_v2, %v500_v36  ;;  %v273_v59 = vmax.f32 %v589_v1, %v499_v55 }
  0x9c   : > { %v292_v60 = vpack.c.bf16 %v276_v56, %v276_v56  ;;  %v291_v61 = vpack.c.bf16 %v275_v57, %v275_v57 }
  0x9d   : > { %v290_v0 = vpack.c.bf16 %v274_v58, %v274_v58  ;;  %v289_v3 = vpack.c.bf16 %v273_v59, %v273_v59 }
  0x9e   : > { %309 = vst.msk [vmem:[%s605_s16 + $0x3c] sm:$0xf] %vm293_vm0, %v292_v60 }
  0x9f   : > { %308 = vst.msk [vmem:[%s605_s16 + $0x38] sm:$0xf] %vm293_vm0, %v291_v61 }
  0xa0   : > { %307 = vst.msk [vmem:[%s605_s16 + $0x34] sm:$0xf] %vm293_vm0, %v290_v0 }
  0xa1   : > { %306 = vst.msk [vmem:[%s605_s16 + $0x30] sm:$0xf] %vm293_vm0, %v289_v3 }
  0xa2 PF: > { %s11_s6 = sadd.s32 1, %s512_s6  }
  0xa3   : > { %p8_p4 = scmp.ge.s32.totalorder %s11_s6, 4  }
  0xa5   :  { %10 = sbr.rel (!%p8_p4) target bundleno = 1 (0x1), region = 54 }

// kernel: resnet_forward.45
= control target key start
LH: loop header
LB: loop body
LE: loop exit
PB: predicated region body
PF: predicated region fallthrough
CT: control target
= control target key end

     0   :  { %s81_s0 = inlined_call_operand.vmem [shape: bf16[16,128], index: 0, kind: input, shape index: {}]   ;;  %s82_s1 = inlined_call_operand.vmem [shape: f32[1,128], index: 1, kind: input, shape index: {}]   ;;  %s83_s2 = inlined_call_operand.vmem [shape: f32[1,128], index: 2, kind: input, shape index: {}]   ;;  %s84_s3 = inlined_call_operand.vmem [shape: bf16[16,128], index: 3, kind: output, shape index: {}]  }
   0x1   :  { %v39_v0 = vld [vmem:[%s81_s0] sm:$0xff]  }
   0x2   :  { %v47_v1 = vld [vmem:[%s82_s1] ss:$0 sm:$0xff]  ;;  %v40_v2 = vunpack.c.l.bf16 %v39_v0  ;;  %v41_v3 = vunpack.c.h.bf16 %v39_v0 }
   0x3   :  { %v48_v4 = vld [vmem:[%s83_s2] ss:$0 sm:$0xff] }
   0x4   :  { %v22_v5 = vmul.f32 %v47_v1, %v40_v2  ;;  %v23_v6 = vmul.f32 %v47_v1, %v41_v3 }
   0x6   :  { %v28_v7 = vadd.f32 %v48_v4, %v22_v5  ;;  %v29_v8 = vadd.f32 %v48_v4, %v23_v6 }
   0x8   :  { %v45_v9 = vpack.c.bf16 %v29_v8, %v28_v7 }
   0xa   :  { %46 = vst [vmem:[%s84_s3] sm:$0xff] %v45_v9  }

// kernel: resnet_forward.47
= control target key start
LH: loop header
LB: loop body
LE: loop exit
PB: predicated region body
PF: predicated region fallthrough
CT: control target
= control target key end

     0   :  { %s83_s0 = inlined_call_operand.vmem [shape: bf16[16,128], index: 0, kind: input, shape index: {}]   ;;  %s84_s1 = inlined_call_operand.vmem [shape: f32[1,128], index: 1, kind: input, shape index: {}]   ;;  %s85_s2 = inlined_call_operand.vmem [shape: f32[1,128], index: 2, kind: input, shape index: {}]   ;;  %s86_s3 = inlined_call_operand.vmem [shape: bf16[16,128], index: 3, kind: output, shape index: {}]  }
   0x1   :  { %v41_v0 = vld [vmem:[%s83_s0] sm:$0xff]  }
   0x2   :  { %v49_v1 = vld [vmem:[%s84_s1] ss:$0 sm:$0xff]  ;;  %v42_v2 = vunpack.c.l.bf16 %v41_v0  ;;  %v43_v3 = vunpack.c.h.bf16 %v41_v0 }
   0x3   :  { %v50_v4 = vld [vmem:[%s85_s2] ss:$0 sm:$0xff] }
   0x4   :  { %v22_v5 = vmul.f32 %v49_v1, %v42_v2  ;;  %v23_v6 = vmul.f32 %v49_v1, %v43_v3 }
   0x6   :  { %v28_v7 = vadd.f32 %v50_v4, %v22_v5  ;;  %v29_v8 = vadd.f32 %v50_v4, %v23_v6 }
   0x8   :  { %v30_v9 = vmax.f32 %v28_v7, 0.0  ;;  %v31_v10 = vmax.f32 %v29_v8, 0.0 }
   0xa   :  { %v47_v11 = vpack.c.bf16 %v31_v10, %v30_v9 }
   0xc   :  { %48 = vst [vmem:[%s86_s3] sm:$0xff] %v47_v11  }

// kernel: resnet_forward.46
= control target key start
LH: loop header
LB: loop body
LE: loop exit
PB: predicated region body
PF: predicated region fallthrough
CT: control target
= control target key end

     0   :  { %s657_s15 = smov 0   ;;  %s770_s0 = inlined_call_operand.vmem [shape: bf16[2,18,10,4], index: 0, kind: input, shape index: {}]   ;;  %s771_s1 = inlined_call_operand.vmem [shape: bf16[36,8], index: 1, kind: input, shape index: {}]   ;;  %s772_s2 = inlined_call_operand.vmem [shape: bf16[2,16,8,8], index: 2, kind: output, shape index: {0}]   ;;  %s773_s3 = inlined_call_operand.vmem [shape: f32[2,1,8], index: 3, kind: output, shape index: {1}]   ;;  %s774_s4 = inlined_call_operand.vmem [shape: f32[2,1,8], index: 4, kind: output, shape index: {2}]  }
   0x1 LB: > { %s514_s16 = sadd.s32 4294967295, %s610_s15   ;;  %p518_p0 = scmp.ge.s32.totalorder %s610_s15, 1  ;;  %s610_s15 = sphi %s657_s15, %s15_s15  }
   0x2   : > { %p167_p1 = scmp.lt.s32.totalorder %s610_s15, 3 }
   0x4   : > { %p168_p2 = pnand %p518_p0, %p167_p1 }
   0x5   : > { %p199_p3 = scmp.lt.s32.totalorder (!%p168_p2), %s514_s16, 1  ;;  %s716_s17 = smov (!%p168_p2), 0  }
   0x6   : > { %171 = sbr.rel (%p168_p2) target bundleno = 300 (0x12c), region = 28 }
   0xb   : > { %v668_v0 = vld [vmem:[%s771_s1] sm:$0xf]  ;;  %v673_v1 = vld [vmem:[%s771_s1] sm:$0xf0]  ;;  %v678_v2 = vld [vmem:[%s771_s1 + $0x8] sm:$0xf] }
   0xc   : > { %v683_v3 = vld [vmem:[%s771_s1 + $0x8] sm:$0xf0]  ;;  %v688_v4 = vld [vmem:[%s771_s1 + $0x10] sm:$0x3]  ;;  %s778_s16 = smov (!%p199_p3, %s514_s16), 1  ;;  %v712_v5 = vmov 0.0  }
   0xd   : > { %s551_s27 = smul.u32 144, %s778_s16  ;;  %s546_s28 = sshll.u32 %s778_s16, 6  ;;  %v714_v6 = vmov 0.0  }
   0xe   : > { %s697_s5 = scalar_lea.vmem %s772_s2, %s546_s28  ;;  %s211_s8 = scalar_lea.vmem %s773_s3, %s778_s16 }
   0xf   : > { %s706_s11 = scalar_lea.vmem %s770_s0, %s551_s27  ;;  %s214_s14 = scalar_lea.vmem %s774_s4, %s778_s16 }
  0x10 LB: >> { %s549_s18 = sshll.u32 %s622_s17, 3  ;;  %s624_s20 = smov 8   ;;  %v337_v37 = vunpack.c.l.b16 %v688_v4  ;;  %vm346_vm0 = vcmask 1041408   ;;  %v541_v40 = vor.u32 %v683_v3, %v678_v2  ;;  %v537_v41 = vor.u32 %v673_v1, %v668_v0  ;;  %s622_s17 = sphi %s716_s17, %s226_s17   ;;  %v618_v6 = vphi %v714_v6, %v776_v6   ;;  %v614_v5 = vphi %v712_v5, %v775_v5  }
  0x11   : >> { %s729_s19 = scalar_lea.vmem %s706_s11, %s549_s18  ;;  %s625_s21 = smov 12   ;;  %vm303_vm1 = vcmask 31744   ;;  %vm307_vm2 = vcmask 64512   ;;  %vm310_vm3 = vcmask 97280   ;;  %vm313_vm4 = vcmask 130048  }
  0x12   : >> { %v532_v7 = vld [vmem:[%s729_s19] sm:$0xf]  ;;  %v550_v8 = vld [vmem:[%s729_s19] sm:$0x10]  ;;  %v525_v9 = vld [vmem:[%s729_s19 + $0x8] sm:$0xf]  ;;  %v340_v38 = vpack.c.b16 %v337_v37, %v337_v37 }
  0x13   : >> { %v533_v10 = vor.u32 %v550_v8, %v532_v7  ;;  %v526_v11 = vld [vmem:[%s729_s19 + $0xc] sm:$0x1]  ;;  %v264_v12 = vunpack.c.l.b16 %v525_v9  ;;  %v528_v13 = vld [vmem:[%s729_s19 + $0x10] sm:$0xf]  ;;  %v529_v14 = vld [vmem:[%s729_s19 + $0x14] sm:$0x1] }
  0x14   : >> { %v269_v15 = vunpack.c.l.b16 %v526_v11  ;;  %v284_v16 = vunpack.c.l.b16 %v528_v13  ;;  %v289_v17 = vunpack.c.l.b16 %v529_v14  ;;  %s626_s22 = smov 20   ;;  %s627_s23 = smov 4   ;;  %v348_v39 = vsel %vm346_vm0, %v340_v38, 0  ;;  %v232_v45 = vld [vmem:[%s729_s19] sm:$0xf] }
  0x15   : >> { %v260_v18 = vrot.slane %v533_v10, 1  ;;  %v265_v19 = vpack.c.b16 %v264_v12, %v264_v12  ;;  %v254_v20 = vshll.u32 %v533_v10, 16  ;;  %v252_v22 = vshrl.u32 %v533_v10, 16  ;;  %s628_s24 = smov 16   ;;  %s629_s25 = smov 24   ;;  %355 = vmatpush.bf16.msra.mxu0 %v348_v39 }
  0x16   : >> { %v270_v21 = vpack.c.b16 %v269_v15, %v264_v12  ;;  %v290_v24 = vpack.c.b16 %v289_v17, %v284_v16  ;;  %v285_v34 = vpack.c.b16 %v284_v16, %v284_v16  ;;  %s630_s26 = smov 28   ;;  %s631_s27 = smov 32   ;;  %vm316_vm5 = vcmask 162816  }
  0x17   : >> { %261 = vrot.lane.b32.xlu0 %v260_v18, %s624_s20  ;;  %266 = vrot.lane.b32.xlu1 %v265_v19, %s625_s21  ;;  %v256_v23 = vrot.slane %v254_v20, 1  ;;  %vm319_vm6 = vcmask 195584   ;;  %vm322_vm7 = vcmask 228352   ;;  %vm325_vm8 = vcmask 261120   ;;  %s543_s28 = sshll.u32 %s622_s17, 2  ;;  %s226_s17 = sadd.s32 1, %s622_s17  }
  0x18   : >> { %v272_v25 = vshrl.u32 %v270_v21, 16  ;;  %v274_v26 = vshll.u32 %v270_v21, 16  ;;  %v280_v27 = vrot.slane %v270_v21, 1  ;;  %v294_v30 = vshll.u32 %v290_v24, 16  ;;  %s365_s29 = scalar_lea.vmem %s697_s5, %s543_s28  ;;  %p223_p4 = scmp.ge.s32.totalorder %s226_s17, 16  }
  0x19   : >> { %v257_v29 = vor.u32 %v256_v23, %v252_v22  ;;  %v292_v32 = vshrl.u32 %v290_v24, 16  ;;  %v300_v36 = vrot.slane %v290_v24, 1  ;;  %356 = vmatpush.bf16.msra.mxu0 %v541_v40  ;;  %vm343_vm9 = vcmask 293888  }
  0x1a   : >> { %v276_v28 = vrot.slane %v274_v26, 1  ;;  %281 = vrot.lane.b32.xlu2 %v280_v27, %s626_s22  ;;  %v296_v33 = vrot.slane %v294_v30, 1  ;;  %vm366_vm10 = vcmask 60416   ;;  %vm385_vm11 = vcmask (%p223_p4), 57344  }
  0x1c   : >> { %v277_v31 = vor.u32 %v276_v28, %v272_v25  ;;  %v297_v35 = vor.u32 %v296_v33, %v292_v32 }
  0x1d   : >> { %357 = vmatpush.bf16.msra.mxu0 %v537_v41 }
  0x1f   : >> { %258 = vrot.lane.b32.xlu0 %v257_v29, %s627_s23  ;;  %278 = vrot.lane.b32.xlu1 %v277_v31, %s628_s24 }
  0x22   : >> { %286 = vrot.lane.b32.xlu2 %v285_v34, %s629_s25 }
  0x27   : >> { %298 = vrot.lane.b32.xlu0 %v297_v35, %s630_s26  ;;  %301 = vrot.lane.b32.xlu1 %v300_v36, %s631_s27 }
  0x74   : >> { %v282_v44 = vpop.permute.xlu2 %281 }
  0x7c   : >> { %v287_v52 = vpop.permute.xlu2 %286 }
  0x89   : >> { %v262_v42 = vpop.permute.xlu0 %261  ;;  %v267_v43 = vpop.permute.xlu1 %266 }
  0x91   : >> { %v259_v46 = vpop.permute.xlu0 %258  ;;  %v279_v47 = vpop.permute.xlu1 %278 }
  0x92   : >> { %v306_v48 = vsel %vm303_vm1, %v232_v45, %v259_v46 }
  0x93   : >> { %v309_v49 = vsel %vm307_vm2, %v306_v48, %v262_v42 }
  0x94   : >> { %v312_v50 = vsel %vm310_vm3, %v309_v49, %v267_v43 }
  0x95   : >> { %v315_v51 = vsel %vm313_vm4, %v312_v50, %v279_v47 }
  0x96   : >> { %v318_v53 = vsel %vm316_vm5, %v315_v51, %v282_v44 }
  0x97   : >> { %v321_v54 = vsel %vm319_vm6, %v318_v53, %v287_v52 }
  0x99   : >> { %v299_v55 = vpop.permute.xlu0 %298  ;;  %v302_v56 = vpop.permute.xlu1 %301 }
  0x9a   : >> { %v324_v57 = vsel %vm322_vm7, %v321_v54, %v299_v55 }
  0x9b   : >> { %v327_v58 = vsel %vm325_vm8, %v324_v57, %v302_v56 }
  0x9c   : >> { %542 = vmatmul.msk.bf16.vlgmr.msra.gmra.mxu0 %vm343_vm9, %v327_v58 }
 0x119   : >> { %v359_v59 = vpop.f32.mrf.mxu0 }
 0x11a   : >> { %v363_v60 = vpack.c.bf16 %v359_v59, %v359_v59  ;;  %v368_v61 = vsel %vm307_vm2, %v359_v59, 0.0  ;;  %v376_v62 = vmul.f32 %v359_v59, %v359_v59 }
 0x11b   : >> { %v369_v63 = vrot.slane %v368_v61, 4 }
 0x11c   : >> { %367 = vst.msk [vmem:[%s365_s29] sm:$0xf] %vm366_vm10, %v363_v60  ;;  %v377_v7 = vsel %vm307_vm2, %v376_v62, 0.0 }
 0x11d   : >> { %v370_v8 = vadd.f32 %v369_v63, %v368_v61  ;;  %v378_v9 = vrot.slane %v377_v7, 4 }
 0x11f   : >> { %v371_v10 = vrot.slane %v370_v8, 2  ;;  %v379_v11 = vadd.f32 %v378_v9, %v377_v7 }
 0x121   : >> { %v372_v12 = vadd.f32 %v371_v10, %v370_v8  ;;  %v380_v13 = vrot.slane %v379_v11, 2  ;;  %v361_v14 = vpop.f32.mrf.mxu0 }
 0x123   : >> { %v373_v15 = vrot.slane %v372_v12, 1  ;;  %v381_v16 = vadd.f32 %v380_v13, %v379_v11 }
 0x125   : >> { %v374_v17 = vadd.f32 %v373_v15, %v372_v12  ;;  %v382_v18 = vrot.slane %v381_v16, 1 }
 0x127   : >> { %v375_v19 = vadd.f32 %v618_v6, %v374_v17   ;;  %v383_v20 = vadd.f32 %v382_v18, %v381_v16  ;;  %225 = sbr.rel (!%p223_p4) target bundleno = 16 (0x10), region = 93 }
 0x129   : >> { %v384_v21 = vadd.f32 %v614_v5, %v383_v20   ;;  %v776_v6 = vmov %v375_v19  ;;  %386 = vst.msk [vmem:[%s211_s8] sm:$0x1] (%p223_p4), %vm385_vm11, %v375_v19 }
 0x12b   : >> { %v775_v5 = vmov %v384_v21  ;;  %387 = vst.msk [vmem:[%s214_s14] sm:$0x1] (%p223_p4), %vm385_vm11, %v384_v21 }
 0x12c PF: > { %s15_s15 = sadd.s32 1, %s610_s15  }
 0x12d   : > { %p12_p5 = scmp.ge.s32.totalorder %s15_s15, 4  }
 0x12f   :  { %14 = sbr.rel (!%p12_p5) target bundleno = 1 (0x1), region = 104 }

// kernel: resnet_forward.49
= control target key start
LH: loop header
LB: loop body
LE: loop exit
PB: predicated region body
PF: predicated region fallthrough
CT: control target
= control target key end

     0   :  { %s104_s0 = inlined_call_operand.vmem [shape: bf16[16,128], index: 0, kind: input, shape index: {}]   ;;  %s105_s1 = inlined_call_operand.vmem [shape: f32[1,128], index: 1, kind: input, shape index: {}]   ;;  %s106_s2 = inlined_call_operand.vmem [shape: f32[1,128], index: 2, kind: input, shape index: {}]   ;;  %s107_s3 = inlined_call_operand.vmem [shape: bf16[16,128], index: 3, kind: input, shape index: {}]   ;;  %s108_s4 = inlined_call_operand.vmem [shape: bf16[16,128], index: 4, kind: output, shape index: {}]  }
   0x1   :  { %v50_v0 = vld [vmem:[%s104_s0] sm:$0xff]  }
   0x2   :  { %v62_v1 = vld [vmem:[%s105_s1] ss:$0 sm:$0xff]  ;;  %v51_v2 = vunpack.c.l.bf16 %v50_v0  ;;  %v52_v3 = vunpack.c.h.bf16 %v50_v0 }
   0x3   :  { %v63_v4 = vld [vmem:[%s106_s2] ss:$0 sm:$0xff] }
   0x4   :  { %v54_v5 = vld [vmem:[%s107_s3] sm:$0xff]   ;;  %v25_v6 = vmul.f32 %v62_v1, %v51_v2  ;;  %v26_v7 = vmul.f32 %v62_v1, %v52_v3 }
   0x5   :  { %v55_v8 = vunpack.c.l.bf16 %v54_v5  ;;  %v56_v9 = vunpack.c.h.bf16 %v54_v5 }
   0x6   :  { %v31_v10 = vadd.f32 %v63_v4, %v25_v6  ;;  %v32_v11 = vadd.f32 %v63_v4, %v26_v7 }
   0x8   :  { %v37_v12 = vadd.f32 %v55_v8, %v31_v10  ;;  %v38_v13 = vadd.f32 %v56_v9, %v32_v11 }
   0xa   :  { %v39_v14 = vmax.f32 %v37_v12, 0.0  ;;  %v40_v15 = vmax.f32 %v38_v13, 0.0 }
   0xc   :  { %v60_v16 = vpack.c.bf16 %v40_v15, %v39_v14 }
   0xe   :  { %61 = vst [vmem:[%s108_s4] sm:$0xff] %v60_v16  }

// kernel: resnet_forward.48
= control target key start
LH: loop header
LB: loop body
LE: loop exit
PB: predicated region body
PF: predicated region fallthrough
CT: control target
= control target key end

     0   :  { %s683_s15 = smov 0   ;;  %s820_s0 = inlined_call_operand.vmem [shape: bf16[2,18,10,8], index: 0, kind: input, shape index: {}]   ;;  %s821_s1 = inlined_call_operand.vmem [shape: bf16[72,8], index: 1, kind: input, shape index: {}]   ;;  %s822_s2 = inlined_call_operand.vmem [shape: bf16[2,16,8,8], index: 2, kind: output, shape index: {0}]   ;;  %s823_s3 = inlined_call_operand.vmem [shape: f32[2,1,8], index: 3, kind: output, shape index: {1}]   ;;  %s824_s4 = inlined_call_operand.vmem [shape: f32[2,1,8], index: 4, kind: output, shape index: {2}]  }
   0x1 LB: > { %s530_s16 = sadd.s32 4294967295, %s636_s15   ;;  %p534_p0 = scmp.ge.s32.totalorder %s636_s15, 1  ;;  %s636_s15 = sphi %s683_s15, %s15_s15  }
   0x2   : > { %p167_p1 = scmp.lt.s32.totalorder %s636_s15, 3 }
   0x4   : > { %p168_p2 = pnand %p534_p0, %p167_p1 }
   0x5   : > { %p199_p3 = scmp.lt.s32.totalorder (!%p168_p2), %s530_s16, 1  ;;  %s762_s25 = smov (!%p168_p2), 0  }
   0x6   : > { %171 = sbr.rel (%p168_p2) target bundleno = 301 (0x12d), region = 28 }
   0xb   : > { %v694_v0 = vld [vmem:[%s821_s1] sm:$0xf]  ;;  %v699_v1 = vld [vmem:[%s821_s1] sm:$0xf0]  ;;  %v704_v2 = vld [vmem:[%s821_s1 + $0x8] sm:$0xf] }
   0xc   : > { %v709_v3 = vld [vmem:[%s821_s1 + $0x8] sm:$0xf0]  ;;  %v714_v4 = vld [vmem:[%s821_s1 + $0x10] sm:$0xf]  ;;  %s828_s16 = smov (!%p199_p3, %s530_s16), 1  ;;  %v758_v9 = vmov 0.0  }
   0xd   : > { %v721_v5 = vld [vmem:[%s821_s1 + $0x10] sm:$0xf0]  ;;  %v726_v6 = vld [vmem:[%s821_s1 + $0x18] sm:$0xf]  ;;  %v731_v7 = vld [vmem:[%s821_s1 + $0x18] sm:$0xf0]  ;;  %s211_s18 = scalar_lea.vmem %s823_s3, %s828_s16  ;;  %s214_s24 = scalar_lea.vmem %s824_s4, %s828_s16 }
   0xe   : > { %v736_v8 = vld [vmem:[%s821_s1 + $0x20] sm:$0xf]  ;;  %s577_s9 = smul.u32 144, %s828_s16  ;;  %s570_s10 = sshll.u32 %s828_s16, 6  ;;  %v760_v10 = vmov 0.0  }
   0xf   : > { %s743_s13 = scalar_lea.vmem %s822_s2, %s570_s10 }
  0x10   : > { %s752_s21 = scalar_lea.vmem %s820_s0, %s577_s9 }
  0x11 LB: >> { %v349_v11 = vunpack.c.l.b16 %v736_v8  ;;  %s575_s26 = sshll.u32 %s648_s25, 3  ;;  %vm362_vm0 = vcmask 1043456   ;;  %s650_s28 = smov 16   ;;  %v565_v44 = vor.u32 %v731_v7, %v726_v6  ;;  %v561_v45 = vor.u32 %v721_v5, %v714_v4  ;;  %s648_s25 = sphi %s762_s25, %s230_s25   ;;  %v644_v10 = vphi %v760_v10, %v826_v10   ;;  %v640_v9 = vphi %v758_v9, %v825_v9  }
  0x12   : >> { %s776_s27 = scalar_lea.vmem %s752_s21, %s575_s26  ;;  %s651_s29 = smov 24   ;;  %v557_v46 = vor.u32 %v709_v3, %v704_v2  ;;  %v553_v47 = vor.u32 %v699_v1, %v694_v0  ;;  %vm307_vm1 = vcmask 64512   ;;  %vm311_vm2 = vcmask 130048  }
  0x13   : >> { %v354_v12 = vpack.c.b16 %v349_v11, %v349_v11  ;;  %v548_v13 = vld [vmem:[%s776_s27] sm:$0xf]  ;;  %v576_v14 = vld [vmem:[%s776_s27] sm:$0x10]  ;;  %v541_v15 = vld [vmem:[%s776_s27 + $0x8] sm:$0xf] }
  0x14   : >> { %v549_v16 = vor.u32 %v576_v14, %v548_v13  ;;  %v542_v17 = vld [vmem:[%s776_s27 + $0xc] sm:$0x1]  ;;  %v268_v18 = vunpack.c.l.b16 %v541_v15  ;;  %v544_v19 = vld [vmem:[%s776_s27 + $0x10] sm:$0xf]  ;;  %v545_v20 = vld [vmem:[%s776_s27 + $0x14] sm:$0x1] }
  0x15   : >> { %v273_v21 = vunpack.c.l.b16 %v542_v17  ;;  %v288_v22 = vunpack.c.l.b16 %v544_v19  ;;  %v293_v23 = vunpack.c.l.b16 %v545_v20  ;;  %v364_v24 = vsel %vm362_vm0, %v354_v12, 0  ;;  %s652_s30 = smov 40   ;;  %s653_s5 = smov 8   ;;  %v236_v51 = vld [vmem:[%s776_s27] sm:$0xf] }
  0x16   : >> { %v264_v25 = vrot.slane %v549_v16, 1  ;;  %v269_v26 = vpack.c.b16 %v268_v18, %v268_v18  ;;  %v258_v27 = vshll.u32 %v549_v16, 16  ;;  %369 = vmatpush.bf16.msra.mxu0 %v364_v24  ;;  %v256_v29 = vshrl.u32 %v549_v16, 16  ;;  %s654_s6 = smov 32   ;;  %s655_s7 = smov 48  }
  0x17   : >> { %v274_v28 = vpack.c.b16 %v273_v21, %v268_v18  ;;  %v294_v31 = vpack.c.b16 %v293_v23, %v288_v22  ;;  %v289_v41 = vpack.c.b16 %v288_v22, %v288_v22  ;;  %s656_s8 = smov 56   ;;  %s657_s9 = smov 64   ;;  %vm314_vm3 = vcmask 195584  }
  0x18   : >> { %265 = vrot.lane.b32.xlu0 %v264_v25, %s650_s28  ;;  %270 = vrot.lane.b32.xlu1 %v269_v26, %s651_s29  ;;  %v260_v30 = vrot.slane %v258_v27, 1  ;;  %vm317_vm4 = vcmask 261120   ;;  %vm320_vm5 = vcmask 326656   ;;  %vm323_vm6 = vcmask 392192   ;;  %s567_s10 = sshll.u32 %s648_s25, 2  ;;  %s230_s25 = sadd.s32 1, %s648_s25  }
  0x19   : >> { %v276_v32 = vshrl.u32 %v274_v28, 16  ;;  %v278_v33 = vshll.u32 %v274_v28, 16  ;;  %v284_v34 = vrot.slane %v274_v28, 1  ;;  %v298_v37 = vshll.u32 %v294_v31, 16  ;;  %s381_s11 = scalar_lea.vmem %s743_s13, %s567_s10  ;;  %p227_p4 = scmp.ge.s32.totalorder %s230_s25, 16  }
  0x1a   : >> { %v261_v36 = vor.u32 %v260_v30, %v256_v29  ;;  %v296_v39 = vshrl.u32 %v294_v31, 16  ;;  %v304_v43 = vrot.slane %v294_v31, 1  ;;  %370 = vmatpush.bf16.msra.mxu0 %v565_v44  ;;  %vm326_vm7 = vcmask 457728  }
  0x1b   : >> { %v280_v35 = vrot.slane %v278_v33, 1  ;;  %285 = vrot.lane.b32.xlu2 %v284_v34, %s652_s30  ;;  %v300_v40 = vrot.slane %v298_v37, 1  ;;  %vm329_vm8 = vcmask 523264   ;;  %vm359_vm9 = vcmask 588800  }
  0x1c   : >> { %vm382_vm10 = vcmask 60416   ;;  %vm401_vm11 = vcmask (%p227_p4), 57344  }
  0x1d   : >> { %v281_v38 = vor.u32 %v280_v35, %v276_v32  ;;  %v301_v42 = vor.u32 %v300_v40, %v296_v39 }
  0x1e   : >> { %371 = vmatpush.bf16.msra.mxu0 %v561_v45 }
  0x20   : >> { %262 = vrot.lane.b32.xlu0 %v261_v36, %s653_s5  ;;  %282 = vrot.lane.b32.xlu1 %v281_v38, %s654_s6 }
  0x22   : >> { %372 = vmatpush.bf16.msra.mxu0 %v557_v46 }
  0x23   : >> { %290 = vrot.lane.b32.xlu2 %v289_v41, %s655_s7 }
  0x26   : >> { %373 = vmatpush.bf16.msra.mxu0 %v553_v47 }
  0x28   : >> { %302 = vrot.lane.b32.xlu0 %v301_v42, %s656_s8  ;;  %305 = vrot.lane.b32.xlu1 %v304_v43, %s657_s9 }
  0x75   : >> { %v286_v50 = vpop.permute.xlu2 %285 }
  0x7d   : >> { %v291_v58 = vpop.permute.xlu2 %290 }
  0x8a   : >> { %v266_v48 = vpop.permute.xlu0 %265  ;;  %v271_v49 = vpop.permute.xlu1 %270 }
  0x92   : >> { %v263_v52 = vpop.permute.xlu0 %262  ;;  %v283_v53 = vpop.permute.xlu1 %282 }
  0x93   : >> { %v310_v54 = vsel %vm307_vm1, %v236_v51, %v263_v52 }
  0x94   : >> { %v313_v55 = vsel %vm311_vm2, %v310_v54, %v266_v48 }
  0x95   : >> { %v316_v56 = vsel %vm314_vm3, %v313_v55, %v271_v49 }
  0x96   : >> { %v319_v57 = vsel %vm317_vm4, %v316_v56, %v283_v53 }
  0x97   : >> { %v322_v59 = vsel %vm320_vm5, %v319_v57, %v286_v50 }
  0x98   : >> { %v325_v60 = vsel %vm323_vm6, %v322_v59, %v291_v58 }
  0x9a   : >> { %v303_v61 = vpop.permute.xlu0 %302  ;;  %v306_v62 = vpop.permute.xlu1 %305 }
  0x9b   : >> { %v328_v63 = vsel %vm326_vm7, %v325_v60, %v303_v61 }
  0x9c   : >> { %v331_v11 = vsel %vm329_vm8, %v328_v63, %v306_v62 }
  0x9d   : >> { %566 = vmatmul.msk.bf16.vlgmr.msra.gmra.mxu0 %vm359_vm9, %v331_v11 }
 0x11a   : >> { %v375_v12 = vpop.f32.mrf.mxu0 }
 0x11b   : >> { %v379_v13 = vpack.c.bf16 %v375_v12, %v375_v12  ;;  %v384_v14 = vsel %vm307_vm1, %v375_v12, 0.0  ;;  %v392_v15 = vmul.f32 %v375_v12, %v375_v12 }
 0x11c   : >> { %v385_v16 = vrot.slane %v384_v14, 4 }
 0x11d   : >> { %383 = vst.msk [vmem:[%s381_s11] sm:$0xf] %vm382_vm10, %v379_v13  ;;  %v393_v17 = vsel %vm307_vm1, %v392_v15, 0.0 }
 0x11e   : >> { %v386_v18 = vadd.f32 %v385_v16, %v384_v14  ;;  %v394_v19 = vrot.slane %v393_v17, 4 }
 0x120   : >> { %v387_v20 = vrot.slane %v386_v18, 2  ;;  %v395_v21 = vadd.f32 %v394_v19, %v393_v17 }
 0x122   : >> { %v388_v22 = vadd.f32 %v387_v20, %v386_v18  ;;  %v396_v23 = vrot.slane %v395_v21, 2  ;;  %v377_v24 = vpop.f32.mrf.mxu0 }
 0x124   : >> { %v389_v25 = vrot.slane %v388_v22, 1  ;;  %v397_v26 = vadd.f32 %v396_v23, %v395_v21 }
 0x126   : >> { %v390_v27 = vadd.f32 %v389_v25, %v388_v22  ;;  %v398_v28 = vrot.slane %v397_v26, 1 }
 0x128   : >> { %v391_v29 = vadd.f32 %v644_v10, %v390_v27   ;;  %v399_v30 = vadd.f32 %v398_v28, %v397_v26  ;;  %229 = sbr.rel (!%p227_p4) target bundleno = 17 (0x11), region = 93 }
 0x12a   : >> { %v400_v31 = vadd.f32 %v640_v9, %v399_v30   ;;  %v826_v10 = vmov %v391_v29  ;;  %402 = vst.msk [vmem:[%s211_s18] sm:$0x1] (%p227_p4), %vm401_vm11, %v391_v29 }
 0x12c   : >> { %v825_v9 = vmov %v400_v31  ;;  %403 = vst.msk [vmem:[%s214_s24] sm:$0x1] (%p227_p4), %vm401_vm11, %v400_v31 }
 0x12d PF: > { %s15_s15 = sadd.s32 1, %s636_s15  }
 0x12e   : > { %p12_p5 = scmp.ge.s32.totalorder %s15_s15, 4  }
 0x130   :  { %14 = sbr.rel (!%p12_p5) target bundleno = 1 (0x1), region = 104 }

// kernel: resnet_forward.53
= control target key start
LH: loop header
LB: loop body
LE: loop exit
PB: predicated region body
PF: predicated region fallthrough
CT: control target
= control target key end

     0   :  { %s500_s15 = smov 0   ;;  %s556_s0 = inlined_call_operand.vmem [shape: bf16[2,8,4,8], index: 0, kind: input, shape index: {}]   ;;  %s557_s1 = inlined_call_operand.vmem [shape: bf16[8,16], index: 1, kind: input, shape index: {}]   ;;  %s558_s2 = inlined_call_operand.vmem [shape: bf16[2,8,4,16], index: 2, kind: output, shape index: {0}]   ;;  %s559_s3 = inlined_call_operand.vmem [shape: f32[2,1,16], index: 3, kind: output, shape index: {1}]   ;;  %s560_s4 = inlined_call_operand.vmem [shape: f32[2,1,16], index: 4, kind: output, shape index: {2}]  }
   0x1 LB: > { %s395_s16 = sadd.s32 4294967295, %s461_s15   ;;  %p399_p0 = scmp.ge.s32.totalorder %s461_s15, 1  ;;  %s461_s15 = sphi %s500_s15, %s15_s15  }
   0x2   : > { %p167_p1 = scmp.lt.s32.totalorder %s461_s15, 3 }
   0x4   : > { %p168_p2 = pnand %p399_p0, %p167_p1 }
   0x5   : > { %p199_p3 = scmp.lt.s32.totalorder (!%p168_p2), %s395_s16, 1  ;;  %s532_s6 = smov (!%p168_p2), 0  }
   0x6   : > { %171 = sbr.rel (%p168_p2) target bundleno = 164 (0xa4), region = 28 }
   0xb   : > { %v216_v0 = vld [vmem:[%s557_s1] sm:$0xf]  ;;  %s562_s16 = smov (!%p199_p3, %s395_s16), 1  ;;  %v463_v1 = vmov 0.0   ;;  %v467_v2 = vmov 0.0  }
   0xc   : > { %s409_s19 = sshll.u32 %s562_s16, 4  ;;  %s211_s22 = scalar_lea.vmem %s559_s3, %s562_s16 }
   0xd   : > { %s521_s25 = scalar_lea.vmem %s556_s0, %s409_s19  ;;  %s526_s28 = scalar_lea.vmem %s558_s2, %s409_s19 }
   0xe   : > { %s214_s5 = scalar_lea.vmem %s560_s4, %s562_s16 }
   0xf LB: >> { %vm232_vm0 = vcmask 1043456   ;;  %s404_s7 = sshll.u32 %s473_s6, 1  ;;  %vm228_vm1 = vcmask 64512   ;;  %vm254_vm2 = vcmask 125952   ;;  %vm252_vm3 = vcmask 123904   ;;  %s222_s6 = sadd.s32 1, %s473_s6   ;;  %s473_s6 = sphi %s532_s6, %s222_s6   ;;  %v469_v2 = vphi %v467_v2, %v468_v2   ;;  %v465_v1 = vphi %v463_v1, %v464_v1  }
  0x10   : >> { %v234_v3 = vsel %vm232_vm0, %v216_v0, 0  ;;  %s226_s8 = scalar_lea.vmem %s521_s25, %s404_s7  ;;  %s251_s9 = scalar_lea.vmem %s526_s28, %s404_s7 }
  0x11   : >> { %243 = vmatpush.bf16.msra.mxu0 %v234_v3  ;;  %v227_v4 = vld [vmem:[%s226_s8] sm:$0x3]  ;;  %p219_p4 = scmp.ge.s32.totalorder %s222_s6, 8  }
  0x12   : > { %vm272_vm4 = vcmask (%p219_p4), 122880  }
  0x14   : >> { %405 = vmatmul.msk.bf16.vlgmr.msra.gmra.mxu0 %vm228_vm1, %v227_v4 }
  0x91   : >> { %v245_v5 = vpop.f32.mrf.mxu0 }
  0x92   : >> { %v249_v6 = vpack.c.bf16 %v245_v5, %v245_v5  ;;  %v255_v7 = vsel %vm254_vm2, %v245_v5, 0.0  ;;  %v263_v8 = vmul.f32 %v245_v5, %v245_v5 }
  0x93   : >> { %v256_v9 = vrot.slane %v255_v7, 4 }
  0x94   : >> { %253 = vst.msk [vmem:[%s251_s9] sm:$0x3] %vm252_vm3, %v249_v6  ;;  %v264_v10 = vsel %vm254_vm2, %v263_v8, 0.0 }
  0x95   : >> { %v257_v11 = vadd.f32 %v256_v9, %v255_v7  ;;  %v265_v12 = vrot.slane %v264_v10, 4 }
  0x97   : >> { %v258_v13 = vrot.slane %v257_v11, 2  ;;  %v266_v14 = vadd.f32 %v265_v12, %v264_v10 }
  0x99   : >> { %v259_v15 = vadd.f32 %v258_v13, %v257_v11  ;;  %v267_v16 = vrot.slane %v266_v14, 2  ;;  %v247_v17 = vpop.f32.mrf.mxu0 }
  0x9b   : >> { %v260_v18 = vrot.slane %v259_v15, 1  ;;  %v268_v19 = vadd.f32 %v267_v16, %v266_v14 }
  0x9d   : >> { %v261_v20 = vadd.f32 %v260_v18, %v259_v15  ;;  %v269_v21 = vrot.slane %v268_v19, 1 }
  0x9f   : >> { %v262_v22 = vadd.f32 %v469_v2, %v261_v20   ;;  %v270_v23 = vadd.f32 %v269_v21, %v268_v19  ;;  %221 = sbr.rel (!%p219_p4) target bundleno = 15 (0xf), region = 91 }
  0xa1   : >> { %v271_v24 = vadd.f32 %v465_v1, %v270_v23   ;;  %v468_v2 = vmov %v262_v22   ;;  %273 = vst.msk [vmem:[%s211_s22] sm:$0x1] (%p219_p4), %vm272_vm4, %v262_v22 }
  0xa3   : >> { %v464_v1 = vmov %v271_v24   ;;  %274 = vst.msk [vmem:[%s214_s5] sm:$0x1] (%p219_p4), %vm272_vm4, %v271_v24 }
  0xa4 PF: > { %s15_s15 = sadd.s32 1, %s461_s15  }
  0xa5   : > { %p12_p5 = scmp.ge.s32.totalorder %s15_s15, 4  }
  0xa7   :  { %14 = sbr.rel (!%p12_p5) target bundleno = 1 (0x1), region = 102 }

// kernel: tile.168
= control target key start
LH: loop header
LB: loop body
LE: loop exit
PB: predicated region body
PF: predicated region fallthrough
CT: control target
= control target key end

     0   :  { %s22_s0 = inlined_call_operand.vmem [shape: f32[16], index: 0, kind: input, shape index: {}]   ;;  %s23_s1 = inlined_call_operand.vmem [shape: f32[8,16], index: 1, kind: output, shape index: {}]  }
   0x1   :  { %v4_v0 = vld [vmem:[%s22_s0] ss:$0 sm:$0xff] }
   0x2   :  { %5 = vst [vmem:[%s23_s1] sm:$0xff] %v4_v0 }

// kernel: tile.169
= control target key start
LH: loop header
LB: loop body
LE: loop exit
PB: predicated region body
PF: predicated region fallthrough
CT: control target
= control target key end

     0   :  { %s67_s10 = smov 112   ;;  %s68_s11 = smov 80   ;;  %vm3_vm0 = vcmask 130048   ;;  %vm9_vm1 = vcmask 1048448   ;;  %vm15_vm2 = vcmask 917248   ;;  %vm21_vm3 = vcmask 786048   ;;  %s111_s0 = inlined_call_operand.vmem [shape: f32[8,16], index: 0, kind: input, shape index: {}]   ;;  %s112_s1 = inlined_call_operand.vmem [shape: f32[1,128], index: 1, kind: output, shape index: {}]  }
   0x1   :  { %v53_v0 = vld [vmem:[%s111_s0 + $0x7] sm:$0x1]   ;;  %v55_v1 = vld [vmem:[%s111_s0 + $0x5] sm:$0x1]   ;;  %v57_v2 = vld [vmem:[%s111_s0 + $0x3] sm:$0x1]  }
   0x2   :  { %7 = vrot.lane.b32.xlu0 %v53_v0, %s67_s10  ;;  %19 = vrot.lane.b32.xlu1 %v55_v1, %s68_s11  ;;  %s69_s14 = smov 48   ;;  %v54_v3 = vld [vmem:[%s111_s0 + $0x6] sm:$0x1]   ;;  %v56_v4 = vld [vmem:[%s111_s0 + $0x4] sm:$0x1]   ;;  %s70_s21 = smov 96  }
   0x3   :  { %31 = vrot.lane.b32.xlu2 %v57_v2, %s69_s14  ;;  %v58_v5 = vld [vmem:[%s111_s0 + $0x2] sm:$0x1]   ;;  %s71_s22 = smov 64   ;;  %s72_s23 = smov 32   ;;  %v59_v6 = vld [vmem:[%s111_s0 + $0x1] sm:$0x1]  }
   0x4   :  { %s73_s26 = smov 16   ;;  %v2_v7 = vld [vmem:[%s111_s0] sm:$0x1]   ;;  %vm27_vm4 = vcmask 654848   ;;  %vm33_vm5 = vcmask 523648   ;;  %vm39_vm6 = vcmask 392448  }
   0x5   :  { %4 = vst.msk [vmem:[#allocation0] sm:$0x1] %vm3_vm0, %v2_v7   ;;  %vm45_vm7 = vcmask 261248  }
   0xa   :  { %13 = vrot.lane.b32.xlu0 %v54_v3, %s70_s21  ;;  %25 = vrot.lane.b32.xlu1 %v56_v4, %s71_s22 }
   0xb   :  { %37 = vrot.lane.b32.xlu2 %v58_v5, %s72_s23 }
  0x12   :  { %43 = vrot.lane.b32.xlu0 %v59_v6, %s73_s26 }
  0x5d   :  { %v32_v8 = vpop.permute.xlu2 %31  }
  0x65   :  { %v38_v9 = vpop.permute.xlu2 %37  }
  0x74   :  { %v8_v10 = vpop.permute.xlu0 %7   ;;  %v20_v11 = vpop.permute.xlu1 %19  }
  0x75   :  { %10 = vst.msk [vmem:[#allocation0] sm:$0x1] %vm9_vm1, %v8_v10  }
  0x7c   :  { %v14_v12 = vpop.permute.xlu0 %13   ;;  %v26_v13 = vpop.permute.xlu1 %25  }
  0x7d   :  { %16 = vst.msk [vmem:[#allocation0] sm:$0x1] %vm15_vm2, %v14_v12  }
  0x7e   :  { %22 = vst.msk [vmem:[#allocation0] sm:$0x1] %vm21_vm3, %v20_v11  }
  0x7f   :  { %28 = vst.msk [vmem:[#allocation0] sm:$0x1] %vm27_vm4, %v26_v13  }
  0x80   :  { %34 = vst.msk [vmem:[#allocation0] sm:$0x1] %vm33_vm5, %v32_v8  }
  0x81   :  { %40 = vst.msk [vmem:[#allocation0] sm:$0x1] %vm39_vm6, %v38_v9  }
  0x84   :  { %v44_v14 = vpop.permute.xlu0 %43  }
  0x85   :  { %46 = vst.msk [vmem:[#allocation0] sm:$0x1] %vm45_vm7, %v44_v14  }
  0x8c   :  { %v49_v15 = vld [vmem:[#allocation0] sm:$0x1] }
  0x8d   :  { %52 = vst [vmem:[%s112_s1] sm:$0x1] %v49_v15 }

// kernel: resnet_forward.52
= control target key start
LH: loop header
LB: loop body
LE: loop exit
PB: predicated region body
PF: predicated region fallthrough
CT: control target
= control target key end

     0   :  { %s330_s6 = smov 0   ;;  %s377_s0 = inlined_call_operand.vmem [shape: bf16[2,8,2,4,16], index: 0, kind: input, shape index: {}]   ;;  %s378_s1 = inlined_call_operand.vmem [shape: bf16[2,8,4,8], index: 1, kind: output, shape index: {}]  }
   0x1 LB: > { %s269_s7 = sadd.s32 4294967295, %s317_s6   ;;  %p273_p0 = scmp.ge.s32.totalorder %s317_s6, 1  ;;  %s317_s6 = sphi %s330_s6, %s11_s6  }
   0x2   : > { %p87_p1 = scmp.lt.s32.totalorder %s317_s6, 3 }
   0x4   : > { %p88_p2 = pnand %p273_p0, %p87_p1 }
   0x5   : > { %p107_p3 = scmp.lt.s32.totalorder (!%p88_p2), %s269_s7, 1  ;;  %s319_s12 = smov (!%p88_p2), 120  }
   0x6   : > { %91 = sbr.rel (%p88_p2) target bundleno = 155 (0x9b), region = 24 }
   0xb   : > { %s380_s7 = smov (!%p107_p3, %s269_s7), 1  ;;  %vm205_vm0 = vcmask 58368  }
   0xc   : > { %s280_s8 = sshll.u32 %s380_s7, 5  ;;  %s281_s13 = sshll.u32 %s380_s7, 4 }
   0xd   : > { %s344_s11 = scalar_lea.vmem %s377_s0, %s280_s8  ;;  %s116_s16 = scalar_lea.vmem %s378_s1, %s281_s13 }
   0xe   : > { %v125_v0 = vld [vmem:[%s344_s11 + $0x10] sm:$0x3]  ;;  %v126_v1 = vld [vmem:[%s344_s11 + $0x12] sm:$0x3]  ;;  %v127_v2 = vld [vmem:[%s344_s11 + $0x14] sm:$0x3] }
   0xf   : > { %v128_v3 = vld [vmem:[%s344_s11 + $0x16] sm:$0x3]  ;;  %v141_v4 = vunpack.c.l.bf16 %v125_v0  ;;  %v142_v5 = vunpack.c.l.bf16 %v126_v1  ;;  %v143_v6 = vunpack.c.l.bf16 %v127_v2  ;;  %v117_v7 = vld [vmem:[%s344_s11] sm:$0x3]  ;;  %v118_v8 = vld [vmem:[%s344_s11 + $0x2] sm:$0x3] }
  0x10   : > { %v144_v9 = vunpack.c.l.bf16 %v128_v3  ;;  %v119_v10 = vld [vmem:[%s344_s11 + $0x4] sm:$0x3]  ;;  %v120_v11 = vld [vmem:[%s344_s11 + $0x6] sm:$0x3]  ;;  %v133_v12 = vunpack.c.l.bf16 %v117_v7  ;;  %v134_v13 = vunpack.c.l.bf16 %v118_v8  ;;  %v129_v14 = vld [vmem:[%s344_s11 + $0x18] sm:$0x3] }
  0x11   : > { %v153_v15 = vmax.f32 %v141_v4, %v142_v5  ;;  %v135_v16 = vunpack.c.l.bf16 %v119_v10  ;;  %v136_v17 = vunpack.c.l.bf16 %v120_v11  ;;  %v130_v18 = vld [vmem:[%s344_s11 + $0x1a] sm:$0x3]  ;;  %v131_v19 = vld [vmem:[%s344_s11 + $0x1c] sm:$0x3]  ;;  %v132_v20 = vld [vmem:[%s344_s11 + $0x1e] sm:$0x3]  ;;  %v145_v21 = vunpack.c.l.bf16 %v129_v14 }
  0x12   : > { %v154_v22 = vmax.f32 %v143_v6, %v144_v9  ;;  %v149_v23 = vmax.f32 %v133_v12, %v134_v13  ;;  %v146_v24 = vunpack.c.l.bf16 %v130_v18  ;;  %v147_v25 = vunpack.c.l.bf16 %v131_v19  ;;  %v121_v26 = vld [vmem:[%s344_s11 + $0x8] sm:$0x3]  ;;  %v122_v27 = vld [vmem:[%s344_s11 + $0xa] sm:$0x3]  ;;  %v123_v28 = vld [vmem:[%s344_s11 + $0xc] sm:$0x3] }
  0x13   : > { %v150_v29 = vmax.f32 %v135_v16, %v136_v17  ;;  %v148_v30 = vunpack.c.l.bf16 %v132_v20  ;;  %v124_v31 = vld [vmem:[%s344_s11 + $0xe] sm:$0x3]  ;;  %v137_v32 = vunpack.c.l.bf16 %v121_v26  ;;  %v138_v33 = vunpack.c.l.bf16 %v122_v27 }
  0x14   : > { %v301_v34 = vpack.i.bf16 %v154_v22, %v153_v15  ;;  %v139_v35 = vunpack.c.l.bf16 %v123_v28  ;;  %v140_v36 = vunpack.c.l.bf16 %v124_v31  ;;  %v155_v38 = vmax.f32 %v145_v21, %v146_v24 }
  0x15   : > { %v291_v37 = vpack.i.bf16 %v150_v29, %v149_v23  ;;  %v156_v39 = vmax.f32 %v147_v25, %v148_v30  ;;  %v151_v40 = vmax.f32 %v137_v32, %v138_v33 }
  0x16   : > { %302 = vrot.lane.b32.xlu1 %v301_v34, %s319_s12  ;;  %v152_v41 = vmax.f32 %v139_v35, %v140_v36 }
  0x17   : > { %292 = vrot.lane.b32.xlu0 %v291_v37, %s319_s12  ;;  %v306_v42 = vpack.i.bf16 %v156_v39, %v155_v38 }
  0x18   : > { %v296_v43 = vpack.i.bf16 %v152_v41, %v151_v40 }
  0x1e   : > { %307 = vrot.lane.b32.xlu1 %v306_v42, %s319_s12 }
  0x1f   : > { %297 = vrot.lane.b32.xlu0 %v296_v43, %s319_s12 }
  0x88   : > { %v303_v44 = vpop.permute.xlu1 %302 }
  0x89   : > { %v305_v45 = vunpack.i.h.bf16 %v303_v44  ;;  %v304_v46 = vunpack.i.l.bf16 %v303_v44  ;;  %v293_v47 = vpop.permute.xlu0 %292 }
  0x8a   : > { %v295_v48 = vunpack.i.h.bf16 %v293_v47  ;;  %v294_v49 = vunpack.i.l.bf16 %v293_v47 }
  0x8b   : > { %v194_v50 = vmax.f32 %v154_v22, %v305_v45  ;;  %v193_v51 = vmax.f32 %v153_v15, %v304_v46 }
  0x8c   : > { %v190_v52 = vmax.f32 %v150_v29, %v295_v48  ;;  %v189_v53 = vmax.f32 %v149_v23, %v294_v49 }
  0x8d   : > { %v202_v54 = vpack.c.bf16 %v194_v50, %v194_v50  ;;  %v201_v55 = vpack.c.bf16 %v193_v51, %v193_v51 }
  0x8e   : > { %v198_v56 = vpack.c.bf16 %v190_v52, %v190_v52  ;;  %v197_v57 = vpack.c.bf16 %v189_v53, %v189_v53 }
  0x8f   : > { %211 = vst.msk [vmem:[%s116_s16 + $0xa] sm:$0x3] %vm205_vm0, %v202_v54 }
  0x90   : > { %210 = vst.msk [vmem:[%s116_s16 + $0x8] sm:$0x3] %vm205_vm0, %v201_v55  ;;  %v308_v58 = vpop.permute.xlu1 %307 }
  0x91   : > { %207 = vst.msk [vmem:[%s116_s16 + $0x2] sm:$0x3] %vm205_vm0, %v198_v56  ;;  %v310_v59 = vunpack.i.h.bf16 %v308_v58  ;;  %v309_v60 = vunpack.i.l.bf16 %v308_v58  ;;  %v298_v61 = vpop.permute.xlu0 %297 }
  0x92   : > { %206 = vst.msk [vmem:[%s116_s16] sm:$0x3] %vm205_vm0, %v197_v57  ;;  %v300_v62 = vunpack.i.h.bf16 %v298_v61  ;;  %v299_v63 = vunpack.i.l.bf16 %v298_v61 }
  0x93   : > { %v196_v0 = vmax.f32 %v156_v39, %v310_v59  ;;  %v195_v1 = vmax.f32 %v155_v38, %v309_v60 }
  0x94   : > { %v192_v2 = vmax.f32 %v152_v41, %v300_v62  ;;  %v191_v3 = vmax.f32 %v151_v40, %v299_v63 }
  0x95   : > { %v204_v4 = vpack.c.bf16 %v196_v0, %v196_v0  ;;  %v203_v5 = vpack.c.bf16 %v195_v1, %v195_v1 }
  0x96   : > { %v200_v6 = vpack.c.bf16 %v192_v2, %v192_v2  ;;  %v199_v7 = vpack.c.bf16 %v191_v3, %v191_v3 }
  0x97   : > { %213 = vst.msk [vmem:[%s116_s16 + $0xe] sm:$0x3] %vm205_vm0, %v204_v4 }
  0x98   : > { %212 = vst.msk [vmem:[%s116_s16 + $0xc] sm:$0x3] %vm205_vm0, %v203_v5 }
  0x99   : > { %209 = vst.msk [vmem:[%s116_s16 + $0x6] sm:$0x3] %vm205_vm0, %v200_v6 }
  0x9a   : > { %208 = vst.msk [vmem:[%s116_s16 + $0x4] sm:$0x3] %vm205_vm0, %v199_v7 }
  0x9b PF: > { %s11_s6 = sadd.s32 1, %s317_s6  }
  0x9c   : > { %p8_p4 = scmp.ge.s32.totalorder %s11_s6, 4  }
  0x9e   :  { %10 = sbr.rel (!%p8_p4) target bundleno = 1 (0x1), region = 54 }

// kernel: resnet_forward.54
= control target key start
LH: loop header
LB: loop body
LE: loop exit
PB: predicated region body
PF: predicated region fallthrough
CT: control target
= control target key end

     0   :  { %s66_s0 = inlined_call_operand.vmem [shape: bf16[8,128], index: 0, kind: input, shape index: {}]   ;;  %s67_s1 = inlined_call_operand.vmem [shape: f32[1,128], index: 1, kind: input, shape index: {}]   ;;  %s68_s2 = inlined_call_operand.vmem [shape: f32[1,128], index: 2, kind: input, shape index: {}]   ;;  %s69_s3 = inlined_call_operand.vmem [shape: bf16[8,128], index: 3, kind: output, shape index: {}]  }
   0x1   :  { %v14_v0 = vld [vmem:[%s66_s0] sm:$0xf] }
   0x2   :  { %v32_v1 = vld [vmem:[%s67_s1] ss:$0 sm:$0xff]  ;;  %v15_v2 = vunpack.c.l.bf16 %v14_v0 }
   0x3   :  { %v33_v3 = vld [vmem:[%s68_s2] ss:$0 sm:$0xff] }
   0x4   :  { %v20_v4 = vmul.f32 %v32_v1, %v15_v2 }
   0x6   :  { %v25_v5 = vadd.f32 %v33_v3, %v20_v4 }
   0x8   :  { %v26_v6 = vpack.c.bf16 %v25_v5, %v25_v5 }
   0xa   :  { %27 = vst [vmem:[%s69_s3] sm:$0xf] %v26_v6 }

// kernel: resnet_forward.56
= control target key start
LH: loop header
LB: loop body
LE: loop exit
PB: predicated region body
PF: predicated region fallthrough
CT: control target
= control target key end

     0   :  { %s67_s0 = inlined_call_operand.vmem [shape: bf16[8,128], index: 0, kind: input, shape index: {}]   ;;  %s68_s1 = inlined_call_operand.vmem [shape: f32[1,128], index: 1, kind: input, shape index: {}]   ;;  %s69_s2 = inlined_call_operand.vmem [shape: f32[1,128], index: 2, kind: input, shape index: {}]   ;;  %s70_s3 = inlined_call_operand.vmem [shape: bf16[8,128], index: 3, kind: output, shape index: {}]  }
   0x1   :  { %v14_v0 = vld [vmem:[%s67_s0] sm:$0xf] }
   0x2   :  { %v33_v1 = vld [vmem:[%s68_s1] ss:$0 sm:$0xff]  ;;  %v15_v2 = vunpack.c.l.bf16 %v14_v0 }
   0x3   :  { %v34_v3 = vld [vmem:[%s69_s2] ss:$0 sm:$0xff] }
   0x4   :  { %v20_v4 = vmul.f32 %v33_v1, %v15_v2 }
   0x6   :  { %v25_v5 = vadd.f32 %v34_v3, %v20_v4 }
   0x8   :  { %v26_v6 = vmax.f32 %v25_v5, 0.0 }
   0xa   :  { %v27_v7 = vpack.c.bf16 %v26_v6, %v26_v6 }
   0xc   :  { %28 = vst [vmem:[%s70_s3] sm:$0xf] %v27_v7 }

// kernel: resnet_forward.55
= control target key start
LH: loop header
LB: loop body
LE: loop exit
PB: predicated region body
PF: predicated region fallthrough
CT: control target
= control target key end

     0   :  { %s661_s15 = smov 0   ;;  %s786_s0 = inlined_call_operand.vmem [shape: bf16[2,10,6,8], index: 0, kind: input, shape index: {}]   ;;  %s787_s1 = inlined_call_operand.vmem [shape: bf16[72,16], index: 1, kind: input, shape index: {}]   ;;  %s788_s2 = inlined_call_operand.vmem [shape: bf16[2,8,4,16], index: 2, kind: output, shape index: {0}]   ;;  %s789_s3 = inlined_call_operand.vmem [shape: f32[2,1,16], index: 3, kind: output, shape index: {1}]   ;;  %s790_s4 = inlined_call_operand.vmem [shape: f32[2,1,16], index: 4, kind: output, shape index: {2}]  }
   0x1 LB: > { %s517_s16 = sadd.s32 4294967295, %s614_s15   ;;  %p521_p0 = scmp.ge.s32.totalorder %s614_s15, 1  ;;  %s614_s15 = sphi %s661_s15, %s15_s15  }
   0x2   : > { %p167_p1 = scmp.lt.s32.totalorder %s614_s15, 3 }
   0x4   : > { %p168_p2 = pnand %p521_p0, %p167_p1 }
   0x5   : > { %p199_p3 = scmp.lt.s32.totalorder (!%p168_p2), %s517_s16, 1  ;;  %s740_s25 = smov (!%p168_p2), 0  }
   0x6   : > { %171 = sbr.rel (%p168_p2) target bundleno = 303 (0x12f), region = 28 }
   0xb   : > { %v672_v0 = vld [vmem:[%s787_s1] sm:$0xf]  ;;  %v677_v1 = vld [vmem:[%s787_s1] sm:$0xf0]  ;;  %v682_v2 = vld [vmem:[%s787_s1 + $0x8] sm:$0xf] }
   0xc   : > { %v687_v3 = vld [vmem:[%s787_s1 + $0x8] sm:$0xf0]  ;;  %v692_v4 = vld [vmem:[%s787_s1 + $0x10] sm:$0xf]  ;;  %s794_s16 = smov (!%p199_p3, %s517_s16), 1  ;;  %v736_v9 = vmov 0.0  }
   0xd   : > { %v699_v5 = vld [vmem:[%s787_s1 + $0x10] sm:$0xf0]  ;;  %v704_v6 = vld [vmem:[%s787_s1 + $0x18] sm:$0xf]  ;;  %v709_v7 = vld [vmem:[%s787_s1 + $0x18] sm:$0xf0]  ;;  %s211_s18 = scalar_lea.vmem %s789_s3, %s794_s16  ;;  %s214_s24 = scalar_lea.vmem %s790_s4, %s794_s16 }
   0xe   : > { %v714_v8 = vld [vmem:[%s787_s1 + $0x20] sm:$0xf]  ;;  %s555_s9 = smul.u32 40, %s794_s16  ;;  %s550_s10 = sshll.u32 %s794_s16, 4  ;;  %v738_v10 = vmov 0.0  }
   0xf   : > { %s721_s13 = scalar_lea.vmem %s788_s2, %s550_s10 }
  0x10   : > { %s730_s21 = scalar_lea.vmem %s786_s0, %s555_s9 }
  0x11 LB: >> { %v335_v11 = vunpack.c.l.b16 %v714_v8  ;;  %s525_s26 = sshll.u32 %s626_s25, 2  ;;  %vm348_vm0 = vcmask 1043456   ;;  %s628_s28 = smov 24   ;;  %v545_v38 = vor.u32 %v709_v7, %v704_v6  ;;  %v541_v39 = vor.u32 %v699_v5, %v692_v4  ;;  %s626_s25 = sphi %s740_s25, %s230_s25   ;;  %v622_v10 = vphi %v738_v10, %v792_v10   ;;  %v618_v9 = vphi %v736_v9, %v791_v9  }
  0x12   : >> { %s234_s27 = scalar_lea.vmem %s730_s21, %s525_s26  ;;  %s629_s29 = smov 16   ;;  %v537_v40 = vor.u32 %v687_v3, %v682_v2  ;;  %v533_v41 = vor.u32 %v677_v1, %v672_v0  ;;  %vm293_vm1 = vcmask 64512   ;;  %vm297_vm2 = vcmask 130048  }
  0x13   : >> { %v340_v12 = vpack.c.b16 %v335_v11, %v335_v11  ;;  %v235_v13 = vld [vmem:[%s234_s27] sm:$0x7]  ;;  %v529_v14 = vld [vmem:[%s234_s27 + $0x8] sm:$0x7]  ;;  %v527_v15 = vld [vmem:[%s234_s27 + $0x4] sm:$0x7] }
  0x14   : >> { %v245_v16 = vunpack.c.l.b16 %v235_v13  ;;  %v260_v17 = vunpack.c.l.b16 %v527_v15  ;;  %v277_v20 = vunpack.c.l.b16 %v529_v14  ;;  %s630_s30 = smov 40   ;;  %s631_s5 = smov 32   ;;  %vm300_vm3 = vcmask 195584  }
  0x15   : >> { %v350_v18 = vsel %vm348_vm0, %v340_v12, 0  ;;  %s632_s6 = smov 8   ;;  %s633_s7 = smov 48   ;;  %vm303_vm4 = vcmask 261120   ;;  %vm306_vm5 = vcmask 326656   ;;  %vm309_vm6 = vcmask 392192  }
  0x16   : >> { %355 = vmatpush.bf16.msra.mxu0 %v350_v18  ;;  %v246_v19 = vpack.c.b16 %v245_v16, %v245_v16  ;;  %v261_v21 = vpack.c.b16 %v260_v17, %v260_v17  ;;  %v278_v26 = vpack.c.b16 %v277_v20, %v277_v20  ;;  %s634_s8 = smov 64   ;;  %s635_s9 = smov 56   ;;  %vm312_vm7 = vcmask 457728  }
  0x17   : >> { %vm315_vm8 = vcmask 523264   ;;  %vm345_vm9 = vcmask 588800   ;;  %s547_s10 = sshll.u32 %s626_s25, 1  ;;  %vm370_vm10 = vcmask 125952   ;;  %vm368_vm11 = vcmask 123904   ;;  %s230_s25 = sadd.s32 1, %s626_s25  }
  0x18   : >> { %v256_v22 = vrot.slane %v246_v19, 1  ;;  %262 = vrot.lane.b32.xlu1 %v261_v21, %s628_s28  ;;  %v250_v23 = vshll.u32 %v246_v19, 16  ;;  %v265_v24 = vshrl.u32 %v261_v21, 16  ;;  %v267_v25 = vshll.u32 %v261_v21, 16  ;;  %s367_s11 = scalar_lea.vmem %s721_s13, %s547_s10  ;;  %p227_p4 = scmp.ge.s32.totalorder %s230_s25, 8  }
  0x19   : >> { %v248_v27 = vshrl.u32 %v246_v19, 16  ;;  %v273_v29 = vrot.slane %v261_v21, 1  ;;  %v284_v33 = vshll.u32 %v278_v26, 16  ;;  %v282_v34 = vshrl.u32 %v278_v26, 16 }
  0x1a   : >> { %257 = vrot.lane.b32.xlu0 %v256_v22, %s629_s29  ;;  %v252_v28 = vrot.slane %v250_v23, 1  ;;  %v269_v30 = vrot.slane %v267_v25, 1  ;;  %v290_v36 = vrot.slane %v278_v26, 1  ;;  %356 = vmatpush.bf16.msra.mxu0 %v545_v38  ;;  %vm388_vm12 = vcmask (%p227_p4), 122880  }
  0x1b   : >> { %274 = vrot.lane.b32.xlu2 %v273_v29, %s630_s30  ;;  %v286_v35 = vrot.slane %v284_v33, 1 }
  0x1c   : >> { %v270_v31 = vor.u32 %v269_v30, %v265_v24  ;;  %v253_v32 = vor.u32 %v252_v28, %v248_v27 }
  0x1d   : >> { %v287_v37 = vor.u32 %v286_v35, %v282_v34 }
  0x1e   : >> { %357 = vmatpush.bf16.msra.mxu0 %v541_v39 }
  0x20   : >> { %271 = vrot.lane.b32.xlu1 %v270_v31, %s631_s5 }
  0x22   : >> { %254 = vrot.lane.b32.xlu0 %v253_v32, %s632_s6  ;;  %358 = vmatpush.bf16.msra.mxu0 %v537_v40 }
  0x23   : >> { %279 = vrot.lane.b32.xlu2 %v278_v26, %s633_s7 }
  0x26   : >> { %359 = vmatpush.bf16.msra.mxu0 %v533_v41 }
  0x28   : >> { %291 = vrot.lane.b32.xlu1 %v290_v36, %s634_s8 }
  0x2a   : >> { %288 = vrot.lane.b32.xlu0 %v287_v37, %s635_s9 }
  0x75   : >> { %v275_v44 = vpop.permute.xlu2 %274 }
  0x7d   : >> { %v280_v51 = vpop.permute.xlu2 %279 }
  0x8a   : >> { %v263_v42 = vpop.permute.xlu1 %262 }
  0x8c   : >> { %v258_v43 = vpop.permute.xlu0 %257 }
  0x92   : >> { %v272_v45 = vpop.permute.xlu1 %271 }
  0x94   : >> { %v255_v46 = vpop.permute.xlu0 %254 }
  0x95   : >> { %v296_v47 = vsel %vm293_vm1, %v235_v13, %v255_v46 }
  0x96   : >> { %v299_v48 = vsel %vm297_vm2, %v296_v47, %v258_v43 }
  0x97   : >> { %v302_v49 = vsel %vm300_vm3, %v299_v48, %v263_v42 }
  0x98   : >> { %v305_v50 = vsel %vm303_vm4, %v302_v49, %v272_v45 }
  0x99   : >> { %v308_v52 = vsel %vm306_vm5, %v305_v50, %v275_v44 }
  0x9a   : >> { %v292_v53 = vpop.permute.xlu1 %291  ;;  %v311_v54 = vsel %vm309_vm6, %v308_v52, %v280_v51 }
  0x9c   : >> { %v289_v55 = vpop.permute.xlu0 %288 }
  0x9d   : >> { %v314_v56 = vsel %vm312_vm7, %v311_v54, %v289_v55 }
  0x9e   : >> { %v317_v57 = vsel %vm315_vm8, %v314_v56, %v292_v53 }
  0x9f   : >> { %546 = vmatmul.msk.bf16.vlgmr.msra.gmra.mxu0 %vm345_vm9, %v317_v57 }
 0x11c   : >> { %v361_v58 = vpop.f32.mrf.mxu0 }
 0x11d   : >> { %v365_v59 = vpack.c.bf16 %v361_v58, %v361_v58  ;;  %v371_v60 = vsel %vm370_vm10, %v361_v58, 0.0  ;;  %v379_v61 = vmul.f32 %v361_v58, %v361_v58 }
 0x11e   : >> { %v372_v62 = vrot.slane %v371_v60, 4 }
 0x11f   : >> { %369 = vst.msk [vmem:[%s367_s11] sm:$0x3] %vm368_vm11, %v365_v59  ;;  %v380_v63 = vsel %vm370_vm10, %v379_v61, 0.0 }
 0x120   : >> { %v373_v11 = vadd.f32 %v372_v62, %v371_v60  ;;  %v381_v12 = vrot.slane %v380_v63, 4 }
 0x122   : >> { %v374_v13 = vrot.slane %v373_v11, 2  ;;  %v382_v14 = vadd.f32 %v381_v12, %v380_v63 }
 0x124   : >> { %v375_v15 = vadd.f32 %v374_v13, %v373_v11  ;;  %v383_v16 = vrot.slane %v382_v14, 2  ;;  %v363_v17 = vpop.f32.mrf.mxu0 }
 0x126   : >> { %v376_v18 = vrot.slane %v375_v15, 1  ;;  %v384_v19 = vadd.f32 %v383_v16, %v382_v14 }
 0x128   : >> { %v377_v20 = vadd.f32 %v376_v18, %v375_v15  ;;  %v385_v21 = vrot.slane %v384_v19, 1 }
 0x12a   : >> { %v378_v22 = vadd.f32 %v622_v10, %v377_v20   ;;  %v386_v23 = vadd.f32 %v385_v21, %v384_v19  ;;  %229 = sbr.rel (!%p227_p4) target bundleno = 17 (0x11), region = 93 }
 0x12c   : >> { %v387_v24 = vadd.f32 %v618_v9, %v386_v23   ;;  %v792_v10 = vmov %v378_v22  ;;  %389 = vst.msk [vmem:[%s211_s18] sm:$0x1] (%p227_p4), %vm388_vm12, %v378_v22 }
 0x12e   : >> { %v791_v9 = vmov %v387_v24  ;;  %390 = vst.msk [vmem:[%s214_s24] sm:$0x1] (%p227_p4), %vm388_vm12, %v387_v24 }
 0x12f PF: > { %s15_s15 = sadd.s32 1, %s614_s15  }
 0x130   : > { %p12_p5 = scmp.ge.s32.totalorder %s15_s15, 4  }
 0x132   :  { %14 = sbr.rel (!%p12_p5) target bundleno = 1 (0x1), region = 104 }

// kernel: resnet_forward.58
= control target key start
LH: loop header
LB: loop body
LE: loop exit
PB: predicated region body
PF: predicated region fallthrough
CT: control target
= control target key end

     0   :  { %s81_s0 = inlined_call_operand.vmem [shape: bf16[8,128], index: 0, kind: input, shape index: {}]   ;;  %s82_s1 = inlined_call_operand.vmem [shape: f32[1,128], index: 1, kind: input, shape index: {}]   ;;  %s83_s2 = inlined_call_operand.vmem [shape: f32[1,128], index: 2, kind: input, shape index: {}]   ;;  %s84_s3 = inlined_call_operand.vmem [shape: bf16[8,128], index: 3, kind: input, shape index: {}]   ;;  %s85_s4 = inlined_call_operand.vmem [shape: bf16[8,128], index: 4, kind: output, shape index: {}]  }
   0x1   :  { %v17_v0 = vld [vmem:[%s81_s0] sm:$0xf] }
   0x2   :  { %v39_v1 = vld [vmem:[%s82_s1] ss:$0 sm:$0xff]  ;;  %v18_v2 = vunpack.c.l.bf16 %v17_v0 }
   0x3   :  { %v40_v3 = vld [vmem:[%s83_s2] ss:$0 sm:$0xff] }
   0x4   :  { %v29_v4 = vld [vmem:[%s84_s3] sm:$0xf]  ;;  %v23_v5 = vmul.f32 %v39_v1, %v18_v2 }
   0x5   :  { %v30_v6 = vunpack.c.l.bf16 %v29_v4 }
   0x6   :  { %v28_v7 = vadd.f32 %v40_v3, %v23_v5 }
   0x8   :  { %v31_v8 = vadd.f32 %v30_v6, %v28_v7 }
   0xa   :  { %v32_v9 = vmax.f32 %v31_v8, 0.0 }
   0xc   :  { %v33_v10 = vpack.c.bf16 %v32_v9, %v32_v9 }
   0xe   :  { %34 = vst [vmem:[%s85_s4] sm:$0xf] %v33_v10 }

// kernel: resnet_forward.57
= control target key start
LH: loop header
LB: loop body
LE: loop exit
PB: predicated region body
PF: predicated region fallthrough
CT: control target
= control target key end

     0   :  { %s725_s15 = smov 0   ;;  %s904_s0 = inlined_call_operand.vmem [shape: bf16[2,10,6,16], index: 0, kind: input, shape index: {}]   ;;  %s905_s1 = inlined_call_operand.vmem [shape: bf16[144,16], index: 1, kind: input, shape index: {}]   ;;  %s906_s2 = inlined_call_operand.vmem [shape: bf16[2,8,4,16], index: 2, kind: output, shape index: {0}]   ;;  %s907_s3 = inlined_call_operand.vmem [shape: f32[2,1,16], index: 3, kind: output, shape index: {1}]   ;;  %s908_s4 = inlined_call_operand.vmem [shape: f32[2,1,16], index: 4, kind: output, shape index: {2}]  }
   0x1 LB: > { %s558_s16 = sadd.s32 4294967295, %s679_s15   ;;  %p562_p0 = scmp.ge.s32.totalorder %s679_s15, 1  ;;  %s679_s15 = sphi %s725_s15, %s15_s15  }
   0x2   : > { %p167_p1 = scmp.lt.s32.totalorder %s679_s15, 3 }
   0x4   : > { %p168_p2 = pnand %p562_p0, %p167_p1 }
   0x5   : > { %p199_p3 = scmp.lt.s32.totalorder (!%p168_p2), %s558_s16, 1 }
   0x6   : > { %171 = sbr.rel (%p168_p2) target bundleno = 305 (0x131), region = 28 }
   0xb   : > { %v736_v0 = vld [vmem:[%s905_s1] sm:$0xf]  ;;  %v741_v1 = vld [vmem:[%s905_s1] sm:$0xf0]  ;;  %v746_v2 = vld [vmem:[%s905_s1 + $0x8] sm:$0xf] }
   0xc   : > { %v751_v3 = vld [vmem:[%s905_s1 + $0x8] sm:$0xf0]  ;;  %v756_v4 = vld [vmem:[%s905_s1 + $0x10] sm:$0xf]  ;;  %s912_s16 = smov (!%p199_p3, %s558_s16), 1  ;;  %v845_v18 = vmov 0.0  }
   0xd   : > { %v763_v5 = vld [vmem:[%s905_s1 + $0x10] sm:$0xf0]  ;;  %v768_v6 = vld [vmem:[%s905_s1 + $0x18] sm:$0xf]  ;;  %v773_v7 = vld [vmem:[%s905_s1 + $0x18] sm:$0xf0]  ;;  %s211_s24 = scalar_lea.vmem %s907_s3, %s912_s16  ;;  %s214_s10 = scalar_lea.vmem %s908_s4, %s912_s16 }
   0xe   : > { %v778_v8 = vld [vmem:[%s905_s1 + $0x20] sm:$0xf]  ;;  %v783_v9 = vld [vmem:[%s905_s1 + $0x20] sm:$0xf0]  ;;  %s621_s11 = smul.u32 40, %s912_s16  ;;  %s611_s12 = sshll.u32 %s912_s16, 4 }
   0xf   : > { %v790_v10 = vld [vmem:[%s905_s1 + $0x28] sm:$0xf]  ;;  %v795_v11 = vld [vmem:[%s905_s1 + $0x28] sm:$0xf0]  ;;  %s800_s21 = scalar_lea.vmem %s906_s2, %s611_s12  ;;  %v809_v12 = vld [vmem:[%s905_s1 + $0x30] sm:$0xf] }
  0x10   : > { %v814_v13 = vld [vmem:[%s905_s1 + $0x30] sm:$0xf0]  ;;  %v819_v14 = vld [vmem:[%s905_s1 + $0x38] sm:$0xf]  ;;  %s824_s7 = scalar_lea.vmem %s904_s0, %s621_s11  ;;  %v833_v15 = vld [vmem:[%s905_s1 + $0x38] sm:$0xf0] }
  0x11   : > { %v838_v16 = vld [vmem:[%s905_s1 + $0x40] sm:$0xf]  ;;  %v843_v17 = vld [vmem:[%s905_s1 + $0x40] sm:$0xf0]  ;;  %v847_v19 = vmov 0.0   ;;  %s849_s11 = smov 0  }
  0x12 LB: >> { %v602_v20 = vor.u32 %v833_v15, %v819_v14  ;;  %s566_s20 = sshll.u32 %s691_s11, 2  ;;  %v598_v21 = vor.u32 %v814_v13, %v809_v12  ;;  %v594_v27 = vor.u32 %v795_v11, %v790_v10  ;;  %s693_s23 = smov 48   ;;  %v590_v36 = vor.u32 %v783_v9, %v778_v8  ;;  %s691_s11 = sphi %s849_s11, %s239_s11   ;;  %v687_v19 = vphi %v847_v19, %v910_v19   ;;  %v683_v18 = vphi %v845_v18, %v909_v18  }
  0x13   : >> { %s243_s22 = scalar_lea.vmem %s824_s7, %s566_s20  ;;  %s694_s25 = smov 32   ;;  %v586_v47 = vor.u32 %v773_v7, %v768_v6  ;;  %v606_v48 = vor.u32 %v843_v17, %v838_v16  ;;  %v582_v49 = vor.u32 %v763_v5, %v756_v4  ;;  %vm300_vm0 = vcmask 130048  }
  0x14   : >> { %380 = vmatpush.bf16.msra.mxu0 %v602_v20  ;;  %v244_v22 = vld [vmem:[%s243_s22] sm:$0x7]  ;;  %v570_v23 = vld [vmem:[%s243_s22 + $0x8] sm:$0x7]  ;;  %v568_v24 = vld [vmem:[%s243_s22 + $0x4] sm:$0x7]  ;;  %v578_v51 = vor.u32 %v751_v3, %v746_v2  ;;  %v574_v52 = vor.u32 %v741_v1, %v736_v0 }
  0x15   : >> { %v254_v25 = vunpack.c.l.b16 %v244_v22  ;;  %v269_v26 = vunpack.c.l.b16 %v568_v24  ;;  %v286_v29 = vunpack.c.l.b16 %v570_v23  ;;  %s695_s26 = smov 80   ;;  %s696_s27 = smov 64   ;;  %400 = vmatpush.bf16.msra.mxu1 %v606_v48  ;;  %vm304_vm1 = vcmask 261120  }
  0x16   : >> { %s697_s28 = smov 16   ;;  %s698_s29 = smov 96   ;;  %vm307_vm2 = vcmask 392192   ;;  %vm310_vm3 = vcmask 523264   ;;  %vm313_vm4 = vcmask 654336   ;;  %vm316_vm5 = vcmask 785408  }
  0x17   : >> { %v255_v28 = vpack.c.b16 %v254_v25, %v254_v25  ;;  %v270_v30 = vpack.c.b16 %v269_v26, %v269_v26  ;;  %v287_v37 = vpack.c.b16 %v286_v29, %v286_v29  ;;  %s699_s30 = smov 112   ;;  %vm319_vm6 = vcmask 916480   ;;  %s608_s5 = sshll.u32 %s691_s11, 1 }
  0x18   : >> { %381 = vmatpush.bf16.msra.mxu0 %v598_v21  ;;  %vm411_vm7 = vcmask 125952   ;;  %s408_s6 = scalar_lea.vmem %s800_s21, %s608_s5  ;;  %vm409_vm8 = vcmask 123904   ;;  %s239_s11 = sadd.s32 1, %s691_s11  }
  0x19   : >> { %v265_v31 = vrot.slane %v255_v28, 1  ;;  %271 = vrot.lane.b32.xlu1 %v270_v30, %s693_s23  ;;  %v259_v32 = vshll.u32 %v255_v28, 16  ;;  %v274_v33 = vshrl.u32 %v270_v30, 16  ;;  %v276_v34 = vshll.u32 %v270_v30, 16  ;;  %p236_p4 = scmp.ge.s32.totalorder %s239_s11, 8  }
  0x1a   : >> { %v282_v35 = vrot.slane %v270_v30, 1  ;;  %v257_v38 = vshrl.u32 %v255_v28, 16  ;;  %v293_v43 = vshll.u32 %v287_v37, 16  ;;  %v291_v44 = vshrl.u32 %v287_v37, 16 }
  0x1b   : >> { %266 = vrot.lane.b32.xlu0 %v265_v31, %s694_s25  ;;  %v261_v39 = vrot.slane %v259_v32, 1  ;;  %v278_v40 = vrot.slane %v276_v34, 1  ;;  %v299_v50 = vrot.slane %v287_v37, 1  ;;  %vm429_vm9 = vcmask (%p236_p4), 122880  }
  0x1c   : >> { %382 = vmatpush.bf16.msra.mxu0 %v594_v27  ;;  %283 = vrot.lane.b32.xlu2 %v282_v35, %s695_s26  ;;  %v295_v45 = vrot.slane %v293_v43, 1 }
  0x1d   : >> { %v279_v41 = vor.u32 %v278_v40, %v274_v33  ;;  %v262_v42 = vor.u32 %v261_v39, %v257_v38  ;;  %607 = vmatmul.msk.bf16.vlgmr.msra.gmra.mxu1 %vm300_vm0, %v299_v50 }
  0x1e   : >> { %v296_v46 = vor.u32 %v295_v45, %v291_v44 }
  0x20   : >> { %383 = vmatpush.bf16.msra.mxu0 %v590_v36 }
  0x21   : >> { %280 = vrot.lane.b32.xlu1 %v279_v41, %s696_s27 }
  0x23   : >> { %263 = vrot.lane.b32.xlu0 %v262_v42, %s697_s28 }
  0x24   : >> { %288 = vrot.lane.b32.xlu2 %v287_v37, %s698_s29  ;;  %384 = vmatpush.bf16.msra.mxu0 %v586_v47 }
  0x28   : >> { %385 = vmatpush.bf16.msra.mxu0 %v582_v49 }
  0x2b   : >> { %297 = vrot.lane.b32.xlu0 %v296_v46, %s699_s30 }
  0x2c   : >> { %386 = vmatpush.bf16.msra.mxu0 %v578_v51 }
  0x30   : >> { %387 = vmatpush.bf16.msra.mxu0 %v574_v52 }
  0x76   : >> { %v284_v55 = vpop.permute.xlu2 %283 }
  0x7e   : >> { %v289_v62 = vpop.permute.xlu2 %288 }
  0x8b   : >> { %v272_v53 = vpop.permute.xlu1 %271 }
  0x8d   : >> { %v267_v54 = vpop.permute.xlu0 %266 }
  0x93   : >> { %v281_v58 = vpop.permute.xlu1 %280 }
  0x95   : >> { %v264_v56 = vpop.permute.xlu0 %263 }
  0x96   : >> { %v303_v57 = vsel %vm300_vm0, %v244_v22, %v264_v56 }
  0x97   : >> { %v306_v59 = vsel %vm304_vm1, %v303_v57, %v267_v54 }
  0x98   : >> { %v309_v60 = vsel %vm307_vm2, %v306_v59, %v272_v53 }
  0x99   : >> { %v312_v61 = vsel %vm310_vm3, %v309_v60, %v281_v58 }
  0x9a   : >> { %v315_v63 = vsel %vm313_vm4, %v312_v61, %v284_v55  ;;  %v402_v24 = vpop.f32.mrf.mxu1 }
  0x9b   : >> { %v318_v20 = vsel %vm316_vm5, %v315_v63, %v289_v62 }
  0x9d   : >> { %v298_v21 = vpop.permute.xlu0 %297 }
  0x9e   : >> { %v321_v23 = vsel %vm319_vm6, %v318_v20, %v298_v21 }
  0x9f   : >> { %388 = vmatmul.bf16.vlgmr.msra.gmra.mxu0 %v321_v23 }
  0xa2   : >> { %v404_v25 = vpop.f32.mrf.mxu1 }
 0x11c   : >> { %v389_v22 = vpop.f32.mrf.mxu0 }
 0x11d   : >> { %v403_v26 = vadd.f32 %v402_v24, %v389_v22 }
 0x11f   : >> { %v406_v27 = vpack.c.bf16 %v403_v26, %v403_v26  ;;  %v412_v28 = vsel %vm411_vm7, %v403_v26, 0.0  ;;  %v420_v29 = vmul.f32 %v403_v26, %v403_v26 }
 0x120   : >> { %v413_v30 = vrot.slane %v412_v28, 4 }
 0x121   : >> { %410 = vst.msk [vmem:[%s408_s6] sm:$0x3] %vm409_vm8, %v406_v27  ;;  %v421_v31 = vsel %vm411_vm7, %v420_v29, 0.0 }
 0x122   : >> { %v414_v32 = vadd.f32 %v413_v30, %v412_v28  ;;  %v422_v33 = vrot.slane %v421_v31, 4 }
 0x124   : >> { %v415_v34 = vrot.slane %v414_v32, 2  ;;  %v423_v35 = vadd.f32 %v422_v33, %v421_v31  ;;  %v391_v36 = vpop.f32.mrf.mxu0 }
 0x126   : >> { %v416_v37 = vadd.f32 %v415_v34, %v414_v32  ;;  %v424_v38 = vrot.slane %v423_v35, 2 }
 0x128   : >> { %v417_v39 = vrot.slane %v416_v37, 1  ;;  %v425_v40 = vadd.f32 %v424_v38, %v423_v35 }
 0x12a   : >> { %v418_v41 = vadd.f32 %v417_v39, %v416_v37  ;;  %v426_v42 = vrot.slane %v425_v40, 1 }
 0x12c   : >> { %v419_v43 = vadd.f32 %v687_v19, %v418_v41   ;;  %v427_v44 = vadd.f32 %v426_v42, %v425_v40  ;;  %238 = sbr.rel (!%p236_p4) target bundleno = 18 (0x12), region = 93 }
 0x12e   : >> { %v428_v45 = vadd.f32 %v683_v18, %v427_v44   ;;  %v910_v19 = vmov %v419_v43  ;;  %430 = vst.msk [vmem:[%s211_s24] sm:$0x1] (%p236_p4), %vm429_vm9, %v419_v43 }
 0x130   : >> { %v909_v18 = vmov %v428_v45  ;;  %431 = vst.msk [vmem:[%s214_s10] sm:$0x1] (%p236_p4), %vm429_vm9, %v428_v45 }
 0x131 PF: > { %s15_s15 = sadd.s32 1, %s679_s15  }
 0x132   : > { %p12_p5 = scmp.ge.s32.totalorder %s15_s15, 4  }
 0x134   :  { %14 = sbr.rel (!%p12_p5) target bundleno = 1 (0x1), region = 104 }

// kernel: resnet_forward.61
= control target key start
LH: loop header
LB: loop body
LE: loop exit
PB: predicated region body
PF: predicated region fallthrough
CT: control target
= control target key end

     0   :  { %s266_s6 = smov 0   ;;  %s295_s0 = inlined_call_operand.vmem [shape: bf16[2,4,2,6,16], index: 0, kind: input, shape index: {}]   ;;  %s296_s1 = inlined_call_operand.vmem [shape: bf16[2,4,5,16], index: 1, kind: output, shape index: {}]  }
   0x1 LB: > { %s227_s7 = sadd.s32 4294967295, %s254_s6   ;;  %p231_p0 = scmp.ge.s32.totalorder %s254_s6, 1  ;;  %s254_s6 = sphi %s266_s6, %s11_s6  }
   0x2   : > { %p87_p1 = scmp.lt.s32.totalorder %s254_s6, 3 }
   0x4   : > { %p88_p2 = pnand %p231_p0, %p87_p1 }
   0x5   : > { %p107_p3 = scmp.lt.s32.totalorder (!%p88_p2), %s227_s7, 1 }
   0x6   : > { %91 = sbr.rel (%p88_p2) target bundleno = 30 (0x1e), region = 24 }
   0xb   : > { %s300_s7 = smov (!%p107_p3, %s227_s7), 1  ;;  %vm157_vm0 = vcmask 124928   ;;  %vm158_vm1 = vsmask.f32 2304 }
   0xc   : > { %s238_s8 = sshll.u32 %s300_s7, 5  ;;  %s239_s12 = sshll.u32 %s300_s7, 4  ;;  %vm280_vm2 = vmand %vm157_vm0, %vm158_vm1 }
   0xd   : > { %s111_s11 = scalar_lea.vmem %s295_s0, %s238_s8  ;;  %s116_s15 = scalar_lea.vmem %s296_s1, %s239_s12 }
   0xe   : > { %v117_v0 = vld [vmem:[%s111_s11] sm:$0x7]  ;;  %v118_v1 = vld [vmem:[%s111_s11 + $0x4] sm:$0x7]  ;;  %v119_v4 = vld [vmem:[%s111_s11 + $0x8] sm:$0x7] }
   0xf   : > { %v125_v2 = vunpack.c.l.bf16 %v117_v0  ;;  %v126_v3 = vunpack.c.l.bf16 %v118_v1  ;;  %v120_v5 = vld [vmem:[%s111_s11 + $0xc] sm:$0x7]  ;;  %v127_v6 = vunpack.c.l.bf16 %v119_v4  ;;  %v121_v8 = vld [vmem:[%s111_s11 + $0x10] sm:$0x7]  ;;  %v122_v9 = vld [vmem:[%s111_s11 + $0x14] sm:$0x7] }
  0x10   : > { %v128_v7 = vunpack.c.l.bf16 %v120_v5  ;;  %v129_v11 = vunpack.c.l.bf16 %v121_v8  ;;  %v130_v12 = vunpack.c.l.bf16 %v122_v9  ;;  %v123_v13 = vld [vmem:[%s111_s11 + $0x18] sm:$0x7]  ;;  %v124_v14 = vld [vmem:[%s111_s11 + $0x1c] sm:$0x7]  ;;  %v160_v25 = vld [vmem:[%s116_s15] sm:$0x7] }
  0x11   : > { %v133_v10 = vmax.f32 %v125_v2, %v126_v3  ;;  %v131_v16 = vunpack.c.l.bf16 %v123_v13  ;;  %v132_v17 = vunpack.c.l.bf16 %v124_v14  ;;  %v163_v29 = vld [vmem:[%s116_s15 + $0x4] sm:$0x7]  ;;  %v166_v32 = vld [vmem:[%s116_s15 + $0x8] sm:$0x7]  ;;  %v169_v36 = vld [vmem:[%s116_s15 + $0xc] sm:$0x7] }
  0x12   : > { %v134_v15 = vmax.f32 %v127_v6, %v128_v7  ;;  %v135_v19 = vmax.f32 %v129_v11, %v130_v12 }
  0x13   : > { %v141_v18 = vrot.slane %v133_v10, 1  ;;  %v136_v21 = vmax.f32 %v131_v16, %v132_v17 }
  0x14   : > { %v142_v20 = vrot.slane %v134_v15, 1  ;;  %v143_v23 = vrot.slane %v135_v19, 1 }
  0x15   : > { %v149_v22 = vmax.f32 %v133_v10, %v141_v18  ;;  %v144_v27 = vrot.slane %v136_v21, 1 }
  0x16   : > { %v150_v26 = vmax.f32 %v134_v15, %v142_v20  ;;  %v151_v30 = vmax.f32 %v135_v19, %v143_v23 }
  0x17   : > { %v153_v28 = vpack.c.bf16 %v149_v22, %v149_v22  ;;  %v152_v33 = vmax.f32 %v136_v21, %v144_v27 }
  0x18   : > { %v154_v31 = vpack.c.bf16 %v150_v26, %v150_v26  ;;  %v155_v35 = vpack.c.bf16 %v151_v30, %v151_v30 }
  0x19   : > { %v161_v34 = vsel %vm280_vm2, %v153_v28, %v160_v25  ;;  %v156_v38 = vpack.c.bf16 %v152_v33, %v152_v33 }
  0x1a   : > { %162 = vst [vmem:[%s116_s15] sm:$0x7] %v161_v34  ;;  %v164_v37 = vsel %vm280_vm2, %v154_v31, %v163_v29  ;;  %v167_v39 = vsel %vm280_vm2, %v155_v35, %v166_v32 }
  0x1b   : > { %165 = vst [vmem:[%s116_s15 + $0x4] sm:$0x7] %v164_v37  ;;  %v170_v40 = vsel %vm280_vm2, %v156_v38, %v169_v36 }
  0x1c   : > { %168 = vst [vmem:[%s116_s15 + $0x8] sm:$0x7] %v167_v39 }
  0x1d   : > { %171 = vst [vmem:[%s116_s15 + $0xc] sm:$0x7] %v170_v40 }
  0x1e PF: > { %s11_s6 = sadd.s32 1, %s254_s6  }
  0x1f   : > { %p8_p4 = scmp.ge.s32.totalorder %s11_s6, 4  }
  0x21   :  { %10 = sbr.rel (!%p8_p4) target bundleno = 1 (0x1), region = 54 }

// kernel: resnet_forward.62
= control target key start
LH: loop header
LB: loop body
LE: loop exit
PB: predicated region body
PF: predicated region fallthrough
CT: control target
= control target key end

     0   :  { %s512_s15 = smov 0   ;;  %s571_s0 = inlined_call_operand.vmem [shape: bf16[2,4,5,16], index: 0, kind: input, shape index: {}]   ;;  %s572_s1 = inlined_call_operand.vmem [shape: bf16[16,32], index: 1, kind: input, shape index: {}]   ;;  %s573_s2 = inlined_call_operand.vmem [shape: bf16[2,4,5,32], index: 2, kind: output, shape index: {0}]   ;;  %s574_s3 = inlined_call_operand.vmem [shape: f32[2,1,32], index: 3, kind: output, shape index: {1}]   ;;  %s575_s4 = inlined_call_operand.vmem [shape: f32[2,1,32], index: 4, kind: output, shape index: {2}]  }
   0x1 LB: > { %s402_s16 = sadd.s32 4294967295, %s473_s15   ;;  %p406_p0 = scmp.ge.s32.totalorder %s473_s15, 1  ;;  %s473_s15 = sphi %s512_s15, %s15_s15  }
   0x2   : > { %p167_p1 = scmp.lt.s32.totalorder %s473_s15, 3 }
   0x4   : > { %p168_p2 = pnand %p406_p0, %p167_p1 }
   0x5   : > { %p199_p3 = scmp.lt.s32.totalorder (!%p168_p2), %s402_s16, 1  ;;  %s547_s8 = smov (!%p168_p2), 0  }
   0x6   : > { %171 = sbr.rel (%p168_p2) target bundleno = 164 (0xa4), region = 28 }
   0xb   : > { %v414_v0 = vld [vmem:[%s572_s1] sm:$0xf]  ;;  %v422_v1 = vld [vmem:[%s572_s1] sm:$0xf0]  ;;  %s577_s16 = smov (!%p199_p3, %s402_s16), 1  ;;  %v475_v2 = vmov 0.0  }
   0xc   : > { %s420_s21 = sshll.u32 %s577_s16, 4  ;;  %s211_s24 = scalar_lea.vmem %s574_s3, %s577_s16  ;;  %v479_v3 = vmov 0.0  }
   0xd   : > { %s536_s27 = scalar_lea.vmem %s571_s0, %s420_s21  ;;  %s541_s30 = scalar_lea.vmem %s573_s2, %s420_s21 }
   0xe   : > { %s214_s7 = scalar_lea.vmem %s575_s4, %s577_s16 }
   0xf LB: >> { %v415_v4 = vor.u32 %v422_v1, %v414_v0  ;;  %s411_s9 = sshll.u32 %s485_s8, 2  ;;  %vm235_vm0 = vcmask 130048   ;;  %vm255_vm1 = vcmask 256000   ;;  %vm256_vm2 = vsmask.f32 2304  ;;  %s223_s8 = sadd.s32 1, %s485_s8   ;;  %s485_s8 = sphi %s547_s8, %s223_s8   ;;  %v481_v3 = vphi %v479_v3, %v480_v3   ;;  %v477_v2 = vphi %v475_v2, %v476_v2  }
  0x10   : >> { %s227_s10 = scalar_lea.vmem %s536_s27, %s411_s9  ;;  %s254_s11 = scalar_lea.vmem %s541_s30, %s411_s9  ;;  %vm261_vm3 = vcmask 258048   ;;  %vm257_vm4 = vmand %vm255_vm1, %vm256_vm2 }
  0x11   : >> { %246 = vmatpush.bf16.msra.mxu0 %v415_v4  ;;  %v228_v5 = vld [vmem:[%s227_s10] sm:$0x7]  ;;  %p220_p4 = scmp.ge.s32.totalorder %s223_s8, 4  }
  0x12   : >> { %v258_v6 = vld [vmem:[%s254_s11] sm:$0x7]  ;;  %vm279_vm5 = vcmask (%p220_p4), 253952  }
  0x14   : >> { %416 = vmatmul.msk.bf16.vlgmr.msra.gmra.mxu0 %vm235_vm0, %v228_v5 }
  0x91   : >> { %v248_v7 = vpop.f32.mrf.mxu0 }
  0x92   : >> { %v252_v8 = vpack.c.bf16 %v248_v7, %v248_v7  ;;  %v262_v9 = vsel %vm261_vm3, %v248_v7, 0.0  ;;  %v270_v10 = vmul.f32 %v248_v7, %v248_v7 }
  0x93   : >> { %v263_v11 = vrot.slane %v262_v9, 4 }
  0x94   : >> { %v259_v12 = vsel %vm257_vm4, %v252_v8, %v258_v6  ;;  %v271_v13 = vsel %vm261_vm3, %v270_v10, 0.0 }
  0x95   : >> { %260 = vst [vmem:[%s254_s11] sm:$0x7] %v259_v12  ;;  %v264_v14 = vadd.f32 %v263_v11, %v262_v9  ;;  %v272_v15 = vrot.slane %v271_v13, 4 }
  0x97   : >> { %v265_v16 = vrot.slane %v264_v14, 2  ;;  %v273_v17 = vadd.f32 %v272_v15, %v271_v13 }
  0x99   : >> { %v266_v18 = vadd.f32 %v265_v16, %v264_v14  ;;  %v274_v19 = vrot.slane %v273_v17, 2  ;;  %v250_v20 = vpop.f32.mrf.mxu0 }
  0x9b   : >> { %v267_v21 = vrot.slane %v266_v18, 1  ;;  %v275_v22 = vadd.f32 %v274_v19, %v273_v17 }
  0x9d   : >> { %v268_v23 = vadd.f32 %v267_v21, %v266_v18  ;;  %v276_v24 = vrot.slane %v275_v22, 1 }
  0x9f   : >> { %v269_v25 = vadd.f32 %v481_v3, %v268_v23   ;;  %v277_v26 = vadd.f32 %v276_v24, %v275_v22  ;;  %222 = sbr.rel (!%p220_p4) target bundleno = 15 (0xf), region = 91 }
  0xa1   : >> { %v278_v27 = vadd.f32 %v477_v2, %v277_v26   ;;  %v480_v3 = vmov %v269_v25   ;;  %280 = vst.msk [vmem:[%s211_s24] sm:$0x1] (%p220_p4), %vm279_vm5, %v269_v25 }
  0xa3   : >> { %v476_v2 = vmov %v278_v27   ;;  %281 = vst.msk [vmem:[%s214_s7] sm:$0x1] (%p220_p4), %vm279_vm5, %v278_v27 }
  0xa4 PF: > { %s15_s15 = sadd.s32 1, %s473_s15  }
  0xa5   : > { %p12_p5 = scmp.ge.s32.totalorder %s15_s15, 4  }
  0xa7   :  { %14 = sbr.rel (!%p12_p5) target bundleno = 1 (0x1), region = 102 }

// kernel: resnet_forward.63
= control target key start
LH: loop header
LB: loop body
LE: loop exit
PB: predicated region body
PF: predicated region fallthrough
CT: control target
= control target key end

     0   :  { %s320_s12 = smov 0   ;;  %s355_s0 = inlined_call_operand.vmem [shape: bf16[2,4,5,32], index: 0, kind: input, shape index: {}]   ;;  %s356_s1 = inlined_call_operand.vmem [shape: f32[1,1,1,32], index: 1, kind: input, shape index: {}]   ;;  %s357_s2 = inlined_call_operand.vmem [shape: f32[1,1,1,32], index: 2, kind: input, shape index: {}]   ;;  %s358_s3 = inlined_call_operand.vmem [shape: bf16[2,4,5,32], index: 3, kind: output, shape index: {}]  }
   0x1 LB: > { %s269_s13 = sadd.s32 4294967295, %s298_s12   ;;  %p273_p0 = scmp.ge.s32.totalorder %s298_s12, 1  ;;  %s298_s12 = sphi %s320_s12, %s13_s12  }
   0x2   : > { %p137_p1 = scmp.lt.s32.totalorder %s298_s12, 3 }
   0x4   : > { %p138_p2 = pnand %p273_p0, %p137_p1 }
   0x5   : > { %p161_p3 = scmp.lt.s32.totalorder (!%p138_p2), %s269_s13, 1 }
   0x6   : > { %141 = sbr.rel (%p138_p2) target bundleno = 28 (0x1c), region = 32 }
   0xb   : > { %s362_s13 = smov (!%p161_p3, %s269_s13), 1  ;;  %v290_v0 = vld [vmem:[%s356_s1] ss:$0 sm:$0xff]  ;;  %vm199_vm0 = vcmask 256000   ;;  %vm200_vm1 = vsmask.f32 2304 }
   0xc   : > { %s280_s14 = sshll.u32 %s362_s13, 4  ;;  %v291_v4 = vld [vmem:[%s357_s2] ss:$0 sm:$0xff]  ;;  %vm340_vm2 = vmand %vm199_vm0, %vm200_vm1 }
   0xd   : > { %s165_s17 = scalar_lea.vmem %s355_s0, %s280_s14  ;;  %s170_s24 = scalar_lea.vmem %s358_s3, %s280_s14 }
   0xe   : > { %v171_v1 = vld [vmem:[%s165_s17] sm:$0x7]  ;;  %v172_v2 = vld [vmem:[%s165_s17 + $0x4] sm:$0x7]  ;;  %v173_v6 = vld [vmem:[%s165_s17 + $0x8] sm:$0x7] }
   0xf   : > { %v175_v3 = vunpack.c.l.bf16 %v171_v1  ;;  %v176_v5 = vunpack.c.l.bf16 %v172_v2  ;;  %v177_v7 = vunpack.c.l.bf16 %v173_v6  ;;  %v174_v8 = vld [vmem:[%s165_s17 + $0xc] sm:$0x7]  ;;  %v202_v17 = vld [vmem:[%s170_s24] sm:$0x7]  ;;  %v205_v18 = vld [vmem:[%s170_s24 + $0x4] sm:$0x7] }
  0x10   : > { %v178_v11 = vunpack.c.l.bf16 %v174_v8  ;;  %v208_v22 = vld [vmem:[%s170_s24 + $0x8] sm:$0x7]  ;;  %v211_v25 = vld [vmem:[%s170_s24 + $0xc] sm:$0x7] }
  0x11   : > { %v183_v9 = vmul.f32 %v290_v0, %v175_v3  ;;  %v184_v10 = vmul.f32 %v290_v0, %v176_v5  ;;  %v185_v12 = vmul.f32 %v290_v0, %v177_v7 }
  0x12   : > { %v186_v15 = vmul.f32 %v290_v0, %v178_v11 }
  0x13   : > { %v191_v13 = vadd.f32 %v291_v4, %v183_v9  ;;  %v192_v14 = vadd.f32 %v291_v4, %v184_v10  ;;  %v193_v19 = vadd.f32 %v291_v4, %v185_v12 }
  0x14   : > { %v194_v23 = vadd.f32 %v291_v4, %v186_v15 }
  0x15   : > { %v195_v20 = vpack.c.bf16 %v191_v13, %v191_v13  ;;  %v196_v21 = vpack.c.bf16 %v192_v14, %v192_v14  ;;  %v197_v24 = vpack.c.bf16 %v193_v19, %v193_v19 }
  0x16   : > { %v198_v28 = vpack.c.bf16 %v194_v23, %v194_v23 }
  0x17   : > { %v203_v26 = vsel %vm340_vm2, %v195_v20, %v202_v17  ;;  %v206_v27 = vsel %vm340_vm2, %v196_v21, %v205_v18  ;;  %v209_v29 = vsel %vm340_vm2, %v197_v24, %v208_v22 }
  0x18   : > { %204 = vst [vmem:[%s170_s24] sm:$0x7] %v203_v26  ;;  %v212_v30 = vsel %vm340_vm2, %v198_v28, %v211_v25 }
  0x19   : > { %207 = vst [vmem:[%s170_s24 + $0x4] sm:$0x7] %v206_v27 }
  0x1a   : > { %210 = vst [vmem:[%s170_s24 + $0x8] sm:$0x7] %v209_v29 }
  0x1b   : > { %213 = vst [vmem:[%s170_s24 + $0xc] sm:$0x7] %v212_v30 }
  0x1c PF: > { %s13_s12 = sadd.s32 1, %s298_s12  }
  0x1d   : > { %p10_p4 = scmp.ge.s32.totalorder %s13_s12, 4  }
  0x1f   :  { %12 = sbr.rel (!%p10_p4) target bundleno = 1 (0x1), region = 62 }

// kernel: resnet_forward.64
= control target key start
LH: loop header
LB: loop body
LE: loop exit
PB: predicated region body
PF: predicated region fallthrough
CT: control target
= control target key end

     0   :  { %s729_s15 = smov 0   ;;  %s911_s0 = inlined_call_operand.vmem [shape: bf16[2,6,7,16], index: 0, kind: input, shape index: {}]   ;;  %s912_s1 = inlined_call_operand.vmem [shape: bf16[144,32], index: 1, kind: input, shape index: {}]   ;;  %s913_s2 = inlined_call_operand.vmem [shape: bf16[2,4,5,32], index: 2, kind: output, shape index: {0}]   ;;  %s914_s3 = inlined_call_operand.vmem [shape: f32[2,1,32], index: 3, kind: output, shape index: {1}]   ;;  %s915_s4 = inlined_call_operand.vmem [shape: f32[2,1,32], index: 4, kind: output, shape index: {2}]  }
   0x1 LB: > { %s562_s16 = sadd.s32 4294967295, %s683_s15   ;;  %p566_p0 = scmp.ge.s32.totalorder %s683_s15, 1  ;;  %s683_s15 = sphi %s729_s15, %s15_s15  }
   0x2   : > { %p167_p1 = scmp.lt.s32.totalorder %s683_s15, 3 }
   0x4   : > { %p168_p2 = pnand %p566_p0, %p167_p1 }
   0x5   : > { %p199_p3 = scmp.lt.s32.totalorder (!%p168_p2), %s562_s16, 1 }
   0x6   : > { %171 = sbr.rel (%p168_p2) target bundleno = 305 (0x131), region = 28 }
   0xb   : > { %v740_v0 = vld [vmem:[%s912_s1] sm:$0xf]  ;;  %v745_v1 = vld [vmem:[%s912_s1] sm:$0xf0]  ;;  %v750_v2 = vld [vmem:[%s912_s1 + $0x8] sm:$0xf] }
   0xc   : > { %v755_v3 = vld [vmem:[%s912_s1 + $0x8] sm:$0xf0]  ;;  %v760_v4 = vld [vmem:[%s912_s1 + $0x10] sm:$0xf]  ;;  %s919_s16 = smov (!%p199_p3, %s562_s16), 1  ;;  %v849_v18 = vmov 0.0  }
   0xd   : > { %v767_v5 = vld [vmem:[%s912_s1 + $0x10] sm:$0xf0]  ;;  %v772_v6 = vld [vmem:[%s912_s1 + $0x18] sm:$0xf]  ;;  %v777_v7 = vld [vmem:[%s912_s1 + $0x18] sm:$0xf0]  ;;  %s211_s24 = scalar_lea.vmem %s914_s3, %s919_s16  ;;  %s214_s10 = scalar_lea.vmem %s915_s4, %s919_s16 }
   0xe   : > { %v782_v8 = vld [vmem:[%s912_s1 + $0x20] sm:$0xf]  ;;  %v787_v9 = vld [vmem:[%s912_s1 + $0x20] sm:$0xf0]  ;;  %s625_s11 = smul.u32 24, %s919_s16  ;;  %s615_s12 = sshll.u32 %s919_s16, 4 }
   0xf   : > { %v794_v10 = vld [vmem:[%s912_s1 + $0x28] sm:$0xf]  ;;  %v799_v11 = vld [vmem:[%s912_s1 + $0x28] sm:$0xf0]  ;;  %s804_s21 = scalar_lea.vmem %s913_s2, %s615_s12  ;;  %v813_v12 = vld [vmem:[%s912_s1 + $0x30] sm:$0xf] }
  0x10   : > { %v818_v13 = vld [vmem:[%s912_s1 + $0x30] sm:$0xf0]  ;;  %v823_v14 = vld [vmem:[%s912_s1 + $0x38] sm:$0xf]  ;;  %s828_s7 = scalar_lea.vmem %s911_s0, %s625_s11  ;;  %v837_v15 = vld [vmem:[%s912_s1 + $0x38] sm:$0xf0] }
  0x11   : > { %v842_v16 = vld [vmem:[%s912_s1 + $0x40] sm:$0xf]  ;;  %v847_v17 = vld [vmem:[%s912_s1 + $0x40] sm:$0xf0]  ;;  %v851_v19 = vmov 0.0   ;;  %s853_s11 = smov 0  }
  0x12 LB: >> { %v606_v20 = vor.u32 %v837_v15, %v823_v14  ;;  %s570_s20 = sshll.u32 %s695_s11, 2  ;;  %v602_v21 = vor.u32 %v818_v13, %v813_v12  ;;  %v598_v26 = vor.u32 %v799_v11, %v794_v10  ;;  %s697_s23 = smov 48   ;;  %v594_v35 = vor.u32 %v787_v9, %v782_v8  ;;  %s695_s11 = sphi %s853_s11, %s239_s11   ;;  %v691_v19 = vphi %v851_v19, %v917_v19   ;;  %v687_v18 = vphi %v849_v18, %v916_v18  }
  0x13   : >> { %s243_s22 = scalar_lea.vmem %s828_s7, %s570_s20  ;;  %s698_s25 = smov 32   ;;  %v590_v46 = vor.u32 %v777_v7, %v772_v6  ;;  %v610_v47 = vor.u32 %v847_v17, %v842_v16  ;;  %v586_v48 = vor.u32 %v767_v5, %v760_v4  ;;  %vm300_vm0 = vcmask 130048  }
  0x14   : >> { %380 = vmatpush.bf16.msra.mxu0 %v606_v20  ;;  %v244_v22 = vld [vmem:[%s243_s22] sm:$0xf]  ;;  %v574_v23 = vld [vmem:[%s243_s22 + $0x4] sm:$0xff]   ;;  %s699_s26 = smov 80   ;;  %s700_s27 = smov 64   ;;  %v582_v50 = vor.u32 %v755_v3, %v750_v2  ;;  %v578_v51 = vor.u32 %v745_v1, %v740_v0  ;;  %vm304_vm1 = vcmask 261120  }
  0x15   : >> { %v254_v24 = vunpack.c.l.b16 %v244_v22  ;;  %v269_v25 = vunpack.c.l.b16 %v574_v23  ;;  %v286_v28 = vunpack.c.h.b16 %v574_v23  ;;  %s701_s28 = smov 16   ;;  %s702_s29 = smov 96   ;;  %400 = vmatpush.bf16.msra.mxu1 %v610_v47  ;;  %vm307_vm2 = vcmask 392192  }
  0x16   : >> { %s703_s30 = smov 112   ;;  %vm310_vm3 = vcmask 523264   ;;  %vm313_vm4 = vcmask 654336   ;;  %vm316_vm5 = vcmask 785408   ;;  %vm319_vm6 = vcmask 916480   ;;  %s408_s5 = scalar_lea.vmem %s804_s21, %s570_s20 }
  0x17   : >> { %v255_v27 = vpack.c.b16 %v254_v24, %v254_v24  ;;  %v270_v29 = vpack.c.b16 %v269_v25, %v269_v25  ;;  %v287_v36 = vpack.c.b16 %v286_v28, %v286_v28  ;;  %vm409_vm7 = vcmask 256000   ;;  %s239_s11 = sadd.s32 1, %s695_s11  }
  0x18   : >> { %381 = vmatpush.bf16.msra.mxu0 %v602_v21  ;;  %vm410_vm8 = vsmask.f32 2304  ;;  %vm415_vm9 = vcmask 258048   ;;  %p236_p4 = scmp.ge.s32.totalorder %s239_s11, 4  }
  0x19   : >> { %v265_v30 = vrot.slane %v255_v27, 1  ;;  %271 = vrot.lane.b32.xlu1 %v270_v29, %s697_s23  ;;  %v259_v31 = vshll.u32 %v255_v27, 16  ;;  %v274_v32 = vshrl.u32 %v270_v29, 16  ;;  %v276_v33 = vshll.u32 %v270_v29, 16  ;;  %vm411_vm10 = vmand %vm409_vm7, %vm410_vm8 }
  0x1a   : >> { %v282_v34 = vrot.slane %v270_v29, 1  ;;  %v257_v37 = vshrl.u32 %v255_v27, 16  ;;  %v293_v42 = vshll.u32 %v287_v36, 16  ;;  %v291_v43 = vshrl.u32 %v287_v36, 16 }
  0x1b   : >> { %266 = vrot.lane.b32.xlu0 %v265_v30, %s698_s25  ;;  %v261_v38 = vrot.slane %v259_v31, 1  ;;  %v278_v39 = vrot.slane %v276_v33, 1  ;;  %v299_v49 = vrot.slane %v287_v36, 1  ;;  %vm433_vm11 = vcmask (%p236_p4), 253952  }
  0x1c   : >> { %382 = vmatpush.bf16.msra.mxu0 %v598_v26  ;;  %283 = vrot.lane.b32.xlu2 %v282_v34, %s699_s26  ;;  %v295_v44 = vrot.slane %v293_v42, 1  ;;  %v412_v26 = vld [vmem:[%s408_s5] sm:$0x7] }
  0x1d   : >> { %v279_v40 = vor.u32 %v278_v39, %v274_v32  ;;  %v262_v41 = vor.u32 %v261_v38, %v257_v37  ;;  %611 = vmatmul.msk.bf16.vlgmr.msra.gmra.mxu1 %vm300_vm0, %v299_v49 }
  0x1e   : >> { %v296_v45 = vor.u32 %v295_v44, %v291_v43 }
  0x20   : >> { %383 = vmatpush.bf16.msra.mxu0 %v594_v35 }
  0x21   : >> { %280 = vrot.lane.b32.xlu1 %v279_v40, %s700_s27 }
  0x23   : >> { %263 = vrot.lane.b32.xlu0 %v262_v41, %s701_s28 }
  0x24   : >> { %288 = vrot.lane.b32.xlu2 %v287_v36, %s702_s29  ;;  %384 = vmatpush.bf16.msra.mxu0 %v590_v46 }
  0x28   : >> { %385 = vmatpush.bf16.msra.mxu0 %v586_v48 }
  0x2b   : >> { %297 = vrot.lane.b32.xlu0 %v296_v45, %s703_s30 }
  0x2c   : >> { %386 = vmatpush.bf16.msra.mxu0 %v582_v50 }
  0x30   : >> { %387 = vmatpush.bf16.msra.mxu0 %v578_v51 }
  0x76   : >> { %v284_v54 = vpop.permute.xlu2 %283 }
  0x7e   : >> { %v289_v61 = vpop.permute.xlu2 %288 }
  0x8b   : >> { %v272_v52 = vpop.permute.xlu1 %271 }
  0x8d   : >> { %v267_v53 = vpop.permute.xlu0 %266 }
  0x93   : >> { %v281_v57 = vpop.permute.xlu1 %280 }
  0x95   : >> { %v264_v55 = vpop.permute.xlu0 %263 }
  0x96   : >> { %v303_v56 = vsel %vm300_vm0, %v244_v22, %v264_v55 }
  0x97   : >> { %v306_v58 = vsel %vm304_vm1, %v303_v56, %v267_v53 }
  0x98   : >> { %v309_v59 = vsel %vm307_vm2, %v306_v58, %v272_v52 }
  0x99   : >> { %v312_v60 = vsel %vm310_vm3, %v309_v59, %v281_v57 }
  0x9a   : >> { %v315_v62 = vsel %vm313_vm4, %v312_v60, %v284_v54  ;;  %v402_v23 = vpop.f32.mrf.mxu1 }
  0x9b   : >> { %v318_v63 = vsel %vm316_vm5, %v315_v62, %v289_v61 }
  0x9d   : >> { %v298_v20 = vpop.permute.xlu0 %297 }
  0x9e   : >> { %v321_v21 = vsel %vm319_vm6, %v318_v63, %v298_v20 }
  0x9f   : >> { %388 = vmatmul.bf16.vlgmr.msra.gmra.mxu0 %v321_v21 }
  0xa2   : >> { %v404_v24 = vpop.f32.mrf.mxu1 }
 0x11c   : >> { %v389_v22 = vpop.f32.mrf.mxu0 }
 0x11d   : >> { %v403_v25 = vadd.f32 %v402_v23, %v389_v22 }
 0x11f   : >> { %v406_v27 = vpack.c.bf16 %v403_v25, %v403_v25  ;;  %v416_v28 = vsel %vm415_vm9, %v403_v25, 0.0  ;;  %v424_v29 = vmul.f32 %v403_v25, %v403_v25 }
 0x120   : >> { %v417_v30 = vrot.slane %v416_v28, 4 }
 0x121   : >> { %v413_v31 = vsel %vm411_vm10, %v406_v27, %v412_v26  ;;  %v425_v32 = vsel %vm415_vm9, %v424_v29, 0.0 }
 0x122   : >> { %414 = vst [vmem:[%s408_s5] sm:$0x7] %v413_v31  ;;  %v418_v33 = vadd.f32 %v417_v30, %v416_v28  ;;  %v426_v34 = vrot.slane %v425_v32, 4 }
 0x124   : >> { %v419_v35 = vrot.slane %v418_v33, 2  ;;  %v427_v36 = vadd.f32 %v426_v34, %v425_v32  ;;  %v391_v37 = vpop.f32.mrf.mxu0 }
 0x126   : >> { %v420_v38 = vadd.f32 %v419_v35, %v418_v33  ;;  %v428_v39 = vrot.slane %v427_v36, 2 }
 0x128   : >> { %v421_v40 = vrot.slane %v420_v38, 1  ;;  %v429_v41 = vadd.f32 %v428_v39, %v427_v36 }
 0x12a   : >> { %v422_v42 = vadd.f32 %v421_v40, %v420_v38  ;;  %v430_v43 = vrot.slane %v429_v41, 1 }
 0x12c   : >> { %v423_v44 = vadd.f32 %v691_v19, %v422_v42   ;;  %v431_v45 = vadd.f32 %v430_v43, %v429_v41  ;;  %238 = sbr.rel (!%p236_p4) target bundleno = 18 (0x12), region = 93 }
 0x12e   : >> { %v432_v46 = vadd.f32 %v687_v18, %v431_v45   ;;  %v917_v19 = vmov %v423_v44  ;;  %434 = vst.msk [vmem:[%s211_s24] sm:$0x1] (%p236_p4), %vm433_vm11, %v423_v44 }
 0x130   : >> { %v916_v18 = vmov %v432_v46  ;;  %435 = vst.msk [vmem:[%s214_s10] sm:$0x1] (%p236_p4), %vm433_vm11, %v432_v46 }
 0x131 PF: > { %s15_s15 = sadd.s32 1, %s683_s15  }
 0x132   : > { %p12_p5 = scmp.ge.s32.totalorder %s15_s15, 4  }
 0x134   :  { %14 = sbr.rel (!%p12_p5) target bundleno = 1 (0x1), region = 104 }

// kernel: resnet_forward.65
= control target key start
LH: loop header
LB: loop body
LE: loop exit
PB: predicated region body
PF: predicated region fallthrough
CT: control target
= control target key end

     0   :  { %s324_s12 = smov 0   ;;  %s359_s0 = inlined_call_operand.vmem [shape: bf16[2,4,5,32], index: 0, kind: input, shape index: {}]   ;;  %s360_s1 = inlined_call_operand.vmem [shape: f32[1,1,1,32], index: 1, kind: input, shape index: {}]   ;;  %s361_s2 = inlined_call_operand.vmem [shape: f32[1,1,1,32], index: 2, kind: input, shape index: {}]   ;;  %s362_s3 = inlined_call_operand.vmem [shape: bf16[2,4,5,32], index: 3, kind: output, shape index: {}]  }
   0x1 LB: > { %s273_s13 = sadd.s32 4294967295, %s302_s12   ;;  %p277_p0 = scmp.ge.s32.totalorder %s302_s12, 1  ;;  %s302_s12 = sphi %s324_s12, %s13_s12  }
   0x2   : > { %p137_p1 = scmp.lt.s32.totalorder %s302_s12, 3 }
   0x4   : > { %p138_p2 = pnand %p277_p0, %p137_p1 }
   0x5   : > { %p161_p3 = scmp.lt.s32.totalorder (!%p138_p2), %s273_s13, 1 }
   0x6   : > { %141 = sbr.rel (%p138_p2) target bundleno = 30 (0x1e), region = 32 }
   0xb   : > { %s366_s13 = smov (!%p161_p3, %s273_s13), 1  ;;  %v294_v0 = vld [vmem:[%s360_s1] ss:$0 sm:$0xff]  ;;  %vm203_vm0 = vcmask 256000   ;;  %vm204_vm1 = vsmask.f32 2304 }
   0xc   : > { %s284_s14 = sshll.u32 %s366_s13, 4  ;;  %v295_v4 = vld [vmem:[%s361_s2] ss:$0 sm:$0xff]  ;;  %vm344_vm2 = vmand %vm203_vm0, %vm204_vm1 }
   0xd   : > { %s165_s17 = scalar_lea.vmem %s359_s0, %s284_s14  ;;  %s170_s24 = scalar_lea.vmem %s362_s3, %s284_s14 }
   0xe   : > { %v171_v1 = vld [vmem:[%s165_s17] sm:$0x7]  ;;  %v172_v2 = vld [vmem:[%s165_s17 + $0x4] sm:$0x7]  ;;  %v173_v6 = vld [vmem:[%s165_s17 + $0x8] sm:$0x7] }
   0xf   : > { %v175_v3 = vunpack.c.l.bf16 %v171_v1  ;;  %v176_v5 = vunpack.c.l.bf16 %v172_v2  ;;  %v177_v7 = vunpack.c.l.bf16 %v173_v6  ;;  %v174_v8 = vld [vmem:[%s165_s17 + $0xc] sm:$0x7]  ;;  %v206_v21 = vld [vmem:[%s170_s24] sm:$0x7]  ;;  %v209_v22 = vld [vmem:[%s170_s24 + $0x4] sm:$0x7] }
  0x10   : > { %v178_v11 = vunpack.c.l.bf16 %v174_v8  ;;  %v212_v26 = vld [vmem:[%s170_s24 + $0x8] sm:$0x7]  ;;  %v215_v29 = vld [vmem:[%s170_s24 + $0xc] sm:$0x7] }
  0x11   : > { %v183_v9 = vmul.f32 %v294_v0, %v175_v3  ;;  %v184_v10 = vmul.f32 %v294_v0, %v176_v5  ;;  %v185_v12 = vmul.f32 %v294_v0, %v177_v7 }
  0x12   : > { %v186_v15 = vmul.f32 %v294_v0, %v178_v11 }
  0x13   : > { %v191_v13 = vadd.f32 %v295_v4, %v183_v9  ;;  %v192_v14 = vadd.f32 %v295_v4, %v184_v10  ;;  %v193_v16 = vadd.f32 %v295_v4, %v185_v12 }
  0x14   : > { %v194_v19 = vadd.f32 %v295_v4, %v186_v15 }
  0x15   : > { %v195_v17 = vmax.f32 %v191_v13, 0.0  ;;  %v196_v18 = vmax.f32 %v192_v14, 0.0  ;;  %v197_v23 = vmax.f32 %v193_v16, 0.0 }
  0x16   : > { %v198_v27 = vmax.f32 %v194_v19, 0.0 }
  0x17   : > { %v199_v24 = vpack.c.bf16 %v195_v17, %v195_v17  ;;  %v200_v25 = vpack.c.bf16 %v196_v18, %v196_v18  ;;  %v201_v28 = vpack.c.bf16 %v197_v23, %v197_v23 }
  0x18   : > { %v202_v32 = vpack.c.bf16 %v198_v27, %v198_v27 }
  0x19   : > { %v207_v30 = vsel %vm344_vm2, %v199_v24, %v206_v21  ;;  %v210_v31 = vsel %vm344_vm2, %v200_v25, %v209_v22  ;;  %v213_v33 = vsel %vm344_vm2, %v201_v28, %v212_v26 }
  0x1a   : > { %208 = vst [vmem:[%s170_s24] sm:$0x7] %v207_v30  ;;  %v216_v34 = vsel %vm344_vm2, %v202_v32, %v215_v29 }
  0x1b   : > { %211 = vst [vmem:[%s170_s24 + $0x4] sm:$0x7] %v210_v31 }
  0x1c   : > { %214 = vst [vmem:[%s170_s24 + $0x8] sm:$0x7] %v213_v33 }
  0x1d   : > { %217 = vst [vmem:[%s170_s24 + $0xc] sm:$0x7] %v216_v34 }
  0x1e PF: > { %s13_s12 = sadd.s32 1, %s302_s12  }
  0x1f   : > { %p10_p4 = scmp.ge.s32.totalorder %s13_s12, 4  }
  0x21   :  { %12 = sbr.rel (!%p10_p4) target bundleno = 1 (0x1), region = 62 }

// kernel: resnet_forward.67
= control target key start
LH: loop header
LB: loop body
LE: loop exit
PB: predicated region body
PF: predicated region fallthrough
CT: control target
= control target key end

     0   :  { %s403_s15 = smov 0   ;;  %s441_s0 = inlined_call_operand.vmem [shape: bf16[2,4,5,32], index: 0, kind: input, shape index: {}]   ;;  %s442_s1 = inlined_call_operand.vmem [shape: f32[1,1,1,32], index: 1, kind: input, shape index: {}]   ;;  %s443_s2 = inlined_call_operand.vmem [shape: f32[1,1,1,32], index: 2, kind: input, shape index: {}]   ;;  %s444_s3 = inlined_call_operand.vmem [shape: bf16[2,4,5,32], index: 3, kind: input, shape index: {}]   ;;  %s445_s4 = inlined_call_operand.vmem [shape: bf16[2,4,5,32], index: 4, kind: output, shape index: {}]  }
   0x1 LB: > { %s344_s16 = sadd.s32 4294967295, %s376_s15   ;;  %p348_p0 = scmp.ge.s32.totalorder %s376_s15, 1  ;;  %s376_s15 = sphi %s403_s15, %s14_s15  }
   0x2   : > { %p172_p1 = scmp.lt.s32.totalorder %s376_s15, 3 }
   0x4   : > { %p173_p2 = pnand %p348_p0, %p172_p1 }
   0x5   : > { %p203_p3 = scmp.lt.s32.totalorder (!%p173_p2), %s344_s16, 1 }
   0x6   : > { %176 = sbr.rel (%p173_p2) target bundleno = 32 (0x20), region = 36 }
   0xb   : > { %s449_s16 = smov (!%p203_p3, %s344_s16), 1  ;;  %v368_v0 = vld [vmem:[%s442_s1] ss:$0 sm:$0xff]  ;;  %vm262_vm0 = vcmask 256000   ;;  %vm263_vm1 = vsmask.f32 2304 }
   0xc   : > { %s357_s17 = sshll.u32 %s449_s16, 4  ;;  %v369_v5 = vld [vmem:[%s443_s2] ss:$0 sm:$0xff]  ;;  %vm426_vm2 = vmand %vm262_vm0, %vm263_vm1 }
   0xd   : > { %s207_s20 = scalar_lea.vmem %s441_s0, %s357_s17  ;;  %s212_s23 = scalar_lea.vmem %s444_s3, %s357_s17 }
   0xe   : > { %v218_v1 = vld [vmem:[%s207_s20] sm:$0x7]  ;;  %v219_v3 = vld [vmem:[%s207_s20 + $0x4] sm:$0x7]  ;;  %v220_v9 = vld [vmem:[%s207_s20 + $0x8] sm:$0x7]  ;;  %s217_s30 = scalar_lea.vmem %s445_s4, %s357_s17 }
   0xf   : > { %v242_v2 = vld [vmem:[%s212_s23] sm:$0x7]  ;;  %v222_v4 = vunpack.c.l.bf16 %v218_v1  ;;  %v223_v6 = vunpack.c.l.bf16 %v219_v3  ;;  %v243_v7 = vld [vmem:[%s212_s23 + $0x4] sm:$0x7]  ;;  %v244_v10 = vld [vmem:[%s212_s23 + $0x8] sm:$0x7]  ;;  %v224_v14 = vunpack.c.l.bf16 %v220_v9 }
  0x10   : > { %v246_v8 = vunpack.c.l.bf16 %v242_v2  ;;  %v247_v13 = vunpack.c.l.bf16 %v243_v7  ;;  %v221_v15 = vld [vmem:[%s207_s20 + $0xc] sm:$0x7]  ;;  %v248_v21 = vunpack.c.l.bf16 %v244_v10  ;;  %v265_v32 = vld [vmem:[%s217_s30] sm:$0x7]  ;;  %v268_v33 = vld [vmem:[%s217_s30 + $0x4] sm:$0x7] }
  0x11   : > { %v230_v11 = vmul.f32 %v368_v0, %v222_v4  ;;  %v231_v12 = vmul.f32 %v368_v0, %v223_v6  ;;  %v245_v16 = vld [vmem:[%s212_s23 + $0xc] sm:$0x7]  ;;  %v225_v17 = vunpack.c.l.bf16 %v221_v15  ;;  %v232_v20 = vmul.f32 %v368_v0, %v224_v14  ;;  %v271_v38 = vld [vmem:[%s217_s30 + $0x8] sm:$0x7] }
  0x12   : > { %v249_v23 = vunpack.c.l.bf16 %v245_v16  ;;  %v274_v43 = vld [vmem:[%s217_s30 + $0xc] sm:$0x7] }
  0x13   : > { %v238_v18 = vadd.f32 %v369_v5, %v230_v11  ;;  %v239_v19 = vadd.f32 %v369_v5, %v231_v12  ;;  %v233_v22 = vmul.f32 %v368_v0, %v225_v17  ;;  %v240_v26 = vadd.f32 %v369_v5, %v232_v20 }
  0x15   : > { %v250_v24 = vadd.f32 %v246_v8, %v238_v18  ;;  %v251_v25 = vadd.f32 %v247_v13, %v239_v19  ;;  %v241_v27 = vadd.f32 %v369_v5, %v233_v22  ;;  %v252_v30 = vadd.f32 %v248_v21, %v240_v26 }
  0x17   : > { %v254_v28 = vmax.f32 %v250_v24, 0.0  ;;  %v255_v29 = vmax.f32 %v251_v25, 0.0  ;;  %v253_v34 = vadd.f32 %v249_v23, %v241_v27  ;;  %v256_v37 = vmax.f32 %v252_v30, 0.0 }
  0x19   : > { %v258_v35 = vpack.c.bf16 %v254_v28, %v254_v28  ;;  %v259_v36 = vpack.c.bf16 %v255_v29, %v255_v29  ;;  %v257_v39 = vmax.f32 %v253_v34, 0.0  ;;  %v260_v42 = vpack.c.bf16 %v256_v37, %v256_v37 }
  0x1b   : > { %v266_v40 = vsel %vm426_vm2, %v258_v35, %v265_v32  ;;  %v269_v41 = vsel %vm426_vm2, %v259_v36, %v268_v33  ;;  %v261_v44 = vpack.c.bf16 %v257_v39, %v257_v39  ;;  %v272_v45 = vsel %vm426_vm2, %v260_v42, %v271_v38 }
  0x1c   : > { %267 = vst [vmem:[%s217_s30] sm:$0x7] %v266_v40 }
  0x1d   : > { %270 = vst [vmem:[%s217_s30 + $0x4] sm:$0x7] %v269_v41  ;;  %v275_v46 = vsel %vm426_vm2, %v261_v44, %v274_v43 }
  0x1e   : > { %273 = vst [vmem:[%s217_s30 + $0x8] sm:$0x7] %v272_v45 }
  0x1f   : > { %276 = vst [vmem:[%s217_s30 + $0xc] sm:$0x7] %v275_v46 }
  0x20 PF: > { %s14_s15 = sadd.s32 1, %s376_s15  }
  0x21   : > { %p11_p4 = scmp.ge.s32.totalorder %s14_s15, 4  }
  0x23   :  { %13 = sbr.rel (!%p11_p4) target bundleno = 1 (0x1), region = 69 }

// kernel: resnet_forward.66
= control target key start
LH: loop header
LB: loop body
LE: loop exit
PB: predicated region body
PF: predicated region fallthrough
CT: control target
= control target key end

     0   :  { %s845_s15 = smov 0   ;;  %s1142_s0 = inlined_call_operand.vmem [shape: bf16[2,6,7,32], index: 0, kind: input, shape index: {}]   ;;  %s1143_s1 = inlined_call_operand.vmem [shape: bf16[288,32], index: 1, kind: input, shape index: {}]   ;;  %s1144_s2 = inlined_call_operand.vmem [shape: bf16[2,4,5,32], index: 2, kind: output, shape index: {0}]   ;;  %s1145_s3 = inlined_call_operand.vmem [shape: f32[2,1,32], index: 3, kind: output, shape index: {1}]   ;;  %s1146_s4 = inlined_call_operand.vmem [shape: f32[2,1,32], index: 4, kind: output, shape index: {2}]  }
   0x1 LB: > { %s641_s16 = sadd.s32 4294967295, %s803_s15   ;;  %p645_p0 = scmp.ge.s32.totalorder %s803_s15, 1  ;;  %s803_s15 = sphi %s845_s15, %s15_s15  }
   0x2   : > { %p167_p1 = scmp.lt.s32.totalorder %s803_s15, 3 }
   0x4   : > { %p168_p2 = pnand %p645_p0, %p167_p1 }
   0x5   : > { %p199_p3 = scmp.lt.s32.totalorder (!%p168_p2), %s641_s16, 1  ;;  %s1059_s14 = smov (!%p168_p2), 0  }
   0x6   : > { %171 = sbr.rel (%p168_p2) target bundleno = 311 (0x137), region = 28 }
   0xb   : > { %v856_v0 = vld [vmem:[%s1143_s1] sm:$0xf]  ;;  %v861_v1 = vld [vmem:[%s1143_s1] sm:$0xf0]  ;;  %v866_v2 = vld [vmem:[%s1143_s1 + $0x8] sm:$0xf] }
   0xc   : > { %v871_v3 = vld [vmem:[%s1143_s1 + $0x8] sm:$0xf0]  ;;  %v876_v4 = vld [vmem:[%s1143_s1 + $0x10] sm:$0xf]  ;;  %s1150_s16 = smov (!%p199_p3, %s641_s16), 1  ;;  %v1055_v36 = vmov 0.0  }
   0xd   : > { %v883_v5 = vld [vmem:[%s1143_s1 + $0x10] sm:$0xf0]  ;;  %v888_v6 = vld [vmem:[%s1143_s1 + $0x18] sm:$0xf]  ;;  %v893_v7 = vld [vmem:[%s1143_s1 + $0x18] sm:$0xf0]  ;;  %s211_s24 = scalar_lea.vmem %s1145_s3, %s1150_s16  ;;  %s214_s10 = scalar_lea.vmem %s1146_s4, %s1150_s16 }
   0xe   : > { %v898_v8 = vld [vmem:[%s1143_s1 + $0x20] sm:$0xf]  ;;  %v903_v9 = vld [vmem:[%s1143_s1 + $0x20] sm:$0xf0]  ;;  %s749_s11 = smul.u32 24, %s1150_s16  ;;  %s730_s12 = sshll.u32 %s1150_s16, 4 }
   0xf   : > { %v910_v10 = vld [vmem:[%s1143_s1 + $0x28] sm:$0xf]  ;;  %v915_v11 = vld [vmem:[%s1143_s1 + $0x28] sm:$0xf0]  ;;  %s920_s21 = scalar_lea.vmem %s1144_s2, %s730_s12  ;;  %v929_v12 = vld [vmem:[%s1143_s1 + $0x30] sm:$0xf] }
  0x10   : > { %v934_v13 = vld [vmem:[%s1143_s1 + $0x30] sm:$0xf0]  ;;  %v939_v14 = vld [vmem:[%s1143_s1 + $0x38] sm:$0xf]  ;;  %s944_s7 = scalar_lea.vmem %s1142_s0, %s749_s11  ;;  %v953_v15 = vld [vmem:[%s1143_s1 + $0x38] sm:$0xf0] }
  0x11   : > { %v958_v16 = vld [vmem:[%s1143_s1 + $0x40] sm:$0xf]  ;;  %v963_v17 = vld [vmem:[%s1143_s1 + $0x40] sm:$0xf0]  ;;  %v968_v18 = vld [vmem:[%s1143_s1 + $0x48] sm:$0xf] }
  0x12   : > { %v973_v19 = vld [vmem:[%s1143_s1 + $0x48] sm:$0xf0]  ;;  %v978_v20 = vld [vmem:[%s1143_s1 + $0x50] sm:$0xf]  ;;  %v983_v21 = vld [vmem:[%s1143_s1 + $0x50] sm:$0xf0] }
  0x13   : > { %v988_v22 = vld [vmem:[%s1143_s1 + $0x58] sm:$0xf]  ;;  %v993_v23 = vld [vmem:[%s1143_s1 + $0x58] sm:$0xf0]  ;;  %v998_v24 = vld [vmem:[%s1143_s1 + $0x60] sm:$0xf] }
  0x14   : > { %v1003_v25 = vld [vmem:[%s1143_s1 + $0x60] sm:$0xf0]  ;;  %v1008_v26 = vld [vmem:[%s1143_s1 + $0x68] sm:$0xf]  ;;  %v1013_v27 = vld [vmem:[%s1143_s1 + $0x68] sm:$0xf0] }
  0x15   : > { %v1018_v28 = vld [vmem:[%s1143_s1 + $0x70] sm:$0xf]  ;;  %v1023_v29 = vld [vmem:[%s1143_s1 + $0x70] sm:$0xf0]  ;;  %v1028_v30 = vld [vmem:[%s1143_s1 + $0x78] sm:$0xf] }
  0x16   : > { %v1033_v31 = vld [vmem:[%s1143_s1 + $0x78] sm:$0xf0]  ;;  %v1038_v32 = vld [vmem:[%s1143_s1 + $0x80] sm:$0xf]  ;;  %v1043_v33 = vld [vmem:[%s1143_s1 + $0x80] sm:$0xf0] }
  0x17   : > { %v1048_v34 = vld [vmem:[%s1143_s1 + $0x88] sm:$0xf]  ;;  %v1053_v35 = vld [vmem:[%s1143_s1 + $0x88] sm:$0xf0]  ;;  %v1057_v37 = vmov 0.0  }
  0x18 LB: >> { %v685_v38 = vor.u32 %v953_v15, %v939_v14  ;;  %v717_v39 = vor.u32 %v1033_v31, %v1028_v30  ;;  %s649_s17 = sshll.u32 %s815_s14, 2  ;;  %v681_v40 = vor.u32 %v934_v13, %v929_v12  ;;  %v713_v41 = vor.u32 %v1023_v29, %v1018_v28  ;;  %s817_s19 = smov 96   ;;  %s815_s14 = sphi %s1059_s14, %s257_s14   ;;  %v811_v37 = vphi %v1057_v37, %v1148_v37   ;;  %v807_v36 = vphi %v1055_v36, %v1147_v36  }
  0x19   : >> { %v725_v42 = vor.u32 %v1053_v35, %v1048_v34  ;;  %s261_s18 = scalar_lea.vmem %s944_s7, %s649_s17  ;;  %v721_v45 = vor.u32 %v1043_v33, %v1038_v32  ;;  %v677_v49 = vor.u32 %v915_v11, %v910_v10  ;;  %v709_v50 = vor.u32 %v1013_v27, %v1008_v26  ;;  %s818_s11 = smov 64  }
  0x1a   : >> { %446 = vmatpush.bf16.msra.mxu0 %v685_v38  ;;  %459 = vmatpush.bf16.msra.mxu1 %v717_v39  ;;  %v1084_v43 = vld [vmem:[%s261_s18] sm:$0xf]  ;;  %v651_v44 = vld [vmem:[%s261_s18 + $0x4] sm:$0xff]   ;;  %v673_v54 = vor.u32 %v903_v9, %v898_v8  ;;  %vm316_vm0 = vcmask 261120   ;;  %v705_v60 = vor.u32 %v1003_v25, %v998_v24  ;;  %s819_s20 = smov 32   ;;  %vm320_vm1 = vcmask 523264   ;;  %s487_s22 = scalar_lea.vmem %s920_s21, %s649_s17 }
  0x1b   : >> { %478 = vmatpush.bf16.msra.mxu2 %v725_v42  ;;  %v272_v46 = vunpack.c.l.b16 %v1084_v43  ;;  %v287_v47 = vunpack.c.l.b16 %v651_v44  ;;  %v302_v48 = vunpack.c.h.b16 %v651_v44  ;;  %v665_v42 = vor.u32 %v883_v5, %v876_v4  ;;  %s257_s14 = sadd.s32 1, %s815_s14  }
  0x1c   : >> { %vm323_vm2 = vcmask 785408   ;;  %vm488_vm3 = vcmask 256000   ;;  %vm489_vm4 = vsmask.f32 2304  ;;  %vm494_vm5 = vcmask 258048   ;;  %p254_p4 = scmp.ge.s32.totalorder %s257_s14, 4  }
  0x1d   : >> { %v273_v51 = vpack.c.b16 %v272_v46, %v272_v46  ;;  %v288_v52 = vpack.c.b16 %v287_v47, %v287_v47  ;;  %v303_v53 = vpack.c.b16 %v302_v48, %v302_v48  ;;  %v657_v46 = vor.u32 %v861_v1, %v856_v0  ;;  %vm490_vm6 = vmand %vm488_vm3, %vm489_vm4 }
  0x1e   : >> { %447 = vmatpush.bf16.msra.mxu0 %v681_v40  ;;  %460 = vmatpush.bf16.msra.mxu1 %v713_v41  ;;  %v669_v40 = vor.u32 %v893_v7, %v888_v6  ;;  %v701_v41 = vor.u32 %v993_v23, %v988_v22  ;;  %v697_v47 = vor.u32 %v983_v21, %v978_v20  ;;  %vm512_vm7 = vcmask (%p254_p4), 253952  }
  0x1f   : >> { %479 = vmatpush.bf16.msra.mxu2 %v721_v45  ;;  %v275_v55 = vshrl.u32 %v273_v51, 16  ;;  %v277_v56 = vshll.u32 %v273_v51, 16  ;;  %v283_v57 = vrot.slane %v273_v51, 1  ;;  %289 = vrot.lane.b32.xlu2 %v288_v52, %s817_s19  ;;  %v307_v58 = vshrl.u32 %v303_v53, 16 }
  0x20   : >> { %v309_v59 = vshll.u32 %v303_v53, 16  ;;  %v315_v61 = vrot.slane %v303_v53, 1  ;;  %v298_v44 = vrot.slane %v288_v52, 1  ;;  %v661_v45 = vor.u32 %v871_v3, %v866_v2 }
  0x21   : >> { %v279_v62 = vrot.slane %v277_v56, 1  ;;  %284 = vrot.lane.b32.xlu1 %v283_v57, %s818_s11  ;;  %v693_v48 = vor.u32 %v973_v19, %v968_v18  ;;  %v294_v51 = vshll.u32 %v288_v52, 16  ;;  %v292_v56 = vshrl.u32 %v288_v52, 16 }
  0x22   : >> { %448 = vmatpush.bf16.msra.mxu0 %v677_v49  ;;  %461 = vmatpush.bf16.msra.mxu1 %v709_v50  ;;  %v311_v63 = vrot.slane %v309_v59, 1  ;;  %v689_v49 = vor.u32 %v963_v17, %v958_v16 }
  0x23   : >> { %726 = vmatmul.msk.bf16.vlgmr.msra.gmra.mxu2 %vm316_vm0, %v315_v61  ;;  %v280_v38 = vor.u32 %v279_v62, %v275_v55  ;;  %v296_v57 = vrot.slane %v294_v51, 1 }
  0x24   : >> { %v312_v39 = vor.u32 %v311_v63, %v307_v58 }
  0x25   : >> { %281 = vrot.lane.b32.xlu0 %v280_v38, %s819_s20 }
  0x26   : >> { %449 = vmatpush.bf16.msra.mxu0 %v673_v54  ;;  %462 = vmatpush.bf16.msra.mxu1 %v705_v60  ;;  %v297_v60 = vor.u32 %v296_v57, %v292_v56 }
  0x27   : >> { %313 = vrot.lane.b32.xlu2 %v312_v39, %s817_s19 }
  0x29   : >> { %304 = vrot.lane.b32.xlu1 %v303_v53, %s818_s11 }
  0x2a   : >> { %450 = vmatpush.bf16.msra.mxu0 %v669_v40  ;;  %463 = vmatpush.bf16.msra.mxu1 %v701_v41 }
  0x2d   : >> { %299 = vrot.lane.b32.xlu0 %v298_v44, %s819_s20 }
  0x2e   : >> { %451 = vmatpush.bf16.msra.mxu0 %v665_v42  ;;  %464 = vmatpush.bf16.msra.mxu1 %v697_v47  ;;  %v491_v47 = vld [vmem:[%s487_s22] sm:$0x7] }
  0x32   : >> { %452 = vmatpush.bf16.msra.mxu0 %v661_v45  ;;  %465 = vmatpush.bf16.msra.mxu1 %v693_v48 }
  0x36   : >> { %453 = vmatpush.bf16.msra.mxu0 %v657_v46  ;;  %466 = vmatpush.bf16.msra.mxu1 %v689_v49 }
  0x79   : >> { %v290_v53 = vpop.permute.xlu2 %289 }
  0x81   : >> { %v314_v63 = vpop.permute.xlu2 %313 }
  0x93   : >> { %v285_v50 = vpop.permute.xlu1 %284 }
  0x97   : >> { %v282_v54 = vpop.permute.xlu0 %281 }
  0x98   : >> { %v319_v55 = vsel %vm316_vm0, %v1084_v43, %v282_v54 }
  0x99   : >> { %v322_v58 = vsel %vm320_vm1, %v319_v55, %v285_v50 }
  0x9a   : >> { %v325_v59 = vsel %vm323_vm2, %v322_v58, %v290_v53 }
  0x9b   : >> { %454 = vmatmul.bf16.vlgmr.msra.gmra.mxu0 %v325_v59  ;;  %v305_v61 = vpop.permute.xlu1 %304 }
  0x9f   : >> { %v300_v62 = vpop.permute.xlu0 %299 }
  0xa0   : >> { %v329_v38 = vsel %vm316_vm0, %v297_v60, %v300_v62 }
  0xa1   : >> { %v331_v39 = vsel %vm320_vm1, %v329_v38, %v305_v61 }
  0xa2   : >> { %v333_v40 = vsel %vm323_vm2, %v331_v39, %v314_v63 }
  0xa3   : >> { %467 = vmatmul.bf16.vlgmr.msra.gmra.mxu1 %v333_v40 }
  0xa6   : >> { %v481_v41 = vpop.f32.mrf.mxu2 }
  0xae   : >> { %v483_v42 = vpop.f32.mrf.mxu2 }
 0x118   : >> { %v455_v44 = vpop.f32.mrf.mxu0 }
 0x120   : >> { %v457_v43 = vpop.f32.mrf.mxu0  ;;  %v468_v52 = vpop.f32.mrf.mxu1 }
 0x121   : >> { %v469_v45 = vadd.f32 %v468_v52, %v455_v44 }
 0x123   : >> { %v482_v46 = vadd.f32 %v481_v41, %v469_v45 }
 0x125   : >> { %v485_v48 = vpack.c.bf16 %v482_v46, %v482_v46  ;;  %v495_v49 = vsel %vm494_vm5, %v482_v46, 0.0  ;;  %v503_v50 = vmul.f32 %v482_v46, %v482_v46 }
 0x126   : >> { %v496_v51 = vrot.slane %v495_v49, 4 }
 0x127   : >> { %v492_v53 = vsel %vm490_vm6, %v485_v48, %v491_v47  ;;  %v504_v54 = vsel %vm494_vm5, %v503_v50, 0.0 }
 0x128   : >> { %493 = vst [vmem:[%s487_s22] sm:$0x7] %v492_v53  ;;  %v497_v55 = vadd.f32 %v496_v51, %v495_v49  ;;  %v505_v56 = vrot.slane %v504_v54, 4  ;;  %v470_v57 = vpop.f32.mrf.mxu1 }
 0x12a   : >> { %v498_v58 = vrot.slane %v497_v55, 2  ;;  %v506_v59 = vadd.f32 %v505_v56, %v504_v54 }
 0x12c   : >> { %v499_v60 = vadd.f32 %v498_v58, %v497_v55  ;;  %v507_v61 = vrot.slane %v506_v59, 2 }
 0x12e   : >> { %v500_v62 = vrot.slane %v499_v60, 1  ;;  %v508_v63 = vadd.f32 %v507_v61, %v506_v59 }
 0x130   : >> { %v501_v38 = vadd.f32 %v500_v62, %v499_v60  ;;  %v509_v39 = vrot.slane %v508_v63, 1 }
 0x132   : >> { %v502_v40 = vadd.f32 %v811_v37, %v501_v38   ;;  %v510_v41 = vadd.f32 %v509_v39, %v508_v63  ;;  %256 = sbr.rel (!%p254_p4) target bundleno = 24 (0x18), region = 93 }
 0x134   : >> { %v511_v42 = vadd.f32 %v807_v36, %v510_v41   ;;  %v1148_v37 = vmov %v502_v40  ;;  %513 = vst.msk [vmem:[%s211_s24] sm:$0x1] (%p254_p4), %vm512_vm7, %v502_v40 }
 0x136   : >> { %v1147_v36 = vmov %v511_v42  ;;  %514 = vst.msk [vmem:[%s214_s10] sm:$0x1] (%p254_p4), %vm512_vm7, %v511_v42 }
 0x137 PF: > { %s15_s15 = sadd.s32 1, %s803_s15  }
 0x138   : > { %p12_p5 = scmp.ge.s32.totalorder %s15_s15, 4  }
 0x13a   :  { %14 = sbr.rel (!%p12_p5) target bundleno = 1 (0x1), region = 104 }

// kernel: resnet_forward.74
= control target key start
LH: loop header
LB: loop body
LE: loop exit
PB: predicated region body
PF: predicated region fallthrough
CT: control target
= control target key end

     0   :  { %s651_s15 = smov 0   ;;  %s818_s0 = inlined_call_operand.vmem [shape: bf16[2,4,7,32], index: 0, kind: input, shape index: {}]   ;;  %s819_s1 = inlined_call_operand.vmem [shape: bf16[128,32], index: 1, kind: input, shape index: {}]   ;;  %s820_s2 = inlined_call_operand.vmem [shape: bf16[2,2,6,32], index: 2, kind: output, shape index: {0}]   ;;  %s821_s3 = inlined_call_operand.vmem [shape: f32[2,1,32], index: 3, kind: output, shape index: {1}]   ;;  %s822_s4 = inlined_call_operand.vmem [shape: f32[2,1,32], index: 4, kind: output, shape index: {2}]  }
   0x1 LB: > { %s495_s16 = sadd.s32 4294967295, %s609_s15   ;;  %p499_p0 = scmp.ge.s32.totalorder %s609_s15, 1  ;;  %s609_s15 = sphi %s651_s15, %s15_s15  }
   0x2   : > { %p167_p1 = scmp.lt.s32.totalorder %s609_s15, 3 }
   0x4   : > { %p168_p2 = pnand %p499_p0, %p167_p1 }
   0x5   : > { %p199_p3 = scmp.lt.s32.totalorder (!%p168_p2), %s495_s16, 1  ;;  %s765_s13 = smov (!%p168_p2), 0  }
   0x6   : > { %171 = sbr.rel (%p168_p2) target bundleno = 300 (0x12c), region = 28 }
   0xb   : > { %v662_v0 = vld [vmem:[%s819_s1] sm:$0xf]  ;;  %v667_v1 = vld [vmem:[%s819_s1] sm:$0xf0]  ;;  %v672_v2 = vld [vmem:[%s819_s1 + $0x8] sm:$0xf] }
   0xc   : > { %v677_v3 = vld [vmem:[%s819_s1 + $0x8] sm:$0xf0]  ;;  %v682_v4 = vld [vmem:[%s819_s1 + $0x10] sm:$0xf]  ;;  %s826_s16 = smov (!%p199_p3, %s495_s16), 1  ;;  %v761_v16 = vmov 0.0  }
   0xd   : > { %v689_v5 = vld [vmem:[%s819_s1 + $0x10] sm:$0xf0]  ;;  %v694_v6 = vld [vmem:[%s819_s1 + $0x18] sm:$0xf]  ;;  %v699_v7 = vld [vmem:[%s819_s1 + $0x18] sm:$0xf0]  ;;  %s211_s7 = scalar_lea.vmem %s821_s3, %s826_s16  ;;  %s214_s10 = scalar_lea.vmem %s822_s4, %s826_s16 }
   0xe   : > { %v704_v8 = vld [vmem:[%s819_s1 + $0x20] sm:$0xf]  ;;  %v709_v9 = vld [vmem:[%s819_s1 + $0x20] sm:$0xf0]  ;;  %s544_s11 = sshll.u32 %s826_s16, 4  ;;  %s545_s12 = sshll.u32 %s826_s16, 3 }
   0xf   : > { %v716_v10 = vld [vmem:[%s819_s1 + $0x28] sm:$0xf]  ;;  %v721_v11 = vld [vmem:[%s819_s1 + $0x28] sm:$0xf0]  ;;  %s726_s21 = scalar_lea.vmem %s818_s0, %s544_s11  ;;  %s731_s24 = scalar_lea.vmem %s820_s2, %s545_s12  ;;  %v736_v12 = vld [vmem:[%s819_s1 + $0x30] sm:$0xf] }
  0x10   : > { %v741_v13 = vld [vmem:[%s819_s1 + $0x30] sm:$0xf0]  ;;  %v746_v14 = vld [vmem:[%s819_s1 + $0x38] sm:$0xf]  ;;  %v759_v15 = vld [vmem:[%s819_s1 + $0x38] sm:$0xf0] }
  0x11   : > { %v763_v17 = vmov 0.0  }
  0x12 LB: >> { %v540_v18 = vor.u32 %v759_v15, %v746_v14  ;;  %s554_s14 = sshll.u32 %s621_s13, 3  ;;  %v536_v19 = vor.u32 %v741_v13, %v736_v12  ;;  %v532_v24 = vor.u32 %v721_v11, %v716_v10  ;;  %v528_v31 = vor.u32 %v709_v9, %v704_v8  ;;  %s623_s18 = smov 32   ;;  %s621_s13 = sphi %s765_s13, %s236_s13   ;;  %v617_v17 = vphi %v763_v17, %v824_v17   ;;  %v613_v16 = vphi %v761_v16, %v823_v16  }
  0x13   : >> { %s241_s17 = scalar_lea.vmem %s726_s21, %s554_s14  ;;  %v524_v36 = vor.u32 %v699_v7, %v694_v6  ;;  %s624_s19 = smov 96   ;;  %v520_v37 = vor.u32 %v689_v5, %v682_v4  ;;  %v516_v38 = vor.u32 %v677_v3, %v672_v2  ;;  %v512_v39 = vor.u32 %v667_v1, %v662_v0 }
  0x14   : >> { %332 = vmatpush.bf16.msra.mxu0 %v540_v18  ;;  %v242_v20 = vld [vmem:[%s241_s17] sm:$0xf]  ;;  %v508_v21 = vld [vmem:[%s241_s17 + $0x4] sm:$0xf]  ;;  %s625_s20 = smov 64   ;;  %vm273_vm0 = vcmask 261120  }
  0x15   : >> { %v248_v22 = vunpack.c.l.b16 %v242_v20  ;;  %v260_v23 = vunpack.c.l.b16 %v508_v21  ;;  %vm277_vm1 = vcmask 523264   ;;  %vm280_vm2 = vcmask 785408   ;;  %s541_s22 = sshll.u32 %s621_s13, 2  ;;  %s236_s13 = sadd.s32 1, %s621_s13  }
  0x16   : >> { %vm350_vm3 = vcmask 259072   ;;  %s347_s23 = scalar_lea.vmem %s731_s24, %s541_s22  ;;  %vm348_vm4 = vcmask 256000   ;;  %p233_p4 = scmp.ge.s32.totalorder %s236_s13, 2  }
  0x17   : >> { %v249_v25 = vpack.c.b16 %v248_v22, %v248_v22  ;;  %v261_v26 = vpack.c.b16 %v260_v23, %v260_v23  ;;  %vm368_vm5 = vcmask (%p233_p4), 253952  }
  0x18   : >> { %333 = vmatpush.bf16.msra.mxu0 %v536_v19 }
  0x19   : >> { %v251_v27 = vshrl.u32 %v249_v25, 16  ;;  %v253_v28 = vshll.u32 %v249_v25, 16  ;;  %v265_v29 = vshrl.u32 %v261_v26, 16  ;;  %v267_v30 = vshll.u32 %v261_v26, 16 }
  0x1b   : >> { %v255_v32 = vrot.slane %v253_v28, 1  ;;  %v269_v33 = vrot.slane %v267_v30, 1 }
  0x1c   : >> { %334 = vmatpush.bf16.msra.mxu0 %v532_v24 }
  0x1d   : >> { %v256_v34 = vor.u32 %v255_v32, %v251_v27  ;;  %v270_v35 = vor.u32 %v269_v33, %v265_v29 }
  0x1f   : >> { %257 = vrot.lane.b32.xlu0 %v256_v34, %s623_s18  ;;  %271 = vrot.lane.b32.xlu1 %v270_v35, %s624_s19 }
  0x20   : >> { %335 = vmatpush.bf16.msra.mxu0 %v528_v31 }
  0x24   : >> { %336 = vmatpush.bf16.msra.mxu0 %v524_v36 }
  0x27   : >> { %262 = vrot.lane.b32.xlu0 %v261_v26, %s625_s20 }
  0x28   : >> { %337 = vmatpush.bf16.msra.mxu0 %v520_v37 }
  0x2c   : >> { %338 = vmatpush.bf16.msra.mxu0 %v516_v38 }
  0x30   : >> { %339 = vmatpush.bf16.msra.mxu0 %v512_v39 }
  0x91   : >> { %v258_v40 = vpop.permute.xlu0 %257  ;;  %v272_v41 = vpop.permute.xlu1 %271 }
  0x92   : >> { %v276_v42 = vsel %vm273_vm0, %v242_v20, %v258_v40 }
  0x99   : >> { %v263_v43 = vpop.permute.xlu0 %262 }
  0x9a   : >> { %v279_v44 = vsel %vm277_vm1, %v276_v42, %v263_v43 }
  0x9b   : >> { %v282_v45 = vsel %vm280_vm2, %v279_v44, %v272_v41 }
  0x9c   : >> { %340 = vmatmul.bf16.vlgmr.msra.gmra.mxu0 %v282_v45 }
 0x119   : >> { %v341_v46 = vpop.f32.mrf.mxu0 }
 0x11a   : >> { %v345_v47 = vpack.c.bf16 %v341_v46, %v341_v46  ;;  %v351_v48 = vsel %vm350_vm3, %v341_v46, 0.0  ;;  %v359_v49 = vmul.f32 %v341_v46, %v341_v46 }
 0x11b   : >> { %v352_v50 = vrot.slane %v351_v48, 4 }
 0x11c   : >> { %349 = vst.msk [vmem:[%s347_s23] sm:$0x7] %vm348_vm4, %v345_v47  ;;  %v360_v51 = vsel %vm350_vm3, %v359_v49, 0.0 }
 0x11d   : >> { %v353_v52 = vadd.f32 %v352_v50, %v351_v48  ;;  %v361_v53 = vrot.slane %v360_v51, 4 }
 0x11f   : >> { %v354_v54 = vrot.slane %v353_v52, 2  ;;  %v362_v55 = vadd.f32 %v361_v53, %v360_v51 }
 0x121   : >> { %v355_v56 = vadd.f32 %v354_v54, %v353_v52  ;;  %v363_v57 = vrot.slane %v362_v55, 2  ;;  %v343_v58 = vpop.f32.mrf.mxu0 }
 0x123   : >> { %v356_v59 = vrot.slane %v355_v56, 1  ;;  %v364_v60 = vadd.f32 %v363_v57, %v362_v55 }
 0x125   : >> { %v357_v61 = vadd.f32 %v356_v59, %v355_v56  ;;  %v365_v62 = vrot.slane %v364_v60, 1 }
 0x127   : >> { %v358_v63 = vadd.f32 %v617_v17, %v357_v61   ;;  %v366_v18 = vadd.f32 %v365_v62, %v364_v60  ;;  %235 = sbr.rel (!%p233_p4) target bundleno = 18 (0x12), region = 92 }
 0x129   : >> { %v367_v19 = vadd.f32 %v613_v16, %v366_v18   ;;  %v824_v17 = vmov %v358_v63  ;;  %369 = vst.msk [vmem:[%s211_s7] sm:$0x1] (%p233_p4), %vm368_vm5, %v358_v63 }
 0x12b   : >> { %v823_v16 = vmov %v367_v19  ;;  %370 = vst.msk [vmem:[%s214_s10] sm:$0x1] (%p233_p4), %vm368_vm5, %v367_v19 }
 0x12c PF: > { %s15_s15 = sadd.s32 1, %s609_s15  }
 0x12d   : > { %p12_p5 = scmp.ge.s32.totalorder %s15_s15, 4  }
 0x12f   :  { %14 = sbr.rel (!%p12_p5) target bundleno = 1 (0x1), region = 103 }

// kernel: resnet_forward.75
= control target key start
LH: loop header
LB: loop body
LE: loop exit
PB: predicated region body
PF: predicated region fallthrough
CT: control target
= control target key end

     0   :  { %s300_s12 = smov 0   ;;  %s323_s0 = inlined_call_operand.vmem [shape: bf16[2,2,6,32], index: 0, kind: input, shape index: {}]   ;;  %s324_s1 = inlined_call_operand.vmem [shape: f32[1,1,1,32], index: 1, kind: input, shape index: {}]   ;;  %s325_s2 = inlined_call_operand.vmem [shape: f32[1,1,1,32], index: 2, kind: input, shape index: {}]   ;;  %s326_s3 = inlined_call_operand.vmem [shape: bf16[2,2,6,32], index: 3, kind: output, shape index: {}]  }
   0x1 LB: > { %s249_s13 = sadd.s32 4294967295, %s278_s12   ;;  %p253_p0 = scmp.ge.s32.totalorder %s278_s12, 1  ;;  %s278_s12 = sphi %s300_s12, %s13_s12  }
   0x2   : > { %p137_p1 = scmp.lt.s32.totalorder %s278_s12, 3 }
   0x4   : > { %p138_p2 = pnand %p253_p0, %p137_p1 }
   0x5   : > { %p161_p3 = scmp.lt.s32.totalorder (!%p138_p2), %s249_s13, 1 }
   0x6   : > { %141 = sbr.rel (%p138_p2) target bundleno = 27 (0x1b), region = 32 }
   0xb   : > { %s328_s13 = smov (!%p161_p3, %s249_s13), 1  ;;  %v270_v0 = vld [vmem:[%s324_s1] ss:$0 sm:$0xff]  ;;  %vm191_vm0 = vcmask 256000  }
   0xc   : > { %s260_s14 = sshll.u32 %s328_s13, 3  ;;  %v271_v5 = vld [vmem:[%s325_s2] ss:$0 sm:$0xff] }
   0xd   : > { %s165_s17 = scalar_lea.vmem %s323_s0, %s260_s14  ;;  %s170_s24 = scalar_lea.vmem %s326_s3, %s260_s14 }
   0xe   : > { %v171_v1 = vld [vmem:[%s165_s17] sm:$0x7]  ;;  %v172_v2 = vld [vmem:[%s165_s17 + $0x4] sm:$0x7] }
   0xf   : > { %v173_v3 = vunpack.c.l.bf16 %v171_v1  ;;  %v174_v4 = vunpack.c.l.bf16 %v172_v2 }
  0x11   : > { %v179_v6 = vmul.f32 %v270_v0, %v173_v3  ;;  %v180_v7 = vmul.f32 %v270_v0, %v174_v4 }
  0x13   : > { %v185_v8 = vadd.f32 %v271_v5, %v179_v6  ;;  %v186_v9 = vadd.f32 %v271_v5, %v180_v7 }
  0x15   : > { %v187_v10 = vmax.f32 %v185_v8, 0.0  ;;  %v188_v11 = vmax.f32 %v186_v9, 0.0 }
  0x17   : > { %v189_v12 = vpack.c.bf16 %v187_v10, %v187_v10  ;;  %v190_v13 = vpack.c.bf16 %v188_v11, %v188_v11 }
  0x19   : > { %192 = vst.msk [vmem:[%s170_s24] sm:$0x7] %vm191_vm0, %v189_v12 }
  0x1a   : > { %193 = vst.msk [vmem:[%s170_s24 + $0x4] sm:$0x7] %vm191_vm0, %v190_v13 }
  0x1b PF: > { %s13_s12 = sadd.s32 1, %s278_s12  }
  0x1c   : > { %p10_p4 = scmp.ge.s32.totalorder %s13_s12, 4  }
  0x1e   :  { %12 = sbr.rel (!%p10_p4) target bundleno = 1 (0x1), region = 62 }

// kernel: resnet_forward.76
= control target key start
LH: loop header
LB: loop body
LE: loop exit
PB: predicated region body
PF: predicated region fallthrough
CT: control target
= control target key end

     0   :  { %s560_s15 = smov 0   ;;  %s613_s0 = inlined_call_operand.vmem [shape: bf16[2,2,6,32], index: 0, kind: input, shape index: {}]   ;;  %s614_s1 = inlined_call_operand.vmem [shape: bf16[128,32], index: 1, kind: input, shape index: {}]   ;;  %s615_s2 = inlined_call_operand.vmem [shape: bf16[2,1,5,32], index: 2, kind: output, shape index: {0}]   ;;  %s616_s3 = inlined_call_operand.vmem [shape: f32[2,1,32], index: 3, kind: output, shape index: {1}]   ;;  %s617_s4 = inlined_call_operand.vmem [shape: f32[2,1,32], index: 4, kind: output, shape index: {2}]  }
   0x1 LB: > { %s461_s16 = sadd.s32 4294967295, %s530_s15   ;;  %p465_p0 = scmp.ge.s32.totalorder %s530_s15, 1  ;;  %s530_s15 = sphi %s560_s15, %s15_s15  }
   0x2   : > { %p167_p1 = scmp.lt.s32.totalorder %s530_s15, 3 }
   0x4   : > { %p168_p2 = pnand %p465_p0, %p167_p1 }
   0x5   : > { %p198_p3 = scmp.lt.s32.totalorder (!%p168_p2), %s461_s16, 1  ;;  %s532_s5 = smov (!%p168_p2), 32  }
   0x6   : > { %171 = sbr.rel (%p168_p2) target bundleno = 292 (0x124), region = 28  ;;  %s533_s6 = smov (!%p168_p2), 96  }
   0x7   : > { %s534_s9 = smov (!%p168_p2), 64  }
   0xb   : > { %v512_v0 = vld [vmem:[%s614_s1 + $0x38] sm:$0xff]  ;;  %s619_s16 = smov (!%p198_p3, %s461_s16), 1  ;;  %v511_v1 = vld [vmem:[%s614_s1 + $0x30] sm:$0xff]  ;;  %v510_v4 = vld [vmem:[%s614_s1 + $0x28] sm:$0xff]  ;;  %vm258_vm0 = vcmask 261120   ;;  %vm262_vm1 = vcmask 523264  }
   0xc   : > { %317 = vmatpush.bf16.msra.mxu0 %v512_v0  ;;  %s504_s21 = sshll.u32 %s619_s16, 3  ;;  %v509_v9 = vld [vmem:[%s614_s1 + $0x20] sm:$0xff]  ;;  %v508_v16 = vld [vmem:[%s614_s1 + $0x18] sm:$0xff]  ;;  %v507_v19 = vld [vmem:[%s614_s1 + $0x10] sm:$0xff]  ;;  %vm265_vm2 = vcmask 785408   ;;  %s468_s14 = sshll.u32 %s619_s16, 2 }
   0xd   : > { %s202_s24 = scalar_lea.vmem %s613_s0, %s504_s21  ;;  %v506_v20 = vld [vmem:[%s614_s1 + $0x8] sm:$0xff]  ;;  %v505_v21 = vld [vmem:[%s614_s1] sm:$0xff]  ;;  %s206_s19 = scalar_lea.vmem %s615_s2, %s468_s14  ;;  %vm331_vm3 = vcmask 256000   ;;  %vm332_vm4 = vsmask.f32 2304  ;;  %vm337_vm5 = vcmask 258048  }
   0xe   : > { %v229_v2 = vld [vmem:[%s202_s24] sm:$0x7]  ;;  %v469_v3 = vld [vmem:[%s202_s24 + $0x4] sm:$0x7]  ;;  %vm333_vm6 = vmand %vm331_vm3, %vm332_vm4  ;;  %s209_s22 = scalar_lea.vmem %s616_s3, %s619_s16  ;;  %vm355_vm7 = vcmask 253952   ;;  %s212_s25 = scalar_lea.vmem %s617_s4, %s619_s16 }
   0xf   : > { %v233_v5 = vunpack.c.l.b16 %v229_v2  ;;  %v245_v6 = vunpack.c.l.b16 %v469_v3  ;;  %v334_v29 = vld [vmem:[%s206_s19] sm:$0x7] }
  0x10   : > { %318 = vmatpush.bf16.msra.mxu0 %v511_v1 }
  0x11   : > { %v234_v7 = vpack.c.b16 %v233_v5, %v233_v5  ;;  %v246_v8 = vpack.c.b16 %v245_v6, %v245_v6 }
  0x13   : > { %v236_v10 = vshrl.u32 %v234_v7, 16  ;;  %v238_v11 = vshll.u32 %v234_v7, 16  ;;  %v250_v12 = vshrl.u32 %v246_v8, 16  ;;  %v252_v13 = vshll.u32 %v246_v8, 16 }
  0x14   : > { %319 = vmatpush.bf16.msra.mxu0 %v510_v4 }
  0x15   : > { %v240_v14 = vrot.slane %v238_v11, 1  ;;  %v254_v15 = vrot.slane %v252_v13, 1 }
  0x17   : > { %v241_v17 = vor.u32 %v240_v14, %v236_v10  ;;  %v255_v18 = vor.u32 %v254_v15, %v250_v12 }
  0x18   : > { %320 = vmatpush.bf16.msra.mxu0 %v509_v9 }
  0x19   : > { %242 = vrot.lane.b32.xlu0 %v241_v17, %s532_s5  ;;  %256 = vrot.lane.b32.xlu1 %v255_v18, %s533_s6 }
  0x1c   : > { %321 = vmatpush.bf16.msra.mxu0 %v508_v16 }
  0x20   : > { %322 = vmatpush.bf16.msra.mxu0 %v507_v19 }
  0x21   : > { %247 = vrot.lane.b32.xlu0 %v246_v8, %s534_s9 }
  0x24   : > { %323 = vmatpush.bf16.msra.mxu0 %v506_v20 }
  0x28   : > { %324 = vmatpush.bf16.msra.mxu0 %v505_v21 }
  0x8b   : > { %v243_v22 = vpop.permute.xlu0 %242  ;;  %v257_v23 = vpop.permute.xlu1 %256 }
  0x8c   : > { %v261_v24 = vsel %vm258_vm0, %v229_v2, %v243_v22 }
  0x93   : > { %v248_v25 = vpop.permute.xlu0 %247 }
  0x94   : > { %v264_v26 = vsel %vm262_vm1, %v261_v24, %v248_v25 }
  0x95   : > { %v267_v27 = vsel %vm265_vm2, %v264_v26, %v257_v23 }
  0x96   : > { %325 = vmatmul.bf16.vlgmr.msra.gmra.mxu0 %v267_v27 }
 0x113   : > { %v326_v28 = vpop.f32.mrf.mxu0 }
 0x114   : > { %v330_v30 = vpack.c.bf16 %v326_v28, %v326_v28  ;;  %v338_v31 = vsel %vm337_vm5, %v326_v28, 0.0  ;;  %v346_v32 = vmul.f32 %v326_v28, %v326_v28 }
 0x115   : > { %v339_v33 = vrot.slane %v338_v31, 4 }
 0x116   : > { %v335_v34 = vsel %vm333_vm6, %v330_v30, %v334_v29  ;;  %v347_v35 = vsel %vm337_vm5, %v346_v32, 0.0 }
 0x117   : > { %336 = vst [vmem:[%s206_s19] sm:$0x7] %v335_v34  ;;  %v340_v36 = vadd.f32 %v339_v33, %v338_v31  ;;  %v348_v37 = vrot.slane %v347_v35, 4 }
 0x119   : > { %v341_v38 = vrot.slane %v340_v36, 2  ;;  %v349_v39 = vadd.f32 %v348_v37, %v347_v35 }
 0x11b   : > { %v342_v40 = vadd.f32 %v341_v38, %v340_v36  ;;  %v350_v41 = vrot.slane %v349_v39, 2  ;;  %v328_v42 = vpop.f32.mrf.mxu0 }
 0x11d   : > { %v343_v43 = vrot.slane %v342_v40, 1  ;;  %v351_v44 = vadd.f32 %v350_v41, %v349_v39 }
 0x11f   : > { %v344_v45 = vadd.f32 %v343_v43, %v342_v40  ;;  %v352_v46 = vrot.slane %v351_v44, 1 }
 0x121   : > { %v353_v47 = vadd.f32 %v352_v46, %v351_v44  ;;  %356 = vst.msk [vmem:[%s209_s22] sm:$0x1] %vm355_vm7, %v344_v45 }
 0x123   : > { %357 = vst.msk [vmem:[%s212_s25] sm:$0x1] %vm355_vm7, %v353_v47 }
 0x124 PF: > { %s15_s15 = sadd.s32 1, %s530_s15  }
 0x125   : > { %p12_p4 = scmp.ge.s32.totalorder %s15_s15, 4  }
 0x127   :  { %14 = sbr.rel (!%p12_p4) target bundleno = 1 (0x1), region = 83 }

// kernel: resnet_forward.77
= control target key start
LH: loop header
LB: loop body
LE: loop exit
PB: predicated region body
PF: predicated region fallthrough
CT: control target
= control target key end

     0   :  { %s286_s12 = smov 0   ;;  %s303_s0 = inlined_call_operand.vmem [shape: bf16[2,1,5,32], index: 0, kind: input, shape index: {}]   ;;  %s304_s1 = inlined_call_operand.vmem [shape: f32[1,1,1,32], index: 1, kind: input, shape index: {}]   ;;  %s305_s2 = inlined_call_operand.vmem [shape: f32[1,1,1,32], index: 2, kind: input, shape index: {}]   ;;  %s306_s3 = inlined_call_operand.vmem [shape: bf16[2,1,5,32], index: 3, kind: output, shape index: {}]  }
   0x1 LB: > { %s239_s13 = sadd.s32 4294967295, %s264_s12   ;;  %p243_p0 = scmp.ge.s32.totalorder %s264_s12, 1  ;;  %s264_s12 = sphi %s286_s12, %s13_s12  }
   0x2   : > { %p136_p1 = scmp.lt.s32.totalorder %s264_s12, 3 }
   0x4   : > { %p137_p2 = pnand %p243_p0, %p136_p1 }
   0x5   : > { %p158_p3 = scmp.lt.s32.totalorder (!%p137_p2), %s239_s13, 1 }
   0x6   : > { %140 = sbr.rel (%p137_p2) target bundleno = 27 (0x1b), region = 32 }
   0xb   : > { %s308_s13 = smov (!%p158_p3, %s239_s13), 1  ;;  %v256_v0 = vld [vmem:[%s304_s1] ss:$0 sm:$0xff]  ;;  %vm180_vm0 = vcmask 256000   ;;  %vm181_vm1 = vsmask.f32 2304 }
   0xc   : > { %s244_s14 = sshll.u32 %s308_s13, 2  ;;  %v257_v3 = vld [vmem:[%s305_s2] ss:$0 sm:$0xff]  ;;  %vm182_vm2 = vmand %vm180_vm0, %vm181_vm1 }
   0xd   : > { %s161_s17 = scalar_lea.vmem %s303_s0, %s244_s14  ;;  %s165_s24 = scalar_lea.vmem %s306_s3, %s244_s14 }
   0xe   : > { %v166_v1 = vld [vmem:[%s161_s17] sm:$0x7] }
   0xf   : > { %v167_v2 = vunpack.c.l.bf16 %v166_v1  ;;  %v183_v7 = vld [vmem:[%s165_s24] sm:$0x7] }
  0x11   : > { %v172_v4 = vmul.f32 %v256_v0, %v167_v2 }
  0x13   : > { %v177_v5 = vadd.f32 %v257_v3, %v172_v4 }
  0x15   : > { %v178_v6 = vmax.f32 %v177_v5, 0.0 }
  0x17   : > { %v179_v8 = vpack.c.bf16 %v178_v6, %v178_v6 }
  0x19   : > { %v184_v9 = vsel %vm182_vm2, %v179_v8, %v183_v7 }
  0x1a   : > { %185 = vst [vmem:[%s165_s24] sm:$0x7] %v184_v9 }
  0x1b PF: > { %s13_s12 = sadd.s32 1, %s264_s12  }
  0x1c   : > { %p10_p4 = scmp.ge.s32.totalorder %s13_s12, 4  }
  0x1e   :  { %12 = sbr.rel (!%p10_p4) target bundleno = 1 (0x1), region = 62 }

</bundles_post_ra>
